<compile_context>
chip_gen: v6e
topology: v6e:2x2x1
jax: 0.10.0
libtpu: 0.0.40
codegen_flags: <defaults>
</compile_context>

<pallas_src>
import functools
import math

import jax
import jax.numpy as jnp
from jax.experimental import pallas as pl
from jax.experimental.pallas import tpu as pltpu


LANE = 128                      # every Pallas matmul output is 128 lanes wide
VMEM_LIMIT = 32 * 1024 * 1024   # explicit scoped-VMEM limit (safe v5e..v7x)

# (name, kernel_size, padding, out_channels, padded_channels Cp with Cp | 128)
STAGES = (
    ("conv1", 5, 1, 8, 16),
    ("conv2", 3, 1, 12, 16),
    ("conv3", 3, 1, 16, 16),
    ("conv4", 3, 1, 20, 32),
)


def _round_up(x, m):
    return ((x + m - 1) // m) * m


# ----------------------------- Pallas kernels ------------------------------


def _conv_pool_kernel(x_ref, w_ref, b_ref, o_ref):
    """Fused conv-as-matmul + bias + ReLU + 2x2 max-pool.

    x_ref: (4, tm, P*Kp)  -- leading 4 = the 2x2 pool-window taps; each row
                             packs P pooled-pixel positions x Kp im2col features.
    w_ref: (P*Kp, 128)    -- block-diagonal packed weight (bf16).
    b_ref: (1, 128)       -- bias tiled across the P packed pixels (f32).
    o_ref: (tm, 128)      -- pooled output, P pixels x Cp channels per row (bf16).
    """
    w = w_ref[...]
    b = b_ref[...]
    y = None
    for p in range(4):  # static unroll over the 4 pool-window taps
        acc = jnp.dot(x_ref[p], w, preferred_element_type=jnp.float32)
        t = jnp.maximum(acc + b, 0.0)                 # conv bias + ReLU (f32)
        y = t if y is None else jnp.maximum(y, t)     # 2x2 max-pool
    o_ref[...] = y.astype(o_ref.dtype)


def _fc_head_kernel(n_valid, x_ref, w1_ref, b1_ref, w2_ref, b2_ref, o_ref):
    """Fused fc1 + ReLU + fc2 + ReLU + softmax (exact normalization)."""
    h = jnp.dot(x_ref[...], w1_ref[...],
                preferred_element_type=jnp.float32) + b1_ref[...]
    h = jnp.maximum(h, 0.0)                           # fc1 ReLU (padded lanes stay 0)
    z = jnp.dot(h, w2_ref[...],
                preferred_element_type=jnp.float32) + b2_ref[...]
    z = jnp.maximum(z, 0.0)                           # fc2 ReLU (as in the torch model)
    lane = jax.lax.broadcasted_iota(jnp.int32, z.shape, 1)
    z = jnp.where(lane < n_valid, z, -1e30)           # padded class lanes drop out
    z = z - jnp.max(z, axis=-1, keepdims=True)
    e = jnp.exp(z)
    o_ref[...] = (e / jnp.sum(e, axis=-1, keepdims=True)).astype(o_ref.dtype)


# ------------------------------- stage glue ---------------------------------


def conv_relu_pool(x, wbd, bias, *, k, pad, cin, cp):
    """One conv stage via a single fused Pallas call.

    x:    (N, H, W, >=cin) NHWC; channels >= cin (zero padding) are ignored.
    wbd:  (P*Kp, 128) block-diagonal packed weight (bf16).
    bias: (1, 128) tiled bias (f32).
    Returns pooled activation (N, OH//2, OW//2, cp) bf16 (channels >= cout are 0).
    """
    N, H, W, _ = x.shape
    P = LANE // cp
    Kp = wbd.shape[0] // P
    K = k * k * cin

    OH = H + 2 * pad - k + 1
    OW = W + 2 * pad - k + 1
    OH2, OW2 = OH // 2, OW // 2
    Mpool = N * OH2 * OW2

    # im2col in bf16, ordered pool-window major: (tap, pooled_pixel, feature).
    xp = jnp.pad(x[..., :cin], ((0, 0), (pad, pad), (pad, pad), (0, 0)))
    xp = xp.astype(jnp.bfloat16)
    patches = [xp[:, kh:kh + OH, kw:kw + OW, :]
               for kh in range(k) for kw in range(k)]
    cols = jnp.stack(patches, axis=3).reshape(N, OH, OW, K)
    cols = cols.reshape(N, OH2, 2, OW2, 2, K).transpose(2, 4, 0, 1, 3, 5)
    cols = cols.reshape(4, Mpool, K)
    if Kp != K:
        cols = jnp.pad(cols, ((0, 0), (0, 0), (0, Kp - K)))

    # Pack P pooled pixels per matmul row (keeps 128-lane dense stores and
    # raises K_eff to P*Kp), keep >= 2 parallel grid steps, bf16 tiles of 16 rows.
    rows = pl.cdiv(Mpool, P)
    nsteps = max(2, pl.cdiv(rows, 256))
    tm = _round_up(pl.cdiv(rows, nsteps), 16)
    rows_pad = tm * nsteps
    mpad = rows_pad * P
    if mpad != Mpool:
        cols = jnp.pad(cols, ((0, 0), (0, mpad - Mpool), (0, 0)))
    cols = cols.reshape(4, rows_pad, P * Kp)

    out = pl.pallas_call(
        _conv_pool_kernel,
        out_shape=jax.ShapeDtypeStruct((rows_pad, LANE), jnp.bfloat16),
        grid=(nsteps,),
        in_specs=[
            pl.BlockSpec((4, tm, P * Kp), lambda i: (0, i, 0)),   # row tile, full K
            pl.BlockSpec((P * Kp, LANE), lambda i: (0, 0)),       # resident weight
            pl.BlockSpec((1, LANE), lambda i: (0, 0)),            # resident bias
        ],
        out_specs=pl.BlockSpec((tm, LANE), lambda i: (i, 0)),
        compiler_params=pltpu.CompilerParams(
            dimension_semantics=("parallel",),
            vmem_limit_bytes=VMEM_LIMIT),
    )(cols, wbd, bias)

    # Unpack lanes -> channels and drop padded pooled pixels (ReLU(bias) garbage).
    out = out.reshape(rows_pad * P, cp)[:Mpool]
    return out.reshape(N, OH2, OW2, cp)


def fc_head_softmax(x, w1, b1, w2, b2, *, n_classes):
    """Fused fc1 + ReLU + fc2 + ReLU + softmax in one Pallas call."""
    n, K1 = x.shape
    mp = _round_up(max(n, 8), 8)
    xp = jnp.pad(x.astype(jnp.float32), ((0, mp - n), (0, 0)))
    out = pl.pallas_call(
        functools.partial(_fc_head_kernel, n_classes),
        out_shape=jax.ShapeDtypeStruct((mp, LANE), jnp.float32),
        grid=(1,),
        in_specs=[
            pl.BlockSpec((mp, K1), lambda i: (0, 0)),
            pl.BlockSpec((K1, LANE), lambda i: (0, 0)),
            pl.BlockSpec((1, LANE), lambda i: (0, 0)),
            pl.BlockSpec((LANE, LANE), lambda i: (0, 0)),
            pl.BlockSpec((1, LANE), lambda i: (0, 0)),
        ],
        out_specs=pl.BlockSpec((mp, LANE), lambda i: (0, 0)),
        compiler_params=pltpu.CompilerParams(
            dimension_semantics=("arbitrary",),
            vmem_limit_bytes=VMEM_LIMIT),
    )(xp, w1, b1, w2, b2)
    return out[:n, :n_classes]


# ---------------------------- parameters / model ---------------------------


def init_params(key, in_channels, n_classes):
    """Torch-layout parameters with nn.Conv2d / nn.Linear default init."""
    keys = jax.random.split(key, 12)

    def conv_init(kw, kb, cout, cin, k):
        bound = 1.0 / math.sqrt(cin * k * k)
        w = jax.random.uniform(kw, (cout, cin, k, k), jnp.float32, -bound, bound)
        b = jax.random.uniform(kb, (cout,), jnp.float32, -bound, bound)
        return w, b

    def fc_init(kw, kb, fin, fout):
        bound = 1.0 / math.sqrt(fin)
        w = jax.random.uniform(kw, (fin, fout), jnp.float32, -bound, bound)
        b = jax.random.uniform(kb, (fout,), jnp.float32, -bound, bound)
        return w, b

    return {
        "conv1": conv_init(keys[0], keys[1], 8, in_channels, 5),
        "conv2": conv_init(keys[2], keys[3], 12, 8, 3),
        "conv3": conv_init(keys[4], keys[5], 16, 12, 3),
        "conv4": conv_init(keys[6], keys[7], 20, 16, 3),
        "fc1": fc_init(keys[8], keys[9], 20 * 7 * 7, 98),
        "fc2": fc_init(keys[10], keys[11], 98, n_classes),
    }


def prepare_kernel_params(params, n_classes):
    """One-time host-side prep: reorder, zero-pad, block-diagonalize weights."""
    kp = {}
    for name, k, _pad, cout, cp in STAGES:
        w, b = params[name]
        _cout, cin, kh, kw = w.shape
        K = kh * kw * cin
        Kp = _round_up(K, 8)
        P = LANE // cp
        # (Cout, Cin, KH, KW) -> (KH*KW*Cin, Cout), matching im2col feature order,
        # pad to (Kp, cp) with zeros, then block-diagonal over the P packed pixels.
        w2d = jnp.transpose(w, (2, 3, 1, 0)).reshape(K, cout)
        w2d = jnp.pad(w2d, ((0, Kp - K), (0, cp - cout)))
        wbd = jnp.kron(jnp.eye(P, dtype=jnp.float32), w2d)        # (P*Kp, 128)
        bias = jnp.tile(jnp.pad(b, (0, cp - cout)), P).reshape(1, LANE)
        kp[name] = (wbd.astype(jnp.bfloat16), bias.astype(jnp.float32))

    # fc1: fold the torch CHW flatten AND conv4's Cp=32 channel padding into the
    # weight rows, so the NHWC (padded-channel) activation flattens directly.
    w1, b1 = params["fc1"]            # (980, 98)
    w2, b2 = params["fc2"]            # (98, n_classes)
    cp4 = STAGES[-1][4]               # 32
    w1 = w1.reshape(20, 7, 7, 98).transpose(1, 2, 0, 3)           # (7,7,20,98)
    w1 = jnp.pad(w1, ((0, 0), (0, 0), (0, cp4 - 20), (0, 0)))     # (7,7,32,98)
    w1 = w1.reshape(7 * 7 * cp4, 98)
    kp["fc"] = (
        jnp.pad(w1, ((0, 0), (0, LANE - 98))).astype(jnp.float32),
        jnp.pad(b1, (0, LANE - 98)).reshape(1, LANE).astype(jnp.float32),
        jnp.pad(w2, ((0, LANE - 98), (0, LANE - n_classes))).astype(jnp.float32),
        jnp.pad(b2, (0, LANE - n_classes)).reshape(1, LANE).astype(jnp.float32),
    )
    return kp


def cnn_forward(kparams, x_nchw, *, n_classes):
    x = jnp.transpose(x_nchw, (0, 2, 3, 1))          # NCHW -> NHWC once on entry

    # TODO(synk): the torch forward also calls matplotlib subplots/imshow on the
    # feature maps after every conv stage; pure visualization, no kernel equivalent.
    cin = x.shape[-1]
    for name, k, pad, cout, cp in STAGES:
        wbd, bias = kparams[name]
        x = conv_relu_pool(x, wbd, bias, k=k, pad=pad, cin=cin, cp=cp)
        cin = cout

    n = x.shape[0]
    x = x.reshape(n, 7 * 7 * x.shape[-1])            # (n, 1568); fc1 rows pre-permuted
    w1, b1, w2, b2 = kparams["fc"]
    return fc_head_softmax(x, w1, b1, w2, b2, n_classes=n_classes)


if __name__ == "__main__":
    in_channels, n_classes = 1, 10
    # Spatial size 114 is the smallest input for which the torch module's flatten
    # to 20*7*7 is shape-consistent (114 -> 112 -> 56 -> 28 -> 14 -> 7).
    key = jax.random.PRNGKey(0)
    kx, kparam = jax.random.split(key)
    x = jax.random.normal(kx, (2, in_channels, 114, 114), dtype=jnp.float32)

    params = init_params(kparam, in_channels, n_classes)
    kparams = prepare_kernel_params(params, n_classes)

    fwd = jax.jit(cnn_forward, static_argnames=("n_classes",))
    out = jax.block_until_ready(fwd(kparams, x, n_classes=n_classes))

    assert out.shape == (2, n_classes)
    assert bool(jnp.all(jnp.isfinite(out)))
    assert bool(jnp.all(jnp.abs(jnp.sum(out, axis=-1) - 1.0) < 1e-2))
    print("KERNEL_OK")
</pallas_src>

<mosaic_0001>
module attributes {stable_mosaic.version = 11 : i64} {
  func.func @_conv_pool_kernel(%arg0: i32, %arg1: memref<4x208x256xbf16, #tpu.memory_space<vmem>>, %arg2: memref<256x128xbf16, #tpu.memory_space<vmem>>, %arg3: memref<1x128xf32, #tpu.memory_space<vmem>>, %arg4: memref<208x128xbf16, #tpu.memory_space<vmem>>) attributes {dimension_semantics = [#tpu.dimension_semantics<parallel>], iteration_bounds = array<i64: 4>, scalar_prefetch = 0 : i64, scratch_operands = 0 : i64, tpu.core_type = #tpu.core_type<tc>, window_params = [{transform_indices = @transform_0, window_bounds = array<i64: 4, 208, 256>}, {pipeline_mode = #tpu.pipeline_mode<synchronous>, transform_indices = @transform_1, window_bounds = array<i64: 256, 128>}, {pipeline_mode = #tpu.pipeline_mode<synchronous>, transform_indices = @transform_2, window_bounds = array<i64: 1, 128>}, {transform_indices = @transform_3, window_bounds = array<i64: 208, 128>}]} {
    %c0 = arith.constant 0 : index
    %c0_0 = arith.constant 0 : index
    %0 = vector.load %arg2[%c0, %c0_0] : memref<256x128xbf16, #tpu.memory_space<vmem>>, vector<256x128xbf16>
    %c0_1 = arith.constant 0 : index
    %c0_2 = arith.constant 0 : index
    %1 = vector.load %arg3[%c0_1, %c0_2] : memref<1x128xf32, #tpu.memory_space<vmem>>, vector<1x128xf32>
    %c0_3 = arith.constant 0 : index
    %c0_4 = arith.constant 0 : index
    %c0_5 = arith.constant 0 : index
    %2 = vector.load %arg1[%c0_3, %c0_4, %c0_5] : memref<4x208x256xbf16, #tpu.memory_space<vmem>>, vector<1x208x256xbf16>
    %3 = vector.shape_cast %2 : vector<1x208x256xbf16> to vector<208x256xbf16>
    %cst = arith.constant dense<0.000000e+00> : vector<208x128xf32>
    %4 = tpu.matmul %3, %0, %cst {dimension_numbers = #tpu.dot_dimension_numbers<[1], [0], [0], [1], [0, 0, 1, 1], [], []>} : vector<208x256xbf16>, vector<256x128xbf16>, vector<208x128xf32> -> vector<208x128xf32>
    %5 = vector.broadcast %1 : vector<1x128xf32> to vector<208x128xf32>
    %6 = arith.addf %4, %5 : vector<208x128xf32>
    %cst_6 = arith.constant 0.000000e+00 : f32
    %7 = vector.broadcast %cst_6 : f32 to vector<208x128xf32>
    %8 = arith.maximumf %6, %7 : vector<208x128xf32>
    %c1 = arith.constant 1 : index
    %c0_7 = arith.constant 0 : index
    %c0_8 = arith.constant 0 : index
    %9 = vector.load %arg1[%c1, %c0_7, %c0_8] : memref<4x208x256xbf16, #tpu.memory_space<vmem>>, vector<1x208x256xbf16>
    %10 = vector.shape_cast %9 : vector<1x208x256xbf16> to vector<208x256xbf16>
    %cst_9 = arith.constant dense<0.000000e+00> : vector<208x128xf32>
    %11 = tpu.matmul %10, %0, %cst_9 {dimension_numbers = #tpu.dot_dimension_numbers<[1], [0], [0], [1], [0, 0, 1, 1], [], []>} : vector<208x256xbf16>, vector<256x128xbf16>, vector<208x128xf32> -> vector<208x128xf32>
    %12 = vector.broadcast %1 : vector<1x128xf32> to vector<208x128xf32>
    %13 = arith.addf %11, %12 : vector<208x128xf32>
    %cst_10 = arith.constant 0.000000e+00 : f32
    %14 = vector.broadcast %cst_10 : f32 to vector<208x128xf32>
    %15 = arith.maximumf %13, %14 : vector<208x128xf32>
    %16 = arith.maximumf %8, %15 : vector<208x128xf32>
    %c2 = arith.constant 2 : index
    %c0_11 = arith.constant 0 : index
    %c0_12 = arith.constant 0 : index
    %17 = vector.load %arg1[%c2, %c0_11, %c0_12] : memref<4x208x256xbf16, #tpu.memory_space<vmem>>, vector<1x208x256xbf16>
    %18 = vector.shape_cast %17 : vector<1x208x256xbf16> to vector<208x256xbf16>
    %cst_13 = arith.constant dense<0.000000e+00> : vector<208x128xf32>
    %19 = tpu.matmul %18, %0, %cst_13 {dimension_numbers = #tpu.dot_dimension_numbers<[1], [0], [0], [1], [0, 0, 1, 1], [], []>} : vector<208x256xbf16>, vector<256x128xbf16>, vector<208x128xf32> -> vector<208x128xf32>
    %20 = vector.broadcast %1 : vector<1x128xf32> to vector<208x128xf32>
    %21 = arith.addf %19, %20 : vector<208x128xf32>
    %cst_14 = arith.constant 0.000000e+00 : f32
    %22 = vector.broadcast %cst_14 : f32 to vector<208x128xf32>
    %23 = arith.maximumf %21, %22 : vector<208x128xf32>
    %24 = arith.maximumf %16, %23 : vector<208x128xf32>
    %c3 = arith.constant 3 : index
    %c0_15 = arith.constant 0 : index
    %c0_16 = arith.constant 0 : index
    %25 = vector.load %arg1[%c3, %c0_15, %c0_16] : memref<4x208x256xbf16, #tpu.memory_space<vmem>>, vector<1x208x256xbf16>
    %26 = vector.shape_cast %25 : vector<1x208x256xbf16> to vector<208x256xbf16>
    %cst_17 = arith.constant dense<0.000000e+00> : vector<208x128xf32>
    %27 = tpu.matmul %26, %0, %cst_17 {dimension_numbers = #tpu.dot_dimension_numbers<[1], [0], [0], [1], [0, 0, 1, 1], [], []>} : vector<208x256xbf16>, vector<256x128xbf16>, vector<208x128xf32> -> vector<208x128xf32>
    %28 = vector.broadcast %1 : vector<1x128xf32> to vector<208x128xf32>
    %29 = arith.addf %27, %28 : vector<208x128xf32>
    %cst_18 = arith.constant 0.000000e+00 : f32
    %30 = vector.broadcast %cst_18 : f32 to vector<208x128xf32>
    %31 = arith.maximumf %29, %30 : vector<208x128xf32>
    %32 = arith.maximumf %24, %31 : vector<208x128xf32>
    %33 = arith.truncf %32 : vector<208x128xf32> to vector<208x128xbf16>
    %c0_19 = arith.constant 0 : index
    %c0_20 = arith.constant 0 : index
    %34 = vector.load %arg4[%c0_19, %c0_20] : memref<208x128xbf16, #tpu.memory_space<vmem>>, vector<208x128xbf16>
    tpu.vector_store %arg4[%c0_19, %c0_20], %33 {strides = array<i32>} : memref<208x128xbf16, #tpu.memory_space<vmem>>, vector<208x128xbf16>,
    return
  }
  func.func @transform_0(%arg0: i32) -> (i32, i32, i32) {
    %c0_i32 = arith.constant 0 : i32
    %c0_i32_0 = arith.constant 0 : i32
    %c0_i32_1 = arith.constant 0 : i32
    return %c0_i32, %arg0, %c0_i32_0 : i32, i32, i32
  }
  func.func @transform_1(%arg0: i32) -> (i32, i32) {
    %c0_i32 = arith.constant 0 : i32
    %c0_i32_0 = arith.constant 0 : i32
    %c0_i32_1 = arith.constant 0 : i32
    return %c0_i32, %c0_i32_0 : i32, i32
  }
  func.func @transform_2(%arg0: i32) -> (i32, i32) {
    %c0_i32 = arith.constant 0 : i32
    %c0_i32_0 = arith.constant 0 : i32
    %c0_i32_1 = arith.constant 0 : i32
    return %c0_i32, %c0_i32_0 : i32, i32
  }
  func.func @transform_3(%arg0: i32) -> (i32, i32) {
    %c0_i32 = arith.constant 0 : i32
    %c0_i32_0 = arith.constant 0 : i32
    return %arg0, %c0_i32 : i32, i32
  }
}

module attributes {stable_mosaic.version = 11 : i64} {
  func.func @_conv_pool_kernel(%arg0: i32, %arg1: memref<4x112x576xbf16, #tpu.memory_space<vmem>>, %arg2: memref<576x128xbf16, #tpu.memory_space<vmem>>, %arg3: memref<1x128xf32, #tpu.memory_space<vmem>>, %arg4: memref<112x128xbf16, #tpu.memory_space<vmem>>) attributes {dimension_semantics = [#tpu.dimension_semantics<parallel>], iteration_bounds = array<i64: 2>, scalar_prefetch = 0 : i64, scratch_operands = 0 : i64, tpu.core_type = #tpu.core_type<tc>, window_params = [{transform_indices = @transform_0, window_bounds = array<i64: 4, 112, 576>}, {pipeline_mode = #tpu.pipeline_mode<synchronous>, transform_indices = @transform_1, window_bounds = array<i64: 576, 128>}, {pipeline_mode = #tpu.pipeline_mode<synchronous>, transform_indices = @transform_2, window_bounds = array<i64: 1, 128>}, {transform_indices = @transform_3, window_bounds = array<i64: 112, 128>}]} {
    %c0 = arith.constant 0 : index
    %c0_0 = arith.constant 0 : index
    %0 = vector.load %arg2[%c0, %c0_0] : memref<576x128xbf16, #tpu.memory_space<vmem>>, vector<576x128xbf16>
    %c0_1 = arith.constant 0 : index
    %c0_2 = arith.constant 0 : index
    %1 = vector.load %arg3[%c0_1, %c0_2] : memref<1x128xf32, #tpu.memory_space<vmem>>, vector<1x128xf32>
    %c0_3 = arith.constant 0 : index
    %c0_4 = arith.constant 0 : index
    %c0_5 = arith.constant 0 : index
    %2 = vector.load %arg1[%c0_3, %c0_4, %c0_5] : memref<4x112x576xbf16, #tpu.memory_space<vmem>>, vector<1x112x576xbf16>
    %3 = vector.shape_cast %2 : vector<1x112x576xbf16> to vector<112x576xbf16>
    %cst = arith.constant dense<0.000000e+00> : vector<112x128xf32>
    %4 = tpu.matmul %3, %0, %cst {dimension_numbers = #tpu.dot_dimension_numbers<[1], [0], [0], [1], [0, 0, 1, 1], [], []>} : vector<112x576xbf16>, vector<576x128xbf16>, vector<112x128xf32> -> vector<112x128xf32>
    %5 = vector.broadcast %1 : vector<1x128xf32> to vector<112x128xf32>
    %6 = arith.addf %4, %5 : vector<112x128xf32>
    %cst_6 = arith.constant 0.000000e+00 : f32
    %7 = vector.broadcast %cst_6 : f32 to vector<112x128xf32>
    %8 = arith.maximumf %6, %7 : vector<112x128xf32>
    %c1 = arith.constant 1 : index
    %c0_7 = arith.constant 0 : index
    %c0_8 = arith.constant 0 : index
    %9 = vector.load %arg1[%c1, %c0_7, %c0_8] : memref<4x112x576xbf16, #tpu.memory_space<vmem>>, vector<1x112x576xbf16>
    %10 = vector.shape_cast %9 : vector<1x112x576xbf16> to vector<112x576xbf16>
    %cst_9 = arith.constant dense<0.000000e+00> : vector<112x128xf32>
    %11 = tpu.matmul %10, %0, %cst_9 {dimension_numbers = #tpu.dot_dimension_numbers<[1], [0], [0], [1], [0, 0, 1, 1], [], []>} : vector<112x576xbf16>, vector<576x128xbf16>, vector<112x128xf32> -> vector<112x128xf32>
    %12 = vector.broadcast %1 : vector<1x128xf32> to vector<112x128xf32>
    %13 = arith.addf %11, %12 : vector<112x128xf32>
    %cst_10 = arith.constant 0.000000e+00 : f32
    %14 = vector.broadcast %cst_10 : f32 to vector<112x128xf32>
    %15 = arith.maximumf %13, %14 : vector<112x128xf32>
    %16 = arith.maximumf %8, %15 : vector<112x128xf32>
    %c2 = arith.constant 2 : index
    %c0_11 = arith.constant 0 : index
    %c0_12 = arith.constant 0 : index
    %17 = vector.load %arg1[%c2, %c0_11, %c0_12] : memref<4x112x576xbf16, #tpu.memory_space<vmem>>, vector<1x112x576xbf16>
    %18 = vector.shape_cast %17 : vector<1x112x576xbf16> to vector<112x576xbf16>
    %cst_13 = arith.constant dense<0.000000e+00> : vector<112x128xf32>
    %19 = tpu.matmul %18, %0, %cst_13 {dimension_numbers = #tpu.dot_dimension_numbers<[1], [0], [0], [1], [0, 0, 1, 1], [], []>} : vector<112x576xbf16>, vector<576x128xbf16>, vector<112x128xf32> -> vector<112x128xf32>
    %20 = vector.broadcast %1 : vector<1x128xf32> to vector<112x128xf32>
    %21 = arith.addf %19, %20 : vector<112x128xf32>
    %cst_14 = arith.constant 0.000000e+00 : f32
    %22 = vector.broadcast %cst_14 : f32 to vector<112x128xf32>
    %23 = arith.maximumf %21, %22 : vector<112x128xf32>
    %24 = arith.maximumf %16, %23 : vector<112x128xf32>
    %c3 = arith.constant 3 : index
    %c0_15 = arith.constant 0 : index
    %c0_16 = arith.constant 0 : index
    %25 = vector.load %arg1[%c3, %c0_15, %c0_16] : memref<4x112x576xbf16, #tpu.memory_space<vmem>>, vector<1x112x576xbf16>
    %26 = vector.shape_cast %25 : vector<1x112x576xbf16> to vector<112x576xbf16>
    %cst_17 = arith.constant dense<0.000000e+00> : vector<112x128xf32>
    %27 = tpu.matmul %26, %0, %cst_17 {dimension_numbers = #tpu.dot_dimension_numbers<[1], [0], [0], [1], [0, 0, 1, 1], [], []>} : vector<112x576xbf16>, vector<576x128xbf16>, vector<112x128xf32> -> vector<112x128xf32>
    %28 = vector.broadcast %1 : vector<1x128xf32> to vector<112x128xf32>
    %29 = arith.addf %27, %28 : vector<112x128xf32>
    %cst_18 = arith.constant 0.000000e+00 : f32
    %30 = vector.broadcast %cst_18 : f32 to vector<112x128xf32>
    %31 = arith.maximumf %29, %30 : vector<112x128xf32>
    %32 = arith.maximumf %24, %31 : vector<112x128xf32>
    %33 = arith.truncf %32 : vector<112x128xf32> to vector<112x128xbf16>
    %c0_19 = arith.constant 0 : index
    %c0_20 = arith.constant 0 : index
    %34 = vector.load %arg4[%c0_19, %c0_20] : memref<112x128xbf16, #tpu.memory_space<vmem>>, vector<112x128xbf16>
    tpu.vector_store %arg4[%c0_19, %c0_20], %33 {strides = array<i32>} : memref<112x128xbf16, #tpu.memory_space<vmem>>, vector<112x128xbf16>,
    return
  }
  func.func @transform_0(%arg0: i32) -> (i32, i32, i32) {
    %c0_i32 = arith.constant 0 : i32
    %c0_i32_0 = arith.constant 0 : i32
    %c0_i32_1 = arith.constant 0 : i32
    return %c0_i32, %arg0, %c0_i32_0 : i32, i32, i32
  }
  func.func @transform_1(%arg0: i32) -> (i32, i32) {
    %c0_i32 = arith.constant 0 : i32
    %c0_i32_0 = arith.constant 0 : i32
    %c0_i32_1 = arith.constant 0 : i32
    return %c0_i32, %c0_i32_0 : i32, i32
  }
  func.func @transform_2(%arg0: i32) -> (i32, i32) {
    %c0_i32 = arith.constant 0 : i32
    %c0_i32_0 = arith.constant 0 : i32
    %c0_i32_1 = arith.constant 0 : i32
    return %c0_i32, %c0_i32_0 : i32, i32
  }
  func.func @transform_3(%arg0: i32) -> (i32, i32) {
    %c0_i32 = arith.constant 0 : i32
    %c0_i32_0 = arith.constant 0 : i32
    return %arg0, %c0_i32 : i32, i32
  }
}

module attributes {stable_mosaic.version = 11 : i64} {
  func.func @_conv_pool_kernel(%arg0: i32, %arg1: memref<4x32x896xbf16, #tpu.memory_space<vmem>>, %arg2: memref<896x128xbf16, #tpu.memory_space<vmem>>, %arg3: memref<1x128xf32, #tpu.memory_space<vmem>>, %arg4: memref<32x128xbf16, #tpu.memory_space<vmem>>) attributes {dimension_semantics = [#tpu.dimension_semantics<parallel>], iteration_bounds = array<i64: 2>, scalar_prefetch = 0 : i64, scratch_operands = 0 : i64, tpu.core_type = #tpu.core_type<tc>, window_params = [{transform_indices = @transform_0, window_bounds = array<i64: 4, 32, 896>}, {pipeline_mode = #tpu.pipeline_mode<synchronous>, transform_indices = @transform_1, window_bounds = array<i64: 896, 128>}, {pipeline_mode = #tpu.pipeline_mode<synchronous>, transform_indices = @transform_2, window_bounds = array<i64: 1, 128>}, {transform_indices = @transform_3, window_bounds = array<i64: 32, 128>}]} {
    %c0 = arith.constant 0 : index
    %c0_0 = arith.constant 0 : index
    %0 = vector.load %arg2[%c0, %c0_0] : memref<896x128xbf16, #tpu.memory_space<vmem>>, vector<896x128xbf16>
    %c0_1 = arith.constant 0 : index
    %c0_2 = arith.constant 0 : index
    %1 = vector.load %arg3[%c0_1, %c0_2] : memref<1x128xf32, #tpu.memory_space<vmem>>, vector<1x128xf32>
    %c0_3 = arith.constant 0 : index
    %c0_4 = arith.constant 0 : index
    %c0_5 = arith.constant 0 : index
    %2 = vector.load %arg1[%c0_3, %c0_4, %c0_5] : memref<4x32x896xbf16, #tpu.memory_space<vmem>>, vector<1x32x896xbf16>
    %3 = vector.shape_cast %2 : vector<1x32x896xbf16> to vector<32x896xbf16>
    %cst = arith.constant dense<0.000000e+00> : vector<32x128xf32>
    %4 = tpu.matmul %3, %0, %cst {dimension_numbers = #tpu.dot_dimension_numbers<[1], [0], [0], [1], [0, 0, 1, 1], [], []>} : vector<32x896xbf16>, vector<896x128xbf16>, vector<32x128xf32> -> vector<32x128xf32>
    %5 = vector.broadcast %1 : vector<1x128xf32> to vector<32x128xf32>
    %6 = arith.addf %4, %5 : vector<32x128xf32>
    %cst_6 = arith.constant 0.000000e+00 : f32
    %7 = vector.broadcast %cst_6 : f32 to vector<32x128xf32>
    %8 = arith.maximumf %6, %7 : vector<32x128xf32>
    %c1 = arith.constant 1 : index
    %c0_7 = arith.constant 0 : index
    %c0_8 = arith.constant 0 : index
    %9 = vector.load %arg1[%c1, %c0_7, %c0_8] : memref<4x32x896xbf16, #tpu.memory_space<vmem>>, vector<1x32x896xbf16>
    %10 = vector.shape_cast %9 : vector<1x32x896xbf16> to vector<32x896xbf16>
    %cst_9 = arith.constant dense<0.000000e+00> : vector<32x128xf32>
    %11 = tpu.matmul %10, %0, %cst_9 {dimension_numbers = #tpu.dot_dimension_numbers<[1], [0], [0], [1], [0, 0, 1, 1], [], []>} : vector<32x896xbf16>, vector<896x128xbf16>, vector<32x128xf32> -> vector<32x128xf32>
    %12 = vector.broadcast %1 : vector<1x128xf32> to vector<32x128xf32>
    %13 = arith.addf %11, %12 : vector<32x128xf32>
    %cst_10 = arith.constant 0.000000e+00 : f32
    %14 = vector.broadcast %cst_10 : f32 to vector<32x128xf32>
    %15 = arith.maximumf %13, %14 : vector<32x128xf32>
    %16 = arith.maximumf %8, %15 : vector<32x128xf32>
    %c2 = arith.constant 2 : index
    %c0_11 = arith.constant 0 : index
    %c0_12 = arith.constant 0 : index
    %17 = vector.load %arg1[%c2, %c0_11, %c0_12] : memref<4x32x896xbf16, #tpu.memory_space<vmem>>, vector<1x32x896xbf16>
    %18 = vector.shape_cast %17 : vector<1x32x896xbf16> to vector<32x896xbf16>
    %cst_13 = arith.constant dense<0.000000e+00> : vector<32x128xf32>
    %19 = tpu.matmul %18, %0, %cst_13 {dimension_numbers = #tpu.dot_dimension_numbers<[1], [0], [0], [1], [0, 0, 1, 1], [], []>} : vector<32x896xbf16>, vector<896x128xbf16>, vector<32x128xf32> -> vector<32x128xf32>
    %20 = vector.broadcast %1 : vector<1x128xf32> to vector<32x128xf32>
    %21 = arith.addf %19, %20 : vector<32x128xf32>
    %cst_14 = arith.constant 0.000000e+00 : f32
    %22 = vector.broadcast %cst_14 : f32 to vector<32x128xf32>
    %23 = arith.maximumf %21, %22 : vector<32x128xf32>
    %24 = arith.maximumf %16, %23 : vector<32x128xf32>
    %c3 = arith.constant 3 : index
    %c0_15 = arith.constant 0 : index
    %c0_16 = arith.constant 0 : index
    %25 = vector.load %arg1[%c3, %c0_15, %c0_16] : memref<4x32x896xbf16, #tpu.memory_space<vmem>>, vector<1x32x896xbf16>
    %26 = vector.shape_cast %25 : vector<1x32x896xbf16> to vector<32x896xbf16>
    %cst_17 = arith.constant dense<0.000000e+00> : vector<32x128xf32>
    %27 = tpu.matmul %26, %0, %cst_17 {dimension_numbers = #tpu.dot_dimension_numbers<[1], [0], [0], [1], [0, 0, 1, 1], [], []>} : vector<32x896xbf16>, vector<896x128xbf16>, vector<32x128xf32> -> vector<32x128xf32>
    %28 = vector.broadcast %1 : vector<1x128xf32> to vector<32x128xf32>
    %29 = arith.addf %27, %28 : vector<32x128xf32>
    %cst_18 = arith.constant 0.000000e+00 : f32
    %30 = vector.broadcast %cst_18 : f32 to vector<32x128xf32>
    %31 = arith.maximumf %29, %30 : vector<32x128xf32>
    %32 = arith.maximumf %24, %31 : vector<32x128xf32>
    %33 = arith.truncf %32 : vector<32x128xf32> to vector<32x128xbf16>
    %c0_19 = arith.constant 0 : index
    %c0_20 = arith.constant 0 : index
    %34 = vector.load %arg4[%c0_19, %c0_20] : memref<32x128xbf16, #tpu.memory_space<vmem>>, vector<32x128xbf16>
    tpu.vector_store %arg4[%c0_19, %c0_20], %33 {strides = array<i32>} : memref<32x128xbf16, #tpu.memory_space<vmem>>, vector<32x128xbf16>,
    return
  }
  func.func @transform_0(%arg0: i32) -> (i32, i32, i32) {
    %c0_i32 = arith.constant 0 : i32
    %c0_i32_0 = arith.constant 0 : i32
    %c0_i32_1 = arith.constant 0 : i32
    return %c0_i32, %arg0, %c0_i32_0 : i32, i32, i32
  }
  func.func @transform_1(%arg0: i32) -> (i32, i32) {
    %c0_i32 = arith.constant 0 : i32
    %c0_i32_0 = arith.constant 0 : i32
    %c0_i32_1 = arith.constant 0 : i32
    return %c0_i32, %c0_i32_0 : i32, i32
  }
  func.func @transform_2(%arg0: i32) -> (i32, i32) {
    %c0_i32 = arith.constant 0 : i32
    %c0_i32_0 = arith.constant 0 : i32
    %c0_i32_1 = arith.constant 0 : i32
    return %c0_i32, %c0_i32_0 : i32, i32
  }
  func.func @transform_3(%arg0: i32) -> (i32, i32) {
    %c0_i32 = arith.constant 0 : i32
    %c0_i32_0 = arith.constant 0 : i32
    return %arg0, %c0_i32 : i32, i32
  }
}

module attributes {stable_mosaic.version = 11 : i64} {
  func.func @_conv_pool_kernel(%arg0: i32, %arg1: memref<4x16x576xbf16, #tpu.memory_space<vmem>>, %arg2: memref<576x128xbf16, #tpu.memory_space<vmem>>, %arg3: memref<1x128xf32, #tpu.memory_space<vmem>>, %arg4: memref<16x128xbf16, #tpu.memory_space<vmem>>) attributes {dimension_semantics = [#tpu.dimension_semantics<parallel>], iteration_bounds = array<i64: 2>, scalar_prefetch = 0 : i64, scratch_operands = 0 : i64, tpu.core_type = #tpu.core_type<tc>, window_params = [{transform_indices = @transform_0, window_bounds = array<i64: 4, 16, 576>}, {pipeline_mode = #tpu.pipeline_mode<synchronous>, transform_indices = @transform_1, window_bounds = array<i64: 576, 128>}, {pipeline_mode = #tpu.pipeline_mode<synchronous>, transform_indices = @transform_2, window_bounds = array<i64: 1, 128>}, {transform_indices = @transform_3, window_bounds = array<i64: 16, 128>}]} {
    %c0 = arith.constant 0 : index
    %c0_0 = arith.constant 0 : index
    %0 = vector.load %arg2[%c0, %c0_0] : memref<576x128xbf16, #tpu.memory_space<vmem>>, vector<576x128xbf16>
    %c0_1 = arith.constant 0 : index
    %c0_2 = arith.constant 0 : index
    %1 = vector.load %arg3[%c0_1, %c0_2] : memref<1x128xf32, #tpu.memory_space<vmem>>, vector<1x128xf32>
    %c0_3 = arith.constant 0 : index
    %c0_4 = arith.constant 0 : index
    %c0_5 = arith.constant 0 : index
    %2 = vector.load %arg1[%c0_3, %c0_4, %c0_5] : memref<4x16x576xbf16, #tpu.memory_space<vmem>>, vector<1x16x576xbf16>
    %3 = vector.shape_cast %2 : vector<1x16x576xbf16> to vector<16x576xbf16>
    %cst = arith.constant dense<0.000000e+00> : vector<16x128xf32>
    %4 = tpu.matmul %3, %0, %cst {dimension_numbers = #tpu.dot_dimension_numbers<[1], [0], [0], [1], [0, 0, 1, 1], [], []>} : vector<16x576xbf16>, vector<576x128xbf16>, vector<16x128xf32> -> vector<16x128xf32>
    %5 = vector.broadcast %1 : vector<1x128xf32> to vector<16x128xf32>
    %6 = arith.addf %4, %5 : vector<16x128xf32>
    %cst_6 = arith.constant 0.000000e+00 : f32
    %7 = vector.broadcast %cst_6 : f32 to vector<16x128xf32>
    %8 = arith.maximumf %6, %7 : vector<16x128xf32>
    %c1 = arith.constant 1 : index
    %c0_7 = arith.constant 0 : index
    %c0_8 = arith.constant 0 : index
    %9 = vector.load %arg1[%c1, %c0_7, %c0_8] : memref<4x16x576xbf16, #tpu.memory_space<vmem>>, vector<1x16x576xbf16>
    %10 = vector.shape_cast %9 : vector<1x16x576xbf16> to vector<16x576xbf16>
    %cst_9 = arith.constant dense<0.000000e+00> : vector<16x128xf32>
    %11 = tpu.matmul %10, %0, %cst_9 {dimension_numbers = #tpu.dot_dimension_numbers<[1], [0], [0], [1], [0, 0, 1, 1], [], []>} : vector<16x576xbf16>, vector<576x128xbf16>, vector<16x128xf32> -> vector<16x128xf32>
    %12 = vector.broadcast %1 : vector<1x128xf32> to vector<16x128xf32>
    %13 = arith.addf %11, %12 : vector<16x128xf32>
    %cst_10 = arith.constant 0.000000e+00 : f32
    %14 = vector.broadcast %cst_10 : f32 to vector<16x128xf32>
    %15 = arith.maximumf %13, %14 : vector<16x128xf32>
    %16 = arith.maximumf %8, %15 : vector<16x128xf32>
    %c2 = arith.constant 2 : index
    %c0_11 = arith.constant 0 : index
    %c0_12 = arith.constant 0 : index
    %17 = vector.load %arg1[%c2, %c0_11, %c0_12] : memref<4x16x576xbf16, #tpu.memory_space<vmem>>, vector<1x16x576xbf16>
    %18 = vector.shape_cast %17 : vector<1x16x576xbf16> to vector<16x576xbf16>
    %cst_13 = arith.constant dense<0.000000e+00> : vector<16x128xf32>
    %19 = tpu.matmul %18, %0, %cst_13 {dimension_numbers = #tpu.dot_dimension_numbers<[1], [0], [0], [1], [0, 0, 1, 1], [], []>} : vector<16x576xbf16>, vector<576x128xbf16>, vector<16x128xf32> -> vector<16x128xf32>
    %20 = vector.broadcast %1 : vector<1x128xf32> to vector<16x128xf32>
    %21 = arith.addf %19, %20 : vector<16x128xf32>
    %cst_14 = arith.constant 0.000000e+00 : f32
    %22 = vector.broadcast %cst_14 : f32 to vector<16x128xf32>
    %23 = arith.maximumf %21, %22 : vector<16x128xf32>
    %24 = arith.maximumf %16, %23 : vector<16x128xf32>
    %c3 = arith.constant 3 : index
    %c0_15 = arith.constant 0 : index
    %c0_16 = arith.constant 0 : index
    %25 = vector.load %arg1[%c3, %c0_15, %c0_16] : memref<4x16x576xbf16, #tpu.memory_space<vmem>>, vector<1x16x576xbf16>
    %26 = vector.shape_cast %25 : vector<1x16x576xbf16> to vector<16x576xbf16>
    %cst_17 = arith.constant dense<0.000000e+00> : vector<16x128xf32>
    %27 = tpu.matmul %26, %0, %cst_17 {dimension_numbers = #tpu.dot_dimension_numbers<[1], [0], [0], [1], [0, 0, 1, 1], [], []>} : vector<16x576xbf16>, vector<576x128xbf16>, vector<16x128xf32> -> vector<16x128xf32>
    %28 = vector.broadcast %1 : vector<1x128xf32> to vector<16x128xf32>
    %29 = arith.addf %27, %28 : vector<16x128xf32>
    %cst_18 = arith.constant 0.000000e+00 : f32
    %30 = vector.broadcast %cst_18 : f32 to vector<16x128xf32>
    %31 = arith.maximumf %29, %30 : vector<16x128xf32>
    %32 = arith.maximumf %24, %31 : vector<16x128xf32>
    %33 = arith.truncf %32 : vector<16x128xf32> to vector<16x128xbf16>
    %c0_19 = arith.constant 0 : index
    %c0_20 = arith.constant 0 : index
    %34 = vector.load %arg4[%c0_19, %c0_20] : memref<16x128xbf16, #tpu.memory_space<vmem>>, vector<16x128xbf16>
    tpu.vector_store %arg4[%c0_19, %c0_20], %33 {strides = array<i32>} : memref<16x128xbf16, #tpu.memory_space<vmem>>, vector<16x128xbf16>,
    return
  }
  func.func @transform_0(%arg0: i32) -> (i32, i32, i32) {
    %c0_i32 = arith.constant 0 : i32
    %c0_i32_0 = arith.constant 0 : i32
    %c0_i32_1 = arith.constant 0 : i32
    return %c0_i32, %arg0, %c0_i32_0 : i32, i32, i32
  }
  func.func @transform_1(%arg0: i32) -> (i32, i32) {
    %c0_i32 = arith.constant 0 : i32
    %c0_i32_0 = arith.constant 0 : i32
    %c0_i32_1 = arith.constant 0 : i32
    return %c0_i32, %c0_i32_0 : i32, i32
  }
  func.func @transform_2(%arg0: i32) -> (i32, i32) {
    %c0_i32 = arith.constant 0 : i32
    %c0_i32_0 = arith.constant 0 : i32
    %c0_i32_1 = arith.constant 0 : i32
    return %c0_i32, %c0_i32_0 : i32, i32
  }
  func.func @transform_3(%arg0: i32) -> (i32, i32) {
    %c0_i32 = arith.constant 0 : i32
    %c0_i32_0 = arith.constant 0 : i32
    return %arg0, %c0_i32 : i32, i32
  }
}

module attributes {stable_mosaic.version = 11 : i64} {
  func.func @_fc_head_kernel(%arg0: i32, %arg1: memref<8x1568xf32, #tpu.memory_space<vmem>>, %arg2: memref<1568x128xf32, #tpu.memory_space<vmem>>, %arg3: memref<1x128xf32, #tpu.memory_space<vmem>>, %arg4: memref<128x128xf32, #tpu.memory_space<vmem>>, %arg5: memref<1x128xf32, #tpu.memory_space<vmem>>, %arg6: memref<8x128xf32, #tpu.memory_space<vmem>>) attributes {dimension_semantics = [#tpu.dimension_semantics<arbitrary>], iteration_bounds = array<i64: 1>, scalar_prefetch = 0 : i64, scratch_operands = 0 : i64, tpu.core_type = #tpu.core_type<tc>, window_params = [{pipeline_mode = #tpu.pipeline_mode<synchronous>, transform_indices = @transform_0, window_bounds = array<i64: 8, 1568>}, {pipeline_mode = #tpu.pipeline_mode<synchronous>, transform_indices = @transform_1, window_bounds = array<i64: 1568, 128>}, {pipeline_mode = #tpu.pipeline_mode<synchronous>, transform_indices = @transform_2, window_bounds = array<i64: 1, 128>}, {pipeline_mode = #tpu.pipeline_mode<synchronous>, transform_indices = @transform_3, window_bounds = array<i64: 128, 128>}, {pipeline_mode = #tpu.pipeline_mode<synchronous>, transform_indices = @transform_4, window_bounds = array<i64: 1, 128>}, {pipeline_mode = #tpu.pipeline_mode<synchronous>, transform_indices = @transform_5, window_bounds = array<i64: 8, 128>}]} {
    %c0 = arith.constant 0 : index
    %c0_0 = arith.constant 0 : index
    %0 = vector.load %arg1[%c0, %c0_0] : memref<8x1568xf32, #tpu.memory_space<vmem>>, vector<8x1568xf32>
    %c0_1 = arith.constant 0 : index
    %c0_2 = arith.constant 0 : index
    %1 = vector.load %arg2[%c0_1, %c0_2] : memref<1568x128xf32, #tpu.memory_space<vmem>>, vector<1568x128xf32>
    %cst = arith.constant dense<0.000000e+00> : vector<8x128xf32>
    %2 = tpu.matmul %0, %1, %cst {dimension_numbers = #tpu.dot_dimension_numbers<[1], [0], [0], [1], [0, 0, 1, 1], [], []>} : vector<8x1568xf32>, vector<1568x128xf32>, vector<8x128xf32> -> vector<8x128xf32>
    %c0_3 = arith.constant 0 : index
    %c0_4 = arith.constant 0 : index
    %3 = vector.load %arg3[%c0_3, %c0_4] : memref<1x128xf32, #tpu.memory_space<vmem>>, vector<1x128xf32>
    %4 = vector.broadcast %3 : vector<1x128xf32> to vector<8x128xf32>
    %5 = arith.addf %2, %4 : vector<8x128xf32>
    %cst_5 = arith.constant 0.000000e+00 : f32
    %6 = vector.broadcast %cst_5 : f32 to vector<8x128xf32>
    %7 = arith.maximumf %5, %6 : vector<8x128xf32>
    %c0_6 = arith.constant 0 : index
    %c0_7 = arith.constant 0 : index
    %8 = vector.load %arg4[%c0_6, %c0_7] : memref<128x128xf32, #tpu.memory_space<vmem>>, vector<128x128xf32>
    %cst_8 = arith.constant dense<0.000000e+00> : vector<8x128xf32>
    %9 = tpu.matmul %7, %8, %cst_8 {dimension_numbers = #tpu.dot_dimension_numbers<[1], [0], [0], [1], [0, 0, 1, 1], [], []>} : vector<8x128xf32>, vector<128x128xf32>, vector<8x128xf32> -> vector<8x128xf32>
    %c0_9 = arith.constant 0 : index
    %c0_10 = arith.constant 0 : index
    %10 = vector.load %arg5[%c0_9, %c0_10] : memref<1x128xf32, #tpu.memory_space<vmem>>, vector<1x128xf32>
    %11 = vector.broadcast %10 : vector<1x128xf32> to vector<8x128xf32>
    %12 = arith.addf %9, %11 : vector<8x128xf32>
    %cst_11 = arith.constant 0.000000e+00 : f32
    %13 = vector.broadcast %cst_11 : f32 to vector<8x128xf32>
    %14 = arith.maximumf %12, %13 : vector<8x128xf32>
    %15 = tpu.iota {dimensions = array<i32: 1>} : vector<8x128xi32>
    %c10_i32 = arith.constant 10 : i32
    %16 = vector.broadcast %c10_i32 : i32 to vector<8x128xi32>
    %17 = arith.cmpi slt, %15, %16 : vector<8x128xi32>
    %cst_12 = arith.constant -1.000000e+30 : f32
    %18 = vector.broadcast %cst_12 : f32 to vector<8x128xf32>
    %19 = arith.select %17, %14, %18 : vector<8x128xi1>, vector<8x128xf32>
    %cst_13 = arith.constant dense<0xFF800000> : vector<8xf32>
    %20 = vector.multi_reduction <maximumf>, %19, %cst_13 [1] : vector<8x128xf32> to vector<8xf32>
    %21 = vector.shape_cast %20 : vector<8xf32> to vector<8x1xf32>
    %22 = vector.broadcast %21 : vector<8x1xf32> to vector<8x128xf32>
    %23 = arith.subf %19, %22 : vector<8x128xf32>
    %24 = math.exp %23 : vector<8x128xf32>
    %cst_14 = arith.constant dense<0.000000e+00> : vector<8xf32>
    %25 = vector.multi_reduction <add>, %24, %cst_14 [1] : vector<8x128xf32> to vector<8xf32>
    %26 = vector.shape_cast %25 : vector<8xf32> to vector<8x1xf32>
    %27 = vector.broadcast %26 : vector<8x1xf32> to vector<8x128xf32>
    %28 = arith.divf %24, %27 : vector<8x128xf32>
    %c0_15 = arith.constant 0 : index
    %c0_16 = arith.constant 0 : index
    %29 = vector.load %arg6[%c0_15, %c0_16] : memref<8x128xf32, #tpu.memory_space<vmem>>, vector<8x128xf32>
    tpu.vector_store %arg6[%c0_15, %c0_16], %28 {strides = array<i32>} : memref<8x128xf32, #tpu.memory_space<vmem>>, vector<8x128xf32>,
    return
  }
  func.func @transform_0(%arg0: i32) -> (i32, i32) {
    %c0_i32 = arith.constant 0 : i32
    %c0_i32_0 = arith.constant 0 : i32
    %c0_i32_1 = arith.constant 0 : i32
    return %c0_i32, %c0_i32_0 : i32, i32
  }
  func.func @transform_1(%arg0: i32) -> (i32, i32) {
    %c0_i32 = arith.constant 0 : i32
    %c0_i32_0 = arith.constant 0 : i32
    %c0_i32_1 = arith.constant 0 : i32
    return %c0_i32, %c0_i32_0 : i32, i32
  }
  func.func @transform_2(%arg0: i32) -> (i32, i32) {
    %c0_i32 = arith.constant 0 : i32
    %c0_i32_0 = arith.constant 0 : i32
    %c0_i32_1 = arith.constant 0 : i32
    return %c0_i32, %c0_i32_0 : i32, i32
  }
  func.func @transform_3(%arg0: i32) -> (i32, i32) {
    %c0_i32 = arith.constant 0 : i32
    %c0_i32_0 = arith.constant 0 : i32
    %c0_i32_1 = arith.constant 0 : i32
    return %c0_i32, %c0_i32_0 : i32, i32
  }
  func.func @transform_4(%arg0: i32) -> (i32, i32) {
    %c0_i32 = arith.constant 0 : i32
    %c0_i32_0 = arith.constant 0 : i32
    %c0_i32_1 = arith.constant 0 : i32
    return %c0_i32, %c0_i32_0 : i32, i32
  }
  func.func @transform_5(%arg0: i32) -> (i32, i32) {
    %c0_i32 = arith.constant 0 : i32
    %c0_i32_0 = arith.constant 0 : i32
    %c0_i32_1 = arith.constant 0 : i32
    return %c0_i32, %c0_i32_0 : i32, i32
  }
}

</mosaic_0001>

<bundles_post_ra>
// kernel: cnn_forward.5
= control target key start
LH: loop header
LB: loop body
LE: loop exit
PB: predicated region body
PF: predicated region fallthrough
CT: control target
= control target key end

     0   :  { %s3267_s12 = smov 0   ;;  %s3269_s13 = smov 0   ;;  %s3976_s0 = inlined_call_operand.vmem [shape: bf16[4,832,256], index: 0, kind: input, shape index: {}]   ;;  %s3977_s1 = inlined_call_operand.vmem [shape: bf16[256,128], index: 1, kind: input, shape index: {}]   ;;  %s3978_s2 = inlined_call_operand.vmem [shape: f32[1,128], index: 2, kind: input, shape index: {}]   ;;  %s3979_s3 = inlined_call_operand.vmem [shape: bf16[832,128], index: 3, kind: output, shape index: {}]  }
   0x1   :  { %s3271_s14 = smov 0  }
   0x2 LB: > { %s2307_s15 = sadd.s32 4294967295, %s3245_s14   ;;  %s3284_s16 = sadd.s32 1, %s3245_s14   ;;  %s3245_s14 = sphi %s3271_s14, %s3982_s14   ;;  %s3241_s13 = sphi %s3269_s13, %s3981_s13   ;;  %s3237_s12 = sphi %s3267_s12, %s3980_s12  }
   0x3   : > { %s17_s17 = ssub.s32 %s3245_s14, %s3284_s16  ;;  %s20_s18 = sadd.s32 1, %s3241_s13 }
   0x4   : > { %p18_p0 = scmp.eq.s32.totalorder %s17_s17, 0  ;;  %p27_p1 = scmp.ne.s32.totalorder %s3241_s13, %s3237_s12 }
   0x5   : > { %p28_p2 = scmp.eq.s32.totalorder %s3245_s14, 0  ;;  %p2310_p4 = scmp.ge.s32.totalorder %s3245_s14, 4 }
   0x6   : > { %s3293_s19 = scalar_select %p18_p0, %s3241_s13, %s20_s18  }
   0x7   : > { %p29_p3 = por %p28_p2, %p27_p1  ;;  %127 = sbr.rel (%p2310_p4) target bundleno = 69 (0x45), region = 24 }
   0xc   : > { %130 = sbr.rel (!%p29_p3) target bundleno = 69 (0x45), region = 28  ;;  %s132_s20 = sand.u32 (%p29_p3), 1, %s3241_s13  }
   0xd   : > { %s2635_s21 = smul.u32 (%p29_p3), 208, %s3245_s14 }
   0xe   : > { %s3024_s22 = smul.u32 (%p29_p3), 832, %s132_s20 }
   0xf   : > { %s3301_s25 = scalar_lea.vmem (%p29_p3), %s3976_s0, %s2635_s21 }
  0x10   : > { %v373_v0 = vld [vmem:[%s3301_s25] sm:$0xff] (%p29_p3)  ;;  %v375_v1 = vld [vmem:[%s3301_s25 + $0x8] sm:$0xff] (%p29_p3)  ;;  %v377_v2 = vld [vmem:[%s3301_s25 + $0x10] sm:$0xff] (%p29_p3)  ;;  %s3306_s26 = scalar_lea.vmem (%p29_p3), [#allocation2], %s3024_s22 }
  0x11   : > { %374 = vst [vmem:[%s3306_s26] sm:$0xff] %v373_v0  ;;  %376 = vst [vmem:[%s3306_s26 + $0x8] sm:$0xff] %v375_v1  ;;  %v379_v3 = vld [vmem:[%s3301_s25 + $0x18] sm:$0xff]  ;;  %v381_v4 = vld [vmem:[%s3301_s25 + $0x20] sm:$0xff] }
  0x12   : > { %378 = vst [vmem:[%s3306_s26 + $0x10] sm:$0xff] %v377_v2  ;;  %v383_v5 = vld [vmem:[%s3301_s25 + $0x28] sm:$0xff]  ;;  %380 = vst [vmem:[%s3306_s26 + $0x18] sm:$0xff] %v379_v3  ;;  %v385_v6 = vld [vmem:[%s3301_s25 + $0x30] sm:$0xff] }
  0x13   : > { %382 = vst [vmem:[%s3306_s26 + $0x20] sm:$0xff] %v381_v4  ;;  %384 = vst [vmem:[%s3306_s26 + $0x28] sm:$0xff] %v383_v5  ;;  %v387_v7 = vld [vmem:[%s3301_s25 + $0x38] sm:$0xff]  ;;  %v389_v8 = vld [vmem:[%s3301_s25 + $0x40] sm:$0xff] }
  0x14   : > { %386 = vst [vmem:[%s3306_s26 + $0x30] sm:$0xff] %v385_v6  ;;  %388 = vst [vmem:[%s3306_s26 + $0x38] sm:$0xff] %v387_v7  ;;  %v391_v9 = vld [vmem:[%s3301_s25 + $0x48] sm:$0xff]  ;;  %v393_v10 = vld [vmem:[%s3301_s25 + $0x50] sm:$0xff] }
  0x15   : > { %390 = vst [vmem:[%s3306_s26 + $0x40] sm:$0xff] %v389_v8  ;;  %v395_v11 = vld [vmem:[%s3301_s25 + $0x58] sm:$0xff]  ;;  %392 = vst [vmem:[%s3306_s26 + $0x48] sm:$0xff] %v391_v9  ;;  %v397_v12 = vld [vmem:[%s3301_s25 + $0x60] sm:$0xff] }
  0x16   : > { %394 = vst [vmem:[%s3306_s26 + $0x50] sm:$0xff] %v393_v10  ;;  %396 = vst [vmem:[%s3306_s26 + $0x58] sm:$0xff] %v395_v11  ;;  %v399_v13 = vld [vmem:[%s3301_s25 + $0x68] sm:$0xff]  ;;  %v401_v14 = vld [vmem:[%s3301_s25 + $0x70] sm:$0xff] }
  0x17   : > { %398 = vst [vmem:[%s3306_s26 + $0x60] sm:$0xff] %v397_v12  ;;  %400 = vst [vmem:[%s3306_s26 + $0x68] sm:$0xff] %v399_v13  ;;  %v403_v15 = vld [vmem:[%s3301_s25 + $0x78] sm:$0xff]  ;;  %v405_v16 = vld [vmem:[%s3301_s25 + $0x80] sm:$0xff] }
  0x18   : > { %402 = vst [vmem:[%s3306_s26 + $0x70] sm:$0xff] %v401_v14  ;;  %v407_v17 = vld [vmem:[%s3301_s25 + $0x88] sm:$0xff]  ;;  %404 = vst [vmem:[%s3306_s26 + $0x78] sm:$0xff] %v403_v15  ;;  %v409_v18 = vld [vmem:[%s3301_s25 + $0x90] sm:$0xff] }
  0x19   : > { %406 = vst [vmem:[%s3306_s26 + $0x80] sm:$0xff] %v405_v16  ;;  %408 = vst [vmem:[%s3306_s26 + $0x88] sm:$0xff] %v407_v17  ;;  %v411_v19 = vld [vmem:[%s3301_s25 + $0x98] sm:$0xff]  ;;  %v413_v20 = vld [vmem:[%s3301_s25 + $0xa0] sm:$0xff] }
  0x1a   : > { %410 = vst [vmem:[%s3306_s26 + $0x90] sm:$0xff] %v409_v18  ;;  %412 = vst [vmem:[%s3306_s26 + $0x98] sm:$0xff] %v411_v19  ;;  %v415_v21 = vld [vmem:[%s3301_s25 + $0xa8] sm:$0xff]  ;;  %v417_v22 = vld [vmem:[%s3301_s25 + $0xb0] sm:$0xff] }
  0x1b   : > { %414 = vst [vmem:[%s3306_s26 + $0xa0] sm:$0xff] %v413_v20  ;;  %v419_v23 = vld [vmem:[%s3301_s25 + $0xb8] sm:$0xff]  ;;  %416 = vst [vmem:[%s3306_s26 + $0xa8] sm:$0xff] %v415_v21  ;;  %v421_v24 = vld [vmem:[%s3301_s25 + $0xc0] sm:$0xff] }
  0x1c   : > { %418 = vst [vmem:[%s3306_s26 + $0xb0] sm:$0xff] %v417_v22  ;;  %420 = vst [vmem:[%s3306_s26 + $0xb8] sm:$0xff] %v419_v23  ;;  %v423_v25 = vld [vmem:[%s3301_s25 + $0xc8] sm:$0xff]  ;;  %v425_v26 = vld [vmem:[%s3301_s25 + $0x340] sm:$0xff] }
  0x1d   : > { %422 = vst [vmem:[%s3306_s26 + $0xc0] sm:$0xff] %v421_v24  ;;  %424 = vst [vmem:[%s3306_s26 + $0xc8] sm:$0xff] %v423_v25  ;;  %v427_v27 = vld [vmem:[%s3301_s25 + $0x348] sm:$0xff]  ;;  %v429_v28 = vld [vmem:[%s3301_s25 + $0x350] sm:$0xff] }
  0x1e   : > { %426 = vst [vmem:[%s3306_s26 + $0xd0] sm:$0xff] %v425_v26  ;;  %v431_v29 = vld [vmem:[%s3301_s25 + $0x358] sm:$0xff]  ;;  %428 = vst [vmem:[%s3306_s26 + $0xd8] sm:$0xff] %v427_v27  ;;  %v433_v30 = vld [vmem:[%s3301_s25 + $0x360] sm:$0xff] }
  0x1f   : > { %430 = vst [vmem:[%s3306_s26 + $0xe0] sm:$0xff] %v429_v28  ;;  %432 = vst [vmem:[%s3306_s26 + $0xe8] sm:$0xff] %v431_v29  ;;  %v435_v31 = vld [vmem:[%s3301_s25 + $0x368] sm:$0xff]  ;;  %v437_v32 = vld [vmem:[%s3301_s25 + $0x370] sm:$0xff] }
  0x20   : > { %434 = vst [vmem:[%s3306_s26 + $0xf0] sm:$0xff] %v433_v30  ;;  %436 = vst [vmem:[%s3306_s26 + $0xf8] sm:$0xff] %v435_v31  ;;  %v439_v33 = vld [vmem:[%s3301_s25 + $0x378] sm:$0xff]  ;;  %v441_v34 = vld [vmem:[%s3301_s25 + $0x380] sm:$0xff] }
  0x21   : > { %438 = vst [vmem:[%s3306_s26 + $0x100] sm:$0xff] %v437_v32  ;;  %v443_v35 = vld [vmem:[%s3301_s25 + $0x388] sm:$0xff]  ;;  %440 = vst [vmem:[%s3306_s26 + $0x108] sm:$0xff] %v439_v33  ;;  %v445_v36 = vld [vmem:[%s3301_s25 + $0x390] sm:$0xff] }
  0x22   : > { %442 = vst [vmem:[%s3306_s26 + $0x110] sm:$0xff] %v441_v34  ;;  %444 = vst [vmem:[%s3306_s26 + $0x118] sm:$0xff] %v443_v35  ;;  %v447_v37 = vld [vmem:[%s3301_s25 + $0x398] sm:$0xff]  ;;  %v449_v38 = vld [vmem:[%s3301_s25 + $0x3a0] sm:$0xff] }
  0x23   : > { %446 = vst [vmem:[%s3306_s26 + $0x120] sm:$0xff] %v445_v36  ;;  %448 = vst [vmem:[%s3306_s26 + $0x128] sm:$0xff] %v447_v37  ;;  %v451_v39 = vld [vmem:[%s3301_s25 + $0x3a8] sm:$0xff]  ;;  %v453_v40 = vld [vmem:[%s3301_s25 + $0x3b0] sm:$0xff] }
  0x24   : > { %450 = vst [vmem:[%s3306_s26 + $0x130] sm:$0xff] %v449_v38  ;;  %v455_v41 = vld [vmem:[%s3301_s25 + $0x3b8] sm:$0xff]  ;;  %452 = vst [vmem:[%s3306_s26 + $0x138] sm:$0xff] %v451_v39  ;;  %v457_v42 = vld [vmem:[%s3301_s25 + $0x3c0] sm:$0xff] }
  0x25   : > { %454 = vst [vmem:[%s3306_s26 + $0x140] sm:$0xff] %v453_v40  ;;  %456 = vst [vmem:[%s3306_s26 + $0x148] sm:$0xff] %v455_v41  ;;  %v459_v43 = vld [vmem:[%s3301_s25 + $0x3c8] sm:$0xff]  ;;  %v461_v44 = vld [vmem:[%s3301_s25 + $0x3d0] sm:$0xff] }
  0x26   : > { %458 = vst [vmem:[%s3306_s26 + $0x150] sm:$0xff] %v457_v42  ;;  %460 = vst [vmem:[%s3306_s26 + $0x158] sm:$0xff] %v459_v43  ;;  %v463_v45 = vld [vmem:[%s3301_s25 + $0x3d8] sm:$0xff]  ;;  %v465_v46 = vld [vmem:[%s3301_s25 + $0x3e0] sm:$0xff] }
  0x27   : > { %462 = vst [vmem:[%s3306_s26 + $0x160] sm:$0xff] %v461_v44  ;;  %v467_v47 = vld [vmem:[%s3301_s25 + $0x3e8] sm:$0xff]  ;;  %464 = vst [vmem:[%s3306_s26 + $0x168] sm:$0xff] %v463_v45  ;;  %v469_v48 = vld [vmem:[%s3301_s25 + $0x3f0] sm:$0xff] }
  0x28   : > { %466 = vst [vmem:[%s3306_s26 + $0x170] sm:$0xff] %v465_v46  ;;  %468 = vst [vmem:[%s3306_s26 + $0x178] sm:$0xff] %v467_v47  ;;  %v471_v49 = vld [vmem:[%s3301_s25 + $0x3f8] sm:$0xff]  ;;  %v473_v50 = vld [vmem:[%s3301_s25 + $0x400] sm:$0xff] }
  0x29   : > { %470 = vst [vmem:[%s3306_s26 + $0x180] sm:$0xff] %v469_v48  ;;  %472 = vst [vmem:[%s3306_s26 + $0x188] sm:$0xff] %v471_v49  ;;  %v475_v51 = vld [vmem:[%s3301_s25 + $0x408] sm:$0xff]  ;;  %v477_v52 = vld [vmem:[%s3301_s25 + $0x680] sm:$0xff] }
  0x2a   : > { %474 = vst [vmem:[%s3306_s26 + $0x190] sm:$0xff] %v473_v50  ;;  %v479_v53 = vld [vmem:[%s3301_s25 + $0x688] sm:$0xff]  ;;  %476 = vst [vmem:[%s3306_s26 + $0x198] sm:$0xff] %v475_v51  ;;  %v481_v54 = vld [vmem:[%s3301_s25 + $0x690] sm:$0xff] }
  0x2b   : > { %478 = vst [vmem:[%s3306_s26 + $0x1a0] sm:$0xff] %v477_v52  ;;  %480 = vst [vmem:[%s3306_s26 + $0x1a8] sm:$0xff] %v479_v53  ;;  %v483_v55 = vld [vmem:[%s3301_s25 + $0x698] sm:$0xff]  ;;  %v485_v56 = vld [vmem:[%s3301_s25 + $0x6a0] sm:$0xff] }
  0x2c   : > { %482 = vst [vmem:[%s3306_s26 + $0x1b0] sm:$0xff] %v481_v54  ;;  %484 = vst [vmem:[%s3306_s26 + $0x1b8] sm:$0xff] %v483_v55  ;;  %v487_v57 = vld [vmem:[%s3301_s25 + $0x6a8] sm:$0xff]  ;;  %v489_v58 = vld [vmem:[%s3301_s25 + $0x6b0] sm:$0xff] }
  0x2d   : > { %486 = vst [vmem:[%s3306_s26 + $0x1c0] sm:$0xff] %v485_v56  ;;  %v491_v59 = vld [vmem:[%s3301_s25 + $0x6b8] sm:$0xff]  ;;  %488 = vst [vmem:[%s3306_s26 + $0x1c8] sm:$0xff] %v487_v57  ;;  %v493_v60 = vld [vmem:[%s3301_s25 + $0x6c0] sm:$0xff] }
  0x2e   : > { %490 = vst [vmem:[%s3306_s26 + $0x1d0] sm:$0xff] %v489_v58  ;;  %492 = vst [vmem:[%s3306_s26 + $0x1d8] sm:$0xff] %v491_v59  ;;  %v495_v61 = vld [vmem:[%s3301_s25 + $0x6c8] sm:$0xff]  ;;  %v497_v62 = vld [vmem:[%s3301_s25 + $0x6d0] sm:$0xff] }
  0x2f   : > { %494 = vst [vmem:[%s3306_s26 + $0x1e0] sm:$0xff] %v493_v60  ;;  %496 = vst [vmem:[%s3306_s26 + $0x1e8] sm:$0xff] %v495_v61  ;;  %v499_v63 = vld [vmem:[%s3301_s25 + $0x6d8] sm:$0xff]  ;;  %v501_v0 = vld [vmem:[%s3301_s25 + $0x6e0] sm:$0xff] }
  0x30   : > { %498 = vst [vmem:[%s3306_s26 + $0x1f0] sm:$0xff] %v497_v62  ;;  %v503_v1 = vld [vmem:[%s3301_s25 + $0x6e8] sm:$0xff]  ;;  %500 = vst [vmem:[%s3306_s26 + $0x1f8] sm:$0xff] %v499_v63  ;;  %v505_v2 = vld [vmem:[%s3301_s25 + $0x6f0] sm:$0xff] }
  0x31   : > { %502 = vst [vmem:[%s3306_s26 + $0x200] sm:$0xff] %v501_v0  ;;  %504 = vst [vmem:[%s3306_s26 + $0x208] sm:$0xff] %v503_v1  ;;  %v507_v3 = vld [vmem:[%s3301_s25 + $0x6f8] sm:$0xff]  ;;  %v509_v4 = vld [vmem:[%s3301_s25 + $0x700] sm:$0xff] }
  0x32   : > { %506 = vst [vmem:[%s3306_s26 + $0x210] sm:$0xff] %v505_v2  ;;  %508 = vst [vmem:[%s3306_s26 + $0x218] sm:$0xff] %v507_v3  ;;  %v511_v5 = vld [vmem:[%s3301_s25 + $0x708] sm:$0xff]  ;;  %v513_v6 = vld [vmem:[%s3301_s25 + $0x710] sm:$0xff] }
  0x33   : > { %510 = vst [vmem:[%s3306_s26 + $0x220] sm:$0xff] %v509_v4  ;;  %v515_v7 = vld [vmem:[%s3301_s25 + $0x718] sm:$0xff]  ;;  %512 = vst [vmem:[%s3306_s26 + $0x228] sm:$0xff] %v511_v5  ;;  %v517_v8 = vld [vmem:[%s3301_s25 + $0x720] sm:$0xff] }
  0x34   : > { %514 = vst [vmem:[%s3306_s26 + $0x230] sm:$0xff] %v513_v6  ;;  %516 = vst [vmem:[%s3306_s26 + $0x238] sm:$0xff] %v515_v7  ;;  %v519_v9 = vld [vmem:[%s3301_s25 + $0x728] sm:$0xff]  ;;  %v521_v10 = vld [vmem:[%s3301_s25 + $0x730] sm:$0xff] }
  0x35   : > { %518 = vst [vmem:[%s3306_s26 + $0x240] sm:$0xff] %v517_v8  ;;  %520 = vst [vmem:[%s3306_s26 + $0x248] sm:$0xff] %v519_v9  ;;  %v523_v11 = vld [vmem:[%s3301_s25 + $0x738] sm:$0xff]  ;;  %v525_v12 = vld [vmem:[%s3301_s25 + $0x740] sm:$0xff] }
  0x36   : > { %522 = vst [vmem:[%s3306_s26 + $0x250] sm:$0xff] %v521_v10  ;;  %v527_v13 = vld [vmem:[%s3301_s25 + $0x748] sm:$0xff]  ;;  %524 = vst [vmem:[%s3306_s26 + $0x258] sm:$0xff] %v523_v11  ;;  %v529_v14 = vld [vmem:[%s3301_s25 + $0x9c0] sm:$0xff] }
  0x37   : > { %526 = vst [vmem:[%s3306_s26 + $0x260] sm:$0xff] %v525_v12  ;;  %528 = vst [vmem:[%s3306_s26 + $0x268] sm:$0xff] %v527_v13  ;;  %v531_v15 = vld [vmem:[%s3301_s25 + $0x9c8] sm:$0xff]  ;;  %v533_v16 = vld [vmem:[%s3301_s25 + $0x9d0] sm:$0xff] }
  0x38   : > { %530 = vst [vmem:[%s3306_s26 + $0x270] sm:$0xff] %v529_v14  ;;  %532 = vst [vmem:[%s3306_s26 + $0x278] sm:$0xff] %v531_v15  ;;  %v535_v17 = vld [vmem:[%s3301_s25 + $0x9d8] sm:$0xff]  ;;  %v537_v18 = vld [vmem:[%s3301_s25 + $0x9e0] sm:$0xff] }
  0x39   : > { %534 = vst [vmem:[%s3306_s26 + $0x280] sm:$0xff] %v533_v16  ;;  %v539_v19 = vld [vmem:[%s3301_s25 + $0x9e8] sm:$0xff]  ;;  %536 = vst [vmem:[%s3306_s26 + $0x288] sm:$0xff] %v535_v17  ;;  %v541_v20 = vld [vmem:[%s3301_s25 + $0x9f0] sm:$0xff] }
  0x3a   : > { %538 = vst [vmem:[%s3306_s26 + $0x290] sm:$0xff] %v537_v18  ;;  %540 = vst [vmem:[%s3306_s26 + $0x298] sm:$0xff] %v539_v19  ;;  %v543_v21 = vld [vmem:[%s3301_s25 + $0x9f8] sm:$0xff]  ;;  %v545_v22 = vld [vmem:[%s3301_s25 + $0xa00] sm:$0xff] }
  0x3b   : > { %542 = vst [vmem:[%s3306_s26 + $0x2a0] sm:$0xff] %v541_v20  ;;  %544 = vst [vmem:[%s3306_s26 + $0x2a8] sm:$0xff] %v543_v21  ;;  %v547_v23 = vld [vmem:[%s3301_s25 + $0xa08] sm:$0xff]  ;;  %v549_v24 = vld [vmem:[%s3301_s25 + $0xa10] sm:$0xff] }
  0x3c   : > { %546 = vst [vmem:[%s3306_s26 + $0x2b0] sm:$0xff] %v545_v22  ;;  %v551_v25 = vld [vmem:[%s3301_s25 + $0xa18] sm:$0xff]  ;;  %548 = vst [vmem:[%s3306_s26 + $0x2b8] sm:$0xff] %v547_v23  ;;  %v553_v26 = vld [vmem:[%s3301_s25 + $0xa20] sm:$0xff] }
  0x3d   : > { %550 = vst [vmem:[%s3306_s26 + $0x2c0] sm:$0xff] %v549_v24  ;;  %552 = vst [vmem:[%s3306_s26 + $0x2c8] sm:$0xff] %v551_v25  ;;  %v555_v27 = vld [vmem:[%s3301_s25 + $0xa28] sm:$0xff]  ;;  %v557_v28 = vld [vmem:[%s3301_s25 + $0xa30] sm:$0xff] }
  0x3e   : > { %554 = vst [vmem:[%s3306_s26 + $0x2d0] sm:$0xff] %v553_v26  ;;  %556 = vst [vmem:[%s3306_s26 + $0x2d8] sm:$0xff] %v555_v27  ;;  %v559_v29 = vld [vmem:[%s3301_s25 + $0xa38] sm:$0xff]  ;;  %v561_v30 = vld [vmem:[%s3301_s25 + $0xa40] sm:$0xff] }
  0x3f   : > { %558 = vst [vmem:[%s3306_s26 + $0x2e0] sm:$0xff] %v557_v28  ;;  %v563_v31 = vld [vmem:[%s3301_s25 + $0xa48] sm:$0xff]  ;;  %560 = vst [vmem:[%s3306_s26 + $0x2e8] sm:$0xff] %v559_v29  ;;  %v565_v32 = vld [vmem:[%s3301_s25 + $0xa50] sm:$0xff] }
  0x40   : > { %562 = vst [vmem:[%s3306_s26 + $0x2f0] sm:$0xff] %v561_v30  ;;  %564 = vst [vmem:[%s3306_s26 + $0x2f8] sm:$0xff] %v563_v31  ;;  %v567_v33 = vld [vmem:[%s3301_s25 + $0xa58] sm:$0xff]  ;;  %v569_v34 = vld [vmem:[%s3301_s25 + $0xa60] sm:$0xff] }
  0x41   : > { %566 = vst [vmem:[%s3306_s26 + $0x300] sm:$0xff] %v565_v32  ;;  %568 = vst [vmem:[%s3306_s26 + $0x308] sm:$0xff] %v567_v33  ;;  %v571_v35 = vld [vmem:[%s3301_s25 + $0xa68] sm:$0xff]  ;;  %v573_v36 = vld [vmem:[%s3301_s25 + $0xa70] sm:$0xff] }
  0x42   : > { %570 = vst [vmem:[%s3306_s26 + $0x310] sm:$0xff] %v569_v34  ;;  %v575_v37 = vld [vmem:[%s3301_s25 + $0xa78] sm:$0xff]  ;;  %572 = vst [vmem:[%s3306_s26 + $0x318] sm:$0xff] %v571_v35  ;;  %v577_v38 = vld [vmem:[%s3301_s25 + $0xa80] sm:$0xff] }
  0x43   : > { %574 = vst [vmem:[%s3306_s26 + $0x320] sm:$0xff] %v573_v36  ;;  %576 = vst [vmem:[%s3306_s26 + $0x328] sm:$0xff] %v575_v37  ;;  %v579_v39 = vld [vmem:[%s3301_s25 + $0xa88] sm:$0xff] }
  0x44   : > { %578 = vst [vmem:[%s3306_s26 + $0x330] sm:$0xff] %v577_v38  ;;  %580 = vst [vmem:[%s3306_s26 + $0x338] sm:$0xff] %v579_v39 }
  0x45 PF: > { %p2313_p5 = scmp.ge.s32.totalorder %s3245_s14, 1  ;;  %p585_p6 = scmp.lt.s32.totalorder %s3245_s14, 5 }
  0x47   : > { %p586_p7 = pnand %p2313_p5, %p585_p6 }
  0x48   : > { %s592_s17 = sand.u32 (!%p586_p7), 1, %s3237_s12  }
  0x49   : > { %589 = sbr.rel (%p586_p7) target bundleno = 523 (0x20b), region = 66 }
  0x4a   : > { %s3025_s21 = smul.u32 (!%p586_p7), 832, %s592_s17 }
  0x4c   : > { %s3581_s29 = scalar_lea.vmem (!%p586_p7), [#allocation2], %s3025_s21  ;;  %s616_s21 = smul.u32 (!%p586_p7), 26, %s2307_s15 }
  0x4e   : > { %v3050_v40 = vld [vmem:[%s3977_s1 + $0x78] sm:$0xff]   ;;  %v3524_v42 = vld [vmem:[%s3977_s1 + $0x70] sm:$0xff]   ;;  %v3536_v44 = vld [vmem:[%s3977_s1 + $0x68] sm:$0xff]   ;;  %p617_p8 = scmp.lt.s32.totalorder %s616_s21, 103 }
  0x4f   : > { %v3051_v41 = vld [vmem:[%s3977_s1 + $0x38] sm:$0xff]   ;;  %2648 = vmatprep.subr.bf16.mxu0 %v3050_v40  ;;  %2742 = vmatprep.subr.bf16.mxu1 %v3050_v40  ;;  %v3529_v43 = vld [vmem:[%s3977_s1 + $0x30] sm:$0xff]   ;;  %v3543_v45 = vld [vmem:[%s3977_s1 + $0x28] sm:$0xff]  }
  0x50   : > { %2649 = vmatpush3.bf16.msra.mxu0 %v3051_v41  ;;  %2743 = vmatpush3.bf16.msra.mxu1 %v3051_v41  ;;  %v3551_v46 = vld [vmem:[%s3977_s1 + $0x60] sm:$0xff]   ;;  %v3565_v48 = vld [vmem:[%s3977_s1 + $0x58] sm:$0xff]   ;;  %v3579_v50 = vld [vmem:[%s3977_s1 + $0x50] sm:$0xff]   ;;  %s3984_s21 = smov (!%p617_p8, %s616_s21), 103 }
  0x51   : > { %2650 = vmatprep.subr.bf16.mxu0 %v3524_v42  ;;  %2744 = vmatprep.subr.bf16.mxu1 %v3524_v42  ;;  %v3558_v47 = vld [vmem:[%s3977_s1 + $0x20] sm:$0xff]   ;;  %v3572_v49 = vld [vmem:[%s3977_s1 + $0x18] sm:$0xff]   ;;  %v3590_v53 = vld [vmem:[%s3977_s1 + $0x10] sm:$0xff]   ;;  %s2314_s14 = sshll.u32 %s3984_s21, 2 }
  0x52   : > { %v3068_v51 = vld [vmem:[%s3581_s29 + $0x4] ss:$8 sps:$4 sm:$0xff]   ;;  %v3071_v52 = vld [vmem:[%s3581_s29 + $0xd4] ss:$8 sps:$4 sm:$0xff]   ;;  %v3066_v58 = vld [vmem:[%s3581_s29] ss:$8 sps:$4 sm:$0xff]   ;;  %s3875_s23 = scalar_lea.vmem %s3979_s3, %s2314_s14 }
  0x53   : > { %v3597_v54 = vld [vmem:[%s3977_s1 + $0x48] sm:$0xff]   ;;  %946 = vmatprep.mubr.bf16.mxu0 %v3068_v51  ;;  %1266 = vmatprep.mubr.bf16.mxu1 %v3071_v52  ;;  %v3611_v56 = vld [vmem:[%s3977_s1 + $0x40] sm:$0xff]   ;;  %v3069_v59 = vld [vmem:[%s3581_s29 + $0xd0] ss:$8 sps:$4 sm:$0xff]  }
  0x54   : > { %2651 = vmatpush3.bf16.msra.mxu0 %v3529_v43  ;;  %2745 = vmatpush3.bf16.msra.mxu1 %v3529_v43  ;;  %v3604_v55 = vld [vmem:[%s3977_s1 + $0x8] sm:$0xff]   ;;  %v3618_v57 = vld [vmem:[%s3977_s1] sm:$0xff]   ;;  %v3072_v60 = vld [vmem:[%s3581_s29 + $0x14] ss:$8 sps:$4 sm:$0xff]  }
  0x55   : > { %2652 = vmatprep.subr.bf16.mxu0 %v3536_v44  ;;  %2746 = vmatprep.subr.bf16.mxu1 %v3536_v44  ;;  %v3074_v61 = vld [vmem:[%s3581_s29 + $0xe4] ss:$8 sps:$4 sm:$0xff]   ;;  %v3076_v62 = vld [vmem:[%s3581_s29 + $0x10] ss:$8 sps:$4 sm:$0xff]   ;;  %v3077_v63 = vld [vmem:[%s3581_s29 + $0xe0] ss:$8 sps:$4 sm:$0xff]  }
  0x56   : > { %v3078_v0 = vld [vmem:[%s3581_s29 + $0x24] ss:$8 sps:$4 sm:$0xff]   ;;  %v3080_v1 = vld [vmem:[%s3581_s29 + $0xf4] ss:$8 sps:$4 sm:$0xff]   ;;  %v3082_v2 = vld [vmem:[%s3581_s29 + $0x20] ss:$8 sps:$4 sm:$0xff]  }
  0x57   : > { %v3083_v3 = vld [vmem:[%s3581_s29 + $0xf0] ss:$8 sps:$4 sm:$0xff]   ;;  %v3084_v4 = vld [vmem:[%s3581_s29 + $0x34] ss:$8 sps:$4 sm:$0xff]   ;;  %v3086_v5 = vld [vmem:[%s3581_s29 + $0x104] ss:$8 sps:$4 sm:$0xff]  }
  0x58   : > { %2653 = vmatpush3.bf16.msra.mxu0 %v3543_v45  ;;  %2747 = vmatpush3.bf16.msra.mxu1 %v3543_v45  ;;  %v3088_v6 = vld [vmem:[%s3581_s29 + $0x30] ss:$8 sps:$4 sm:$0xff]   ;;  %v3089_v7 = vld [vmem:[%s3581_s29 + $0x100] ss:$8 sps:$4 sm:$0xff]   ;;  %v3090_v8 = vld [vmem:[%s3581_s29 + $0x44] ss:$8 sps:$4 sm:$0xff]  }
  0x59   : > { %2654 = vmatprep.subr.bf16.mxu0 %v3551_v46  ;;  %2748 = vmatprep.subr.bf16.mxu1 %v3551_v46  ;;  %v3092_v9 = vld [vmem:[%s3581_s29 + $0x114] ss:$8 sps:$4 sm:$0xff]   ;;  %v3094_v10 = vld [vmem:[%s3581_s29 + $0x40] ss:$8 sps:$4 sm:$0xff]   ;;  %v3095_v11 = vld [vmem:[%s3581_s29 + $0x110] ss:$8 sps:$4 sm:$0xff]  }
  0x5a   : > { %v3096_v12 = vld [vmem:[%s3581_s29 + $0x54] ss:$8 sps:$4 sm:$0xff]   ;;  %v3098_v13 = vld [vmem:[%s3581_s29 + $0x124] ss:$8 sps:$4 sm:$0xff]   ;;  %v3100_v14 = vld [vmem:[%s3581_s29 + $0x50] ss:$8 sps:$4 sm:$0xff]  }
  0x5b   : > { %v3101_v15 = vld [vmem:[%s3581_s29 + $0x120] ss:$8 sps:$4 sm:$0xff]   ;;  %v3102_v16 = vld [vmem:[%s3581_s29 + $0x64] ss:$8 sps:$4 sm:$0xff]   ;;  %v3104_v17 = vld [vmem:[%s3581_s29 + $0x134] ss:$8 sps:$4 sm:$0xff]  }
  0x5c   : > { %2655 = vmatpush3.bf16.msra.mxu0 %v3558_v47  ;;  %2749 = vmatpush3.bf16.msra.mxu1 %v3558_v47  ;;  %v3106_v18 = vld [vmem:[%s3581_s29 + $0x60] ss:$8 sps:$4 sm:$0xff]   ;;  %v3107_v19 = vld [vmem:[%s3581_s29 + $0x130] ss:$8 sps:$4 sm:$0xff]   ;;  %v3108_v20 = vld [vmem:[%s3581_s29 + $0x74] ss:$8 sps:$4 sm:$0xff]  }
  0x5d   : > { %2656 = vmatprep.subr.bf16.mxu0 %v3565_v48  ;;  %2750 = vmatprep.subr.bf16.mxu1 %v3565_v48  ;;  %v3110_v21 = vld [vmem:[%s3581_s29 + $0x144] ss:$8 sps:$4 sm:$0xff]   ;;  %v3112_v22 = vld [vmem:[%s3581_s29 + $0x70] ss:$8 sps:$4 sm:$0xff]   ;;  %v3113_v23 = vld [vmem:[%s3581_s29 + $0x140] ss:$8 sps:$4 sm:$0xff]  }
  0x5e   : > { %v3114_v24 = vld [vmem:[%s3581_s29 + $0x84] ss:$8 sps:$4 sm:$0xff]   ;;  %v3116_v25 = vld [vmem:[%s3581_s29 + $0x154] ss:$8 sps:$4 sm:$0xff]   ;;  %v3118_v26 = vld [vmem:[%s3581_s29 + $0x80] ss:$8 sps:$4 sm:$0xff]  }
  0x5f   : > { %v3119_v27 = vld [vmem:[%s3581_s29 + $0x150] ss:$8 sps:$4 sm:$0xff]   ;;  %v3120_v28 = vld [vmem:[%s3581_s29 + $0x94] ss:$8 sps:$4 sm:$0xff]   ;;  %v3122_v29 = vld [vmem:[%s3581_s29 + $0x164] ss:$8 sps:$4 sm:$0xff]  }
  0x60   : > { %2657 = vmatpush3.bf16.msra.mxu0 %v3572_v49  ;;  %2751 = vmatpush3.bf16.msra.mxu1 %v3572_v49  ;;  %v3124_v30 = vld [vmem:[%s3581_s29 + $0x90] ss:$8 sps:$4 sm:$0xff]   ;;  %v3125_v31 = vld [vmem:[%s3581_s29 + $0x160] ss:$8 sps:$4 sm:$0xff]   ;;  %v3126_v32 = vld [vmem:[%s3581_s29 + $0xa4] ss:$8 sps:$4 sm:$0xff]  }
  0x61   : > { %2658 = vmatprep.subr.bf16.mxu0 %v3579_v50  ;;  %2752 = vmatprep.subr.bf16.mxu1 %v3579_v50  ;;  %v3128_v33 = vld [vmem:[%s3581_s29 + $0x174] ss:$8 sps:$4 sm:$0xff]   ;;  %v3130_v34 = vld [vmem:[%s3581_s29 + $0xa0] ss:$8 sps:$4 sm:$0xff]   ;;  %v3131_v35 = vld [vmem:[%s3581_s29 + $0x170] ss:$8 sps:$4 sm:$0xff]  }
  0x62   : > { %v3132_v36 = vld [vmem:[%s3581_s29 + $0xb4] ss:$8 sps:$4 sm:$0xff]   ;;  %v3134_v37 = vld [vmem:[%s3581_s29 + $0x184] ss:$8 sps:$4 sm:$0xff]   ;;  %v3136_v38 = vld [vmem:[%s3581_s29 + $0xb0] ss:$8 sps:$4 sm:$0xff]  }
  0x63   : > { %v3137_v39 = vld [vmem:[%s3581_s29 + $0x180] ss:$8 sps:$4 sm:$0xff]   ;;  %v3156_v52 = vld [vmem:[%s3581_s29 + $0x1c4] ss:$8 sps:$4 sm:$0xff]  }
  0x64   : > { %2659 = vmatpush3.bf16.msra.mxu0 %v3590_v53  ;;  %2753 = vmatpush3.bf16.msra.mxu1 %v3590_v53  ;;  %v3155_v51 = vld [vmem:[%s3581_s29 + $0x280] ss:$8 sps:$4 sm:$0xff]  }
  0x65   : > { %2660 = vmatprep.subr.bf16.mxu0 %v3597_v54  ;;  %2754 = vmatprep.subr.bf16.mxu1 %v3597_v54 }
  0x68   : > { %2661 = vmatpush3.bf16.msra.mxu0 %v3604_v55  ;;  %2755 = vmatpush3.bf16.msra.mxu1 %v3604_v55 }
  0x69   : > { %2662 = vmatprep.subr.bf16.mxu0 %v3611_v56  ;;  %2756 = vmatprep.subr.bf16.mxu1 %v3611_v56 }
  0x6c   : > { %2663 = vmatpush3.bf16.msra.mxu0 %v3618_v57  ;;  %2757 = vmatpush3.bf16.msra.mxu1 %v3618_v57 }
  0x6d   : > { %2836 = vmatprep.subr.bf16.mxu0 %v3050_v40  ;;  %2930 = vmatprep.subr.bf16.mxu1 %v3050_v40  ;;  %v3138_v40 = vld [vmem:[%s3581_s29 + $0xc4] ss:$8 sps:$4 sm:$0xff]  }
  0x6f   : > { %947 = vmatmul.mubr.bf16.vlgmr.msra.gmra.mxu0 %v3066_v58  ;;  %1267 = vmatmul.mubr.bf16.vlgmr.msra.gmra.mxu1 %v3069_v59  ;;  %v3166_v58 = vld [vmem:[%s3581_s29 + $0x1d0] ss:$8 sps:$4 sm:$0xff]   ;;  %v3167_v59 = vld [vmem:[%s3581_s29 + $0x2a0] ss:$8 sps:$4 sm:$0xff]  }
  0x70   : > { %2837 = vmatpush3.bf16.msra.mxu0 %v3051_v41  ;;  %2931 = vmatpush3.bf16.msra.mxu1 %v3051_v41  ;;  %v3140_v41 = vld [vmem:[%s3581_s29 + $0x194] ss:$8 sps:$4 sm:$0xff]  }
  0x71   : > { %954 = vmatprep.mubr.bf16.mxu0 %v3072_v60  ;;  %1274 = vmatprep.mubr.bf16.mxu1 %v3074_v61  ;;  %v3168_v60 = vld [vmem:[%s3581_s29 + $0x1e4] ss:$8 sps:$4 sm:$0xff]   ;;  %v3170_v61 = vld [vmem:[%s3581_s29 + $0x2b4] ss:$8 sps:$4 sm:$0xff]  }
  0x72   : > { %2838 = vmatprep.subr.bf16.mxu0 %v3524_v42  ;;  %2932 = vmatprep.subr.bf16.mxu1 %v3524_v42  ;;  %v3142_v42 = vld [vmem:[%s3581_s29 + $0xc0] ss:$8 sps:$4 sm:$0xff]  }
  0x74   : > { %2839 = vmatpush3.bf16.msra.mxu0 %v3529_v43  ;;  %2933 = vmatpush3.bf16.msra.mxu1 %v3529_v43  ;;  %v3143_v43 = vld [vmem:[%s3581_s29 + $0x190] ss:$8 sps:$4 sm:$0xff]  }
  0x75   : > { %2840 = vmatprep.subr.bf16.mxu0 %v3536_v44  ;;  %2934 = vmatprep.subr.bf16.mxu1 %v3536_v44  ;;  %v3146_v44 = vld [vmem:[%s3581_s29 + $0x1a4] ss:$8 sps:$4 sm:$0xff]  }
  0x77   : > { %955 = vmatmul.mubr.bf16.gmra.mxu0 %v3076_v62  ;;  %1275 = vmatmul.mubr.bf16.gmra.mxu1 %v3077_v63  ;;  %v3172_v62 = vld [vmem:[%s3581_s29 + $0x1e0] ss:$8 sps:$4 sm:$0xff]   ;;  %v3173_v63 = vld [vmem:[%s3581_s29 + $0x2b0] ss:$8 sps:$4 sm:$0xff]  }
  0x78   : > { %962 = vmatprep.mubr.bf16.mxu0 %v3078_v0  ;;  %1282 = vmatprep.mubr.bf16.mxu1 %v3080_v1  ;;  %v3174_v0 = vld [vmem:[%s3581_s29 + $0x1f4] ss:$8 sps:$4 sm:$0xff]   ;;  %v3176_v1 = vld [vmem:[%s3581_s29 + $0x2c4] ss:$8 sps:$4 sm:$0xff]  }
  0x79   : > { %2841 = vmatpush3.bf16.msra.mxu0 %v3543_v45  ;;  %2935 = vmatpush3.bf16.msra.mxu1 %v3543_v45  ;;  %v3149_v45 = vld [vmem:[%s3581_s29 + $0x274] ss:$8 sps:$4 sm:$0xff]  }
  0x7a   : > { %2842 = vmatprep.subr.bf16.mxu0 %v3551_v46  ;;  %2936 = vmatprep.subr.bf16.mxu1 %v3551_v46  ;;  %v3144_v46 = vld [vmem:[%s3581_s29 + $0x1a0] ss:$8 sps:$4 sm:$0xff]  }
  0x7d   : > { %2843 = vmatpush3.bf16.msra.mxu0 %v3558_v47  ;;  %2937 = vmatpush3.bf16.msra.mxu1 %v3558_v47  ;;  %v3147_v47 = vld [vmem:[%s3581_s29 + $0x270] ss:$8 sps:$4 sm:$0xff]  }
  0x7e   : > { %2844 = vmatprep.subr.bf16.mxu0 %v3565_v48  ;;  %2938 = vmatprep.subr.bf16.mxu1 %v3565_v48  ;;  %v3150_v48 = vld [vmem:[%s3581_s29 + $0x1b4] ss:$8 sps:$4 sm:$0xff]  }
  0x7f   : > { %963 = vmatmul.mubr.bf16.gmra.mxu0 %v3082_v2  ;;  %1283 = vmatmul.mubr.bf16.gmra.mxu1 %v3083_v3  ;;  %v3178_v2 = vld [vmem:[%s3581_s29 + $0x1f0] ss:$8 sps:$4 sm:$0xff]   ;;  %v3179_v3 = vld [vmem:[%s3581_s29 + $0x2c0] ss:$8 sps:$4 sm:$0xff]  }
  0x80   : > { %970 = vmatprep.mubr.bf16.mxu0 %v3084_v4  ;;  %1290 = vmatprep.mubr.bf16.mxu1 %v3086_v5  ;;  %v3180_v4 = vld [vmem:[%s3581_s29 + $0x204] ss:$8 sps:$4 sm:$0xff]   ;;  %v3182_v5 = vld [vmem:[%s3581_s29 + $0x2d4] ss:$8 sps:$4 sm:$0xff]  }
  0x81   : > { %2845 = vmatpush3.bf16.msra.mxu0 %v3572_v49  ;;  %2939 = vmatpush3.bf16.msra.mxu1 %v3572_v49  ;;  %v3152_v49 = vld [vmem:[%s3581_s29 + $0x284] ss:$8 sps:$4 sm:$0xff]  }
  0x82   : > { %2846 = vmatprep.subr.bf16.mxu0 %v3579_v50  ;;  %2940 = vmatprep.subr.bf16.mxu1 %v3579_v50  ;;  %v3154_v50 = vld [vmem:[%s3581_s29 + $0x1b0] ss:$8 sps:$4 sm:$0xff]  }
  0x85   : > { %2847 = vmatpush3.bf16.msra.mxu0 %v3590_v53  ;;  %2941 = vmatpush3.bf16.msra.mxu1 %v3590_v53  ;;  %v3158_v53 = vld [vmem:[%s3581_s29 + $0x294] ss:$8 sps:$4 sm:$0xff]  }
  0x86   : > { %2848 = vmatprep.subr.bf16.mxu0 %v3597_v54  ;;  %2942 = vmatprep.subr.bf16.mxu1 %v3597_v54  ;;  %v3160_v54 = vld [vmem:[%s3581_s29 + $0x1c0] ss:$8 sps:$4 sm:$0xff]  }
  0x87   : > { %971 = vmatmul.mubr.bf16.gmra.mxu0 %v3088_v6  ;;  %1291 = vmatmul.mubr.bf16.gmra.mxu1 %v3089_v7  ;;  %v3184_v6 = vld [vmem:[%s3581_s29 + $0x200] ss:$8 sps:$4 sm:$0xff]   ;;  %v3185_v7 = vld [vmem:[%s3581_s29 + $0x2d0] ss:$8 sps:$4 sm:$0xff]  }
  0x88   : > { %978 = vmatprep.mubr.bf16.mxu0 %v3090_v8  ;;  %1298 = vmatprep.mubr.bf16.mxu1 %v3092_v9  ;;  %v3186_v8 = vld [vmem:[%s3581_s29 + $0x214] ss:$8 sps:$4 sm:$0xff]   ;;  %v3188_v9 = vld [vmem:[%s3581_s29 + $0x2e4] ss:$8 sps:$4 sm:$0xff]  }
  0x89   : > { %2849 = vmatpush3.bf16.msra.mxu0 %v3604_v55  ;;  %2943 = vmatpush3.bf16.msra.mxu1 %v3604_v55  ;;  %v3161_v55 = vld [vmem:[%s3581_s29 + $0x290] ss:$8 sps:$4 sm:$0xff]  }
  0x8a   : > { %2850 = vmatprep.subr.bf16.mxu0 %v3611_v56  ;;  %2944 = vmatprep.subr.bf16.mxu1 %v3611_v56  ;;  %v3162_v56 = vld [vmem:[%s3581_s29 + $0x1d4] ss:$8 sps:$4 sm:$0xff]  }
  0x8d   : > { %2851 = vmatpush3.bf16.msra.mxu0 %v3618_v57  ;;  %2945 = vmatpush3.bf16.msra.mxu1 %v3618_v57  ;;  %v3164_v57 = vld [vmem:[%s3581_s29 + $0x2a4] ss:$8 sps:$4 sm:$0xff]  }
  0x8f   : > { %979 = vmatmul.mubr.bf16.gmra.mxu0 %v3094_v10  ;;  %1299 = vmatmul.mubr.bf16.gmra.mxu1 %v3095_v11  ;;  %v3190_v10 = vld [vmem:[%s3581_s29 + $0x210] ss:$8 sps:$4 sm:$0xff]   ;;  %v3191_v11 = vld [vmem:[%s3581_s29 + $0x2e0] ss:$8 sps:$4 sm:$0xff]  }
  0x90   : > { %986 = vmatprep.mubr.bf16.mxu0 %v3096_v12  ;;  %1306 = vmatprep.mubr.bf16.mxu1 %v3098_v13  ;;  %v3192_v12 = vld [vmem:[%s3581_s29 + $0x224] ss:$8 sps:$4 sm:$0xff]   ;;  %v3194_v13 = vld [vmem:[%s3581_s29 + $0x2f4] ss:$8 sps:$4 sm:$0xff]  }
  0x97   : > { %987 = vmatmul.mubr.bf16.gmra.mxu0 %v3100_v14  ;;  %1307 = vmatmul.mubr.bf16.gmra.mxu1 %v3101_v15  ;;  %v3196_v14 = vld [vmem:[%s3581_s29 + $0x220] ss:$8 sps:$4 sm:$0xff]   ;;  %v3197_v15 = vld [vmem:[%s3581_s29 + $0x2f0] ss:$8 sps:$4 sm:$0xff]  }
  0x98   : > { %994 = vmatprep.mubr.bf16.mxu0 %v3102_v16  ;;  %1314 = vmatprep.mubr.bf16.mxu1 %v3104_v17  ;;  %v3198_v16 = vld [vmem:[%s3581_s29 + $0x234] ss:$8 sps:$4 sm:$0xff]   ;;  %v3200_v17 = vld [vmem:[%s3581_s29 + $0x304] ss:$8 sps:$4 sm:$0xff]  }
  0x9f   : > { %995 = vmatmul.mubr.bf16.gmra.mxu0 %v3106_v18  ;;  %1315 = vmatmul.mubr.bf16.gmra.mxu1 %v3107_v19  ;;  %v3202_v18 = vld [vmem:[%s3581_s29 + $0x230] ss:$8 sps:$4 sm:$0xff]   ;;  %v3203_v19 = vld [vmem:[%s3581_s29 + $0x300] ss:$8 sps:$4 sm:$0xff]  }
  0xa0   : > { %1002 = vmatprep.mubr.bf16.mxu0 %v3108_v20  ;;  %1322 = vmatprep.mubr.bf16.mxu1 %v3110_v21  ;;  %v3204_v20 = vld [vmem:[%s3581_s29 + $0x244] ss:$8 sps:$4 sm:$0xff]   ;;  %v3206_v21 = vld [vmem:[%s3581_s29 + $0x314] ss:$8 sps:$4 sm:$0xff]  }
  0xa7   : > { %1003 = vmatmul.mubr.bf16.gmra.mxu0 %v3112_v22  ;;  %1323 = vmatmul.mubr.bf16.gmra.mxu1 %v3113_v23  ;;  %v3208_v22 = vld [vmem:[%s3581_s29 + $0x240] ss:$8 sps:$4 sm:$0xff]   ;;  %v3209_v23 = vld [vmem:[%s3581_s29 + $0x310] ss:$8 sps:$4 sm:$0xff]  }
  0xa8   : > { %1010 = vmatprep.mubr.bf16.mxu0 %v3114_v24  ;;  %1330 = vmatprep.mubr.bf16.mxu1 %v3116_v25  ;;  %v3210_v24 = vld [vmem:[%s3581_s29 + $0x254] ss:$8 sps:$4 sm:$0xff]   ;;  %v3212_v25 = vld [vmem:[%s3581_s29 + $0x324] ss:$8 sps:$4 sm:$0xff]  }
  0xaf   : > { %1011 = vmatmul.mubr.bf16.gmra.mxu0 %v3118_v26  ;;  %1331 = vmatmul.mubr.bf16.gmra.mxu1 %v3119_v27  ;;  %v3214_v26 = vld [vmem:[%s3581_s29 + $0x250] ss:$8 sps:$4 sm:$0xff]   ;;  %v3215_v27 = vld [vmem:[%s3581_s29 + $0x320] ss:$8 sps:$4 sm:$0xff]  }
  0xb0   : > { %1018 = vmatprep.mubr.bf16.mxu0 %v3120_v28  ;;  %1338 = vmatprep.mubr.bf16.mxu1 %v3122_v29  ;;  %v3216_v28 = vld [vmem:[%s3581_s29 + $0x264] ss:$8 sps:$4 sm:$0xff]   ;;  %v3218_v29 = vld [vmem:[%s3581_s29 + $0x334] ss:$8 sps:$4 sm:$0xff]  }
  0xb7   : > { %1019 = vmatmul.mubr.bf16.gmra.mxu0 %v3124_v30  ;;  %1339 = vmatmul.mubr.bf16.gmra.mxu1 %v3125_v31 }
  0xb8   : > { %1026 = vmatprep.mubr.bf16.mxu0 %v3126_v32  ;;  %1346 = vmatprep.mubr.bf16.mxu1 %v3128_v33  ;;  %v3755_v32 = vld [vmem:[%s3978_s2] ss:$0 sm:$0xff] }
  0xbf   : > { %1027 = vmatmul.mubr.bf16.gmra.mxu0 %v3130_v34  ;;  %1347 = vmatmul.mubr.bf16.gmra.mxu1 %v3131_v35 }
  0xc0   : > { %1034 = vmatprep.mubr.bf16.mxu0 %v3132_v36  ;;  %1354 = vmatprep.mubr.bf16.mxu1 %v3134_v37 }
  0xc7   : > { %1035 = vmatmul.mubr.bf16.gmra.mxu0 %v3136_v38  ;;  %1355 = vmatmul.mubr.bf16.gmra.mxu1 %v3137_v39  ;;  %v3220_v39 = vld [vmem:[%s3581_s29 + $0x260] ss:$8 sps:$4 sm:$0xff]  }
  0xc8   : > { %1042 = vmatprep.mubr.bf16.mxu0 %v3138_v40  ;;  %1362 = vmatprep.mubr.bf16.mxu1 %v3140_v41  ;;  %v3221_v40 = vld [vmem:[%s3581_s29 + $0x330] ss:$8 sps:$4 sm:$0xff]  }
  0xcf   : > { %1043 = vmatmul.mubr.bf16.gmra.mxu0 %v3142_v42  ;;  %1363 = vmatmul.mubr.bf16.gmra.mxu1 %v3143_v43 }
  0xd0   : > { %1612 = vmatprep.mubr.bf16.mxu0 %v3146_v44  ;;  %1958 = vmatprep.mubr.bf16.mxu1 %v3149_v45 }
  0xd7   : > { %1613 = vmatmul.mubr.bf16.vlgmr.msra.gmra.mxu0 %v3144_v46  ;;  %1959 = vmatmul.mubr.bf16.vlgmr.msra.gmra.mxu1 %v3147_v47 }
  0xd8   : > { %1620 = vmatprep.mubr.bf16.mxu0 %v3150_v48  ;;  %1966 = vmatprep.mubr.bf16.mxu1 %v3152_v49 }
  0xdf   : > { %1621 = vmatmul.mubr.bf16.gmra.mxu0 %v3154_v50  ;;  %1967 = vmatmul.mubr.bf16.gmra.mxu1 %v3155_v51 }
  0xe0   : > { %1628 = vmatprep.mubr.bf16.mxu0 %v3156_v52  ;;  %1974 = vmatprep.mubr.bf16.mxu1 %v3158_v53 }
  0xe7   : > { %1629 = vmatmul.mubr.bf16.gmra.mxu0 %v3160_v54  ;;  %1975 = vmatmul.mubr.bf16.gmra.mxu1 %v3161_v55 }
  0xe8   : > { %1636 = vmatprep.mubr.bf16.mxu0 %v3162_v56  ;;  %1982 = vmatprep.mubr.bf16.mxu1 %v3164_v57 }
  0xef   : > { %1637 = vmatmul.mubr.bf16.gmra.mxu0 %v3166_v58  ;;  %1983 = vmatmul.mubr.bf16.gmra.mxu1 %v3167_v59 }
  0xf0   : > { %1644 = vmatprep.mubr.bf16.mxu0 %v3168_v60  ;;  %1990 = vmatprep.mubr.bf16.mxu1 %v3170_v61 }
  0xf7   : > { %1645 = vmatmul.mubr.bf16.gmra.mxu0 %v3172_v62  ;;  %1991 = vmatmul.mubr.bf16.gmra.mxu1 %v3173_v63 }
  0xf8   : > { %1652 = vmatprep.mubr.bf16.mxu0 %v3174_v0  ;;  %1998 = vmatprep.mubr.bf16.mxu1 %v3176_v1 }
  0xff   : > { %1653 = vmatmul.mubr.bf16.gmra.mxu0 %v3178_v2  ;;  %1999 = vmatmul.mubr.bf16.gmra.mxu1 %v3179_v3 }
 0x100   : > { %1660 = vmatprep.mubr.bf16.mxu0 %v3180_v4  ;;  %2006 = vmatprep.mubr.bf16.mxu1 %v3182_v5 }
 0x107   : > { %1661 = vmatmul.mubr.bf16.gmra.mxu0 %v3184_v6  ;;  %2007 = vmatmul.mubr.bf16.gmra.mxu1 %v3185_v7 }
 0x108   : > { %1668 = vmatprep.mubr.bf16.mxu0 %v3186_v8  ;;  %2014 = vmatprep.mubr.bf16.mxu1 %v3188_v9 }
 0x10f   : > { %1669 = vmatmul.mubr.bf16.gmra.mxu0 %v3190_v10  ;;  %2015 = vmatmul.mubr.bf16.gmra.mxu1 %v3191_v11 }
 0x110   : > { %1676 = vmatprep.mubr.bf16.mxu0 %v3192_v12  ;;  %2022 = vmatprep.mubr.bf16.mxu1 %v3194_v13 }
 0x117   : > { %1677 = vmatmul.mubr.bf16.gmra.mxu0 %v3196_v14  ;;  %2023 = vmatmul.mubr.bf16.gmra.mxu1 %v3197_v15 }
 0x118   : > { %1684 = vmatprep.mubr.bf16.mxu0 %v3198_v16  ;;  %2030 = vmatprep.mubr.bf16.mxu1 %v3200_v17 }
 0x11f   : > { %1685 = vmatmul.mubr.bf16.gmra.mxu0 %v3202_v18  ;;  %2031 = vmatmul.mubr.bf16.gmra.mxu1 %v3203_v19 }
 0x120   : > { %1692 = vmatprep.mubr.bf16.mxu0 %v3204_v20  ;;  %2038 = vmatprep.mubr.bf16.mxu1 %v3206_v21 }
 0x127   : > { %1693 = vmatmul.mubr.bf16.gmra.mxu0 %v3208_v22  ;;  %2039 = vmatmul.mubr.bf16.gmra.mxu1 %v3209_v23 }
 0x128   : > { %1700 = vmatprep.mubr.bf16.mxu0 %v3210_v24  ;;  %2046 = vmatprep.mubr.bf16.mxu1 %v3212_v25 }
 0x12f   : > { %v2664_v30 = vpop.f32.mrf.mxu0  ;;  %v2758_v31 = vpop.f32.mrf.mxu1  ;;  %1701 = vmatmul.mubr.bf16.gmra.mxu0 %v3214_v26  ;;  %2047 = vmatmul.mubr.bf16.gmra.mxu1 %v3215_v27 }
 0x130   : > { %1708 = vmatprep.mubr.bf16.mxu0 %v3216_v28  ;;  %2054 = vmatprep.mubr.bf16.mxu1 %v3218_v29 }
 0x131   : > { %v2665_v33 = vpop.f32.mrf.mxu0  ;;  %v2759_v34 = vpop.f32.mrf.mxu1 }
 0x132   : > { %v2666_v35 = vadd.f32 %v2665_v33, %v2664_v30  ;;  %v2760_v36 = vadd.f32 %v2759_v34, %v2758_v31 }
 0x133   : > { %v2667_v37 = vpop.f32.mrf.mxu0  ;;  %v2761_v38 = vpop.f32.mrf.mxu1 }
 0x134   : > { %v949_v41 = vadd.f32 %v2666_v35, %v3755_v32  ;;  %v1269_v42 = vadd.f32 %v2760_v36, %v3755_v32 }
 0x135   : > { %v2668_v43 = vpop.f32.mrf.mxu0  ;;  %v2762_v44 = vpop.f32.mrf.mxu1 }
 0x136   : > { %v1051_v45 = vmax.f32 %v949_v41, 0.0  ;;  %v1371_v46 = vmax.f32 %v1269_v42, 0.0  ;;  %v2669_v47 = vadd.f32 %v2668_v43, %v2667_v37  ;;  %v2763_v48 = vadd.f32 %v2762_v44, %v2761_v38 }
 0x137   : > { %v2670_v49 = vpop.f32.mrf.mxu0  ;;  %v2764_v50 = vpop.f32.mrf.mxu1  ;;  %1709 = vmatmul.mubr.bf16.gmra.mxu0 %v3220_v39  ;;  %2055 = vmatmul.mubr.bf16.gmra.mxu1 %v3221_v40 }
 0x138   : > { %v3761_v51 = vmax.f32 %v1051_v45, %v1371_v46  ;;  %v952_v52 = vadd.f32 %v2669_v47, %v3755_v32  ;;  %v1272_v53 = vadd.f32 %v2763_v48, %v3755_v32 }
 0x139   : > { %v2671_v54 = vpop.f32.mrf.mxu0  ;;  %v2765_v55 = vpop.f32.mrf.mxu1 }
 0x13a   : > { %v1052_v56 = vmax.f32 %v952_v52, 0.0  ;;  %v1372_v57 = vmax.f32 %v1272_v53, 0.0  ;;  %v2672_v58 = vadd.f32 %v2671_v54, %v2670_v49  ;;  %v2766_v59 = vadd.f32 %v2765_v55, %v2764_v50 }
 0x13b   : > { %v2673_v60 = vpop.f32.mrf.mxu0  ;;  %v2767_v61 = vpop.f32.mrf.mxu1 }
 0x13c   : > { %v3765_v62 = vmax.f32 %v1052_v56, %v1372_v57  ;;  %v957_v63 = vadd.f32 %v2672_v58, %v3755_v32  ;;  %v1277_v0 = vadd.f32 %v2766_v59, %v3755_v32 }
 0x13d   : > { %v2674_v1 = vpop.f32.mrf.mxu0  ;;  %v2768_v2 = vpop.f32.mrf.mxu1 }
 0x13e   : > { %v1053_v3 = vmax.f32 %v957_v63, 0.0  ;;  %v1373_v4 = vmax.f32 %v1277_v0, 0.0  ;;  %v2675_v5 = vadd.f32 %v2674_v1, %v2673_v60  ;;  %v2769_v6 = vadd.f32 %v2768_v2, %v2767_v61 }
 0x13f   : > { %v2676_v7 = vpop.f32.mrf.mxu0  ;;  %v2770_v8 = vpop.f32.mrf.mxu1 }
 0x140   : > { %v3769_v9 = vmax.f32 %v1053_v3, %v1373_v4  ;;  %v960_v10 = vadd.f32 %v2675_v5, %v3755_v32  ;;  %v1280_v11 = vadd.f32 %v2769_v6, %v3755_v32 }
 0x141   : > { %v2677_v12 = vpop.f32.mrf.mxu0  ;;  %v2771_v13 = vpop.f32.mrf.mxu1 }
 0x142   : > { %v1054_v14 = vmax.f32 %v960_v10, 0.0  ;;  %v1374_v15 = vmax.f32 %v1280_v11, 0.0  ;;  %v2678_v16 = vadd.f32 %v2677_v12, %v2676_v7  ;;  %v2772_v17 = vadd.f32 %v2771_v13, %v2770_v8 }
 0x143   : > { %v2679_v18 = vpop.f32.mrf.mxu0  ;;  %v2773_v19 = vpop.f32.mrf.mxu1 }
 0x144   : > { %v3773_v20 = vmax.f32 %v1054_v14, %v1374_v15  ;;  %v965_v21 = vadd.f32 %v2678_v16, %v3755_v32  ;;  %v1285_v22 = vadd.f32 %v2772_v17, %v3755_v32 }
 0x145   : > { %v2680_v23 = vpop.f32.mrf.mxu0  ;;  %v2774_v24 = vpop.f32.mrf.mxu1 }
 0x146   : > { %v1055_v25 = vmax.f32 %v965_v21, 0.0  ;;  %v1375_v26 = vmax.f32 %v1285_v22, 0.0  ;;  %v2681_v27 = vadd.f32 %v2680_v23, %v2679_v18  ;;  %v2775_v28 = vadd.f32 %v2774_v24, %v2773_v19 }
 0x147   : > { %v2682_v29 = vpop.f32.mrf.mxu0  ;;  %v2776_v30 = vpop.f32.mrf.mxu1 }
 0x148   : > { %v3777_v31 = vmax.f32 %v1055_v25, %v1375_v26  ;;  %v968_v33 = vadd.f32 %v2681_v27, %v3755_v32  ;;  %v1288_v34 = vadd.f32 %v2775_v28, %v3755_v32 }
 0x149   : > { %v2683_v35 = vpop.f32.mrf.mxu0  ;;  %v2777_v36 = vpop.f32.mrf.mxu1 }
 0x14a   : > { %v1056_v37 = vmax.f32 %v968_v33, 0.0  ;;  %v1376_v38 = vmax.f32 %v1288_v34, 0.0  ;;  %v2684_v39 = vadd.f32 %v2683_v35, %v2682_v29  ;;  %v2778_v40 = vadd.f32 %v2777_v36, %v2776_v30 }
 0x14b   : > { %v2685_v41 = vpop.f32.mrf.mxu0  ;;  %v2779_v42 = vpop.f32.mrf.mxu1 }
 0x14c   : > { %v3781_v43 = vmax.f32 %v1056_v37, %v1376_v38  ;;  %v973_v44 = vadd.f32 %v2684_v39, %v3755_v32  ;;  %v1293_v45 = vadd.f32 %v2778_v40, %v3755_v32 }
 0x14d   : > { %v2686_v46 = vpop.f32.mrf.mxu0  ;;  %v2780_v47 = vpop.f32.mrf.mxu1 }
 0x14e   : > { %v1057_v48 = vmax.f32 %v973_v44, 0.0  ;;  %v1377_v49 = vmax.f32 %v1293_v45, 0.0  ;;  %v2687_v50 = vadd.f32 %v2686_v46, %v2685_v41  ;;  %v2781_v52 = vadd.f32 %v2780_v47, %v2779_v42 }
 0x14f   : > { %v2688_v53 = vpop.f32.mrf.mxu0  ;;  %v2782_v54 = vpop.f32.mrf.mxu1 }
 0x150   : > { %v3785_v55 = vmax.f32 %v1057_v48, %v1377_v49  ;;  %v976_v56 = vadd.f32 %v2687_v50, %v3755_v32  ;;  %v1296_v57 = vadd.f32 %v2781_v52, %v3755_v32 }
 0x151   : > { %v2689_v58 = vpop.f32.mrf.mxu0  ;;  %v2783_v59 = vpop.f32.mrf.mxu1 }
 0x152   : > { %v1058_v60 = vmax.f32 %v976_v56, 0.0  ;;  %v1378_v61 = vmax.f32 %v1296_v57, 0.0  ;;  %v2690_v63 = vadd.f32 %v2689_v58, %v2688_v53  ;;  %v2784_v0 = vadd.f32 %v2783_v59, %v2782_v54 }
 0x153   : > { %v2691_v1 = vpop.f32.mrf.mxu0  ;;  %v2785_v2 = vpop.f32.mrf.mxu1 }
 0x154   : > { %v3789_v3 = vmax.f32 %v1058_v60, %v1378_v61  ;;  %v981_v4 = vadd.f32 %v2690_v63, %v3755_v32  ;;  %v1301_v5 = vadd.f32 %v2784_v0, %v3755_v32 }
 0x155   : > { %v2692_v6 = vpop.f32.mrf.mxu0  ;;  %v2786_v7 = vpop.f32.mrf.mxu1 }
 0x156   : > { %v1059_v8 = vmax.f32 %v981_v4, 0.0  ;;  %v1379_v10 = vmax.f32 %v1301_v5, 0.0  ;;  %v2693_v11 = vadd.f32 %v2692_v6, %v2691_v1  ;;  %v2787_v12 = vadd.f32 %v2786_v7, %v2785_v2 }
 0x157   : > { %v2694_v13 = vpop.f32.mrf.mxu0  ;;  %v2788_v14 = vpop.f32.mrf.mxu1 }
 0x158   : > { %v3793_v15 = vmax.f32 %v1059_v8, %v1379_v10  ;;  %v984_v16 = vadd.f32 %v2693_v11, %v3755_v32  ;;  %v1304_v17 = vadd.f32 %v2787_v12, %v3755_v32 }
 0x159   : > { %v2695_v18 = vpop.f32.mrf.mxu0  ;;  %v2789_v19 = vpop.f32.mrf.mxu1 }
 0x15a   : > { %v1060_v21 = vmax.f32 %v984_v16, 0.0  ;;  %v1380_v22 = vmax.f32 %v1304_v17, 0.0  ;;  %v2696_v23 = vadd.f32 %v2695_v18, %v2694_v13  ;;  %v2790_v24 = vadd.f32 %v2789_v19, %v2788_v14 }
 0x15b   : > { %v2697_v25 = vpop.f32.mrf.mxu0  ;;  %v2791_v26 = vpop.f32.mrf.mxu1 }
 0x15c   : > { %v3797_v27 = vmax.f32 %v1060_v21, %v1380_v22  ;;  %v989_v28 = vadd.f32 %v2696_v23, %v3755_v32  ;;  %v1309_v29 = vadd.f32 %v2790_v24, %v3755_v32 }
 0x15d   : > { %v2698_v30 = vpop.f32.mrf.mxu0  ;;  %v2792_v33 = vpop.f32.mrf.mxu1 }
 0x15e   : > { %v1061_v34 = vmax.f32 %v989_v28, 0.0  ;;  %v1381_v35 = vmax.f32 %v1309_v29, 0.0  ;;  %v2699_v36 = vadd.f32 %v2698_v30, %v2697_v25  ;;  %v2793_v37 = vadd.f32 %v2792_v33, %v2791_v26 }
 0x15f   : > { %v2700_v38 = vpop.f32.mrf.mxu0  ;;  %v2794_v39 = vpop.f32.mrf.mxu1 }
 0x160   : > { %v3801_v40 = vmax.f32 %v1061_v34, %v1381_v35  ;;  %v992_v41 = vadd.f32 %v2699_v36, %v3755_v32  ;;  %v1312_v42 = vadd.f32 %v2793_v37, %v3755_v32 }
 0x161   : > { %v2701_v44 = vpop.f32.mrf.mxu0  ;;  %v2795_v45 = vpop.f32.mrf.mxu1 }
 0x162   : > { %v1062_v46 = vmax.f32 %v992_v41, 0.0  ;;  %v1382_v47 = vmax.f32 %v1312_v42, 0.0  ;;  %v2702_v48 = vadd.f32 %v2701_v44, %v2700_v38  ;;  %v2796_v49 = vadd.f32 %v2795_v45, %v2794_v39 }
 0x163   : > { %v2703_v50 = vpop.f32.mrf.mxu0  ;;  %v2797_v52 = vpop.f32.mrf.mxu1 }
 0x164   : > { %v3805_v53 = vmax.f32 %v1062_v46, %v1382_v47  ;;  %v997_v54 = vadd.f32 %v2702_v48, %v3755_v32  ;;  %v1317_v56 = vadd.f32 %v2796_v49, %v3755_v32 }
 0x165   : > { %v2704_v57 = vpop.f32.mrf.mxu0  ;;  %v2798_v58 = vpop.f32.mrf.mxu1 }
 0x166   : > { %v1063_v59 = vmax.f32 %v997_v54, 0.0  ;;  %v1383_v60 = vmax.f32 %v1317_v56, 0.0  ;;  %v2705_v61 = vadd.f32 %v2704_v57, %v2703_v50  ;;  %v2799_v63 = vadd.f32 %v2798_v58, %v2797_v52 }
 0x167   : > { %v2706_v0 = vpop.f32.mrf.mxu0  ;;  %v2800_v1 = vpop.f32.mrf.mxu1 }
 0x168   : > { %v3809_v2 = vmax.f32 %v1063_v59, %v1383_v60  ;;  %v1000_v4 = vadd.f32 %v2705_v61, %v3755_v32  ;;  %v1320_v5 = vadd.f32 %v2799_v63, %v3755_v32 }
 0x169   : > { %v2707_v6 = vpop.f32.mrf.mxu0  ;;  %v2801_v7 = vpop.f32.mrf.mxu1 }
 0x16a   : > { %v1064_v8 = vmax.f32 %v1000_v4, 0.0  ;;  %v1384_v10 = vmax.f32 %v1320_v5, 0.0  ;;  %v2708_v11 = vadd.f32 %v2707_v6, %v2706_v0  ;;  %v2802_v12 = vadd.f32 %v2801_v7, %v2800_v1 }
 0x16b   : > { %v2709_v13 = vpop.f32.mrf.mxu0  ;;  %v2803_v14 = vpop.f32.mrf.mxu1 }
 0x16c   : > { %v3813_v16 = vmax.f32 %v1064_v8, %v1384_v10  ;;  %v1005_v17 = vadd.f32 %v2708_v11, %v3755_v32  ;;  %v1325_v18 = vadd.f32 %v2802_v12, %v3755_v32 }
 0x16d   : > { %v2710_v19 = vpop.f32.mrf.mxu0  ;;  %v2804_v21 = vpop.f32.mrf.mxu1 }
 0x16e   : > { %v1065_v22 = vmax.f32 %v1005_v17, 0.0  ;;  %v1385_v23 = vmax.f32 %v1325_v18, 0.0  ;;  %v2711_v24 = vadd.f32 %v2710_v19, %v2709_v13  ;;  %v2805_v25 = vadd.f32 %v2804_v21, %v2803_v14 }
 0x16f   : > { %v2712_v26 = vpop.f32.mrf.mxu0  ;;  %v2806_v28 = vpop.f32.mrf.mxu1 }
 0x170   : > { %v3817_v29 = vmax.f32 %v1065_v22, %v1385_v23  ;;  %v1008_v30 = vadd.f32 %v2711_v24, %v3755_v32  ;;  %v1328_v33 = vadd.f32 %v2805_v25, %v3755_v32 }
 0x171   : > { %v2713_v34 = vpop.f32.mrf.mxu0  ;;  %v2807_v35 = vpop.f32.mrf.mxu1 }
 0x172   : > { %v1066_v36 = vmax.f32 %v1008_v30, 0.0  ;;  %v1386_v37 = vmax.f32 %v1328_v33, 0.0  ;;  %v2714_v38 = vadd.f32 %v2713_v34, %v2712_v26  ;;  %v2808_v39 = vadd.f32 %v2807_v35, %v2806_v28 }
 0x173   : > { %v2715_v41 = vpop.f32.mrf.mxu0  ;;  %v2809_v42 = vpop.f32.mrf.mxu1 }
 0x174   : > { %v3821_v44 = vmax.f32 %v1066_v36, %v1386_v37  ;;  %v1013_v45 = vadd.f32 %v2714_v38, %v3755_v32  ;;  %v1333_v46 = vadd.f32 %v2808_v39, %v3755_v32 }
 0x175   : > { %v2716_v47 = vpop.f32.mrf.mxu0  ;;  %v2810_v48 = vpop.f32.mrf.mxu1 }
 0x176   : > { %v1067_v49 = vmax.f32 %v1013_v45, 0.0  ;;  %v1387_v50 = vmax.f32 %v1333_v46, 0.0  ;;  %v2717_v52 = vadd.f32 %v2716_v47, %v2715_v41  ;;  %v2811_v54 = vadd.f32 %v2810_v48, %v2809_v42 }
 0x177   : > { %v2718_v56 = vpop.f32.mrf.mxu0  ;;  %v2812_v57 = vpop.f32.mrf.mxu1 }
 0x178   : > { %v3825_v58 = vmax.f32 %v1067_v49, %v1387_v50  ;;  %v1016_v59 = vadd.f32 %v2717_v52, %v3755_v32  ;;  %v1336_v60 = vadd.f32 %v2811_v54, %v3755_v32 }
 0x179   : > { %v2719_v61 = vpop.f32.mrf.mxu0  ;;  %v2813_v63 = vpop.f32.mrf.mxu1 }
 0x17a   : > { %v1068_v0 = vmax.f32 %v1016_v59, 0.0  ;;  %v1388_v1 = vmax.f32 %v1336_v60, 0.0  ;;  %v2720_v4 = vadd.f32 %v2719_v61, %v2718_v56  ;;  %v2814_v5 = vadd.f32 %v2813_v63, %v2812_v57 }
 0x17b   : > { %v2721_v6 = vpop.f32.mrf.mxu0  ;;  %v2815_v7 = vpop.f32.mrf.mxu1 }
 0x17c   : > { %v3829_v8 = vmax.f32 %v1068_v0, %v1388_v1  ;;  %v1021_v10 = vadd.f32 %v2720_v4, %v3755_v32  ;;  %v1341_v11 = vadd.f32 %v2814_v5, %v3755_v32 }
 0x17d   : > { %v2722_v12 = vpop.f32.mrf.mxu0  ;;  %v2816_v13 = vpop.f32.mrf.mxu1 }
 0x17e   : > { %v1069_v14 = vmax.f32 %v1021_v10, 0.0  ;;  %v1389_v17 = vmax.f32 %v1341_v11, 0.0  ;;  %v2723_v18 = vadd.f32 %v2722_v12, %v2721_v6  ;;  %v2817_v19 = vadd.f32 %v2816_v13, %v2815_v7 }
 0x17f   : > { %v2724_v21 = vpop.f32.mrf.mxu0  ;;  %v2818_v22 = vpop.f32.mrf.mxu1 }
 0x180   : > { %v3833_v23 = vmax.f32 %v1069_v14, %v1389_v17  ;;  %v1024_v24 = vadd.f32 %v2723_v18, %v3755_v32  ;;  %v1344_v25 = vadd.f32 %v2817_v19, %v3755_v32 }
 0x181   : > { %v2725_v26 = vpop.f32.mrf.mxu0  ;;  %v2819_v28 = vpop.f32.mrf.mxu1 }
 0x182   : > { %v1070_v30 = vmax.f32 %v1024_v24, 0.0  ;;  %v1390_v33 = vmax.f32 %v1344_v25, 0.0  ;;  %v2726_v34 = vadd.f32 %v2725_v26, %v2724_v21  ;;  %v2820_v35 = vadd.f32 %v2819_v28, %v2818_v22 }
 0x183   : > { %v2727_v36 = vpop.f32.mrf.mxu0  ;;  %v2821_v37 = vpop.f32.mrf.mxu1 }
 0x184   : > { %v3837_v38 = vmax.f32 %v1070_v30, %v1390_v33  ;;  %v1029_v39 = vadd.f32 %v2726_v34, %v3755_v32  ;;  %v1349_v41 = vadd.f32 %v2820_v35, %v3755_v32 }
 0x185   : > { %v2728_v42 = vpop.f32.mrf.mxu0  ;;  %v2822_v45 = vpop.f32.mrf.mxu1 }
 0x186   : > { %v1071_v46 = vmax.f32 %v1029_v39, 0.0  ;;  %v1391_v47 = vmax.f32 %v1349_v41, 0.0  ;;  %v2729_v48 = vadd.f32 %v2728_v42, %v2727_v36  ;;  %v2823_v49 = vadd.f32 %v2822_v45, %v2821_v37 }
 0x187   : > { %v2730_v50 = vpop.f32.mrf.mxu0  ;;  %v2824_v52 = vpop.f32.mrf.mxu1 }
 0x188   : > { %v3841_v54 = vmax.f32 %v1071_v46, %v1391_v47  ;;  %v1032_v56 = vadd.f32 %v2729_v48, %v3755_v32  ;;  %v1352_v57 = vadd.f32 %v2823_v49, %v3755_v32 }
 0x189   : > { %v2731_v59 = vpop.f32.mrf.mxu0  ;;  %v2825_v60 = vpop.f32.mrf.mxu1 }
 0x18a   : > { %v1072_v61 = vmax.f32 %v1032_v56, 0.0  ;;  %v1392_v63 = vmax.f32 %v1352_v57, 0.0  ;;  %v2732_v0 = vadd.f32 %v2731_v59, %v2730_v50  ;;  %v2826_v1 = vadd.f32 %v2825_v60, %v2824_v52 }
 0x18b   : > { %v2733_v4 = vpop.f32.mrf.mxu0  ;;  %v2827_v5 = vpop.f32.mrf.mxu1 }
 0x18c   : > { %v3845_v6 = vmax.f32 %v1072_v61, %v1392_v63  ;;  %v1037_v7 = vadd.f32 %v2732_v0, %v3755_v32  ;;  %v1357_v10 = vadd.f32 %v2826_v1, %v3755_v32 }
 0x18d   : > { %v2734_v11 = vpop.f32.mrf.mxu0  ;;  %v2828_v12 = vpop.f32.mrf.mxu1 }
 0x18e   : > { %v1073_v13 = vmax.f32 %v1037_v7, 0.0  ;;  %v1393_v14 = vmax.f32 %v1357_v10, 0.0  ;;  %v2735_v17 = vadd.f32 %v2734_v11, %v2733_v4  ;;  %v2829_v18 = vadd.f32 %v2828_v12, %v2827_v5 }
 0x18f   : > { %v2736_v19 = vpop.f32.mrf.mxu0  ;;  %v2830_v21 = vpop.f32.mrf.mxu1 }
 0x190   : > { %v3849_v22 = vmax.f32 %v1073_v13, %v1393_v14  ;;  %v1040_v24 = vadd.f32 %v2735_v17, %v3755_v32  ;;  %v1360_v25 = vadd.f32 %v2829_v18, %v3755_v32 }
 0x191   : > { %v2737_v26 = vpop.f32.mrf.mxu0  ;;  %v2831_v28 = vpop.f32.mrf.mxu1 }
 0x192   : > { %v1074_v30 = vmax.f32 %v1040_v24, 0.0  ;;  %v1394_v33 = vmax.f32 %v1360_v25, 0.0  ;;  %v2738_v34 = vadd.f32 %v2737_v26, %v2736_v19  ;;  %v2832_v35 = vadd.f32 %v2831_v28, %v2830_v21 }
 0x193   : > { %v2739_v36 = vpop.f32.mrf.mxu0  ;;  %v2833_v37 = vpop.f32.mrf.mxu1 }
 0x194   : > { %v3853_v39 = vmax.f32 %v1074_v30, %v1394_v33  ;;  %v1045_v41 = vadd.f32 %v2738_v34, %v3755_v32  ;;  %v1365_v42 = vadd.f32 %v2832_v35, %v3755_v32 }
 0x195   : > { %v2740_v45 = vpop.f32.mrf.mxu0  ;;  %v2834_v46 = vpop.f32.mrf.mxu1 }
 0x196   : > { %v1075_v47 = vmax.f32 %v1045_v41, 0.0  ;;  %v1395_v48 = vmax.f32 %v1365_v42, 0.0  ;;  %v2741_v49 = vadd.f32 %v2740_v45, %v2739_v36  ;;  %v2835_v50 = vadd.f32 %v2834_v46, %v2833_v37 }
 0x197   : > { %v2852_v52 = vpop.f32.mrf.mxu0  ;;  %v2946_v56 = vpop.f32.mrf.mxu1 }
 0x198   : > { %v3857_v57 = vmax.f32 %v1075_v47, %v1395_v48  ;;  %v1048_v59 = vadd.f32 %v2741_v49, %v3755_v32  ;;  %v1368_v60 = vadd.f32 %v2835_v50, %v3755_v32 }
 0x199   : > { %v2853_v61 = vpop.f32.mrf.mxu0  ;;  %v2947_v63 = vpop.f32.mrf.mxu1 }
 0x19a   : > { %v1076_v0 = vmax.f32 %v1048_v59, 0.0  ;;  %v1396_v1 = vmax.f32 %v1368_v60, 0.0  ;;  %v2854_v4 = vadd.f32 %v2853_v61, %v2852_v52  ;;  %v2948_v5 = vadd.f32 %v2947_v63, %v2946_v56 }
 0x19b   : > { %v2855_v7 = vpop.f32.mrf.mxu0  ;;  %v2949_v10 = vpop.f32.mrf.mxu1 }
 0x19c   : > { %v3863_v11 = vmax.f32 %v1076_v0, %v1396_v1  ;;  %v1615_v12 = vadd.f32 %v2854_v4, %v3755_v32  ;;  %v1961_v21 = vadd.f32 %v2948_v5, %v3755_v32 }
 0x19d   : > { %v2856_v13 = vpop.f32.mrf.mxu0  ;;  %v2950_v14 = vpop.f32.mrf.mxu1 }
 0x19e   : > { %v1717_v17 = vmax.f32 %v1615_v12, 0.0  ;;  %v2857_v18 = vadd.f32 %v2856_v13, %v2855_v7  ;;  %v2951_v19 = vadd.f32 %v2950_v14, %v2949_v10  ;;  %v2063_v37 = vmax.f32 %v1961_v21, 0.0 }
 0x19f   : > { %v2858_v24 = vpop.f32.mrf.mxu0  ;;  %v2952_v25 = vpop.f32.mrf.mxu1 }
 0x1a0   : > { %v1618_v26 = vadd.f32 %v2857_v18, %v3755_v32  ;;  %v1964_v28 = vadd.f32 %v2951_v19, %v3755_v32  ;;  %v1743_v30 = vmax.f32 %v3761_v51, %v1717_v17 }
 0x1a1   : > { %v2859_v33 = vpop.f32.mrf.mxu0  ;;  %v2953_v34 = vpop.f32.mrf.mxu1 }
 0x1a2   : > { %v1718_v35 = vmax.f32 %v1618_v26, 0.0  ;;  %v2860_v36 = vadd.f32 %v2859_v33, %v2858_v24  ;;  %v2954_v41 = vadd.f32 %v2953_v34, %v2952_v25  ;;  %v2064_v47 = vmax.f32 %v1964_v28, 0.0 }
 0x1a3   : > { %v2861_v42 = vpop.f32.mrf.mxu0  ;;  %v2955_v45 = vpop.f32.mrf.mxu1  ;;  %v2089_v49 = vmax.f32 %v1743_v30, %v2063_v37 }
 0x1a4   : > { %v1744_v46 = vmax.f32 %v3765_v62, %v1718_v35  ;;  %v1623_v48 = vadd.f32 %v2860_v36, %v3755_v32  ;;  %v1969_v61 = vadd.f32 %v2954_v41, %v3755_v32 }
 0x1a5   : > { %v2862_v50 = vpop.f32.mrf.mxu0  ;;  %v2956_v52 = vpop.f32.mrf.mxu1 }
 0x1a6   : > { %v2090_v56 = vmax.f32 %v1744_v46, %v2064_v47  ;;  %v1719_v59 = vmax.f32 %v1623_v48, 0.0  ;;  %v2863_v51 = vadd.f32 %v2862_v50, %v2861_v42  ;;  %v2957_v60 = vadd.f32 %v2956_v52, %v2955_v45 }
 0x1a7   : > { %v2864_v62 = vpop.f32.mrf.mxu0  ;;  %v2958_v63 = vpop.f32.mrf.mxu1  ;;  %v2065_v14 = vmax.f32 %v1969_v61, 0.0 }
 0x1a8   : > { %v2573_v0 = vpack.c.bf16 %v2090_v56, %v2089_v49  ;;  %v1626_v1 = vadd.f32 %v2863_v51, %v3755_v32  ;;  %v1972_v4 = vadd.f32 %v2957_v60, %v3755_v32  ;;  %v1745_v5 = vmax.f32 %v3769_v9, %v1719_v59 }
 0x1a9   : > { %v2865_v7 = vpop.f32.mrf.mxu0  ;;  %v2959_v10 = vpop.f32.mrf.mxu1 }
 0x1aa   : > { %2574 = vst [vmem:[%s3875_s23] sm:$0xff] %v2573_v0   ;;  %v1720_v12 = vmax.f32 %v1626_v1, 0.0  ;;  %v2866_v13 = vadd.f32 %v2865_v7, %v2864_v62  ;;  %v2960_v17 = vadd.f32 %v2959_v10, %v2958_v63  ;;  %v2066_v24 = vmax.f32 %v1972_v4, 0.0 }
 0x1ab   : > { %v2867_v18 = vpop.f32.mrf.mxu0  ;;  %v2961_v19 = vpop.f32.mrf.mxu1  ;;  %v2091_v26 = vmax.f32 %v1745_v5, %v2065_v14 }
 0x1ac   : > { %v1746_v21 = vmax.f32 %v3773_v20, %v1720_v12  ;;  %v1631_v25 = vadd.f32 %v2866_v13, %v3755_v32  ;;  %v1977_v36 = vadd.f32 %v2960_v17, %v3755_v32 }
 0x1ad   : > { %v2868_v28 = vpop.f32.mrf.mxu0  ;;  %v2962_v30 = vpop.f32.mrf.mxu1 }
 0x1ae   : > { %v2092_v33 = vmax.f32 %v1746_v21, %v2066_v24  ;;  %v1721_v9 = vmax.f32 %v1631_v25, 0.0  ;;  %v2869_v34 = vadd.f32 %v2868_v28, %v2867_v18  ;;  %v2963_v35 = vadd.f32 %v2962_v30, %v2961_v19 }
 0x1af   : > { %v2870_v37 = vpop.f32.mrf.mxu0  ;;  %v2964_v41 = vpop.f32.mrf.mxu1  ;;  %v2067_v52 = vmax.f32 %v1977_v36, 0.0 }
 0x1b0   : > { %v2578_v42 = vpack.c.bf16 %v2092_v33, %v2091_v26  ;;  %v1634_v45 = vadd.f32 %v2869_v34, %v3755_v32  ;;  %v1980_v20 = vadd.f32 %v2963_v35, %v3755_v32  ;;  %v1747_v46 = vmax.f32 %v3777_v31, %v1721_v9 }
 0x1b1   : > { %v2871_v47 = vpop.f32.mrf.mxu0  ;;  %v2965_v48 = vpop.f32.mrf.mxu1 }
 0x1b2   : > { %2636 = vst [vmem:[%s3875_s23 + $0x8] sm:$0xff] %v2578_v42   ;;  %v1722_v49 = vmax.f32 %v1634_v45, 0.0  ;;  %v2872_v50 = vadd.f32 %v2871_v47, %v2870_v37  ;;  %v2966_v56 = vadd.f32 %v2965_v48, %v2964_v41  ;;  %v2068_v61 = vmax.f32 %v1980_v20, 0.0 }
 0x1b3   : > { %v2873_v59 = vpop.f32.mrf.mxu0  ;;  %v2967_v51 = vpop.f32.mrf.mxu1  ;;  %v2093_v63 = vmax.f32 %v1747_v46, %v2067_v52 }
 0x1b4   : > { %v1748_v60 = vmax.f32 %v3781_v43, %v1722_v49  ;;  %v1639_v62 = vadd.f32 %v2872_v50, %v3755_v32  ;;  %v1985_v10 = vadd.f32 %v2966_v56, %v3755_v32 }
 0x1b5   : > { %v2874_v0 = vpop.f32.mrf.mxu0  ;;  %v2968_v1 = vpop.f32.mrf.mxu1 }
 0x1b6   : > { %v2094_v4 = vmax.f32 %v1748_v60, %v2068_v61  ;;  %v1723_v31 = vmax.f32 %v1639_v62, 0.0  ;;  %v2875_v5 = vadd.f32 %v2874_v0, %v2873_v59  ;;  %v2969_v7 = vadd.f32 %v2968_v1, %v2967_v51 }
 0x1b7   : > { %v2876_v12 = vpop.f32.mrf.mxu0  ;;  %v2970_v13 = vpop.f32.mrf.mxu1  ;;  %v2069_v26 = vmax.f32 %v1985_v10, 0.0 }
 0x1b8   : > { %v2583_v14 = vpack.c.bf16 %v2094_v4, %v2093_v63  ;;  %v1642_v17 = vadd.f32 %v2875_v5, %v3755_v32  ;;  %v1988_v43 = vadd.f32 %v2969_v7, %v3755_v32  ;;  %v1749_v18 = vmax.f32 %v3785_v55, %v1723_v31 }
 0x1b9   : > { %v2877_v19 = vpop.f32.mrf.mxu0  ;;  %v2971_v21 = vpop.f32.mrf.mxu1 }
 0x1ba   : > { %2637 = vst [vmem:[%s3875_s23 + $0x10] sm:$0xff] %v2583_v14   ;;  %v1724_v24 = vmax.f32 %v1642_v17, 0.0  ;;  %v2878_v25 = vadd.f32 %v2877_v19, %v2876_v12  ;;  %v2972_v28 = vadd.f32 %v2971_v21, %v2970_v13  ;;  %v2070_v34 = vmax.f32 %v1988_v43, 0.0 }
 0x1bb   : > { %v2879_v30 = vpop.f32.mrf.mxu0  ;;  %v2973_v33 = vpop.f32.mrf.mxu1  ;;  %v2095_v36 = vmax.f32 %v1749_v18, %v2069_v26 }
 0x1bc   : > { %v1750_v9 = vmax.f32 %v3789_v3, %v1724_v24  ;;  %v1647_v35 = vadd.f32 %v2878_v25, %v3755_v32  ;;  %v1993_v46 = vadd.f32 %v2972_v28, %v3755_v32 }
 0x1bd   : > { %v2880_v37 = vpop.f32.mrf.mxu0  ;;  %v2974_v41 = vpop.f32.mrf.mxu1 }
 0x1be   : > { %v2096_v42 = vmax.f32 %v1750_v9, %v2070_v34  ;;  %v1725_v55 = vmax.f32 %v1647_v35, 0.0  ;;  %v2881_v45 = vadd.f32 %v2880_v37, %v2879_v30  ;;  %v2975_v20 = vadd.f32 %v2974_v41, %v2973_v33 }
 0x1bf   : > { %v2882_v47 = vpop.f32.mrf.mxu0  ;;  %v2976_v48 = vpop.f32.mrf.mxu1  ;;  %v2071_v61 = vmax.f32 %v1993_v46, 0.0 }
 0x1c0   : > { %v2588_v49 = vpack.c.bf16 %v2096_v42, %v2095_v36  ;;  %v1650_v50 = vadd.f32 %v2881_v45, %v3755_v32  ;;  %v1996_v3 = vadd.f32 %v2975_v20, %v3755_v32  ;;  %v1751_v52 = vmax.f32 %v3793_v15, %v1725_v55 }
 0x1c1   : > { %v2883_v56 = vpop.f32.mrf.mxu0  ;;  %v2977_v59 = vpop.f32.mrf.mxu1 }
 0x1c2   : > { %2638 = vst [vmem:[%s3875_s23 + $0x18] sm:$0xff] %v2588_v49   ;;  %v1726_v51 = vmax.f32 %v1650_v50, 0.0  ;;  %v2884_v60 = vadd.f32 %v2883_v56, %v2882_v47  ;;  %v2978_v62 = vadd.f32 %v2977_v59, %v2976_v48  ;;  %v2072_v4 = vmax.f32 %v1996_v3, 0.0 }
 0x1c3   : > { %v2885_v63 = vpop.f32.mrf.mxu0  ;;  %v2979_v0 = vpop.f32.mrf.mxu1  ;;  %v2097_v5 = vmax.f32 %v1751_v52, %v2071_v61 }
 0x1c4   : > { %v1752_v1 = vmax.f32 %v3797_v27, %v1726_v51  ;;  %v1655_v31 = vadd.f32 %v2884_v60, %v3755_v32  ;;  %v2001_v17 = vadd.f32 %v2978_v62, %v3755_v32 }
 0x1c5   : > { %v2886_v7 = vpop.f32.mrf.mxu0  ;;  %v2980_v10 = vpop.f32.mrf.mxu1 }
 0x1c6   : > { %v2098_v12 = vmax.f32 %v1752_v1, %v2072_v4  ;;  %v1727_v15 = vmax.f32 %v1655_v31, 0.0  ;;  %v2887_v13 = vadd.f32 %v2886_v7, %v2885_v63  ;;  %v2981_v14 = vadd.f32 %v2980_v10, %v2979_v0 }
 0x1c7   : > { %v2888_v43 = vpop.f32.mrf.mxu0  ;;  %v2982_v18 = vpop.f32.mrf.mxu1  ;;  %v2073_v33 = vmax.f32 %v2001_v17, 0.0 }
 0x1c8   : > { %v2593_v19 = vpack.c.bf16 %v2098_v12, %v2097_v5  ;;  %v1658_v21 = vadd.f32 %v2887_v13, %v3755_v32  ;;  %v2004_v27 = vadd.f32 %v2981_v14, %v3755_v32  ;;  %v1753_v24 = vmax.f32 %v3801_v40, %v1727_v15 }
 0x1c9   : > { %v2889_v25 = vpop.f32.mrf.mxu0  ;;  %v2983_v26 = vpop.f32.mrf.mxu1 }
 0x1ca   : > { %2639 = vst [vmem:[%s3875_s23 + $0x20] sm:$0xff] %v2593_v19   ;;  %v1728_v28 = vmax.f32 %v1658_v21, 0.0  ;;  %v2890_v30 = vadd.f32 %v2889_v25, %v2888_v43  ;;  %v2984_v9 = vadd.f32 %v2983_v26, %v2982_v18  ;;  %v2074_v37 = vmax.f32 %v2004_v27, 0.0 }
 0x1cb   : > { %v2891_v34 = vpop.f32.mrf.mxu0  ;;  %v2985_v35 = vpop.f32.mrf.mxu1  ;;  %v2099_v42 = vmax.f32 %v1753_v24, %v2073_v33 }
 0x1cc   : > { %v1754_v36 = vmax.f32 %v3805_v53, %v1728_v28  ;;  %v1663_v41 = vadd.f32 %v2890_v30, %v3755_v32  ;;  %v2009_v48 = vadd.f32 %v2984_v9, %v3755_v32 }
 0x1cd   : > { %v2892_v55 = vpop.f32.mrf.mxu0  ;;  %v2986_v45 = vpop.f32.mrf.mxu1 }
 0x1ce   : > { %v2100_v20 = vmax.f32 %v1754_v36, %v2074_v37  ;;  %v1729_v40 = vmax.f32 %v1663_v41, 0.0  ;;  %v2893_v46 = vadd.f32 %v2892_v55, %v2891_v34  ;;  %v2987_v47 = vadd.f32 %v2986_v45, %v2985_v35 }
 0x1cf   : > { %v2894_v49 = vpop.f32.mrf.mxu0  ;;  %v2988_v50 = vpop.f32.mrf.mxu1  ;;  %v2075_v62 = vmax.f32 %v2009_v48, 0.0 }
 0x1d0   : > { %v2598_v3 = vpack.c.bf16 %v2100_v20, %v2099_v42  ;;  %v1666_v52 = vadd.f32 %v2893_v46, %v3755_v32  ;;  %v2012_v53 = vadd.f32 %v2987_v47, %v3755_v32  ;;  %v1755_v56 = vmax.f32 %v3809_v2, %v1729_v40  ;;  %v3929_v46 = vld [vmem:[%s3978_s2] ss:$0 sm:$0xff] }
 0x1d1   : > { %v2895_v59 = vpop.f32.mrf.mxu0  ;;  %v2989_v51 = vpop.f32.mrf.mxu1 }
 0x1d2   : > { %2640 = vst [vmem:[%s3875_s23 + $0x28] sm:$0xff] %v2598_v3   ;;  %v1730_v60 = vmax.f32 %v1666_v52, 0.0  ;;  %v2896_v61 = vadd.f32 %v2895_v59, %v2894_v49  ;;  %v2990_v63 = vadd.f32 %v2989_v51, %v2988_v50  ;;  %v2076_v31 = vmax.f32 %v2012_v53, 0.0 }
 0x1d3   : > { %v2897_v0 = vpop.f32.mrf.mxu0  ;;  %v2991_v1 = vpop.f32.mrf.mxu1  ;;  %v2101_v7 = vmax.f32 %v1755_v56, %v2075_v62 }
 0x1d4   : > { %v1756_v4 = vmax.f32 %v3813_v16, %v1730_v60  ;;  %v1671_v5 = vadd.f32 %v2896_v61, %v3755_v32  ;;  %v2017_v17 = vadd.f32 %v2990_v63, %v3755_v32 }
 0x1d5   : > { %v2898_v10 = vpop.f32.mrf.mxu0  ;;  %v2992_v12 = vpop.f32.mrf.mxu1 }
 0x1d6   : > { %v2102_v15 = vmax.f32 %v1756_v4, %v2076_v31  ;;  %v1731_v2 = vmax.f32 %v1671_v5, 0.0  ;;  %v2899_v13 = vadd.f32 %v2898_v10, %v2897_v0  ;;  %v2993_v14 = vadd.f32 %v2992_v12, %v2991_v1 }
 0x1d7   : > { %v2900_v43 = vpop.f32.mrf.mxu0  ;;  %v2994_v18 = vpop.f32.mrf.mxu1  ;;  %v2077_v30 = vmax.f32 %v2017_v17, 0.0 }
 0x1d8   : > { %v2603_v19 = vpack.c.bf16 %v2102_v15, %v2101_v7  ;;  %v1674_v21 = vadd.f32 %v2899_v13, %v3755_v32  ;;  %v2020_v16 = vadd.f32 %v2993_v14, %v3755_v32  ;;  %v1757_v27 = vmax.f32 %v3817_v29, %v1731_v2 }
 0x1d9   : > { %v2901_v24 = vpop.f32.mrf.mxu0  ;;  %v2995_v25 = vpop.f32.mrf.mxu1 }
 0x1da   : > { %2641 = vst [vmem:[%s3875_s23 + $0x30] sm:$0xff] %v2603_v19   ;;  %v1732_v26 = vmax.f32 %v1674_v21, 0.0  ;;  %v2902_v28 = vadd.f32 %v2901_v24, %v2900_v43  ;;  %v2996_v33 = vadd.f32 %v2995_v25, %v2994_v18  ;;  %v2078_v36 = vmax.f32 %v2020_v16, 0.0 }
 0x1db   : > { %v2903_v9 = vpop.f32.mrf.mxu0  ;;  %v2997_v34 = vpop.f32.mrf.mxu1  ;;  %v2103_v41 = vmax.f32 %v1757_v27, %v2077_v30 }
 0x1dc   : > { %v1758_v35 = vmax.f32 %v3821_v44, %v1732_v26  ;;  %v1679_v37 = vadd.f32 %v2902_v28, %v3755_v32  ;;  %v2025_v47 = vadd.f32 %v3929_v46, %v2996_v33 }
 0x1dd   : > { %v2904_v42 = vpop.f32.mrf.mxu0  ;;  %v2998_v55 = vpop.f32.mrf.mxu1 }
 0x1de   : > { %v2104_v45 = vmax.f32 %v1758_v35, %v2078_v36  ;;  %v1733_v29 = vmax.f32 %v1679_v37, 0.0  ;;  %v2905_v20 = vadd.f32 %v2904_v42, %v2903_v9  ;;  %v2999_v40 = vadd.f32 %v2998_v55, %v2997_v34 }
 0x1df   : > { %v2906_v48 = vpop.f32.mrf.mxu0  ;;  %v3000_v44 = vpop.f32.mrf.mxu1  ;;  %v2079_v51 = vmax.f32 %v2025_v47, 0.0 }
 0x1e0   : > { %v2608_v49 = vpack.c.bf16 %v2104_v45, %v2103_v41  ;;  %v1682_v32 = vadd.f32 %v3929_v46, %v2905_v20  ;;  %v2028_v50 = vadd.f32 %v3929_v46, %v2999_v40  ;;  %v1759_v3 = vmax.f32 %v3825_v58, %v1733_v29 }
 0x1e1   : > { %v2907_v52 = vpop.f32.mrf.mxu0  ;;  %v3001_v53 = vpop.f32.mrf.mxu1 }
 0x1e2   : > { %2642 = vst [vmem:[%s3875_s23 + $0x38] sm:$0xff] %v2608_v49   ;;  %v1734_v56 = vmax.f32 %v1682_v32, 0.0  ;;  %v2908_v59 = vadd.f32 %v2907_v52, %v2906_v48  ;;  %v3002_v60 = vadd.f32 %v3001_v53, %v3000_v44  ;;  %v2080_v0 = vmax.f32 %v2028_v50, 0.0 }
 0x1e3   : > { %v2909_v61 = vpop.f32.mrf.mxu0  ;;  %v3003_v62 = vpop.f32.mrf.mxu1  ;;  %v2105_v4 = vmax.f32 %v1759_v3, %v2079_v51 }
 0x1e4   : > { %v1760_v63 = vmax.f32 %v3829_v8, %v1734_v56  ;;  %v1687_v1 = vadd.f32 %v3929_v46, %v2908_v59  ;;  %v2033_v15 = vadd.f32 %v3929_v46, %v3002_v60 }
 0x1e5   : > { %v2910_v31 = vpop.f32.mrf.mxu0  ;;  %v3004_v5 = vpop.f32.mrf.mxu1 }
 0x1e6   : > { %v2106_v7 = vmax.f32 %v1760_v63, %v2080_v0  ;;  %v1735_v58 = vmax.f32 %v1687_v1, 0.0  ;;  %v2911_v10 = vadd.f32 %v2910_v31, %v2909_v61  ;;  %v3005_v12 = vadd.f32 %v3004_v5, %v3003_v62 }
 0x1e7   : > { %v2912_v2 = vpop.f32.mrf.mxu0  ;;  %v3006_v13 = vpop.f32.mrf.mxu1  ;;  %v2081_v27 = vmax.f32 %v2033_v15, 0.0 }
 0x1e8   : > { %v2613_v14 = vpack.c.bf16 %v2106_v7, %v2105_v4  ;;  %v1690_v17 = vadd.f32 %v3929_v46, %v2911_v10  ;;  %v2036_v8 = vadd.f32 %v3929_v46, %v3005_v12  ;;  %v1761_v43 = vmax.f32 %v3833_v23, %v1735_v58 }
 0x1e9   : > { %v2913_v18 = vpop.f32.mrf.mxu0  ;;  %v3007_v19 = vpop.f32.mrf.mxu1 }
 0x1ea   : > { %2643 = vst [vmem:[%s3875_s23 + $0x40] sm:$0xff] %v2613_v14   ;;  %v1736_v21 = vmax.f32 %v1690_v17, 0.0  ;;  %v2914_v16 = vadd.f32 %v2913_v18, %v2912_v2  ;;  %v3008_v24 = vadd.f32 %v3007_v19, %v3006_v13  ;;  %v2082_v30 = vmax.f32 %v2036_v8, 0.0 }
 0x1eb   : > { %v2915_v25 = vpop.f32.mrf.mxu0  ;;  %v3009_v26 = vpop.f32.mrf.mxu1  ;;  %v2107_v9 = vmax.f32 %v1761_v43, %v2081_v27 }
 0x1ec   : > { %v1762_v28 = vmax.f32 %v3837_v38, %v1736_v21  ;;  %v1695_v33 = vadd.f32 %v3929_v46, %v2914_v16  ;;  %v2041_v42 = vadd.f32 %v3929_v46, %v3008_v24 }
 0x1ed   : > { %v2916_v34 = vpop.f32.mrf.mxu0  ;;  %v3010_v35 = vpop.f32.mrf.mxu1 }
 0x1ee   : > { %v2108_v36 = vmax.f32 %v1762_v28, %v2082_v30  ;;  %v1737_v23 = vmax.f32 %v1695_v33, 0.0  ;;  %v2917_v37 = vadd.f32 %v2916_v34, %v2915_v25  ;;  %v3011_v41 = vadd.f32 %v3010_v35, %v3009_v26 }
 0x1ef   : > { %v2918_v55 = vpop.f32.mrf.mxu0  ;;  %v3012_v45 = vpop.f32.mrf.mxu1  ;;  %v2083_v32 = vmax.f32 %v2041_v42, 0.0 }
 0x1f0   : > { %v2618_v29 = vpack.c.bf16 %v2108_v36, %v2107_v9  ;;  %v1698_v20 = vadd.f32 %v3929_v46, %v2917_v37  ;;  %v2044_v38 = vadd.f32 %v3929_v46, %v3011_v41  ;;  %v1763_v40 = vmax.f32 %v3841_v54, %v1737_v23 }
 0x1f1   : > { %v2919_v47 = vpop.f32.mrf.mxu0  ;;  %v3013_v48 = vpop.f32.mrf.mxu1 }
 0x1f2   : > { %2644 = vst [vmem:[%s3875_s23 + $0x48] sm:$0xff] %v2618_v29   ;;  %v1738_v44 = vmax.f32 %v1698_v20, 0.0  ;;  %v2920_v49 = vadd.f32 %v2919_v47, %v2918_v55  ;;  %v3014_v50 = vadd.f32 %v3013_v48, %v3012_v45  ;;  %v2084_v56 = vmax.f32 %v2044_v38, 0.0 }
 0x1f3   : > { %v2921_v3 = vpop.f32.mrf.mxu0  ;;  %v3015_v52 = vpop.f32.mrf.mxu1  ;;  %v2109_v51 = vmax.f32 %v1763_v40, %v2083_v32 }
 0x1f4   : > { %v1764_v53 = vmax.f32 %v3845_v6, %v1738_v44  ;;  %v1703_v59 = vadd.f32 %v3929_v46, %v2920_v49  ;;  %v2049_v1 = vadd.f32 %v3929_v46, %v3014_v50 }
 0x1f5   : > { %v2922_v60 = vpop.f32.mrf.mxu0  ;;  %v3016_v61 = vpop.f32.mrf.mxu1 }
 0x1f6   : > { %v2110_v62 = vmax.f32 %v1764_v53, %v2084_v56  ;;  %v1739_v54 = vmax.f32 %v1703_v59, 0.0  ;;  %v2923_v63 = vadd.f32 %v2922_v60, %v2921_v3  ;;  %v3017_v0 = vadd.f32 %v3016_v61, %v3015_v52 }
 0x1f7   : > { %v2924_v4 = vpop.f32.mrf.mxu0  ;;  %v3018_v31 = vpop.f32.mrf.mxu1  ;;  %v2085_v13 = vmax.f32 %v2049_v1, 0.0 }
 0x1f8   : > { %v2623_v5 = vpack.c.bf16 %v2110_v62, %v2109_v51  ;;  %v1706_v7 = vadd.f32 %v3929_v46, %v2923_v63  ;;  %v2052_v6 = vadd.f32 %v3929_v46, %v3017_v0  ;;  %v1765_v58 = vmax.f32 %v3849_v22, %v1739_v54 }
 0x1f9   : > { %v2925_v10 = vpop.f32.mrf.mxu0  ;;  %v3019_v12 = vpop.f32.mrf.mxu1 }
 0x1fa   : > { %2645 = vst [vmem:[%s3875_s23 + $0x50] sm:$0xff] %v2623_v5   ;;  %v1740_v15 = vmax.f32 %v1706_v7, 0.0  ;;  %v2926_v2 = vadd.f32 %v2925_v10, %v2924_v4  ;;  %v2086_v43 = vmax.f32 %v2052_v6, 0.0  ;;  %v3020_v19 = vadd.f32 %v3019_v12, %v3018_v31 }
 0x1fb   : > { %v2927_v14 = vpop.f32.mrf.mxu0  ;;  %v3021_v17 = vpop.f32.mrf.mxu1  ;;  %v2111_v21 = vmax.f32 %v1765_v58, %v2085_v13 }
 0x1fc   : > { %v1766_v8 = vmax.f32 %v3853_v39, %v1740_v15  ;;  %v1711_v18 = vadd.f32 %v3929_v46, %v2926_v2  ;;  %v2057_v30 = vadd.f32 %v3929_v46, %v3020_v19 }
 0x1fd   : > { %v2928_v16 = vpop.f32.mrf.mxu0  ;;  %v3022_v27 = vpop.f32.mrf.mxu1 }
 0x1fe   : > { %v2112_v24 = vmax.f32 %v1766_v8, %v2086_v43  ;;  %v1741_v22 = vmax.f32 %v1711_v18, 0.0  ;;  %v2929_v25 = vadd.f32 %v2928_v16, %v2927_v14  ;;  %v3023_v26 = vadd.f32 %v3022_v27, %v3021_v17 }
 0x1ff   : > { %v2087_v35 = vmax.f32 %v2057_v30, 0.0 }
 0x200   : > { %v2628_v28 = vpack.c.bf16 %v2112_v24, %v2111_v21  ;;  %v1714_v33 = vadd.f32 %v3929_v46, %v2929_v25  ;;  %v2060_v9 = vadd.f32 %v3929_v46, %v3023_v26  ;;  %v1767_v39 = vmax.f32 %v3857_v57, %v1741_v22 }
 0x202   : > { %2646 = vst [vmem:[%s3875_s23 + $0x58] sm:$0xff] %v2628_v28   ;;  %v1742_v34 = vmax.f32 %v1714_v33, 0.0  ;;  %v2088_v23 = vmax.f32 %v2060_v9, 0.0  ;;  %v2113_v37 = vmax.f32 %v1767_v39, %v2087_v35 }
 0x204   : > { %v1768_v36 = vmax.f32 %v3863_v11, %v1742_v34 }
 0x206   : > { %v2114_v41 = vmax.f32 %v1768_v36, %v2088_v23 }
 0x208   : > { %v2633_v42 = vpack.c.bf16 %v2114_v41, %v2113_v37 }
 0x20a   : > { %2647 = vst [vmem:[%s3875_s23 + $0x60] sm:$0xff] %v2633_v42  }
 0x20b PF: > { %p10_p9 = scmp.ge.s32.totalorder %s3284_s16, 6   ;;  %s3980_s12 = smov %s3241_s13 }
 0x20c   : > { %s3981_s13 = smov %s3293_s19  ;;  %s3982_s14 = smov %s3284_s16 }
 0x20d   :  { %12 = sbr.rel (!%p10_p9) target bundleno = 2 (0x2), region = 108 }

// kernel: cnn_forward.6
= control target key start
LH: loop header
LB: loop body
LE: loop exit
PB: predicated region body
PF: predicated region fallthrough
CT: control target
= control target key end

     0   :  { %s4606_s12 = smov 0   ;;  %s4608_s13 = smov 0   ;;  %s6039_s0 = inlined_call_operand.vmem [shape: bf16[4,224,576], index: 0, kind: input, shape index: {}]   ;;  %s6040_s1 = inlined_call_operand.vmem [shape: bf16[576,128], index: 1, kind: input, shape index: {}]   ;;  %s6041_s2 = inlined_call_operand.vmem [shape: f32[1,128], index: 2, kind: input, shape index: {}]   ;;  %s6042_s3 = inlined_call_operand.vmem [shape: bf16[224,128], index: 3, kind: output, shape index: {}]  }
   0x1   :  { %s4610_s14 = smov 0  }
   0x2 LB: > { %s3092_s15 = sadd.s32 4294967295, %s4582_s14   ;;  %s4623_s16 = sadd.s32 1, %s4582_s14   ;;  %s4582_s14 = sphi %s4610_s14, %s6045_s14   ;;  %s4578_s13 = sphi %s4608_s13, %s6044_s13   ;;  %s4574_s12 = sphi %s4606_s12, %s6043_s12  }
   0x3   : > { %s17_s17 = ssub.s32 %s4582_s14, %s4623_s16  ;;  %s20_s18 = sadd.s32 1, %s4578_s13 }
   0x4   : > { %p18_p0 = scmp.eq.s32.totalorder %s17_s17, 0  ;;  %p27_p1 = scmp.ne.s32.totalorder %s4578_s13, %s4574_s12 }
   0x5   : > { %p28_p2 = scmp.eq.s32.totalorder %s4582_s14, 0  ;;  %p3095_p4 = scmp.ge.s32.totalorder %s4582_s14, 2 }
   0x6   : > { %s4632_s19 = scalar_select %p18_p0, %s4578_s13, %s20_s18  }
   0x7   : > { %p29_p3 = por %p28_p2, %p27_p1  ;;  %127 = sbr.rel (%p3095_p4) target bundleno = 111 (0x6f), region = 24 }
   0xc   : > { %130 = sbr.rel (!%p29_p3) target bundleno = 111 (0x6f), region = 28  ;;  %s132_s20 = sand.u32 (%p29_p3), 1, %s4578_s13  }
   0xd   : > { %s4265_s21 = smul.u32 (%p29_p3), 1120, %s132_s20 }
   0xe   : > { %s4268_s22 = smul.u32 (%p29_p3), 280, %s4582_s14 }
   0xf   : > { %s4645_s26 = scalar_lea.vmem (%p29_p3), [#allocation2], %s4265_s21 }
  0x10   : > { %s4640_s25 = scalar_lea.vmem (%p29_p3), %s6039_s0, %s4268_s22 }
  0x11   : > { %v153_v0 = vld [vmem:[%s4640_s25] sm:$0xff]  ;;  %v155_v1 = vld [vmem:[%s4640_s25 + $0x8] sm:$0xff]  ;;  %v157_v2 = vld [vmem:[%s4640_s25 + $0x14] sm:$0xff] }
  0x12   : > { %154 = vst [vmem:[%s4645_s26] sm:$0xff] %v153_v0  ;;  %156 = vst [vmem:[%s4645_s26 + $0x8] sm:$0xff] %v155_v1  ;;  %v159_v3 = vld [vmem:[%s4640_s25 + $0x1c] sm:$0xff]  ;;  %v161_v4 = vld [vmem:[%s4640_s25 + $0x28] sm:$0xff] }
  0x13   : > { %158 = vst [vmem:[%s4645_s26 + $0x14] sm:$0xff] %v157_v2  ;;  %v163_v5 = vld [vmem:[%s4640_s25 + $0x30] sm:$0xff]  ;;  %160 = vst [vmem:[%s4645_s26 + $0x1c] sm:$0xff] %v159_v3  ;;  %v165_v6 = vld [vmem:[%s4640_s25 + $0x3c] sm:$0xff] }
  0x14   : > { %162 = vst [vmem:[%s4645_s26 + $0x28] sm:$0xff] %v161_v4  ;;  %164 = vst [vmem:[%s4645_s26 + $0x30] sm:$0xff] %v163_v5  ;;  %v167_v7 = vld [vmem:[%s4640_s25 + $0x44] sm:$0xff]  ;;  %v169_v8 = vld [vmem:[%s4640_s25 + $0x50] sm:$0xff] }
  0x15   : > { %166 = vst [vmem:[%s4645_s26 + $0x3c] sm:$0xff] %v165_v6  ;;  %168 = vst [vmem:[%s4645_s26 + $0x44] sm:$0xff] %v167_v7  ;;  %v171_v9 = vld [vmem:[%s4640_s25 + $0x58] sm:$0xff]  ;;  %v173_v10 = vld [vmem:[%s4640_s25 + $0x64] sm:$0xff] }
  0x16   : > { %170 = vst [vmem:[%s4645_s26 + $0x50] sm:$0xff] %v169_v8  ;;  %v175_v11 = vld [vmem:[%s4640_s25 + $0x6c] sm:$0xff]  ;;  %172 = vst [vmem:[%s4645_s26 + $0x58] sm:$0xff] %v171_v9  ;;  %v177_v12 = vld [vmem:[%s4640_s25 + $0x78] sm:$0xff] }
  0x17   : > { %174 = vst [vmem:[%s4645_s26 + $0x64] sm:$0xff] %v173_v10  ;;  %176 = vst [vmem:[%s4645_s26 + $0x6c] sm:$0xff] %v175_v11  ;;  %v179_v13 = vld [vmem:[%s4640_s25 + $0x80] sm:$0xff]  ;;  %v181_v14 = vld [vmem:[%s4640_s25 + $0x8c] sm:$0xff] }
  0x18   : > { %178 = vst [vmem:[%s4645_s26 + $0x78] sm:$0xff] %v177_v12  ;;  %180 = vst [vmem:[%s4645_s26 + $0x80] sm:$0xff] %v179_v13  ;;  %v183_v15 = vld [vmem:[%s4640_s25 + $0x94] sm:$0xff]  ;;  %v185_v16 = vld [vmem:[%s4640_s25 + $0xa0] sm:$0xff] }
  0x19   : > { %182 = vst [vmem:[%s4645_s26 + $0x8c] sm:$0xff] %v181_v14  ;;  %v187_v17 = vld [vmem:[%s4640_s25 + $0xa8] sm:$0xff]  ;;  %184 = vst [vmem:[%s4645_s26 + $0x94] sm:$0xff] %v183_v15  ;;  %v189_v18 = vld [vmem:[%s4640_s25 + $0xb4] sm:$0xff] }
  0x1a   : > { %186 = vst [vmem:[%s4645_s26 + $0xa0] sm:$0xff] %v185_v16  ;;  %188 = vst [vmem:[%s4645_s26 + $0xa8] sm:$0xff] %v187_v17  ;;  %v191_v19 = vld [vmem:[%s4640_s25 + $0xbc] sm:$0xff]  ;;  %v193_v20 = vld [vmem:[%s4640_s25 + $0xc8] sm:$0xff] }
  0x1b   : > { %190 = vst [vmem:[%s4645_s26 + $0xb4] sm:$0xff] %v189_v18  ;;  %192 = vst [vmem:[%s4645_s26 + $0xbc] sm:$0xff] %v191_v19  ;;  %v195_v21 = vld [vmem:[%s4640_s25 + $0xd0] sm:$0xff]  ;;  %v197_v22 = vld [vmem:[%s4640_s25 + $0xdc] sm:$0xff] }
  0x1c   : > { %194 = vst [vmem:[%s4645_s26 + $0xc8] sm:$0xff] %v193_v20  ;;  %v199_v23 = vld [vmem:[%s4640_s25 + $0xe4] sm:$0xff]  ;;  %196 = vst [vmem:[%s4645_s26 + $0xd0] sm:$0xff] %v195_v21  ;;  %v201_v24 = vld [vmem:[%s4640_s25 + $0xf0] sm:$0xff] }
  0x1d   : > { %198 = vst [vmem:[%s4645_s26 + $0xdc] sm:$0xff] %v197_v22  ;;  %200 = vst [vmem:[%s4645_s26 + $0xe4] sm:$0xff] %v199_v23  ;;  %v203_v25 = vld [vmem:[%s4640_s25 + $0xf8] sm:$0xff]  ;;  %v205_v26 = vld [vmem:[%s4640_s25 + $0x104] sm:$0xff] }
  0x1e   : > { %202 = vst [vmem:[%s4645_s26 + $0xf0] sm:$0xff] %v201_v24  ;;  %204 = vst [vmem:[%s4645_s26 + $0xf8] sm:$0xff] %v203_v25  ;;  %v207_v27 = vld [vmem:[%s4640_s25 + $0x10c] sm:$0xff]  ;;  %v211_v29 = vld [vmem:[%s4640_s25 + $0x238] sm:$0xff] }
  0x1f   : > { %206 = vst [vmem:[%s4645_s26 + $0x104] sm:$0xff] %v205_v26  ;;  %v209_v28 = vld [vmem:[%s4640_s25 + $0x230] sm:$0xff]  ;;  %208 = vst [vmem:[%s4645_s26 + $0x10c] sm:$0xff] %v207_v27  ;;  %v213_v30 = vld [vmem:[%s4640_s25 + $0x244] sm:$0xff] }
  0x20   : > { %210 = vst [vmem:[%s4645_s26 + $0x118] sm:$0xff] %v209_v28  ;;  %212 = vst [vmem:[%s4645_s26 + $0x120] sm:$0xff] %v211_v29  ;;  %v215_v31 = vld [vmem:[%s4640_s25 + $0x24c] sm:$0xff]  ;;  %v217_v32 = vld [vmem:[%s4640_s25 + $0x258] sm:$0xff] }
  0x21   : > { %214 = vst [vmem:[%s4645_s26 + $0x12c] sm:$0xff] %v213_v30  ;;  %216 = vst [vmem:[%s4645_s26 + $0x134] sm:$0xff] %v215_v31  ;;  %v219_v33 = vld [vmem:[%s4640_s25 + $0x260] sm:$0xff]  ;;  %v221_v34 = vld [vmem:[%s4640_s25 + $0x26c] sm:$0xff] }
  0x22   : > { %218 = vst [vmem:[%s4645_s26 + $0x140] sm:$0xff] %v217_v32  ;;  %v223_v35 = vld [vmem:[%s4640_s25 + $0x274] sm:$0xff]  ;;  %220 = vst [vmem:[%s4645_s26 + $0x148] sm:$0xff] %v219_v33  ;;  %v225_v36 = vld [vmem:[%s4640_s25 + $0x280] sm:$0xff] }
  0x23   : > { %222 = vst [vmem:[%s4645_s26 + $0x154] sm:$0xff] %v221_v34  ;;  %224 = vst [vmem:[%s4645_s26 + $0x15c] sm:$0xff] %v223_v35  ;;  %v227_v37 = vld [vmem:[%s4640_s25 + $0x288] sm:$0xff]  ;;  %v229_v38 = vld [vmem:[%s4640_s25 + $0x294] sm:$0xff] }
  0x24   : > { %226 = vst [vmem:[%s4645_s26 + $0x168] sm:$0xff] %v225_v36  ;;  %228 = vst [vmem:[%s4645_s26 + $0x170] sm:$0xff] %v227_v37  ;;  %v231_v39 = vld [vmem:[%s4640_s25 + $0x29c] sm:$0xff]  ;;  %v233_v40 = vld [vmem:[%s4640_s25 + $0x2a8] sm:$0xff] }
  0x25   : > { %230 = vst [vmem:[%s4645_s26 + $0x17c] sm:$0xff] %v229_v38  ;;  %v235_v41 = vld [vmem:[%s4640_s25 + $0x2b0] sm:$0xff]  ;;  %232 = vst [vmem:[%s4645_s26 + $0x184] sm:$0xff] %v231_v39  ;;  %v237_v42 = vld [vmem:[%s4640_s25 + $0x2bc] sm:$0xff] }
  0x26   : > { %234 = vst [vmem:[%s4645_s26 + $0x190] sm:$0xff] %v233_v40  ;;  %236 = vst [vmem:[%s4645_s26 + $0x198] sm:$0xff] %v235_v41  ;;  %v239_v43 = vld [vmem:[%s4640_s25 + $0x2c4] sm:$0xff]  ;;  %v241_v44 = vld [vmem:[%s4640_s25 + $0x2d0] sm:$0xff] }
  0x27   : > { %238 = vst [vmem:[%s4645_s26 + $0x1a4] sm:$0xff] %v237_v42  ;;  %240 = vst [vmem:[%s4645_s26 + $0x1ac] sm:$0xff] %v239_v43  ;;  %v243_v45 = vld [vmem:[%s4640_s25 + $0x2d8] sm:$0xff]  ;;  %v245_v46 = vld [vmem:[%s4640_s25 + $0x2e4] sm:$0xff] }
  0x28   : > { %242 = vst [vmem:[%s4645_s26 + $0x1b8] sm:$0xff] %v241_v44  ;;  %v247_v47 = vld [vmem:[%s4640_s25 + $0x2ec] sm:$0xff]  ;;  %244 = vst [vmem:[%s4645_s26 + $0x1c0] sm:$0xff] %v243_v45  ;;  %v249_v48 = vld [vmem:[%s4640_s25 + $0x2f8] sm:$0xff] }
  0x29   : > { %246 = vst [vmem:[%s4645_s26 + $0x1cc] sm:$0xff] %v245_v46  ;;  %248 = vst [vmem:[%s4645_s26 + $0x1d4] sm:$0xff] %v247_v47  ;;  %v251_v49 = vld [vmem:[%s4640_s25 + $0x300] sm:$0xff]  ;;  %v253_v50 = vld [vmem:[%s4640_s25 + $0x30c] sm:$0xff] }
  0x2a   : > { %250 = vst [vmem:[%s4645_s26 + $0x1e0] sm:$0xff] %v249_v48  ;;  %252 = vst [vmem:[%s4645_s26 + $0x1e8] sm:$0xff] %v251_v49  ;;  %v255_v51 = vld [vmem:[%s4640_s25 + $0x314] sm:$0xff]  ;;  %v257_v52 = vld [vmem:[%s4640_s25 + $0x320] sm:$0xff] }
  0x2b   : > { %254 = vst [vmem:[%s4645_s26 + $0x1f4] sm:$0xff] %v253_v50  ;;  %v259_v53 = vld [vmem:[%s4640_s25 + $0x328] sm:$0xff]  ;;  %256 = vst [vmem:[%s4645_s26 + $0x1fc] sm:$0xff] %v255_v51  ;;  %v261_v54 = vld [vmem:[%s4640_s25 + $0x334] sm:$0xff] }
  0x2c   : > { %258 = vst [vmem:[%s4645_s26 + $0x208] sm:$0xff] %v257_v52  ;;  %260 = vst [vmem:[%s4645_s26 + $0x210] sm:$0xff] %v259_v53  ;;  %v263_v55 = vld [vmem:[%s4640_s25 + $0x33c] sm:$0xff]  ;;  %v267_v57 = vld [vmem:[%s4640_s25 + $0x468] sm:$0xff] }
  0x2d   : > { %v265_v56 = vld [vmem:[%s4640_s25 + $0x460] sm:$0xff]  ;;  %262 = vst [vmem:[%s4645_s26 + $0x21c] sm:$0xff] %v261_v54  ;;  %264 = vst [vmem:[%s4645_s26 + $0x224] sm:$0xff] %v263_v55  ;;  %v269_v58 = vld [vmem:[%s4640_s25 + $0x474] sm:$0xff] }
  0x2e   : > { %266 = vst [vmem:[%s4645_s26 + $0x230] sm:$0xff] %v265_v56  ;;  %v271_v59 = vld [vmem:[%s4640_s25 + $0x47c] sm:$0xff]  ;;  %268 = vst [vmem:[%s4645_s26 + $0x238] sm:$0xff] %v267_v57  ;;  %v273_v60 = vld [vmem:[%s4640_s25 + $0x488] sm:$0xff] }
  0x2f   : > { %270 = vst [vmem:[%s4645_s26 + $0x244] sm:$0xff] %v269_v58  ;;  %272 = vst [vmem:[%s4645_s26 + $0x24c] sm:$0xff] %v271_v59  ;;  %v275_v61 = vld [vmem:[%s4640_s25 + $0x490] sm:$0xff]  ;;  %v277_v62 = vld [vmem:[%s4640_s25 + $0x49c] sm:$0xff] }
  0x30   : > { %274 = vst [vmem:[%s4645_s26 + $0x258] sm:$0xff] %v273_v60  ;;  %276 = vst [vmem:[%s4645_s26 + $0x260] sm:$0xff] %v275_v61  ;;  %v279_v63 = vld [vmem:[%s4640_s25 + $0x4a4] sm:$0xff]  ;;  %v281_v0 = vld [vmem:[%s4640_s25 + $0x4b0] sm:$0xff] }
  0x31   : > { %278 = vst [vmem:[%s4645_s26 + $0x26c] sm:$0xff] %v277_v62  ;;  %v283_v1 = vld [vmem:[%s4640_s25 + $0x4b8] sm:$0xff]  ;;  %280 = vst [vmem:[%s4645_s26 + $0x274] sm:$0xff] %v279_v63  ;;  %v285_v2 = vld [vmem:[%s4640_s25 + $0x4c4] sm:$0xff] }
  0x32   : > { %282 = vst [vmem:[%s4645_s26 + $0x280] sm:$0xff] %v281_v0  ;;  %284 = vst [vmem:[%s4645_s26 + $0x288] sm:$0xff] %v283_v1  ;;  %v287_v3 = vld [vmem:[%s4640_s25 + $0x4cc] sm:$0xff]  ;;  %v289_v4 = vld [vmem:[%s4640_s25 + $0x4d8] sm:$0xff] }
  0x33   : > { %286 = vst [vmem:[%s4645_s26 + $0x294] sm:$0xff] %v285_v2  ;;  %288 = vst [vmem:[%s4645_s26 + $0x29c] sm:$0xff] %v287_v3  ;;  %v291_v5 = vld [vmem:[%s4640_s25 + $0x4e0] sm:$0xff]  ;;  %v293_v6 = vld [vmem:[%s4640_s25 + $0x4ec] sm:$0xff] }
  0x34   : > { %290 = vst [vmem:[%s4645_s26 + $0x2a8] sm:$0xff] %v289_v4  ;;  %v295_v7 = vld [vmem:[%s4640_s25 + $0x4f4] sm:$0xff]  ;;  %292 = vst [vmem:[%s4645_s26 + $0x2b0] sm:$0xff] %v291_v5  ;;  %v297_v8 = vld [vmem:[%s4640_s25 + $0x500] sm:$0xff] }
  0x35   : > { %294 = vst [vmem:[%s4645_s26 + $0x2bc] sm:$0xff] %v293_v6  ;;  %296 = vst [vmem:[%s4645_s26 + $0x2c4] sm:$0xff] %v295_v7  ;;  %v299_v9 = vld [vmem:[%s4640_s25 + $0x508] sm:$0xff]  ;;  %v301_v10 = vld [vmem:[%s4640_s25 + $0x514] sm:$0xff] }
  0x36   : > { %298 = vst [vmem:[%s4645_s26 + $0x2d0] sm:$0xff] %v297_v8  ;;  %300 = vst [vmem:[%s4645_s26 + $0x2d8] sm:$0xff] %v299_v9  ;;  %v303_v11 = vld [vmem:[%s4640_s25 + $0x51c] sm:$0xff]  ;;  %v305_v12 = vld [vmem:[%s4640_s25 + $0x528] sm:$0xff] }
  0x37   : > { %302 = vst [vmem:[%s4645_s26 + $0x2e4] sm:$0xff] %v301_v10  ;;  %v307_v13 = vld [vmem:[%s4640_s25 + $0x530] sm:$0xff]  ;;  %304 = vst [vmem:[%s4645_s26 + $0x2ec] sm:$0xff] %v303_v11  ;;  %v309_v14 = vld [vmem:[%s4640_s25 + $0x53c] sm:$0xff] }
  0x38   : > { %306 = vst [vmem:[%s4645_s26 + $0x2f8] sm:$0xff] %v305_v12  ;;  %308 = vst [vmem:[%s4645_s26 + $0x300] sm:$0xff] %v307_v13  ;;  %v311_v15 = vld [vmem:[%s4640_s25 + $0x544] sm:$0xff]  ;;  %v313_v16 = vld [vmem:[%s4640_s25 + $0x550] sm:$0xff] }
  0x39   : > { %310 = vst [vmem:[%s4645_s26 + $0x30c] sm:$0xff] %v309_v14  ;;  %312 = vst [vmem:[%s4645_s26 + $0x314] sm:$0xff] %v311_v15  ;;  %v315_v17 = vld [vmem:[%s4640_s25 + $0x558] sm:$0xff]  ;;  %v317_v18 = vld [vmem:[%s4640_s25 + $0x564] sm:$0xff] }
  0x3a   : > { %314 = vst [vmem:[%s4645_s26 + $0x320] sm:$0xff] %v313_v16  ;;  %v319_v19 = vld [vmem:[%s4640_s25 + $0x56c] sm:$0xff]  ;;  %316 = vst [vmem:[%s4645_s26 + $0x328] sm:$0xff] %v315_v17  ;;  %v323_v21 = vld [vmem:[%s4640_s25 + $0x698] sm:$0xff] }
  0x3b   : > { %318 = vst [vmem:[%s4645_s26 + $0x334] sm:$0xff] %v317_v18  ;;  %320 = vst [vmem:[%s4645_s26 + $0x33c] sm:$0xff] %v319_v19  ;;  %v321_v20 = vld [vmem:[%s4640_s25 + $0x690] sm:$0xff]  ;;  %v325_v22 = vld [vmem:[%s4640_s25 + $0x6a4] sm:$0xff] }
  0x3c   : > { %322 = vst [vmem:[%s4645_s26 + $0x348] sm:$0xff] %v321_v20  ;;  %324 = vst [vmem:[%s4645_s26 + $0x350] sm:$0xff] %v323_v21  ;;  %v327_v23 = vld [vmem:[%s4640_s25 + $0x6ac] sm:$0xff]  ;;  %v329_v24 = vld [vmem:[%s4640_s25 + $0x6b8] sm:$0xff] }
  0x3d   : > { %326 = vst [vmem:[%s4645_s26 + $0x35c] sm:$0xff] %v325_v22  ;;  %v331_v25 = vld [vmem:[%s4640_s25 + $0x6c0] sm:$0xff]  ;;  %328 = vst [vmem:[%s4645_s26 + $0x364] sm:$0xff] %v327_v23  ;;  %v333_v26 = vld [vmem:[%s4640_s25 + $0x6cc] sm:$0xff] }
  0x3e   : > { %330 = vst [vmem:[%s4645_s26 + $0x370] sm:$0xff] %v329_v24  ;;  %332 = vst [vmem:[%s4645_s26 + $0x378] sm:$0xff] %v331_v25  ;;  %v335_v27 = vld [vmem:[%s4640_s25 + $0x6d4] sm:$0xff]  ;;  %v337_v28 = vld [vmem:[%s4640_s25 + $0x6e0] sm:$0xff] }
  0x3f   : > { %334 = vst [vmem:[%s4645_s26 + $0x384] sm:$0xff] %v333_v26  ;;  %336 = vst [vmem:[%s4645_s26 + $0x38c] sm:$0xff] %v335_v27  ;;  %v339_v29 = vld [vmem:[%s4640_s25 + $0x6e8] sm:$0xff]  ;;  %v341_v30 = vld [vmem:[%s4640_s25 + $0x6f4] sm:$0xff] }
  0x40   : > { %338 = vst [vmem:[%s4645_s26 + $0x398] sm:$0xff] %v337_v28  ;;  %v343_v31 = vld [vmem:[%s4640_s25 + $0x6fc] sm:$0xff]  ;;  %340 = vst [vmem:[%s4645_s26 + $0x3a0] sm:$0xff] %v339_v29  ;;  %v345_v32 = vld [vmem:[%s4640_s25 + $0x708] sm:$0xff] }
  0x41   : > { %342 = vst [vmem:[%s4645_s26 + $0x3ac] sm:$0xff] %v341_v30  ;;  %344 = vst [vmem:[%s4645_s26 + $0x3b4] sm:$0xff] %v343_v31  ;;  %v347_v33 = vld [vmem:[%s4640_s25 + $0x710] sm:$0xff]  ;;  %v349_v34 = vld [vmem:[%s4640_s25 + $0x71c] sm:$0xff] }
  0x42   : > { %346 = vst [vmem:[%s4645_s26 + $0x3c0] sm:$0xff] %v345_v32  ;;  %348 = vst [vmem:[%s4645_s26 + $0x3c8] sm:$0xff] %v347_v33  ;;  %v351_v35 = vld [vmem:[%s4640_s25 + $0x724] sm:$0xff]  ;;  %v353_v36 = vld [vmem:[%s4640_s25 + $0x730] sm:$0xff] }
  0x43   : > { %350 = vst [vmem:[%s4645_s26 + $0x3d4] sm:$0xff] %v349_v34  ;;  %v355_v37 = vld [vmem:[%s4640_s25 + $0x738] sm:$0xff]  ;;  %352 = vst [vmem:[%s4645_s26 + $0x3dc] sm:$0xff] %v351_v35  ;;  %v357_v38 = vld [vmem:[%s4640_s25 + $0x744] sm:$0xff] }
  0x44   : > { %354 = vst [vmem:[%s4645_s26 + $0x3e8] sm:$0xff] %v353_v36  ;;  %356 = vst [vmem:[%s4645_s26 + $0x3f0] sm:$0xff] %v355_v37  ;;  %v359_v39 = vld [vmem:[%s4640_s25 + $0x74c] sm:$0xff]  ;;  %v361_v40 = vld [vmem:[%s4640_s25 + $0x758] sm:$0xff] }
  0x45   : > { %358 = vst [vmem:[%s4645_s26 + $0x3fc] sm:$0xff] %v357_v38  ;;  %360 = vst [vmem:[%s4645_s26 + $0x404] sm:$0xff] %v359_v39  ;;  %v363_v41 = vld [vmem:[%s4640_s25 + $0x760] sm:$0xff]  ;;  %v365_v42 = vld [vmem:[%s4640_s25 + $0x76c] sm:$0xff] }
  0x46   : > { %362 = vst [vmem:[%s4645_s26 + $0x410] sm:$0xff] %v361_v40  ;;  %v367_v43 = vld [vmem:[%s4640_s25 + $0x774] sm:$0xff]  ;;  %364 = vst [vmem:[%s4645_s26 + $0x418] sm:$0xff] %v363_v41  ;;  %v369_v44 = vld [vmem:[%s4640_s25 + $0x780] sm:$0xff] }
  0x47   : > { %366 = vst [vmem:[%s4645_s26 + $0x424] sm:$0xff] %v365_v42  ;;  %368 = vst [vmem:[%s4645_s26 + $0x42c] sm:$0xff] %v367_v43  ;;  %v371_v45 = vld [vmem:[%s4640_s25 + $0x788] sm:$0xff]  ;;  %v373_v46 = vld [vmem:[%s4640_s25 + $0x794] sm:$0xff] }
  0x48   : > { %370 = vst [vmem:[%s4645_s26 + $0x438] sm:$0xff] %v369_v44  ;;  %372 = vst [vmem:[%s4645_s26 + $0x440] sm:$0xff] %v371_v45  ;;  %v375_v47 = vld [vmem:[%s4640_s25 + $0x79c] sm:$0xff]  ;;  %v3097_v48 = vld [vmem:[%s4640_s25 + $0x10] sm:$0xf] }
  0x49   : > { %374 = vst [vmem:[%s4645_s26 + $0x44c] sm:$0xff] %v373_v46  ;;  %v3099_v49 = vld [vmem:[%s4640_s25 + $0x24] sm:$0xf]  ;;  %376 = vst [vmem:[%s4645_s26 + $0x454] sm:$0xff] %v375_v47  ;;  %v3101_v50 = vld [vmem:[%s4640_s25 + $0x38] sm:$0xf] }
  0x4a   : > { %3098 = vst [vmem:[%s4645_s26 + $0x10] sm:$0xf] %v3097_v48  ;;  %3100 = vst [vmem:[%s4645_s26 + $0x24] sm:$0xf] %v3099_v49  ;;  %v3103_v51 = vld [vmem:[%s4640_s25 + $0x4c] sm:$0xf] }
  0x4b   : > { %v3105_v52 = vld [vmem:[%s4640_s25 + $0x60] sm:$0xf]  ;;  %3102 = vst [vmem:[%s4645_s26 + $0x38] sm:$0xf] %v3101_v50  ;;  %3104 = vst [vmem:[%s4645_s26 + $0x4c] sm:$0xf] %v3103_v51 }
  0x4c   : > { %3106 = vst [vmem:[%s4645_s26 + $0x60] sm:$0xf] %v3105_v52  ;;  %v3107_v53 = vld [vmem:[%s4640_s25 + $0x74] sm:$0xf]  ;;  %v3109_v54 = vld [vmem:[%s4640_s25 + $0x88] sm:$0xf] }
  0x4d   : > { %v3111_v55 = vld [vmem:[%s4640_s25 + $0x9c] sm:$0xf]  ;;  %3108 = vst [vmem:[%s4645_s26 + $0x74] sm:$0xf] %v3107_v53  ;;  %3110 = vst [vmem:[%s4645_s26 + $0x88] sm:$0xf] %v3109_v54 }
  0x4e   : > { %3112 = vst [vmem:[%s4645_s26 + $0x9c] sm:$0xf] %v3111_v55  ;;  %v3113_v56 = vld [vmem:[%s4640_s25 + $0xb0] sm:$0xf]  ;;  %v3115_v57 = vld [vmem:[%s4640_s25 + $0xc4] sm:$0xf] }
  0x4f   : > { %v3117_v58 = vld [vmem:[%s4640_s25 + $0xd8] sm:$0xf]  ;;  %3114 = vst [vmem:[%s4645_s26 + $0xb0] sm:$0xf] %v3113_v56  ;;  %3116 = vst [vmem:[%s4645_s26 + $0xc4] sm:$0xf] %v3115_v57 }
  0x50   : > { %3118 = vst [vmem:[%s4645_s26 + $0xd8] sm:$0xf] %v3117_v58  ;;  %v3119_v59 = vld [vmem:[%s4640_s25 + $0xec] sm:$0xf]  ;;  %v3121_v60 = vld [vmem:[%s4640_s25 + $0x100] sm:$0xf] }
  0x51   : > { %v3123_v61 = vld [vmem:[%s4640_s25 + $0x114] sm:$0xf]  ;;  %3120 = vst [vmem:[%s4645_s26 + $0xec] sm:$0xf] %v3119_v59  ;;  %3122 = vst [vmem:[%s4645_s26 + $0x100] sm:$0xf] %v3121_v60 }
  0x52   : > { %3124 = vst [vmem:[%s4645_s26 + $0x114] sm:$0xf] %v3123_v61  ;;  %v3125_v62 = vld [vmem:[%s4640_s25 + $0x240] sm:$0xf]  ;;  %v3127_v63 = vld [vmem:[%s4640_s25 + $0x254] sm:$0xf] }
  0x53   : > { %v3129_v0 = vld [vmem:[%s4640_s25 + $0x268] sm:$0xf]  ;;  %3126 = vst [vmem:[%s4645_s26 + $0x128] sm:$0xf] %v3125_v62  ;;  %3128 = vst [vmem:[%s4645_s26 + $0x13c] sm:$0xf] %v3127_v63 }
  0x54   : > { %3130 = vst [vmem:[%s4645_s26 + $0x150] sm:$0xf] %v3129_v0  ;;  %v3131_v1 = vld [vmem:[%s4640_s25 + $0x27c] sm:$0xf]  ;;  %v3133_v2 = vld [vmem:[%s4640_s25 + $0x290] sm:$0xf] }
  0x55   : > { %v3135_v3 = vld [vmem:[%s4640_s25 + $0x2a4] sm:$0xf]  ;;  %3132 = vst [vmem:[%s4645_s26 + $0x164] sm:$0xf] %v3131_v1  ;;  %3134 = vst [vmem:[%s4645_s26 + $0x178] sm:$0xf] %v3133_v2 }
  0x56   : > { %3136 = vst [vmem:[%s4645_s26 + $0x18c] sm:$0xf] %v3135_v3  ;;  %v3137_v4 = vld [vmem:[%s4640_s25 + $0x2b8] sm:$0xf]  ;;  %v3139_v5 = vld [vmem:[%s4640_s25 + $0x2cc] sm:$0xf] }
  0x57   : > { %v3141_v6 = vld [vmem:[%s4640_s25 + $0x2e0] sm:$0xf]  ;;  %3138 = vst [vmem:[%s4645_s26 + $0x1a0] sm:$0xf] %v3137_v4  ;;  %3140 = vst [vmem:[%s4645_s26 + $0x1b4] sm:$0xf] %v3139_v5 }
  0x58   : > { %3142 = vst [vmem:[%s4645_s26 + $0x1c8] sm:$0xf] %v3141_v6  ;;  %v3143_v7 = vld [vmem:[%s4640_s25 + $0x2f4] sm:$0xf]  ;;  %v3145_v8 = vld [vmem:[%s4640_s25 + $0x308] sm:$0xf] }
  0x59   : > { %v3147_v9 = vld [vmem:[%s4640_s25 + $0x31c] sm:$0xf]  ;;  %3144 = vst [vmem:[%s4645_s26 + $0x1dc] sm:$0xf] %v3143_v7  ;;  %3146 = vst [vmem:[%s4645_s26 + $0x1f0] sm:$0xf] %v3145_v8 }
  0x5a   : > { %3148 = vst [vmem:[%s4645_s26 + $0x204] sm:$0xf] %v3147_v9  ;;  %v3149_v10 = vld [vmem:[%s4640_s25 + $0x330] sm:$0xf]  ;;  %v3151_v11 = vld [vmem:[%s4640_s25 + $0x344] sm:$0xf] }
  0x5b   : > { %v3153_v12 = vld [vmem:[%s4640_s25 + $0x470] sm:$0xf]  ;;  %3150 = vst [vmem:[%s4645_s26 + $0x218] sm:$0xf] %v3149_v10  ;;  %3152 = vst [vmem:[%s4645_s26 + $0x22c] sm:$0xf] %v3151_v11 }
  0x5c   : > { %3154 = vst [vmem:[%s4645_s26 + $0x240] sm:$0xf] %v3153_v12  ;;  %v3155_v13 = vld [vmem:[%s4640_s25 + $0x484] sm:$0xf]  ;;  %v3157_v14 = vld [vmem:[%s4640_s25 + $0x498] sm:$0xf] }
  0x5d   : > { %v3159_v15 = vld [vmem:[%s4640_s25 + $0x4ac] sm:$0xf]  ;;  %3156 = vst [vmem:[%s4645_s26 + $0x254] sm:$0xf] %v3155_v13  ;;  %3158 = vst [vmem:[%s4645_s26 + $0x268] sm:$0xf] %v3157_v14 }
  0x5e   : > { %3160 = vst [vmem:[%s4645_s26 + $0x27c] sm:$0xf] %v3159_v15  ;;  %v3161_v16 = vld [vmem:[%s4640_s25 + $0x4c0] sm:$0xf]  ;;  %v3163_v17 = vld [vmem:[%s4640_s25 + $0x4d4] sm:$0xf] }
  0x5f   : > { %v3165_v18 = vld [vmem:[%s4640_s25 + $0x4e8] sm:$0xf]  ;;  %3162 = vst [vmem:[%s4645_s26 + $0x290] sm:$0xf] %v3161_v16  ;;  %3164 = vst [vmem:[%s4645_s26 + $0x2a4] sm:$0xf] %v3163_v17 }
  0x60   : > { %3166 = vst [vmem:[%s4645_s26 + $0x2b8] sm:$0xf] %v3165_v18  ;;  %v3167_v19 = vld [vmem:[%s4640_s25 + $0x4fc] sm:$0xf]  ;;  %v3169_v20 = vld [vmem:[%s4640_s25 + $0x510] sm:$0xf] }
  0x61   : > { %v3171_v21 = vld [vmem:[%s4640_s25 + $0x524] sm:$0xf]  ;;  %3168 = vst [vmem:[%s4645_s26 + $0x2cc] sm:$0xf] %v3167_v19  ;;  %3170 = vst [vmem:[%s4645_s26 + $0x2e0] sm:$0xf] %v3169_v20 }
  0x62   : > { %3172 = vst [vmem:[%s4645_s26 + $0x2f4] sm:$0xf] %v3171_v21  ;;  %v3173_v22 = vld [vmem:[%s4640_s25 + $0x538] sm:$0xf]  ;;  %v3175_v23 = vld [vmem:[%s4640_s25 + $0x54c] sm:$0xf] }
  0x63   : > { %v3177_v24 = vld [vmem:[%s4640_s25 + $0x560] sm:$0xf]  ;;  %3174 = vst [vmem:[%s4645_s26 + $0x308] sm:$0xf] %v3173_v22  ;;  %3176 = vst [vmem:[%s4645_s26 + $0x31c] sm:$0xf] %v3175_v23 }
  0x64   : > { %3178 = vst [vmem:[%s4645_s26 + $0x330] sm:$0xf] %v3177_v24  ;;  %v3179_v25 = vld [vmem:[%s4640_s25 + $0x574] sm:$0xf]  ;;  %v3181_v26 = vld [vmem:[%s4640_s25 + $0x6a0] sm:$0xf] }
  0x65   : > { %v3183_v27 = vld [vmem:[%s4640_s25 + $0x6b4] sm:$0xf]  ;;  %3180 = vst [vmem:[%s4645_s26 + $0x344] sm:$0xf] %v3179_v25  ;;  %3182 = vst [vmem:[%s4645_s26 + $0x358] sm:$0xf] %v3181_v26 }
  0x66   : > { %3184 = vst [vmem:[%s4645_s26 + $0x36c] sm:$0xf] %v3183_v27  ;;  %v3185_v28 = vld [vmem:[%s4640_s25 + $0x6c8] sm:$0xf]  ;;  %v3187_v29 = vld [vmem:[%s4640_s25 + $0x6dc] sm:$0xf] }
  0x67   : > { %v3189_v30 = vld [vmem:[%s4640_s25 + $0x6f0] sm:$0xf]  ;;  %3186 = vst [vmem:[%s4645_s26 + $0x380] sm:$0xf] %v3185_v28  ;;  %3188 = vst [vmem:[%s4645_s26 + $0x394] sm:$0xf] %v3187_v29 }
  0x68   : > { %3190 = vst [vmem:[%s4645_s26 + $0x3a8] sm:$0xf] %v3189_v30  ;;  %v3191_v31 = vld [vmem:[%s4640_s25 + $0x704] sm:$0xf]  ;;  %v3193_v32 = vld [vmem:[%s4640_s25 + $0x718] sm:$0xf] }
  0x69   : > { %v3195_v33 = vld [vmem:[%s4640_s25 + $0x72c] sm:$0xf]  ;;  %3192 = vst [vmem:[%s4645_s26 + $0x3bc] sm:$0xf] %v3191_v31  ;;  %3194 = vst [vmem:[%s4645_s26 + $0x3d0] sm:$0xf] %v3193_v32 }
  0x6a   : > { %3196 = vst [vmem:[%s4645_s26 + $0x3e4] sm:$0xf] %v3195_v33  ;;  %v3197_v34 = vld [vmem:[%s4640_s25 + $0x740] sm:$0xf]  ;;  %v3199_v35 = vld [vmem:[%s4640_s25 + $0x754] sm:$0xf] }
  0x6b   : > { %v3201_v36 = vld [vmem:[%s4640_s25 + $0x768] sm:$0xf]  ;;  %3198 = vst [vmem:[%s4645_s26 + $0x3f8] sm:$0xf] %v3197_v34  ;;  %3200 = vst [vmem:[%s4645_s26 + $0x40c] sm:$0xf] %v3199_v35 }
  0x6c   : > { %3202 = vst [vmem:[%s4645_s26 + $0x420] sm:$0xf] %v3201_v36  ;;  %v3203_v37 = vld [vmem:[%s4640_s25 + $0x77c] sm:$0xf]  ;;  %v3205_v38 = vld [vmem:[%s4640_s25 + $0x790] sm:$0xf] }
  0x6d   : > { %v3207_v39 = vld [vmem:[%s4640_s25 + $0x7a4] sm:$0xf]  ;;  %3204 = vst [vmem:[%s4645_s26 + $0x434] sm:$0xf] %v3203_v37  ;;  %3206 = vst [vmem:[%s4645_s26 + $0x448] sm:$0xf] %v3205_v38 }
  0x6e   : > { %3208 = vst [vmem:[%s4645_s26 + $0x45c] sm:$0xf] %v3207_v39 }
  0x6f PF: > { %p3209_p5 = scmp.ge.s32.totalorder %s4582_s14, 1  ;;  %p501_p6 = scmp.lt.s32.totalorder %s4582_s14, 3 }
  0x71   : > { %p502_p7 = pnand %p3209_p5, %p501_p6 }
  0x72   : > { %s508_s4 = sand.u32 (!%p502_p7), 1, %s4574_s12   ;;  %s532_s20 = smul.u32 (!%p502_p7), 14, %s3092_s15 }
  0x73   : > { %505 = sbr.rel (%p502_p7) target bundleno = 693 (0x2b5), region = 54 }
  0x74   : > { %s4267_s12 = smul.u32 (!%p502_p7), 1120, %s508_s4  ;;  %p533_p8 = scmp.lt.s32.totalorder (!%p502_p7), %s532_s20, 27 }
  0x76   : > { %s5174_s29 = scalar_lea.vmem (!%p502_p7), [#allocation2], %s4267_s12 }
  0x78   : > { %v4985_v40 = vld [vmem:[%s6040_s1 + $0x78] sm:$0xff]   ;;  %v5008_v44 = vld [vmem:[%s6040_s1 + $0x70] sm:$0xff]   ;;  %v5032_v48 = vld [vmem:[%s6040_s1 + $0x68] sm:$0xff]   ;;  %v4584_v9 = vmov 0.0   ;;  %vm4585_vm0 = vmmov 0   ;;  %vm1051_vm1 = vcmask 523264  }
  0x79   : > { %v4990_v41 = vld [vmem:[%s6040_s1 + $0x38] sm:$0xff]   ;;  %3613 = vmatprep.subr.bf16.mxu0 %v4985_v40  ;;  %v5014_v45 = vld [vmem:[%s6040_s1 + $0x30] sm:$0xff]   ;;  %v5038_v49 = vld [vmem:[%s6040_s1 + $0x28] sm:$0xff]   ;;  %s6047_s20 = smov (!%p533_p8, %s532_s20), 27 }
  0x7a   : > { %v4996_v42 = vld [vmem:[%s6040_s1 + $0xf8] sm:$0xff]   ;;  %3614 = vmatpush3.bf16.msra.mxu0 %v4990_v41  ;;  %v5020_v46 = vld [vmem:[%s6040_s1 + $0xf0] sm:$0xff]   ;;  %v5044_v50 = vld [vmem:[%s6040_s1 + $0xe8] sm:$0xff]   ;;  %s3210_s14 = sshll.u32 %s6047_s20, 2 }
  0x7b   : > { %v5002_v43 = vld [vmem:[%s6040_s1 + $0xb8] sm:$0xff]   ;;  %3671 = vmatprep.subr.bf16.mxu1 %v4996_v42  ;;  %3615 = vmatprep.subr.bf16.mxu0 %v5008_v44  ;;  %v5026_v47 = vld [vmem:[%s6040_s1 + $0xb0] sm:$0xff]   ;;  %v5050_v51 = vld [vmem:[%s6040_s1 + $0xa8] sm:$0xff]   ;;  %s5980_s22 = scalar_lea.vmem %s6042_s3, %s3210_s14 }
  0x7c   : > { %3672 = vmatpush3.bf16.msra.mxu1 %v5002_v43  ;;  %v5056_v52 = vld [vmem:[%s6040_s1 + $0x60] sm:$0xff]   ;;  %v5080_v56 = vld [vmem:[%s6040_s1 + $0x58] sm:$0xff]   ;;  %v5104_v60 = vld [vmem:[%s6040_s1 + $0x50] sm:$0xff]  }
  0x7d   : > { %3673 = vmatprep.subr.bf16.mxu1 %v5020_v46  ;;  %v5062_v53 = vld [vmem:[%s6040_s1 + $0x20] sm:$0xff]   ;;  %v5086_v57 = vld [vmem:[%s6040_s1 + $0x18] sm:$0xff]   ;;  %v5110_v61 = vld [vmem:[%s6040_s1 + $0x10] sm:$0xff]  }
  0x7e   : > { %3616 = vmatpush3.bf16.msra.mxu0 %v5014_v45  ;;  %v5068_v54 = vld [vmem:[%s6040_s1 + $0xe0] sm:$0xff]   ;;  %v5092_v58 = vld [vmem:[%s6040_s1 + $0xd8] sm:$0xff]   ;;  %v5116_v62 = vld [vmem:[%s6040_s1 + $0xd0] sm:$0xff]  }
  0x7f   : > { %3617 = vmatprep.subr.bf16.mxu0 %v5032_v48  ;;  %v5074_v55 = vld [vmem:[%s6040_s1 + $0xa0] sm:$0xff]   ;;  %v5098_v59 = vld [vmem:[%s6040_s1 + $0x98] sm:$0xff]   ;;  %v5123_v63 = vld [vmem:[%s6040_s1 + $0x90] sm:$0xff]  }
  0x80   : > { %3674 = vmatpush3.bf16.msra.mxu1 %v5026_v47  ;;  %v5129_v0 = vld [vmem:[%s6040_s1 + $0x48] sm:$0xff]   ;;  %v5153_v4 = vld [vmem:[%s6040_s1 + $0x40] sm:$0xff]   ;;  %v5186_v13 = vld [vmem:[%s6040_s1 + $0x118] sm:$0xff]  }
  0x81   : > { %3675 = vmatprep.subr.bf16.mxu1 %v5044_v50  ;;  %v5135_v1 = vld [vmem:[%s6040_s1 + $0x8] sm:$0xff]   ;;  %v5159_v5 = vld [vmem:[%s6040_s1] sm:$0xff]   ;;  %v5198_v17 = vld [vmem:[%s6040_s1 + $0x110] sm:$0xff]  }
  0x82   : > { %3618 = vmatpush3.bf16.msra.mxu0 %v5038_v49  ;;  %v5141_v2 = vld [vmem:[%s6040_s1 + $0xc8] sm:$0xff]   ;;  %v5165_v6 = vld [vmem:[%s6040_s1 + $0xc0] sm:$0xff]   ;;  %v4344_v20 = vld [vmem:[%s5174_s29 + $0x5c] ss:$20 sps:$4 sm:$0xff]  }
  0x83   : > { %3619 = vmatprep.subr.bf16.mxu0 %v5056_v52  ;;  %v5147_v3 = vld [vmem:[%s6040_s1 + $0x88] sm:$0xff]   ;;  %v5171_v7 = vld [vmem:[%s6040_s1 + $0x80] sm:$0xff]   ;;  %v4347_v24 = vld [vmem:[%s5174_s29 + $0x7c] ss:$20 sps:$4 sm:$0xff]  }
  0x84   : > { %3676 = vmatpush3.bf16.msra.mxu1 %v5050_v51  ;;  %v4327_v8 = vld [vmem:[%s5174_s29] ss:$20 sps:$4 sm:$0xff]   ;;  %v4329_v10 = vld [vmem:[%s5174_s29 + $0x4] ss:$20 sps:$4 sm:$0xff]   ;;  %v4330_v11 = vld [vmem:[%s5174_s29 + $0x8] ss:$20 sps:$4 sm:$0xff]  }
  0x85   : > { %3677 = vmatprep.subr.bf16.mxu1 %v5068_v54  ;;  %v4332_v12 = vld [vmem:[%s5174_s29 + $0xc] ss:$20 sps:$4 sm:$0xff]   ;;  %1105 = vmatprep.mubr.bf16.mxu0 %v4329_v10  ;;  %v4337_v15 = vld [vmem:[%s5174_s29 + $0x34] ss:$20 sps:$4 sm:$0xff]   ;;  %v4339_v18 = vld [vmem:[%s5174_s29 + $0x30] ss:$20 sps:$4 sm:$0xff]  }
  0x86   : > { %3620 = vmatpush3.bf16.msra.mxu0 %v5062_v53  ;;  %1194 = vmatprep.mubr.bf16.mxu1 %v4332_v12  ;;  %v4334_v14 = vld [vmem:[%s5174_s29 + $0x2c] ss:$20 sps:$4 sm:$0xff]   ;;  %v4336_v16 = vld [vmem:[%s5174_s29 + $0x28] ss:$20 sps:$4 sm:$0xff]   ;;  %v4343_v22 = vld [vmem:[%s5174_s29 + $0x50] ss:$20 sps:$4 sm:$0xff]  }
  0x87   : > { %3621 = vmatprep.subr.bf16.mxu0 %v5080_v56  ;;  %v4340_v19 = vld [vmem:[%s5174_s29 + $0x54] ss:$20 sps:$4 sm:$0xff]   ;;  %v4346_v23 = vld [vmem:[%s5174_s29 + $0x58] ss:$20 sps:$4 sm:$0xff]   ;;  %v5225_v26 = vld [vmem:[%s6040_s1 + $0x100] sm:$0xff]  }
  0x88   : > { %3678 = vmatpush3.bf16.msra.mxu1 %v5074_v55  ;;  %v5210_v21 = vld [vmem:[%s6040_s1 + $0x108] sm:$0xff]   ;;  %v4350_v25 = vld [vmem:[%s5174_s29 + $0x84] ss:$20 sps:$4 sm:$0xff]   ;;  %v4352_v28 = vld [vmem:[%s5174_s29 + $0x80] ss:$20 sps:$4 sm:$0xff]  }
  0x89   : > { %3679 = vmatprep.subr.bf16.mxu1 %v5092_v58  ;;  %v4349_v27 = vld [vmem:[%s5174_s29 + $0x78] ss:$20 sps:$4 sm:$0xff]   ;;  %v4356_v31 = vld [vmem:[%s5174_s29 + $0xa0] ss:$20 sps:$4 sm:$0xff]   ;;  %v4359_v32 = vld [vmem:[%s5174_s29 + $0xa8] ss:$20 sps:$4 sm:$0xff]  }
  0x8a   : > { %3622 = vmatpush3.bf16.msra.mxu0 %v5086_v57  ;;  %v4354_v29 = vld [vmem:[%s5174_s29 + $0xa4] ss:$20 sps:$4 sm:$0xff]   ;;  %v4357_v30 = vld [vmem:[%s5174_s29 + $0xac] ss:$20 sps:$4 sm:$0xff]   ;;  %v4363_v34 = vld [vmem:[%s5174_s29 + $0xd4] ss:$20 sps:$4 sm:$0xff]  }
  0x8b   : > { %3623 = vmatprep.subr.bf16.mxu0 %v5104_v60  ;;  %v4360_v33 = vld [vmem:[%s5174_s29 + $0xcc] ss:$20 sps:$4 sm:$0xff]   ;;  %v4362_v35 = vld [vmem:[%s5174_s29 + $0xc8] ss:$20 sps:$4 sm:$0xff]   ;;  %v4365_v36 = vld [vmem:[%s5174_s29 + $0xd0] ss:$20 sps:$4 sm:$0xff]  }
  0x8c   : > { %3680 = vmatpush3.bf16.msra.mxu1 %v5098_v59  ;;  %v4367_v37 = vld [vmem:[%s5174_s29 + $0xf4] ss:$20 sps:$4 sm:$0xff]   ;;  %v4370_v38 = vld [vmem:[%s5174_s29 + $0xfc] ss:$20 sps:$4 sm:$0xff]   ;;  %v4374_v12 = vld [vmem:[%s5174_s29 + $0x118] ss:$20 sps:$4 sm:$0xff]  }
  0x8d   : > { %3681 = vmatprep.subr.bf16.mxu1 %v5116_v62  ;;  %v4369_v39 = vld [vmem:[%s5174_s29 + $0xf0] ss:$20 sps:$4 sm:$0xff]  }
  0x8e   : > { %3624 = vmatpush3.bf16.msra.mxu0 %v5110_v61  ;;  %v4376_v10 = vld [vmem:[%s5174_s29 + $0x11c] ss:$20 sps:$4 sm:$0xff]  }
  0x8f   : > { %3625 = vmatprep.subr.bf16.mxu0 %v5129_v0 }
  0x90   : > { %3682 = vmatpush3.bf16.msra.mxu1 %v5123_v63 }
  0x91   : > { %3683 = vmatprep.subr.bf16.mxu1 %v5141_v2 }
  0x92   : > { %3626 = vmatpush3.bf16.msra.mxu0 %v5135_v1 }
  0x93   : > { %3627 = vmatprep.subr.bf16.mxu0 %v5153_v4 }
  0x94   : > { %3684 = vmatpush3.bf16.msra.mxu1 %v5147_v3 }
  0x95   : > { %3685 = vmatprep.subr.bf16.mxu1 %v5165_v6 }
  0x96   : > { %3628 = vmatpush3.bf16.msra.mxu0 %v5159_v5 }
  0x97   : > { %4121 = vmatprep.subr.bf16.mxu0 %v4584_v9 }
  0x98   : > { %3686 = vmatpush3.bf16.msra.mxu1 %v5171_v7 }
  0x99   : > { %3740 = vmatprep.subr.bf16.mxu1 %v4985_v40  ;;  %1106 = vmatmul.mubr.bf16.vlgmr.msra.gmra.mxu0 %v4327_v8  ;;  %v4372_v8 = vld [vmem:[%s5174_s29 + $0xf8] ss:$20 sps:$4 sm:$0xff]  }
  0x9a   : > { %4122 = vmatpush3.bf16.msra.mxu0 %v5186_v13  ;;  %1113 = vmatprep.mubr.bf16.mxu0 %v4334_v14  ;;  %v4378_v14 = vld [vmem:[%s5174_s29 + $0x144] ss:$20 sps:$4 sm:$0xff]  }
  0x9b   : > { %1195 = vmatmul.mubr.bf16.vlgmr.msra.gmra.mxu1 %v4330_v11  ;;  %4123 = vmatprep.subr.bf16.mxu0 %v4584_v9  ;;  %v4373_v11 = vld [vmem:[%s5174_s29 + $0x10] ss:$20 sps:$4 sm:$0xff]  }
  0x9c   : > { %3741 = vmatpush3.bf16.msra.mxu1 %v4990_v41  ;;  %1202 = vmatprep.mubr.bf16.mxu1 %v4337_v15  ;;  %v4377_v15 = vld [vmem:[%s5174_s29 + $0x38] ss:$20 sps:$4 sm:$0xff]  }
  0x9d   : > { %3742 = vmatprep.subr.bf16.mxu1 %v5008_v44 }
  0x9e   : > { %4124 = vmatpush3.bf16.msra.mxu0 %v5198_v17 }
  0x9f   : > { %4125 = vmatprep.subr.bf16.mxu0 %v4584_v9 }
  0xa0   : > { %3743 = vmatpush3.bf16.msra.mxu1 %v5014_v45 }
  0xa1   : > { %3744 = vmatprep.subr.bf16.mxu1 %v5032_v48  ;;  %1114 = vmatmul.mubr.bf16.gmra.mxu0 %v4336_v16  ;;  %v4380_v16 = vld [vmem:[%s5174_s29 + $0x140] ss:$20 sps:$4 sm:$0xff]  }
  0xa2   : > { %1121 = vmatprep.mubr.bf16.mxu0 %v4340_v19  ;;  %4126 = vmatpush3.bf16.msra.mxu0 %v5210_v21  ;;  %v4381_v19 = vld [vmem:[%s5174_s29 + $0x60] ss:$20 sps:$4 sm:$0xff]  }
  0xa3   : > { %1203 = vmatmul.mubr.bf16.gmra.mxu1 %v4339_v18  ;;  %4127 = vmatprep.subr.bf16.mxu0 %v4584_v9  ;;  %v4382_v18 = vld [vmem:[%s5174_s29 + $0x16c] ss:$20 sps:$4 sm:$0xff]  }
  0xa4   : > { %1210 = vmatprep.mubr.bf16.mxu1 %v4344_v20  ;;  %3745 = vmatpush3.bf16.msra.mxu1 %v5038_v49  ;;  %v4384_v20 = vld [vmem:[%s5174_s29 + $0x168] ss:$20 sps:$4 sm:$0xff]  }
  0xa5   : > { %3746 = vmatprep.subr.bf16.mxu1 %v5056_v52 }
  0xa6   : > { %4128 = vmatpush3.bf16.msra.mxu0 %v5225_v26 }
  0xa7   : > { %3798 = vmatprep.subr.bf16.mxu0 %v4996_v42 }
  0xa8   : > { %3747 = vmatpush3.bf16.msra.mxu1 %v5062_v53 }
  0xa9   : > { %3748 = vmatprep.subr.bf16.mxu1 %v5080_v56  ;;  %1122 = vmatmul.mubr.bf16.gmra.mxu0 %v4343_v22  ;;  %v4386_v22 = vld [vmem:[%s5174_s29 + $0x194] ss:$20 sps:$4 sm:$0xff]  }
  0xaa   : > { %1129 = vmatprep.mubr.bf16.mxu0 %v4347_v24  ;;  %v4388_v24 = vld [vmem:[%s5174_s29 + $0x190] ss:$20 sps:$4 sm:$0xff]  }
  0xab   : > { %1211 = vmatmul.mubr.bf16.gmra.mxu1 %v4346_v23  ;;  %v4385_v23 = vld [vmem:[%s5174_s29 + $0x88] ss:$20 sps:$4 sm:$0xff]  }
  0xac   : > { %1218 = vmatprep.mubr.bf16.mxu1 %v4350_v25  ;;  %3749 = vmatpush3.bf16.msra.mxu1 %v5086_v57  ;;  %v4390_v25 = vld [vmem:[%s5174_s29 + $0x1bc] ss:$20 sps:$4 sm:$0xff]  }
  0xad   : > { %3750 = vmatprep.subr.bf16.mxu1 %v5104_v60 }
  0xb0   : > { %3751 = vmatpush3.bf16.msra.mxu1 %v5110_v61 }
  0xb1   : > { %3752 = vmatprep.subr.bf16.mxu1 %v5129_v0  ;;  %1130 = vmatmul.mubr.bf16.gmra.mxu0 %v4349_v27  ;;  %v4392_v27 = vld [vmem:[%s5174_s29 + $0x1b8] ss:$20 sps:$4 sm:$0xff]  }
  0xb2   : > { %1137 = vmatprep.mubr.bf16.mxu0 %v4354_v29  ;;  %v4393_v29 = vld [vmem:[%s5174_s29 + $0xd8] ss:$20 sps:$4 sm:$0xff]  }
  0xb3   : > { %1219 = vmatmul.mubr.bf16.gmra.mxu1 %v4352_v28  ;;  %v4394_v28 = vld [vmem:[%s5174_s29 + $0x1e4] ss:$20 sps:$4 sm:$0xff]  }
  0xb4   : > { %1226 = vmatprep.mubr.bf16.mxu1 %v4357_v30  ;;  %3753 = vmatpush3.bf16.msra.mxu1 %v5135_v1  ;;  %v4396_v30 = vld [vmem:[%s5174_s29 + $0x1e0] ss:$20 sps:$4 sm:$0xff]  }
  0xb5   : > { %3754 = vmatprep.subr.bf16.mxu1 %v5153_v4 }
  0xb8   : > { %3755 = vmatpush3.bf16.msra.mxu1 %v5159_v5 }
  0xb9   : > { %4157 = vmatprep.subr.bf16.mxu1 %v4584_v9  ;;  %1138 = vmatmul.mubr.bf16.gmra.mxu0 %v4356_v31  ;;  %v4398_v31 = vld [vmem:[%s5174_s29 + $0x20c] ss:$20 sps:$4 sm:$0xff]  }
  0xba   : > { %1145 = vmatprep.mubr.bf16.mxu0 %v4360_v33  ;;  %v4403_v33 = vld [vmem:[%s5174_s29 + $0x124] ss:$20 sps:$4 sm:$0xff]  }
  0xbb   : > { %1227 = vmatmul.mubr.bf16.gmra.mxu1 %v4359_v32  ;;  %v4400_v32 = vld [vmem:[%s5174_s29 + $0x208] ss:$20 sps:$4 sm:$0xff]  }
  0xbc   : > { %1234 = vmatprep.mubr.bf16.mxu1 %v4363_v34  ;;  %v4401_v34 = vld [vmem:[%s5174_s29 + $0x120] ss:$20 sps:$4 sm:$0xff]  }
  0xc1   : > { %1146 = vmatmul.mubr.bf16.gmra.mxu0 %v4362_v35  ;;  %v4404_v35 = vld [vmem:[%s5174_s29 + $0x128] ss:$20 sps:$4 sm:$0xff]  }
  0xc2   : > { %1153 = vmatprep.mubr.bf16.mxu0 %v4367_v37  ;;  %v4407_v37 = vld [vmem:[%s5174_s29 + $0x148] ss:$20 sps:$4 sm:$0xff]  }
  0xc3   : > { %1235 = vmatmul.mubr.bf16.gmra.mxu1 %v4365_v36  ;;  %v4405_v36 = vld [vmem:[%s5174_s29 + $0x14c] ss:$20 sps:$4 sm:$0xff]  }
  0xc4   : > { %1242 = vmatprep.mubr.bf16.mxu1 %v4370_v38  ;;  %v4408_v38 = vld [vmem:[%s5174_s29 + $0x150] ss:$20 sps:$4 sm:$0xff]  }
  0xc9   : > { %1154 = vmatmul.mubr.bf16.gmra.mxu0 %v4369_v39  ;;  %v4409_v39 = vld [vmem:[%s5174_s29 + $0x174] ss:$20 sps:$4 sm:$0xff]  }
  0xca   : > { %4129 = vmatprep.mubr.msk.bf16.mxu0 %vm4585_vm0, %v4584_v9 }
  0xcb   : > { %1243 = vmatmul.mubr.bf16.gmra.mxu1 %v4372_v8  ;;  %v4444_v8 = vld [vmem:[%s5174_s29 + $0x28c] ss:$20 sps:$4 sm:$0xff]  }
  0xcc   : > { %1625 = vmatprep.mubr.bf16.mxu1 %v4376_v10  ;;  %v4531_v10 = vld [vmem:[%s6040_s1 + $0x68] sm:$0xff]  }
  0xd1   : > { %4130 = vmatmul.mubr.msk.bf16.vlgmr.msra.gmra.mxu0 %vm1051_vm1, %v4373_v11  ;;  %v4533_v11 = vld [vmem:[%s6040_s1 + $0x60] sm:$0xff]  }
  0xd2   : > { %3799 = vmatpush3.bf16.msra.mxu0 %v5002_v43  ;;  %4133 = vmatprep.mubr.msk.bf16.mxu0 %vm4585_vm0, %v4584_v9 }
  0xd3   : > { %1626 = vmatmul.mubr.bf16.vlgmr.msra.gmra.mxu1 %v4374_v12  ;;  %3800 = vmatprep.subr.bf16.mxu0 %v5020_v46  ;;  %v4443_v12 = vld [vmem:[%s5174_s29 + $0x280] ss:$20 sps:$4 sm:$0xff]  }
  0xd4   : > { %4158 = vmatpush3.bf16.msra.mxu1 %v5186_v13  ;;  %1633 = vmatprep.mubr.bf16.mxu1 %v4378_v14  ;;  %v4446_v14 = vld [vmem:[%s5174_s29 + $0x288] ss:$20 sps:$4 sm:$0xff]  }
  0xd5   : > { %4159 = vmatprep.subr.bf16.mxu1 %v4584_v9 }
  0xd6   : > { %3801 = vmatpush3.bf16.msra.mxu0 %v5026_v47 }
  0xd7   : > { %3802 = vmatprep.subr.bf16.mxu0 %v5044_v50 }
  0xd8   : > { %4160 = vmatpush3.bf16.msra.mxu1 %v5198_v17 }
  0xd9   : > { %4134 = vmatmul.mubr.msk.bf16.gmra.mxu0 %vm1051_vm1, %v4377_v15  ;;  %4161 = vmatprep.subr.bf16.mxu1 %v4584_v9  ;;  %v4447_v15 = vld [vmem:[%s5174_s29 + $0x2ac] ss:$20 sps:$4 sm:$0xff]  }
  0xda   : > { %4137 = vmatprep.mubr.msk.bf16.mxu0 %vm4585_vm0, %v4584_v9  ;;  %3803 = vmatpush3.bf16.msra.mxu0 %v5050_v51 }
  0xdb   : > { %1634 = vmatmul.mubr.bf16.gmra.mxu1 %v4380_v16  ;;  %3804 = vmatprep.subr.bf16.mxu0 %v5068_v54  ;;  %v4450_v16 = vld [vmem:[%s5174_s29 + $0x2b4] ss:$20 sps:$4 sm:$0xff]  }
  0xdc   : > { %1641 = vmatprep.mubr.bf16.mxu1 %v4382_v18  ;;  %4162 = vmatpush3.bf16.msra.mxu1 %v5210_v21  ;;  %v4534_v18 = vld [vmem:[%s6040_s1 + $0x20] sm:$0xff]  }
  0xdd   : > { %4163 = vmatprep.subr.bf16.mxu1 %v4584_v9 }
  0xde   : > { %3805 = vmatpush3.bf16.msra.mxu0 %v5074_v55 }
  0xdf   : > { %3806 = vmatprep.subr.bf16.mxu0 %v5092_v58 }
  0xe0   : > { %4164 = vmatpush3.bf16.msra.mxu1 %v5225_v26 }
  0xe1   : > { %4138 = vmatmul.mubr.msk.bf16.gmra.mxu0 %vm1051_vm1, %v4381_v19  ;;  %3925 = vmatprep.subr.bf16.mxu1 %v4996_v42  ;;  %v4389_v42 = vld [vmem:[%s5174_s29 + $0xb0] ss:$20 sps:$4 sm:$0xff]   ;;  %v4535_v19 = vld [vmem:[%s6040_s1 + $0x58] sm:$0xff]  }
  0xe2   : > { %4141 = vmatprep.mubr.msk.bf16.mxu0 %vm4585_vm0, %v4584_v9  ;;  %3807 = vmatpush3.bf16.msra.mxu0 %v5098_v59 }
  0xe3   : > { %1642 = vmatmul.mubr.bf16.gmra.mxu1 %v4384_v20  ;;  %3808 = vmatprep.subr.bf16.mxu0 %v5116_v62  ;;  %v4537_v20 = vld [vmem:[%s6040_s1 + $0x18] sm:$0xff]  }
  0xe4   : > { %1649 = vmatprep.mubr.bf16.mxu1 %v4386_v22  ;;  %v4538_v22 = vld [vmem:[%s6040_s1 + $0x50] sm:$0xff]  }
  0xe6   : > { %3809 = vmatpush3.bf16.msra.mxu0 %v5123_v63 }
  0xe7   : > { %3810 = vmatprep.subr.bf16.mxu0 %v5141_v2 }
  0xe9   : > { %4142 = vmatmul.mubr.msk.bf16.gmra.mxu0 %vm1051_vm1, %v4385_v23  ;;  %v4452_v23 = vld [vmem:[%s5174_s29 + $0x2b0] ss:$20 sps:$4 sm:$0xff]  }
  0xea   : > { %4145 = vmatprep.mubr.msk.bf16.mxu0 %vm4585_vm0, %v4584_v9  ;;  %3811 = vmatpush3.bf16.msra.mxu0 %v5147_v3 }
  0xeb   : > { %1650 = vmatmul.mubr.bf16.gmra.mxu1 %v4388_v24  ;;  %3812 = vmatprep.subr.bf16.mxu0 %v5165_v6  ;;  %v4453_v24 = vld [vmem:[%s5174_s29 + $0x2d4] ss:$20 sps:$4 sm:$0xff]  }
  0xec   : > { %1657 = vmatprep.mubr.bf16.mxu1 %v4390_v25  ;;  %v4456_v25 = vld [vmem:[%s5174_s29 + $0x2dc] ss:$20 sps:$4 sm:$0xff]  }
  0xee   : > { %3813 = vmatpush3.bf16.msra.mxu0 %v5171_v7 }
  0xef   : > { %3867 = vmatprep.subr.bf16.mxu0 %v4985_v40  ;;  %v4397_v40 = vld [vmem:[%s5174_s29 + $0x100] ss:$20 sps:$4 sm:$0xff]  }
  0xf1   : > { %4146 = vmatmul.mubr.msk.bf16.gmra.mxu0 %vm1051_vm1, %v4389_v42  ;;  %v4539_v42 = vld [vmem:[%s6040_s1 + $0x10] sm:$0xff]  }
  0xf2   : > { %4149 = vmatprep.mubr.msk.bf16.mxu0 %vm4585_vm0, %v4584_v9 }
  0xf3   : > { %1658 = vmatmul.mubr.bf16.gmra.mxu1 %v4392_v27 }
  0xf4   : > { %1665 = vmatprep.mubr.bf16.mxu1 %v4394_v28 }
  0xf9   : > { %4150 = vmatmul.mubr.msk.bf16.gmra.mxu0 %vm1051_vm1, %v4393_v29  ;;  %v5458_v29 = vld [vmem:[%s6041_s2] ss:$0 sm:$0xff] }
  0xfa   : > { %4153 = vmatprep.mubr.msk.bf16.mxu0 %vm4585_vm0, %v4584_v9 }
  0xfb   : > { %1666 = vmatmul.mubr.bf16.gmra.mxu1 %v4396_v30 }
  0xfc   : > { %1673 = vmatprep.mubr.bf16.mxu1 %v4398_v31 }
 0x101   : > { %4154 = vmatmul.mubr.msk.bf16.gmra.mxu0 %vm1051_vm1, %v4397_v40 }
 0x102   : > { %1714 = vmatprep.mubr.bf16.mxu0 %v4403_v33  ;;  %v4455_v33 = vld [vmem:[%s5174_s29 + $0x2d0] ss:$20 sps:$4 sm:$0xff]  }
 0x103   : > { %1674 = vmatmul.mubr.bf16.gmra.mxu1 %v4400_v32 }
 0x104   : > { %4165 = vmatprep.mubr.msk.bf16.mxu1 %vm4585_vm0, %v4584_v9 }
 0x109   : > { %1715 = vmatmul.mubr.bf16.vlgmr.msra.gmra.mxu0 %v4401_v34 }
 0x10a   : > { %3868 = vmatpush3.bf16.msra.mxu0 %v4990_v41  ;;  %1722 = vmatprep.mubr.bf16.mxu0 %v4405_v36  ;;  %v4411_v41 = vld [vmem:[%s5174_s29 + $0x170] ss:$20 sps:$4 sm:$0xff]   ;;  %v4458_v36 = vld [vmem:[%s5174_s29 + $0x2d8] ss:$20 sps:$4 sm:$0xff]  }
 0x10b   : > { %4166 = vmatmul.mubr.msk.bf16.vlgmr.msra.gmra.mxu1 %vm1051_vm1, %v4404_v35  ;;  %3869 = vmatprep.subr.bf16.mxu0 %v5008_v44  ;;  %v4413_v44 = vld [vmem:[%s5174_s29 + $0x19c] ss:$20 sps:$4 sm:$0xff]  }
 0x10c   : > { %3926 = vmatpush3.bf16.msra.mxu1 %v5002_v43  ;;  %4169 = vmatprep.mubr.msk.bf16.mxu1 %vm4585_vm0, %v4584_v9  ;;  %v4412_v43 = vld [vmem:[%s5174_s29 + $0x178] ss:$20 sps:$4 sm:$0xff]  }
 0x10d   : > { %3927 = vmatprep.subr.bf16.mxu1 %v5020_v46  ;;  %v4416_v46 = vld [vmem:[%s5174_s29 + $0x1a0] ss:$20 sps:$4 sm:$0xff]  }
 0x10e   : > { %3870 = vmatpush3.bf16.msra.mxu0 %v5014_v45  ;;  %v4415_v45 = vld [vmem:[%s5174_s29 + $0x198] ss:$20 sps:$4 sm:$0xff]  }
 0x10f   : > { %3871 = vmatprep.subr.bf16.mxu0 %v5032_v48  ;;  %v4419_v48 = vld [vmem:[%s5174_s29 + $0x1c0] ss:$20 sps:$4 sm:$0xff]  }
 0x110   : > { %3928 = vmatpush3.bf16.msra.mxu1 %v5026_v47  ;;  %v4417_v47 = vld [vmem:[%s5174_s29 + $0x1c4] ss:$20 sps:$4 sm:$0xff]  }
 0x111   : > { %1723 = vmatmul.mubr.bf16.gmra.mxu0 %v4407_v37  ;;  %3929 = vmatprep.subr.bf16.mxu1 %v5044_v50  ;;  %v4421_v50 = vld [vmem:[%s5174_s29 + $0x1ec] ss:$20 sps:$4 sm:$0xff]   ;;  %v4459_v37 = vld [vmem:[%s5174_s29 + $0x2fc] ss:$20 sps:$4 sm:$0xff]  }
 0x112   : > { %1730 = vmatprep.mubr.bf16.mxu0 %v4409_v39  ;;  %3872 = vmatpush3.bf16.msra.mxu0 %v5038_v49  ;;  %v4420_v49 = vld [vmem:[%s5174_s29 + $0x1c8] ss:$20 sps:$4 sm:$0xff]   ;;  %v4462_v39 = vld [vmem:[%s5174_s29 + $0x304] ss:$20 sps:$4 sm:$0xff]  }
 0x113   : > { %4170 = vmatmul.mubr.msk.bf16.gmra.mxu1 %vm1051_vm1, %v4408_v38  ;;  %3873 = vmatprep.subr.bf16.mxu0 %v5056_v52  ;;  %v4423_v52 = vld [vmem:[%s5174_s29 + $0x1e8] ss:$20 sps:$4 sm:$0xff]  }
 0x114   : > { %4173 = vmatprep.mubr.msk.bf16.mxu1 %vm4585_vm0, %v4584_v9  ;;  %3930 = vmatpush3.bf16.msra.mxu1 %v5050_v51  ;;  %v4527_v51 = vld [vmem:[%s6040_s1 + $0x78] sm:$0xff]  }
 0x115   : > { %3931 = vmatprep.subr.bf16.mxu1 %v5068_v54  ;;  %v4425_v54 = vld [vmem:[%s5174_s29 + $0x214] ss:$20 sps:$4 sm:$0xff]  }
 0x116   : > { %3874 = vmatpush3.bf16.msra.mxu0 %v5062_v53  ;;  %v4424_v53 = vld [vmem:[%s5174_s29 + $0x1f0] ss:$20 sps:$4 sm:$0xff]  }
 0x117   : > { %3875 = vmatprep.subr.bf16.mxu0 %v5080_v56  ;;  %v4428_v56 = vld [vmem:[%s5174_s29 + $0x218] ss:$20 sps:$4 sm:$0xff]  }
 0x118   : > { %3932 = vmatpush3.bf16.msra.mxu1 %v5074_v55  ;;  %v4427_v55 = vld [vmem:[%s5174_s29 + $0x210] ss:$20 sps:$4 sm:$0xff]  }
 0x119   : > { %1731 = vmatmul.mubr.bf16.gmra.mxu0 %v4411_v41  ;;  %3933 = vmatprep.subr.bf16.mxu1 %v5092_v58  ;;  %v4434_v58 = vld [vmem:[%s5174_s29 + $0x23c] ss:$20 sps:$4 sm:$0xff]  }
 0x11a   : > { %1738 = vmatprep.mubr.bf16.mxu0 %v4413_v44  ;;  %3876 = vmatpush3.bf16.msra.mxu0 %v5086_v57  ;;  %v4431_v57 = vld [vmem:[%s5174_s29 + $0x234] ss:$20 sps:$4 sm:$0xff]  }
 0x11b   : > { %4174 = vmatmul.mubr.msk.bf16.gmra.mxu1 %vm1051_vm1, %v4412_v43  ;;  %3877 = vmatprep.subr.bf16.mxu0 %v5104_v60  ;;  %v4432_v60 = vld [vmem:[%s5174_s29 + $0x238] ss:$20 sps:$4 sm:$0xff]  }
 0x11c   : > { %4177 = vmatprep.mubr.msk.bf16.mxu1 %vm4585_vm0, %v4584_v9  ;;  %3934 = vmatpush3.bf16.msra.mxu1 %v5098_v59  ;;  %v4429_v59 = vld [vmem:[%s5174_s29 + $0x230] ss:$20 sps:$4 sm:$0xff]  }
 0x11d   : > { %3935 = vmatprep.subr.bf16.mxu1 %v5116_v62  ;;  %v4438_v62 = vld [vmem:[%s5174_s29 + $0x264] ss:$20 sps:$4 sm:$0xff]  }
 0x11e   : > { %3878 = vmatpush3.bf16.msra.mxu0 %v5110_v61  ;;  %v4435_v61 = vld [vmem:[%s5174_s29 + $0x25c] ss:$20 sps:$4 sm:$0xff]  }
 0x11f   : > { %3879 = vmatprep.subr.bf16.mxu0 %v5129_v0 }
 0x120   : > { %3936 = vmatpush3.bf16.msra.mxu1 %v5123_v63  ;;  %v4528_v63 = vld [vmem:[%s6040_s1 + $0x38] sm:$0xff]  }
 0x121   : > { %1739 = vmatmul.mubr.bf16.gmra.mxu0 %v4415_v45  ;;  %3937 = vmatprep.subr.bf16.mxu1 %v5141_v2  ;;  %v4529_v2 = vld [vmem:[%s6040_s1 + $0x70] sm:$0xff]  }
 0x122   : > { %1746 = vmatprep.mubr.bf16.mxu0 %v4417_v47  ;;  %3880 = vmatpush3.bf16.msra.mxu0 %v5135_v1 }
 0x123   : > { %4178 = vmatmul.mubr.msk.bf16.gmra.mxu1 %vm1051_vm1, %v4416_v46  ;;  %3881 = vmatprep.subr.bf16.mxu0 %v5153_v4 }
 0x124   : > { %4181 = vmatprep.mubr.msk.bf16.mxu1 %vm4585_vm0, %v4584_v9  ;;  %3938 = vmatpush3.bf16.msra.mxu1 %v5147_v3  ;;  %v4437_v3 = vld [vmem:[%s5174_s29 + $0x258] ss:$20 sps:$4 sm:$0xff]  }
 0x125   : > { %3939 = vmatprep.subr.bf16.mxu1 %v5165_v6  ;;  %v4440_v6 = vld [vmem:[%s5174_s29 + $0x260] ss:$20 sps:$4 sm:$0xff]  }
 0x126   : > { %3882 = vmatpush3.bf16.msra.mxu0 %v5159_v5 }
 0x127   : > { %4193 = vmatprep.subr.bf16.mxu0 %v4584_v9 }
 0x128   : > { %3940 = vmatpush3.bf16.msra.mxu1 %v5171_v7  ;;  %v4441_v7 = vld [vmem:[%s5174_s29 + $0x284] ss:$20 sps:$4 sm:$0xff]  }
 0x129   : > { %1747 = vmatmul.mubr.bf16.gmra.mxu0 %v4419_v48  ;;  %3994 = vmatprep.subr.bf16.mxu1 %v4527_v51 }
 0x12a   : > { %1754 = vmatprep.mubr.bf16.mxu0 %v4421_v50 }
 0x12b   : > { %4182 = vmatmul.mubr.msk.bf16.gmra.mxu1 %vm1051_vm1, %v4420_v49 }
 0x12c   : > { %4185 = vmatprep.mubr.msk.bf16.mxu1 %vm4585_vm0, %v4584_v9 }
 0x131   : > { %1755 = vmatmul.mubr.bf16.gmra.mxu0 %v4423_v52  ;;  %v4461_v52 = vld [vmem:[%s5174_s29 + $0x2f8] ss:$20 sps:$4 sm:$0xff]  }
 0x132   : > { %1762 = vmatprep.mubr.bf16.mxu0 %v4425_v54 }
 0x133   : > { %4186 = vmatmul.mubr.msk.bf16.gmra.mxu1 %vm1051_vm1, %v4424_v53 }
 0x134   : > { %4189 = vmatprep.mubr.msk.bf16.mxu1 %vm4585_vm0, %v4584_v9 }
 0x139   : > { %1763 = vmatmul.mubr.bf16.gmra.mxu0 %v4427_v55  ;;  %v4464_v55 = vld [vmem:[%s5174_s29 + $0x300] ss:$20 sps:$4 sm:$0xff]  }
 0x13a   : > { %2159 = vmatprep.mubr.bf16.mxu0 %v4431_v57 }
 0x13b   : > { %4190 = vmatmul.mubr.msk.bf16.gmra.mxu1 %vm1051_vm1, %v4428_v56  ;;  %v4465_v56 = vld [vmem:[%s5174_s29 + $0x324] ss:$20 sps:$4 sm:$0xff]  }
 0x13c   : > { %2248 = vmatprep.mubr.bf16.mxu1 %v4434_v58  ;;  %v4468_v58 = vld [vmem:[%s5174_s29 + $0x32c] ss:$20 sps:$4 sm:$0xff]  }
 0x141   : > { %2160 = vmatmul.mubr.bf16.vlgmr.msra.gmra.mxu0 %v4429_v59 }
 0x142   : > { %4194 = vmatpush3.bf16.msra.mxu0 %v5186_v13  ;;  %2167 = vmatprep.mubr.bf16.mxu0 %v4435_v61  ;;  %v4530_v13 = vld [vmem:[%s6040_s1 + $0x30] sm:$0xff]  }
 0x143   : > { %2249 = vmatmul.mubr.bf16.vlgmr.msra.gmra.mxu1 %v4432_v60  ;;  %4195 = vmatprep.subr.bf16.mxu0 %v4584_v9 }
 0x144   : > { %3995 = vmatpush3.bf16.msra.mxu1 %v4528_v63  ;;  %2256 = vmatprep.mubr.bf16.mxu1 %v4438_v62 }
 0x145   : > { %3996 = vmatprep.subr.bf16.mxu1 %v4529_v2 }
 0x146   : > { %4196 = vmatpush3.bf16.msra.mxu0 %v5198_v17  ;;  %v4532_v17 = vld [vmem:[%s6040_s1 + $0x28] sm:$0xff]  }
 0x147   : > { %4197 = vmatprep.subr.bf16.mxu0 %v4584_v9 }
 0x148   : > { %3997 = vmatpush3.bf16.msra.mxu1 %v4530_v13 }
 0x149   : > { %3998 = vmatprep.subr.bf16.mxu1 %v4531_v10  ;;  %2168 = vmatmul.mubr.bf16.gmra.mxu0 %v4437_v3 }
 0x14a   : > { %2175 = vmatprep.mubr.bf16.mxu0 %v4441_v7  ;;  %4198 = vmatpush3.bf16.msra.mxu0 %v5210_v21  ;;  %v4536_v21 = vld [vmem:[%s6040_s1 + $0xf8] sm:$0xff]  }
 0x14b   : > { %2257 = vmatmul.mubr.bf16.gmra.mxu1 %v4440_v6  ;;  %4199 = vmatprep.subr.bf16.mxu0 %v4584_v9 }
 0x14c   : > { %2264 = vmatprep.mubr.bf16.mxu1 %v4444_v8  ;;  %3999 = vmatpush3.bf16.msra.mxu1 %v4532_v17 }
 0x14d   : > { %4000 = vmatprep.subr.bf16.mxu1 %v4533_v11  ;;  %v4467_v11 = vld [vmem:[%s5174_s29 + $0x320] ss:$20 sps:$4 sm:$0xff]  }
 0x14e   : > { %4200 = vmatpush3.bf16.msra.mxu0 %v5225_v26  ;;  %v4449_v26 = vld [vmem:[%s5174_s29 + $0x2a8] ss:$20 sps:$4 sm:$0xff]  }
 0x14f   : > { %4052 = vmatprep.subr.bf16.mxu0 %v4536_v21 }
 0x150   : > { %4001 = vmatpush3.bf16.msra.mxu1 %v4534_v18  ;;  %v4474_v18 = vld [vmem:[%s5174_s29 + $0x34c] ss:$20 sps:$4 sm:$0xff]  }
 0x151   : > { %4002 = vmatprep.subr.bf16.mxu1 %v4535_v19  ;;  %2176 = vmatmul.mubr.bf16.gmra.mxu0 %v4443_v12 }
 0x152   : > { %2183 = vmatprep.mubr.bf16.mxu0 %v4447_v15  ;;  %v4470_v15 = vld [vmem:[%s5174_s29 + $0x328] ss:$20 sps:$4 sm:$0xff]  }
 0x153   : > { %2265 = vmatmul.mubr.bf16.gmra.mxu1 %v4446_v14 }
 0x154   : > { %2272 = vmatprep.mubr.bf16.mxu1 %v4450_v16  ;;  %4003 = vmatpush3.bf16.msra.mxu1 %v4537_v20 }
 0x155   : > { %4004 = vmatprep.subr.bf16.mxu1 %v4538_v22 }
 0x158   : > { %4005 = vmatpush3.bf16.msra.mxu1 %v4539_v42 }
 0x159   : > { %4006 = vmatprep.subr.bf16.mxu1 %v5129_v0  ;;  %v3629_v27 = vpop.f32.mrf.mxu0  ;;  %2184 = vmatmul.mubr.bf16.gmra.mxu0 %v4449_v26 }
 0x15a   : > { %2191 = vmatprep.mubr.bf16.mxu0 %v4453_v24 }
 0x15b   : > { %v3687_v28 = vpop.f32.mrf.mxu1  ;;  %2273 = vmatmul.mubr.bf16.gmra.mxu1 %v4452_v23  ;;  %v3630_v30 = vpop.f32.mrf.mxu0 }
 0x15c   : > { %2280 = vmatprep.mubr.bf16.mxu1 %v4456_v25  ;;  %4007 = vmatpush3.bf16.msra.mxu1 %v5135_v1  ;;  %v3631_v31 = vadd.f32 %v3630_v30, %v3629_v27 }
 0x15d   : > { %v3688_v40 = vpop.f32.mrf.mxu1  ;;  %4008 = vmatprep.subr.bf16.mxu1 %v5153_v4  ;;  %v3632_v32 = vpop.f32.mrf.mxu0 }
 0x15e   : > { %v3689_v0 = vadd.f32 %v3688_v40, %v3687_v28  ;;  %v1108_v34 = vadd.f32 %v3631_v31, %v5458_v29  ;;  %v4471_v40 = vld [vmem:[%s5174_s29 + $0x240] ss:$20 sps:$4 sm:$0xff]  }
 0x15f   : > { %v3690_v35 = vpop.f32.mrf.mxu1  ;;  %v3633_v38 = vpop.f32.mrf.mxu0 }
 0x160   : > { %4009 = vmatpush3.bf16.msra.mxu1 %v5159_v5  ;;  %v3634_v41 = vadd.f32 %v3633_v38, %v3632_v32  ;;  %v5469_v1 = vadd.f32 %v3689_v0, %v1108_v34 }
 0x161   : > { %v3691_v43 = vpop.f32.mrf.mxu1  ;;  %4229 = vmatprep.subr.bf16.mxu1 %v4584_v9  ;;  %v3635_v44 = vpop.f32.mrf.mxu0  ;;  %2192 = vmatmul.mubr.bf16.gmra.mxu0 %v4455_v33  ;;  %v4472_v33 = vld [vmem:[%s5174_s29 + $0x348] ss:$20 sps:$4 sm:$0xff]  }
 0x162   : > { %v3692_v4 = vadd.f32 %v3691_v43, %v3690_v35  ;;  %v1111_v45 = vadd.f32 %v3634_v41, %v5458_v29  ;;  %2199 = vmatprep.mubr.bf16.mxu0 %v4459_v37  ;;  %v4478_v37 = vld [vmem:[%s5174_s29 + $0x374] ss:$20 sps:$4 sm:$0xff]  }
 0x163   : > { %v3693_v46 = vpop.f32.mrf.mxu1  ;;  %2281 = vmatmul.mubr.bf16.gmra.mxu1 %v4458_v36  ;;  %v3636_v47 = vpop.f32.mrf.mxu0 }
 0x164   : > { %2288 = vmatprep.mubr.bf16.mxu1 %v4462_v39  ;;  %v3637_v5 = vadd.f32 %v3636_v47, %v3635_v44  ;;  %v5472_v49 = vadd.f32 %v3692_v4, %v1111_v45  ;;  %v4540_v44 = vld [vmem:[%s6040_s1 + $0xb8] sm:$0xff]  }
 0x165   : > { %v3694_v48 = vpop.f32.mrf.mxu1  ;;  %v3638_v51 = vpop.f32.mrf.mxu0 }
 0x166   : > { %v3695_v50 = vadd.f32 %v3694_v48, %v3693_v46  ;;  %v1116_v53 = vadd.f32 %v3637_v5, %v5458_v29  ;;  %v4541_v46 = vld [vmem:[%s6040_s1 + $0xf0] sm:$0xff]   ;;  %v4542_v48 = vld [vmem:[%s6040_s1 + $0x118] sm:$0xff]  }
 0x167   : > { %v3696_v54 = vpop.f32.mrf.mxu1  ;;  %v3639_v57 = vpop.f32.mrf.mxu0 }
 0x168   : > { %v3640_v59 = vadd.f32 %v3639_v57, %v3638_v51  ;;  %v5479_v61 = vadd.f32 %v3695_v50, %v1116_v53  ;;  %v4475_v53 = vld [vmem:[%s5174_s29 + $0x268] ss:$20 sps:$4 sm:$0xff]   ;;  %v4543_v57 = vld [vmem:[%s6040_s1 + $0xb0] sm:$0xff]  }
 0x169   : > { %v3697_v60 = vpop.f32.mrf.mxu1  ;;  %v3641_v63 = vpop.f32.mrf.mxu0  ;;  %2200 = vmatmul.mubr.bf16.gmra.mxu0 %v4461_v52 }
 0x16a   : > { %v3698_v62 = vadd.f32 %v3697_v60, %v3696_v54  ;;  %v1119_v2 = vadd.f32 %v3640_v59, %v5458_v29  ;;  %2207 = vmatprep.mubr.bf16.mxu0 %v4465_v56  ;;  %v4476_v56 = vld [vmem:[%s5174_s29 + $0x370] ss:$20 sps:$4 sm:$0xff]   ;;  %v4544_v59 = vld [vmem:[%s6040_s1 + $0xe8] sm:$0xff]  }
 0x16b   : > { %v3699_v3 = vpop.f32.mrf.mxu1  ;;  %2289 = vmatmul.mubr.bf16.gmra.mxu1 %v4464_v55  ;;  %v3642_v6 = vpop.f32.mrf.mxu0  ;;  %v4482_v60 = vld [vmem:[%s5174_s29 + $0x39c] ss:$20 sps:$4 sm:$0xff]  }
 0x16c   : > { %2296 = vmatprep.mubr.bf16.mxu1 %v4468_v58  ;;  %v3643_v7 = vadd.f32 %v3642_v6, %v3641_v63  ;;  %v5482_v8 = vadd.f32 %v3698_v62, %v1119_v2  ;;  %v4545_v2 = vld [vmem:[%s6040_s1 + $0x110] sm:$0xff]  }
 0x16d   : > { %v3700_v13 = vpop.f32.mrf.mxu1  ;;  %v3644_v17 = vpop.f32.mrf.mxu0 }
 0x16e   : > { %v3701_v10 = vadd.f32 %v3700_v13, %v3699_v3  ;;  %v1124_v12 = vadd.f32 %v3643_v7, %v5458_v29 }
 0x16f   : > { %v3702_v14 = vpop.f32.mrf.mxu1  ;;  %v3645_v16 = vpop.f32.mrf.mxu0 }
 0x170   : > { %v3646_v19 = vadd.f32 %v3645_v16, %v3644_v17  ;;  %v5488_v20 = vadd.f32 %v3701_v10, %v1124_v12  ;;  %v4548_v16 = vld [vmem:[%s6040_s1 + $0x108] sm:$0xff]  }
 0x171   : > { %v3703_v21 = vpop.f32.mrf.mxu1  ;;  %v3647_v26 = vpop.f32.mrf.mxu0  ;;  %2208 = vmatmul.mubr.bf16.gmra.mxu0 %v4467_v11  ;;  %v4546_v11 = vld [vmem:[%s6040_s1 + $0xa8] sm:$0xff]  }
 0x172   : > { %v3704_v22 = vadd.f32 %v3703_v21, %v3702_v14  ;;  %v1127_v23 = vadd.f32 %v3646_v19, %v5458_v29  ;;  %4201 = vmatprep.mubr.msk.bf16.mxu0 %vm4585_vm0, %v4584_v9 }
 0x173   : > { %v3705_v24 = vpop.f32.mrf.mxu1  ;;  %2297 = vmatmul.mubr.bf16.gmra.mxu1 %v4470_v15  ;;  %v3648_v25 = vpop.f32.mrf.mxu0  ;;  %v4547_v15 = vld [vmem:[%s6040_s1 + $0xe0] sm:$0xff]  }
 0x174   : > { %2693 = vmatprep.mubr.bf16.mxu1 %v4474_v18  ;;  %v3649_v42 = vadd.f32 %v3648_v25, %v3647_v26  ;;  %v5493_v28 = vadd.f32 %v3704_v22, %v1127_v23  ;;  %v4479_v22 = vld [vmem:[%s5174_s29 + $0x290] ss:$20 sps:$4 sm:$0xff]  }
 0x175   : > { %v3706_v27 = vpop.f32.mrf.mxu1  ;;  %v3650_v31 = vpop.f32.mrf.mxu0 }
 0x176   : > { %v3707_v30 = vadd.f32 %v3706_v27, %v3705_v24  ;;  %v1132_v0 = vadd.f32 %v3649_v42, %v5458_v29  ;;  %v4480_v24 = vld [vmem:[%s5174_s29 + $0x398] ss:$20 sps:$4 sm:$0xff]   ;;  %v4549_v42 = vld [vmem:[%s6040_s1 + $0xa0] sm:$0xff]  }
 0x177   : > { %v3708_v32 = vpop.f32.mrf.mxu1  ;;  %v3651_v34 = vpop.f32.mrf.mxu0  ;;  %v4486_v27 = vld [vmem:[%s5174_s29 + $0x3c4] ss:$20 sps:$4 sm:$0xff]  }
 0x178   : > { %v3652_v35 = vadd.f32 %v3651_v34, %v3650_v31  ;;  %v5499_v38 = vadd.f32 %v3707_v30, %v1132_v0  ;;  %v4551_v0 = vld [vmem:[%s6040_s1 + $0x100] sm:$0xff]  }
 0x179   : > { %v3709_v36 = vpop.f32.mrf.mxu1  ;;  %v3653_v41 = vpop.f32.mrf.mxu0  ;;  %4202 = vmatmul.mubr.msk.bf16.vlgmr.msra.gmra.mxu0 %vm1051_vm1, %v4471_v40  ;;  %v4550_v40 = vld [vmem:[%s6040_s1 + $0xd8] sm:$0xff]  }
 0x17a   : > { %v3710_v39 = vadd.f32 %v3709_v36, %v3708_v32  ;;  %v1135_v43 = vadd.f32 %v3652_v35, %v5458_v29  ;;  %4053 = vmatpush3.bf16.msra.mxu0 %v4540_v44  ;;  %4205 = vmatprep.mubr.msk.bf16.mxu0 %vm4585_vm0, %v4584_v9 }
 0x17b   : > { %v3711_v4 = vpop.f32.mrf.mxu1  ;;  %2694 = vmatmul.mubr.bf16.vlgmr.msra.gmra.mxu1 %v4472_v33  ;;  %v3654_v45 = vpop.f32.mrf.mxu0  ;;  %4054 = vmatprep.subr.bf16.mxu0 %v4541_v46 }
 0x17c   : > { %v3655_v47 = vadd.f32 %v3654_v45, %v3653_v41  ;;  %4230 = vmatpush3.bf16.msra.mxu1 %v4542_v48  ;;  %2701 = vmatprep.mubr.bf16.mxu1 %v4478_v37  ;;  %v5514_v50 = vadd.f32 %v3710_v39, %v1135_v43  ;;  %v4552_v39 = vld [vmem:[%s6040_s1 + $0x98] sm:$0xff]  }
 0x17d   : > { %v3712_v5 = vpop.f32.mrf.mxu1  ;;  %v3656_v52 = vpop.f32.mrf.mxu0  ;;  %4231 = vmatprep.subr.bf16.mxu1 %v4584_v9 }
 0x17e   : > { %v3713_v51 = vadd.f32 %v3712_v5, %v3711_v4  ;;  %v1140_v54 = vadd.f32 %v3655_v47, %v5458_v29  ;;  %4055 = vmatpush3.bf16.msra.mxu0 %v4543_v57  ;;  %v4553_v4 = vld [vmem:[%s6040_s1 + $0xd0] sm:$0xff]   ;;  %v4483_v47 = vld [vmem:[%s5174_s29 + $0x2b8] ss:$20 sps:$4 sm:$0xff]  }
 0x17f   : > { %v3714_v55 = vpop.f32.mrf.mxu1  ;;  %v3657_v58 = vpop.f32.mrf.mxu0  ;;  %4056 = vmatprep.subr.bf16.mxu0 %v4544_v59  ;;  %v4555_v57 = vld [vmem:[%s6040_s1 + $0xc8] sm:$0xff]  }
 0x180   : > { %v3658_v62 = vadd.f32 %v3657_v58, %v3656_v52  ;;  %4232 = vmatpush3.bf16.msra.mxu1 %v4545_v2  ;;  %v5530_v3 = vadd.f32 %v3713_v51, %v1140_v54  ;;  %v4484_v51 = vld [vmem:[%s5174_s29 + $0x3c0] ss:$20 sps:$4 sm:$0xff]  }
 0x181   : > { %v3715_v63 = vpop.f32.mrf.mxu1  ;;  %v3659_v7 = vpop.f32.mrf.mxu0  ;;  %4206 = vmatmul.mubr.msk.bf16.gmra.mxu0 %vm1051_vm1, %v4475_v53  ;;  %4233 = vmatprep.subr.bf16.mxu1 %v4584_v9  ;;  %v4490_v53 = vld [vmem:[%s5174_s29 + $0x3ec] ss:$20 sps:$4 sm:$0xff]   ;;  %v4554_v54 = vld [vmem:[%s6040_s1 + $0x90] sm:$0xff]  }
 0x182   : > { %v3716_v6 = vadd.f32 %v3715_v63, %v3714_v55  ;;  %v1143_v13 = vadd.f32 %v3658_v62, %v5458_v29  ;;  %4209 = vmatprep.mubr.msk.bf16.mxu0 %vm4585_vm0, %v4584_v9  ;;  %4057 = vmatpush3.bf16.msra.mxu0 %v4546_v11 }
 0x183   : > { %v3717_v10 = vpop.f32.mrf.mxu1  ;;  %2702 = vmatmul.mubr.bf16.gmra.mxu1 %v4476_v56  ;;  %v3660_v17 = vpop.f32.mrf.mxu0  ;;  %4058 = vmatprep.subr.bf16.mxu0 %v4547_v15 }
 0x184   : > { %2709 = vmatprep.mubr.bf16.mxu1 %v4482_v60  ;;  %v3661_v12 = vadd.f32 %v3660_v17, %v3659_v7  ;;  %4234 = vmatpush3.bf16.msra.mxu1 %v4548_v16  ;;  %v5546_v18 = vadd.f32 %v3716_v6, %v1143_v13  ;;  %v4556_v7 = vld [vmem:[%s6040_s1 + $0x88] sm:$0xff]  }
 0x185   : > { %v3718_v14 = vpop.f32.mrf.mxu1  ;;  %v3662_v21 = vpop.f32.mrf.mxu0  ;;  %4235 = vmatprep.subr.bf16.mxu1 %v4584_v9  ;;  %v4488_v16 = vld [vmem:[%s5174_s29 + $0x3e8] ss:$20 sps:$4 sm:$0xff]  }
 0x186   : > { %v3719_v19 = vadd.f32 %v3718_v14, %v3717_v10  ;;  %v1148_v26 = vadd.f32 %v3661_v12, %v5458_v29  ;;  %4059 = vmatpush3.bf16.msra.mxu0 %v4549_v42  ;;  %v4487_v12 = vld [vmem:[%s5174_s29 + $0x2e0] ss:$20 sps:$4 sm:$0xff]  }
 0x187   : > { %v3720_v23 = vpop.f32.mrf.mxu1  ;;  %v3663_v25 = vpop.f32.mrf.mxu0  ;;  %4060 = vmatprep.subr.bf16.mxu0 %v4550_v40  ;;  %v4491_v40 = vld [vmem:[%s5174_s29 + $0x308] ss:$20 sps:$4 sm:$0xff]  }
 0x188   : > { %v3664_v30 = vadd.f32 %v3663_v25, %v3662_v21  ;;  %4236 = vmatpush3.bf16.msra.mxu1 %v4551_v0  ;;  %v5562_v32 = vadd.f32 %v3719_v19, %v1148_v26  ;;  %v4494_v21 = vld [vmem:[%s5174_s29 + $0x414] ss:$20 sps:$4 sm:$0xff]  }
 0x189   : > { %v3721_v31 = vpop.f32.mrf.mxu1  ;;  %v3665_v34 = vpop.f32.mrf.mxu0  ;;  %4210 = vmatmul.mubr.msk.bf16.gmra.mxu0 %vm1051_vm1, %v4479_v22  ;;  %v4558_v22 = vld [vmem:[%s6040_s1 + $0x80] sm:$0xff]  }
 0x18a   : > { %v3722_v33 = vadd.f32 %v3721_v31, %v3720_v23  ;;  %v1151_v35 = vadd.f32 %v3664_v30, %v5458_v29  ;;  %4213 = vmatprep.mubr.msk.bf16.mxu0 %vm4585_vm0, %v4584_v9  ;;  %4061 = vmatpush3.bf16.msra.mxu0 %v4552_v39 }
 0x18b   : > { %v3723_v36 = vpop.f32.mrf.mxu1  ;;  %2710 = vmatmul.mubr.bf16.gmra.mxu1 %v4480_v24  ;;  %v3666_v37 = vpop.f32.mrf.mxu0  ;;  %4062 = vmatprep.subr.bf16.mxu0 %v4553_v4 }
 0x18c   : > { %2717 = vmatprep.mubr.bf16.mxu1 %v4486_v27  ;;  %v3667_v41 = vadd.f32 %v3666_v37, %v3665_v34  ;;  %v5574_v44 = vadd.f32 %v3722_v33, %v1151_v35  ;;  %v4492_v34 = vld [vmem:[%s5174_s29 + $0x410] ss:$20 sps:$4 sm:$0xff]  }
 0x18d   : > { %v3724_v43 = vpop.f32.mrf.mxu1  ;;  %v3668_v46 = vpop.f32.mrf.mxu0  ;;  %v4498_v35 = vld [vmem:[%s5174_s29 + $0x43c] ss:$20 sps:$4 sm:$0xff]  }
 0x18e   : > { %v3725_v45 = vadd.f32 %v3724_v43, %v3723_v36  ;;  %v1156_v5 = vadd.f32 %v3667_v41, %v5458_v29  ;;  %4063 = vmatpush3.bf16.msra.mxu0 %v4554_v54 }
 0x18f   : > { %v3726_v48 = vpop.f32.mrf.mxu1  ;;  %v3669_v52 = vpop.f32.mrf.mxu0  ;;  %4064 = vmatprep.subr.bf16.mxu0 %v4555_v57 }
 0x190   : > { %v3670_v55 = vadd.f32 %v3669_v52, %v3668_v46  ;;  %v5586_v58 = vadd.f32 %v3725_v45, %v1156_v5 }
 0x191   : > { %v3727_v56 = vpop.f32.mrf.mxu1  ;;  %v1285_v60 = vpop.f32.mrf.mxu0  ;;  %4214 = vmatmul.mubr.msk.bf16.gmra.mxu0 %vm1051_vm1, %v4483_v47  ;;  %v4495_v47 = vld [vmem:[%s5174_s29 + $0x330] ss:$20 sps:$4 sm:$0xff]  }
 0x192   : > { %v3728_v59 = vadd.f32 %v3727_v56, %v3726_v48  ;;  %v1159_v62 = vadd.f32 %v3670_v55, %v5458_v29  ;;  %v5591_v63 = vadd.f32 %v1285_v60, %v5469_v1  ;;  %4217 = vmatprep.mubr.msk.bf16.mxu0 %vm4585_vm0, %v4584_v9  ;;  %4065 = vmatpush3.bf16.msra.mxu0 %v4556_v7  ;;  %v4557_v1 = vld [vmem:[%s6040_s1 + $0xc0] sm:$0xff]  }
 0x193   : > { %v3756_v2 = vpop.f32.mrf.mxu1  ;;  %2718 = vmatmul.mubr.bf16.gmra.mxu1 %v4484_v51  ;;  %v4131_v6 = vpop.f32.mrf.mxu0  ;;  %4066 = vmatprep.subr.bf16.mxu0 %v4557_v1  ;;  %v4496_v51 = vld [vmem:[%s5174_s29 + $0x438] ss:$20 sps:$4 sm:$0xff]  }
 0x194   : > { %2725 = vmatprep.mubr.bf16.mxu1 %v4490_v53  ;;  %v5601_v10 = vadd.f32 %v3728_v59, %v1159_v62 }
 0x195   : > { %v3757_v13 = vpop.f32.mrf.mxu1  ;;  %v1288_v11 = vpop.f32.mrf.mxu0 }
 0x196   : > { %v5603_v17 = vadd.f32 %v3757_v13, %v3756_v2  ;;  %v5607_v14 = vadd.f32 %v1288_v11, %v5472_v49  ;;  %4067 = vmatpush3.bf16.msra.mxu0 %v4558_v22  ;;  %v4499_v2 = vld [vmem:[%s5174_s29 + $0x350] ss:$20 sps:$4 sm:$0xff]   ;;  %v4502_v13 = vld [vmem:[%s5174_s29 + $0x358] ss:$20 sps:$4 sm:$0xff]  }
 0x197   : > { %v3759_v15 = vpop.f32.mrf.mxu1  ;;  %v4132_v19 = vpop.f32.mrf.mxu0 }
 0x199   : > { %v3760_v26 = vpop.f32.mrf.mxu1  ;;  %v1293_v24 = vpop.f32.mrf.mxu0  ;;  %4218 = vmatmul.mubr.msk.bf16.gmra.mxu0 %vm1051_vm1, %v4487_v12 }
 0x19a   : > { %v5614_v23 = vadd.f32 %v3760_v26, %v3759_v15  ;;  %v5618_v49 = vadd.f32 %v1293_v24, %v5479_v61  ;;  %4221 = vmatprep.mubr.msk.bf16.mxu0 %vm4585_vm0, %v4584_v9  ;;  %v4503_v24 = vld [vmem:[%s5174_s29 + $0x378] ss:$20 sps:$4 sm:$0xff]  }
 0x19b   : > { %v3762_v25 = vpop.f32.mrf.mxu1  ;;  %2726 = vmatmul.mubr.bf16.gmra.mxu1 %v4488_v16  ;;  %v4135_v42 = vpop.f32.mrf.mxu0 }
 0x19c   : > { %2733 = vmatprep.mubr.bf16.mxu1 %v4494_v21 }
 0x19d   : > { %v3763_v27 = vpop.f32.mrf.mxu1  ;;  %v1296_v31 = vpop.f32.mrf.mxu0 }
 0x19e   : > { %v5622_v30 = vadd.f32 %v3763_v27, %v3762_v25  ;;  %v5626_v0 = vadd.f32 %v1296_v31, %v5482_v8  ;;  %v4506_v27 = vld [vmem:[%s5174_s29 + $0x380] ss:$20 sps:$4 sm:$0xff]  }
 0x19f   : > { %v3765_v33 = vpop.f32.mrf.mxu1  ;;  %v4136_v61 = vpop.f32.mrf.mxu0 }
 0x1a1   : > { %v3766_v36 = vpop.f32.mrf.mxu1  ;;  %v1301_v39 = vpop.f32.mrf.mxu0  ;;  %4222 = vmatmul.mubr.msk.bf16.gmra.mxu0 %vm1051_vm1, %v4491_v40 }
 0x1a2   : > { %v5630_v37 = vadd.f32 %v3766_v36, %v3765_v33  ;;  %v5634_v41 = vadd.f32 %v1301_v39, %v5488_v20  ;;  %4225 = vmatprep.mubr.msk.bf16.mxu0 %vm4585_vm0, %v4584_v9  ;;  %v4501_v20 = vld [vmem:[%s5174_s29 + $0x354] ss:$20 sps:$4 sm:$0xff]  }
 0x1a3   : > { %v3768_v43 = vpop.f32.mrf.mxu1  ;;  %2734 = vmatmul.mubr.bf16.gmra.mxu1 %v4492_v34  ;;  %v4139_v8 = vpop.f32.mrf.mxu0 }
 0x1a4   : > { %2741 = vmatprep.mubr.bf16.mxu1 %v4498_v35  ;;  %v4507_v8 = vld [vmem:[%s5174_s29 + $0x3a0] ss:$20 sps:$4 sm:$0xff]  }
 0x1a5   : > { %v3769_v4 = vpop.f32.mrf.mxu1  ;;  %v1304_v46 = vpop.f32.mrf.mxu0 }
 0x1a6   : > { %v5638_v45 = vadd.f32 %v3769_v4, %v3768_v43  ;;  %v5642_v5 = vadd.f32 %v1304_v46, %v5493_v28 }
 0x1a7   : > { %v3771_v48 = vpop.f32.mrf.mxu1  ;;  %v4140_v52 = vpop.f32.mrf.mxu0 }
 0x1a9   : > { %v3772_v53 = vpop.f32.mrf.mxu1  ;;  %v1309_v55 = vpop.f32.mrf.mxu0  ;;  %4226 = vmatmul.mubr.msk.bf16.gmra.mxu0 %vm1051_vm1, %v4495_v47  ;;  %v4510_v47 = vld [vmem:[%s5174_s29 + $0x3a8] ss:$20 sps:$4 sm:$0xff]  }
 0x1aa   : > { %v5646_v54 = vadd.f32 %v3772_v53, %v3771_v48  ;;  %v5650_v56 = vadd.f32 %v1309_v55, %v5499_v38  ;;  %2782 = vmatprep.mubr.bf16.mxu0 %v4501_v20  ;;  %v4505_v38 = vld [vmem:[%s5174_s29 + $0x37c] ss:$20 sps:$4 sm:$0xff]  }
 0x1ab   : > { %v3774_v57 = vpop.f32.mrf.mxu1  ;;  %2742 = vmatmul.mubr.bf16.gmra.mxu1 %v4496_v51  ;;  %v4143_v28 = vpop.f32.mrf.mxu0 }
 0x1ac   : > { %4237 = vmatprep.mubr.msk.bf16.mxu1 %vm4585_vm0, %v4584_v9 }
 0x1ad   : > { %v3775_v59 = vpop.f32.mrf.mxu1  ;;  %v1312_v62 = vpop.f32.mrf.mxu0 }
 0x1ae   : > { %v5654_v60 = vadd.f32 %v3775_v59, %v3774_v57  ;;  %v5658_v6 = vadd.f32 %v1312_v62, %v5514_v50  ;;  %v4511_v62 = vld [vmem:[%s5174_s29 + $0x3c8] ss:$20 sps:$4 sm:$0xff]  }
 0x1af   : > { %v3777_v7 = vpop.f32.mrf.mxu1  ;;  %v4144_v1 = vpop.f32.mrf.mxu0 }
 0x1b1   : > { %v3778_v11 = vpop.f32.mrf.mxu1  ;;  %v1317_v15 = vpop.f32.mrf.mxu0  ;;  %2783 = vmatmul.mubr.bf16.vlgmr.msra.gmra.mxu0 %v4499_v2 }
 0x1b2   : > { %v5662_v12 = vadd.f32 %v3778_v11, %v3777_v7  ;;  %v5665_v16 = vadd.f32 %v1317_v15, %v5530_v3  ;;  %2790 = vmatprep.mubr.bf16.mxu0 %v4505_v38  ;;  %v4509_v3 = vld [vmem:[%s5174_s29 + $0x3a4] ss:$20 sps:$4 sm:$0xff]  }
 0x1b3   : > { %v3780_v19 = vpop.f32.mrf.mxu1  ;;  %4238 = vmatmul.mubr.msk.bf16.vlgmr.msra.gmra.mxu1 %vm1051_vm1, %v4502_v13  ;;  %v4147_v50 = vpop.f32.mrf.mxu0  ;;  %v4514_v13 = vld [vmem:[%s5174_s29 + $0x3d0] ss:$20 sps:$4 sm:$0xff]  }
 0x1b4   : > { %4241 = vmatprep.mubr.msk.bf16.mxu1 %vm4585_vm0, %v4584_v9 }
 0x1b5   : > { %v3781_v21 = vpop.f32.mrf.mxu1  ;;  %v1320_v26 = vpop.f32.mrf.mxu0 }
 0x1b6   : > { %v5670_v22 = vadd.f32 %v3781_v21, %v3780_v19  ;;  %v5674_v25 = vadd.f32 %v1320_v26, %v5546_v18 }
 0x1b7   : > { %v3783_v42 = vpop.f32.mrf.mxu1  ;;  %v4148_v31 = vpop.f32.mrf.mxu0 }
 0x1b8   : > { %v4518_v31 = vld [vmem:[%s5174_s29 + $0x3f8] ss:$20 sps:$4 sm:$0xff]  }
 0x1b9   : > { %v3784_v40 = vpop.f32.mrf.mxu1  ;;  %v1325_v34 = vpop.f32.mrf.mxu0  ;;  %2791 = vmatmul.mubr.bf16.gmra.mxu0 %v4503_v24 }
 0x1ba   : > { %v5678_v33 = vadd.f32 %v3784_v40, %v3783_v42  ;;  %v5681_v61 = vadd.f32 %v1325_v34, %v5562_v32  ;;  %2798 = vmatprep.mubr.bf16.mxu0 %v4509_v3  ;;  %v4513_v32 = vld [vmem:[%s5174_s29 + $0x3cc] ss:$20 sps:$4 sm:$0xff]   ;;  %v4515_v42 = vld [vmem:[%s5174_s29 + $0x3f0] ss:$20 sps:$4 sm:$0xff]  }
 0x1bb   : > { %v3786_v35 = vpop.f32.mrf.mxu1  ;;  %4242 = vmatmul.mubr.msk.bf16.gmra.mxu1 %vm1051_vm1, %v4506_v27  ;;  %v4151_v18 = vpop.f32.mrf.mxu0  ;;  %v4521_v40 = vld [vmem:[%s5174_s29 + $0x41c] ss:$20 sps:$4 sm:$0xff]  }
 0x1bc   : > { %4245 = vmatprep.mubr.msk.bf16.mxu1 %vm4585_vm0, %v4584_v9 }
 0x1bd   : > { %v3787_v36 = vpop.f32.mrf.mxu1  ;;  %v1328_v43 = vpop.f32.mrf.mxu0 }
 0x1be   : > { %v5686_v39 = vadd.f32 %v3787_v36, %v3786_v35  ;;  %v5690_v4 = vadd.f32 %v1328_v43, %v5574_v44  ;;  %v1631_v35 = vadd.f32 %v5614_v23, %v5458_v29  ;;  %v1636_v23 = vadd.f32 %v5622_v30, %v5458_v29 }
 0x1bf   : > { %v3789_v46 = vpop.f32.mrf.mxu1  ;;  %v4152_v48 = vpop.f32.mrf.mxu0 }
 0x1c1   : > { %v3790_v51 = vpop.f32.mrf.mxu1  ;;  %v1333_v52 = vpop.f32.mrf.mxu0  ;;  %2799 = vmatmul.mubr.bf16.gmra.mxu0 %v4507_v8 }
 0x1c2   : > { %v5694_v20 = vadd.f32 %v3790_v51, %v3789_v46  ;;  %v5697_v53 = vadd.f32 %v1333_v52, %v5586_v58  ;;  %2806 = vmatprep.mubr.bf16.mxu0 %v4513_v32  ;;  %v4517_v58 = vld [vmem:[%s5174_s29 + $0x3f4] ss:$20 sps:$4 sm:$0xff]  }
 0x1c3   : > { %v3792_v55 = vpop.f32.mrf.mxu1  ;;  %4246 = vmatmul.mubr.msk.bf16.gmra.mxu1 %vm1051_vm1, %v4510_v47  ;;  %v4155_v44 = vpop.f32.mrf.mxu0 }
 0x1c4   : > { %4249 = vmatprep.mubr.msk.bf16.mxu1 %vm4585_vm0, %v4584_v9 }
 0x1c5   : > { %v3793_v57 = vpop.f32.mrf.mxu1  ;;  %v1336_v59 = vpop.f32.mrf.mxu0 }
 0x1c6   : > { %v5702_v28 = vadd.f32 %v3793_v57, %v3792_v55  ;;  %v5706_v2 = vadd.f32 %v1336_v59, %v5601_v10  ;;  %v1628_v10 = vadd.f32 %v5603_v17, %v5458_v29  ;;  %v1340_v17 = vmax.f32 %v5591_v63, 0.0  ;;  %v4519_v57 = vld [vmem:[%s5174_s29 + $0x418] ss:$20 sps:$4 sm:$0xff]  }
 0x1c7   : > { %v3795_v7 = vpop.f32.mrf.mxu1  ;;  %v4156_v38 = vpop.f32.mrf.mxu0  ;;  %v1341_v59 = vmax.f32 %v5607_v14, 0.0 }
 0x1c8   : > { %v4525_v38 = vld [vmem:[%s5174_s29 + $0x444] ss:$20 sps:$4 sm:$0xff]  }
 0x1c9   : > { %v3796_v1 = vpop.f32.mrf.mxu1  ;;  %v3814_v15 = vpop.f32.mrf.mxu0  ;;  %2807 = vmatmul.mubr.bf16.gmra.mxu0 %v4511_v62 }
 0x1ca   : > { %v5710_v11 = vadd.f32 %v3796_v1, %v3795_v7  ;;  %2814 = vmatprep.mubr.bf16.mxu0 %v4517_v58  ;;  %v4522_v58 = vld [vmem:[%s5174_s29 + $0x420] ss:$20 sps:$4 sm:$0xff]  }
 0x1cb   : > { %v1805_v19 = vpop.f32.mrf.mxu1  ;;  %4250 = vmatmul.mubr.msk.bf16.gmra.mxu1 %vm1051_vm1, %v4514_v13  ;;  %v3815_v50 = vpop.f32.mrf.mxu0 }
 0x1cc   : > { %4253 = vmatprep.mubr.msk.bf16.mxu1 %vm4585_vm0, %v4584_v9  ;;  %v3816_v21 = vadd.f32 %v3815_v50, %v3814_v15  ;;  %v1639_v15 = vadd.f32 %v5630_v37, %v5458_v29  ;;  %v1644_v37 = vadd.f32 %v5638_v45, %v5458_v29 }
 0x1cd   : > { %v4167_v26 = vpop.f32.mrf.mxu1  ;;  %v3817_v24 = vpop.f32.mrf.mxu0 }
 0x1ce   : > { %v1717_v27 = vadd.f32 %v3816_v21, %v1628_v10  ;;  %v1342_v26 = vmax.f32 %v5618_v49, 0.0 }
 0x1cf   : > { %v1808_v3 = vpop.f32.mrf.mxu1  ;;  %v3818_v34 = vpop.f32.mrf.mxu0 }
 0x1d0   : > { %v1806_v18 = vadd.f32 %v1805_v19, %v1717_v27  ;;  %v3819_v36 = vadd.f32 %v3818_v34, %v3817_v24 }
 0x1d1   : > { %v4168_v43 = vpop.f32.mrf.mxu1  ;;  %v3820_v8 = vpop.f32.mrf.mxu0  ;;  %2815 = vmatmul.mubr.bf16.gmra.mxu0 %v4515_v42 }
 0x1d2   : > { %v1860_v46 = vmax.f32 %v1806_v18, 0.0  ;;  %v1720_v47 = vadd.f32 %v3819_v36, %v1631_v35  ;;  %2822 = vmatprep.mubr.bf16.mxu0 %v4521_v40  ;;  %v4523_v35 = vld [vmem:[%s5174_s29 + $0x440] ss:$20 sps:$4 sm:$0xff]   ;;  %v1343_v18 = vmax.f32 %v5626_v0, 0.0 }
 0x1d3   : > { %v1813_v32 = vpop.f32.mrf.mxu1  ;;  %4254 = vmatmul.mubr.msk.bf16.gmra.mxu1 %vm1051_vm1, %v4518_v31  ;;  %v3821_v48 = vpop.f32.mrf.mxu0 }
 0x1d4   : > { %4257 = vmatprep.mubr.msk.bf16.mxu1 %vm4585_vm0, %v4584_v9  ;;  %v1809_v51 = vadd.f32 %v1808_v3, %v1720_v47  ;;  %v3822_v52 = vadd.f32 %v3821_v48, %v3820_v8  ;;  %v5728_v44 = vmax.f32 %v1340_v17, %v1860_v46  ;;  %v4526_v17 = vld [vmem:[%s5174_s29 + $0x448] ss:$20 sps:$4 sm:$0xff]  }
 0x1d5   : > { %v4171_v55 = vpop.f32.mrf.mxu1  ;;  %v3823_v63 = vpop.f32.mrf.mxu0 }
 0x1d6   : > { %v1861_v62 = vmax.f32 %v1809_v51, 0.0  ;;  %v1725_v7 = vadd.f32 %v3822_v52, %v1636_v23  ;;  %v1344_v51 = vmax.f32 %v5634_v41, 0.0 }
 0x1d7   : > { %v1816_v13 = vpop.f32.mrf.mxu1  ;;  %v3824_v1 = vpop.f32.mrf.mxu0 }
 0x1d8   : > { %v1814_v19 = vadd.f32 %v1813_v32, %v1725_v7  ;;  %v3825_v30 = vadd.f32 %v3824_v1, %v3823_v63  ;;  %v5736_v10 = vmax.f32 %v1341_v59, %v1861_v62 }
 0x1d9   : > { %v4172_v50 = vpop.f32.mrf.mxu1  ;;  %v3826_v21 = vpop.f32.mrf.mxu0  ;;  %2823 = vmatmul.mubr.bf16.gmra.mxu0 %v4519_v57  ;;  %v1652_v57 = vadd.f32 %v5654_v60, %v5458_v29 }
 0x1da   : > { %v1862_v14 = vmax.f32 %v1814_v19, 0.0  ;;  %v1728_v24 = vadd.f32 %v3825_v30, %v1639_v15  ;;  %2830 = vmatprep.mubr.bf16.mxu0 %v4525_v38  ;;  %v1655_v19 = vadd.f32 %v5662_v12, %v5458_v29 }
 0x1db   : > { %v1821_v42 = vpop.f32.mrf.mxu1  ;;  %4258 = vmatmul.mubr.msk.bf16.gmra.mxu1 %vm1051_vm1, %v4522_v58  ;;  %v3827_v27 = vpop.f32.mrf.mxu0  ;;  %v1345_v58 = vmax.f32 %v5642_v5, 0.0  ;;  %v1660_v5 = vadd.f32 %v5670_v22, %v5458_v29 }
 0x1dc   : > { %4261 = vmatprep.mubr.msk.bf16.mxu1 %vm4585_vm0, %v4584_v9  ;;  %v1817_v3 = vadd.f32 %v1816_v13, %v1728_v24  ;;  %v3828_v31 = vadd.f32 %v3827_v27, %v3826_v21  ;;  %v5744_v34 = vmax.f32 %v1342_v26, %v1862_v14  ;;  %v1647_v9 = vadd.f32 %v5646_v54, %v5458_v29 }
 0x1dd   : > { %v4175_v40 = vpop.f32.mrf.mxu1  ;;  %v3829_v49 = vpop.f32.mrf.mxu0  ;;  %v1346_v14 = vmax.f32 %v5650_v56, 0.0  ;;  %v1663_v56 = vadd.f32 %v5678_v33, %v5458_v29 }
 0x1de   : > { %v1863_v36 = vmax.f32 %v1817_v3, 0.0  ;;  %v1733_v43 = vadd.f32 %v3828_v31, %v1644_v37 }
 0x1df   : > { %v1824_v8 = vpop.f32.mrf.mxu1  ;;  %v3830_v46 = vpop.f32.mrf.mxu0 }
 0x1e0   : > { %v1822_v47 = vadd.f32 %v1821_v42, %v1733_v43  ;;  %v3831_v32 = vadd.f32 %v3830_v46, %v3829_v49  ;;  %v5751_v48 = vmax.f32 %v1343_v18, %v1863_v36 }
 0x1e1   : > { %v4176_v45 = vpop.f32.mrf.mxu1  ;;  %v3832_v23 = vpop.f32.mrf.mxu0  ;;  %2831 = vmatmul.mubr.bf16.gmra.mxu0 %v4523_v35  ;;  %v1347_v35 = vmax.f32 %v5658_v6, 0.0  ;;  %v1668_v6 = vadd.f32 %v5686_v39, %v5458_v29 }
 0x1e2   : > { %v1864_v52 = vmax.f32 %v1822_v47, 0.0  ;;  %v1736_v55 = vadd.f32 %v3831_v32, %v1647_v9  ;;  %v1348_v32 = vmax.f32 %v5665_v16, 0.0  ;;  %v1671_v16 = vadd.f32 %v5694_v20, %v5458_v29 }
 0x1e3   : > { %v1829_v0 = vpop.f32.mrf.mxu1  ;;  %4262 = vmatmul.mubr.msk.bf16.gmra.mxu1 %vm1051_vm1, %v4526_v17  ;;  %v3833_v63 = vpop.f32.mrf.mxu0 }
 0x1e4   : > { %v1825_v59 = vadd.f32 %v1824_v8, %v1736_v55  ;;  %v3834_v54 = vadd.f32 %v3833_v63, %v3832_v23  ;;  %v5757_v7 = vmax.f32 %v1344_v51, %v1864_v52 }
 0x1e5   : > { %v4179_v62 = vpop.f32.mrf.mxu1  ;;  %v3835_v13 = vpop.f32.mrf.mxu0 }
 0x1e6   : > { %v1865_v38 = vmax.f32 %v1825_v59, 0.0  ;;  %v1741_v1 = vadd.f32 %v3834_v54, %v1652_v57  ;;  %v1349_v59 = vmax.f32 %v5674_v25, 0.0  ;;  %v1676_v25 = vadd.f32 %v5702_v28, %v5458_v29 }
 0x1e7   : > { %v1832_v41 = vpop.f32.mrf.mxu1  ;;  %v3836_v15 = vpop.f32.mrf.mxu0 }
 0x1e8   : > { %v1830_v30 = vadd.f32 %v1829_v0, %v1741_v1  ;;  %v3837_v50 = vadd.f32 %v3836_v15, %v3835_v13  ;;  %v5762_v26 = vmax.f32 %v1345_v58, %v1865_v38 }
 0x1e9   : > { %v4180_v21 = vpop.f32.mrf.mxu1  ;;  %v3838_v60 = vpop.f32.mrf.mxu0 }
 0x1ea   : > { %v1866_v24 = vmax.f32 %v1830_v30, 0.0  ;;  %v1744_v42 = vadd.f32 %v3837_v50, %v1655_v19  ;;  %v1350_v19 = vmax.f32 %v5681_v61, 0.0  ;;  %v1679_v61 = vadd.f32 %v5710_v11, %v5458_v29 }
 0x1eb   : > { %v1837_v27 = vpop.f32.mrf.mxu1  ;;  %v3839_v37 = vpop.f32.mrf.mxu0  ;;  %v1353_v11 = vmax.f32 %v5706_v2, 0.0 }
 0x1ec   : > { %v1833_v3 = vadd.f32 %v1832_v41, %v1744_v42  ;;  %v3840_v31 = vadd.f32 %v3839_v37, %v3838_v60  ;;  %v5767_v49 = vmax.f32 %v1346_v14, %v1866_v24  ;;  %v1351_v37 = vmax.f32 %v5690_v4, 0.0 }
 0x1ed   : > { %v4183_v40 = vpop.f32.mrf.mxu1  ;;  %v3841_v12 = vpop.f32.mrf.mxu0 }
 0x1ee   : > { %v1867_v18 = vmax.f32 %v1833_v3, 0.0  ;;  %v1749_v36 = vadd.f32 %v3840_v31, %v1660_v5 }
 0x1ef   : > { %v1840_v43 = vpop.f32.mrf.mxu1  ;;  %v3842_v8 = vpop.f32.mrf.mxu0 }
 0x1f0   : > { %v1838_v17 = vadd.f32 %v1837_v27, %v1749_v36  ;;  %v3843_v46 = vadd.f32 %v3842_v8, %v3841_v12  ;;  %v5772_v47 = vmax.f32 %v1347_v35, %v1867_v18 }
 0x1f1   : > { %v4184_v9 = vpop.f32.mrf.mxu1  ;;  %v3844_v22 = vpop.f32.mrf.mxu0 }
 0x1f2   : > { %v1868_v45 = vmax.f32 %v1838_v17, 0.0  ;;  %v1752_v23 = vadd.f32 %v3843_v46, %v1663_v56 }
 0x1f3   : > { %v1845_v51 = vpop.f32.mrf.mxu1  ;;  %v3845_v52 = vpop.f32.mrf.mxu0 }
 0x1f4   : > { %v1841_v55 = vadd.f32 %v1840_v43, %v1752_v23  ;;  %v3846_v0 = vadd.f32 %v3845_v52, %v3844_v22  ;;  %v5777_v57 = vmax.f32 %v1348_v32, %v1868_v45  ;;  %v1352_v43 = vmax.f32 %v5697_v53, 0.0 }
 0x1f5   : > { %v4187_v63 = vpop.f32.mrf.mxu1  ;;  %v3847_v33 = vpop.f32.mrf.mxu0 }
 0x1f6   : > { %v1869_v54 = vmax.f32 %v1841_v55, 0.0  ;;  %v1757_v62 = vadd.f32 %v3846_v0, %v1668_v6 }
 0x1f7   : > { %v1848_v13 = vpop.f32.mrf.mxu1  ;;  %v3848_v58 = vpop.f32.mrf.mxu0 }
 0x1f8   : > { %v1846_v38 = vadd.f32 %v1845_v51, %v1757_v62  ;;  %v3849_v1 = vadd.f32 %v3848_v58, %v3847_v33  ;;  %v5782_v15 = vmax.f32 %v1349_v59, %v1869_v54 }
 0x1f9   : > { %v4188_v41 = vpop.f32.mrf.mxu1  ;;  %v3850_v39 = vpop.f32.mrf.mxu0 }
 0x1fa   : > { %v1870_v30 = vmax.f32 %v1846_v38, 0.0  ;;  %v1760_v50 = vadd.f32 %v3849_v1, %v1671_v16 }
 0x1fb   : > { %v1853_v21 = vpop.f32.mrf.mxu1  ;;  %v3851_v60 = vpop.f32.mrf.mxu0 }
 0x1fc   : > { %v1849_v14 = vadd.f32 %v1848_v13, %v1760_v50  ;;  %v3852_v24 = vadd.f32 %v3851_v60, %v3850_v39  ;;  %v5787_v27 = vmax.f32 %v1350_v19, %v1870_v30  ;;  %v5809_v39 = vld [vmem:[%s6041_s2] ss:$0 sm:$0xff] }
 0x1fd   : > { %v4191_v42 = vpop.f32.mrf.mxu1  ;;  %v3853_v20 = vpop.f32.mrf.mxu0 }
 0x1fe   : > { %v1871_v5 = vmax.f32 %v1849_v14, 0.0  ;;  %v1765_v3 = vadd.f32 %v3852_v24, %v1676_v25 }
 0x1ff   : > { %v1856_v31 = vpop.f32.mrf.mxu1  ;;  %v3854_v40 = vpop.f32.mrf.mxu0 }
 0x200   : > { %v1854_v12 = vadd.f32 %v1853_v21, %v1765_v3  ;;  %v3855_v35 = vadd.f32 %v3854_v40, %v3853_v20  ;;  %v5792_v36 = vmax.f32 %v1351_v37, %v1871_v5 }
 0x201   : > { %v4192_v18 = vpop.f32.mrf.mxu1  ;;  %v3883_v28 = vpop.f32.mrf.mxu0 }
 0x202   : > { %v1872_v8 = vmax.f32 %v1854_v12, 0.0  ;;  %v1768_v56 = vadd.f32 %v3855_v35, %v1679_v61 }
 0x203   : > { %v3941_v17 = vpop.f32.mrf.mxu1  ;;  %v3884_v46 = vpop.f32.mrf.mxu0 }
 0x204   : > { %v1857_v4 = vadd.f32 %v1856_v31, %v1768_v56  ;;  %v3885_v9 = vadd.f32 %v3884_v46, %v3883_v28  ;;  %v5795_v32 = vmax.f32 %v1352_v43, %v1872_v8 }
 0x205   : > { %v3942_v22 = vpop.f32.mrf.mxu1  ;;  %v3886_v23 = vpop.f32.mrf.mxu0 }
 0x206   : > { %v3943_v45 = vadd.f32 %v3942_v22, %v3941_v17  ;;  %v1873_v51 = vmax.f32 %v1857_v4, 0.0  ;;  %v2162_v52 = vadd.f32 %v3885_v9, %v5458_v29 }
 0x207   : > { %v3944_v6 = vpop.f32.mrf.mxu1  ;;  %v3887_v55 = vpop.f32.mrf.mxu0 }
 0x208   : > { %v3888_v0 = vadd.f32 %v3887_v55, %v3886_v23  ;;  %v5799_v63 = vadd.f32 %v3943_v45, %v2162_v52  ;;  %v5801_v33 = vmax.f32 %v1353_v11, %v1873_v51 }
 0x209   : > { %v3945_v53 = vpop.f32.mrf.mxu1  ;;  %v3889_v54 = vpop.f32.mrf.mxu0 }
 0x20a   : > { %v3946_v59 = vadd.f32 %v3945_v53, %v3944_v6  ;;  %v2165_v62 = vadd.f32 %v3888_v0, %v5458_v29 }
 0x20b   : > { %v3947_v13 = vpop.f32.mrf.mxu1  ;;  %v3890_v58 = vpop.f32.mrf.mxu0 }
 0x20c   : > { %v3891_v16 = vadd.f32 %v3890_v58, %v3889_v54  ;;  %v5804_v2 = vadd.f32 %v3946_v59, %v2165_v62 }
 0x20d   : > { %v3948_v38 = vpop.f32.mrf.mxu1  ;;  %v3892_v41 = vpop.f32.mrf.mxu0 }
 0x20e   : > { %v3949_v1 = vadd.f32 %v3948_v38, %v3947_v13  ;;  %v2170_v19 = vadd.f32 %v5809_v39, %v3891_v16 }
 0x20f   : > { %v3950_v30 = vpop.f32.mrf.mxu1  ;;  %v3893_v50 = vpop.f32.mrf.mxu0 }
 0x210   : > { %v3894_v21 = vadd.f32 %v3893_v50, %v3892_v41  ;;  %v5812_v29 = vadd.f32 %v3949_v1, %v2170_v19 }
 0x211   : > { %v3951_v60 = vpop.f32.mrf.mxu1  ;;  %v3895_v14 = vpop.f32.mrf.mxu0 }
 0x212   : > { %v3952_v25 = vadd.f32 %v3951_v60, %v3950_v30  ;;  %v2173_v24 = vadd.f32 %v5809_v39, %v3894_v21 }
 0x213   : > { %v3953_v42 = vpop.f32.mrf.mxu1  ;;  %v3896_v20 = vpop.f32.mrf.mxu0 }
 0x214   : > { %v3897_v37 = vadd.f32 %v3896_v20, %v3895_v14  ;;  %v5815_v3 = vadd.f32 %v3952_v25, %v2173_v24 }
 0x215   : > { %v3954_v5 = vpop.f32.mrf.mxu1  ;;  %v3898_v40 = vpop.f32.mrf.mxu0 }
 0x216   : > { %v3955_v31 = vadd.f32 %v3954_v5, %v3953_v42  ;;  %v2178_v61 = vadd.f32 %v5809_v39, %v3897_v37 }
 0x217   : > { %v3956_v12 = vpop.f32.mrf.mxu1  ;;  %v3899_v35 = vpop.f32.mrf.mxu0 }
 0x218   : > { %v3900_v18 = vadd.f32 %v3899_v35, %v3898_v40  ;;  %v5818_v43 = vadd.f32 %v3955_v31, %v2178_v61 }
 0x219   : > { %v3957_v28 = vpop.f32.mrf.mxu1  ;;  %v3901_v56 = vpop.f32.mrf.mxu0 }
 0x21a   : > { %v3958_v8 = vadd.f32 %v3957_v28, %v3956_v12  ;;  %v2181_v17 = vadd.f32 %v5809_v39, %v3900_v18 }
 0x21b   : > { %v3959_v46 = vpop.f32.mrf.mxu1  ;;  %v3902_v4 = vpop.f32.mrf.mxu0 }
 0x21c   : > { %v3903_v9 = vadd.f32 %v3902_v4, %v3901_v56  ;;  %v5821_v45 = vadd.f32 %v3958_v8, %v2181_v17 }
 0x21d   : > { %v3960_v22 = vpop.f32.mrf.mxu1  ;;  %v3904_v11 = vpop.f32.mrf.mxu0 }
 0x21e   : > { %v3961_v23 = vadd.f32 %v3960_v22, %v3959_v46  ;;  %v2186_v51 = vadd.f32 %v5809_v39, %v3903_v9 }
 0x21f   : > { %v3962_v52 = vpop.f32.mrf.mxu1  ;;  %v3905_v6 = vpop.f32.mrf.mxu0 }
 0x220   : > { %v3906_v55 = vadd.f32 %v3905_v6, %v3904_v11  ;;  %v5824_v53 = vadd.f32 %v3961_v23, %v2186_v51 }
 0x221   : > { %v3963_v0 = vpop.f32.mrf.mxu1  ;;  %v3907_v54 = vpop.f32.mrf.mxu0 }
 0x222   : > { %v3964_v59 = vadd.f32 %v3963_v0, %v3962_v52  ;;  %v2189_v62 = vadd.f32 %v5809_v39, %v3906_v55 }
 0x223   : > { %v3965_v13 = vpop.f32.mrf.mxu1  ;;  %v3908_v58 = vpop.f32.mrf.mxu0 }
 0x224   : > { %v3909_v16 = vadd.f32 %v3908_v58, %v3907_v54  ;;  %v5827_v1 = vadd.f32 %v3964_v59, %v2189_v62 }
 0x225   : > { %v3966_v38 = vpop.f32.mrf.mxu1  ;;  %v3910_v19 = vpop.f32.mrf.mxu0 }
 0x226   : > { %v3967_v41 = vadd.f32 %v3966_v38, %v3965_v13  ;;  %v2194_v30 = vadd.f32 %v5809_v39, %v3909_v16 }
 0x227   : > { %v3968_v50 = vpop.f32.mrf.mxu1  ;;  %v3911_v21 = vpop.f32.mrf.mxu0 }
 0x228   : > { %v3912_v60 = vadd.f32 %v3911_v21, %v3910_v19  ;;  %v5830_v14 = vadd.f32 %v3967_v41, %v2194_v30 }
 0x229   : > { %v3969_v25 = vpop.f32.mrf.mxu1  ;;  %v3913_v42 = vpop.f32.mrf.mxu0 }
 0x22a   : > { %v3970_v24 = vadd.f32 %v3969_v25, %v3968_v50  ;;  %v2197_v20 = vadd.f32 %v5809_v39, %v3912_v60 }
 0x22b   : > { %v3971_v37 = vpop.f32.mrf.mxu1  ;;  %v3914_v5 = vpop.f32.mrf.mxu0 }
 0x22c   : > { %v3915_v31 = vadd.f32 %v3914_v5, %v3913_v42  ;;  %v5833_v61 = vadd.f32 %v3970_v24, %v2197_v20 }
 0x22d   : > { %v3972_v40 = vpop.f32.mrf.mxu1  ;;  %v3916_v35 = vpop.f32.mrf.mxu0 }
 0x22e   : > { %v3973_v12 = vadd.f32 %v3972_v40, %v3971_v37  ;;  %v2202_v18 = vadd.f32 %v5809_v39, %v3915_v31 }
 0x22f   : > { %v3974_v28 = vpop.f32.mrf.mxu1  ;;  %v3917_v8 = vpop.f32.mrf.mxu0 }
 0x230   : > { %v3918_v56 = vadd.f32 %v3917_v8, %v3916_v35  ;;  %v5836_v46 = vadd.f32 %v3973_v12, %v2202_v18 }
 0x231   : > { %v3975_v17 = vpop.f32.mrf.mxu1  ;;  %v3919_v9 = vpop.f32.mrf.mxu0 }
 0x232   : > { %v3976_v4 = vadd.f32 %v3975_v17, %v3974_v28  ;;  %v2205_v22 = vadd.f32 %v5809_v39, %v3918_v56 }
 0x233   : > { %v3977_v23 = vpop.f32.mrf.mxu1  ;;  %v3920_v11 = vpop.f32.mrf.mxu0 }
 0x234   : > { %v3921_v51 = vadd.f32 %v3920_v11, %v3919_v9  ;;  %v5839_v6 = vadd.f32 %v3976_v4, %v2205_v22 }
 0x235   : > { %v3978_v52 = vpop.f32.mrf.mxu1  ;;  %v3922_v0 = vpop.f32.mrf.mxu0 }
 0x236   : > { %v3979_v55 = vadd.f32 %v3978_v52, %v3977_v23  ;;  %v2210_v59 = vadd.f32 %v5809_v39, %v3921_v51 }
 0x237   : > { %v3980_v54 = vpop.f32.mrf.mxu1  ;;  %v3923_v62 = vpop.f32.mrf.mxu0 }
 0x238   : > { %v3924_v13 = vadd.f32 %v3923_v62, %v3922_v0  ;;  %v5842_v16 = vadd.f32 %v3979_v55, %v2210_v59 }
 0x239   : > { %v3981_v58 = vpop.f32.mrf.mxu1  ;;  %v2339_v41 = vpop.f32.mrf.mxu0 }
 0x23a   : > { %v3982_v38 = vadd.f32 %v3981_v58, %v3980_v54  ;;  %v2213_v19 = vadd.f32 %v5809_v39, %v3924_v13  ;;  %v2340_v30 = vadd.f32 %v2339_v41, %v5799_v63 }
 0x23b   : > { %v5846_v50 = vpop.f32.mrf.mxu1  ;;  %v4203_v21 = vpop.f32.mrf.mxu0 }
 0x23c   : > { %v2394_v60 = vmax.f32 %v2340_v30, 0.0  ;;  %v5850_v24 = vadd.f32 %v3982_v38, %v2213_v19 }
 0x23d   : > { %v5848_v25 = vpop.f32.mrf.mxu1  ;;  %v2342_v42 = vpop.f32.mrf.mxu0 }
 0x23e   : > { %v5853_v20 = vmax.f32 %v5728_v44, %v2394_v60  ;;  %v2343_v37 = vadd.f32 %v2342_v42, %v5804_v2 }
 0x23f   : > { %v5856_v5 = vpop.f32.mrf.mxu1  ;;  %v4204_v31 = vpop.f32.mrf.mxu0 }
 0x240   : > { %v2395_v40 = vmax.f32 %v2343_v37, 0.0 }
 0x241   : > { %v5858_v12 = vpop.f32.mrf.mxu1  ;;  %v2347_v63 = vpop.f32.mrf.mxu0 }
 0x242   : > { %v5861_v35 = vmax.f32 %v5736_v10, %v2395_v40  ;;  %v2348_v18 = vadd.f32 %v2347_v63, %v5812_v29 }
 0x243   : > { %v5864_v28 = vpop.f32.mrf.mxu1  ;;  %v4207_v8 = vpop.f32.mrf.mxu0 }
 0x244   : > { %v2396_v56 = vmax.f32 %v2348_v18, 0.0 }
 0x245   : > { %v5866_v44 = vpop.f32.mrf.mxu1  ;;  %v2350_v17 = vpop.f32.mrf.mxu0 }
 0x246   : > { %v5869_v2 = vmax.f32 %v5744_v34, %v2396_v56  ;;  %v2351_v4 = vadd.f32 %v2350_v17, %v5815_v3 }
 0x247   : > { %v5872_v9 = vpop.f32.mrf.mxu1  ;;  %v4208_v22 = vpop.f32.mrf.mxu0 }
 0x248   : > { %v2397_v23 = vmax.f32 %v2351_v4, 0.0 }
 0x249   : > { %v5874_v10 = vpop.f32.mrf.mxu1  ;;  %v2355_v11 = vpop.f32.mrf.mxu0 }
 0x24a   : > { %v5877_v29 = vmax.f32 %v5751_v48, %v2397_v23  ;;  %v2356_v51 = vadd.f32 %v2355_v11, %v5818_v43 }
 0x24b   : > { %v5880_v52 = vpop.f32.mrf.mxu1  ;;  %v4211_v55 = vpop.f32.mrf.mxu0 }
 0x24c   : > { %v2398_v0 = vmax.f32 %v2356_v51, 0.0 }
 0x24d   : > { %v5882_v34 = vpop.f32.mrf.mxu1  ;;  %v2358_v59 = vpop.f32.mrf.mxu0 }
 0x24e   : > { %v5885_v3 = vmax.f32 %v5757_v7, %v2398_v0  ;;  %v2359_v54 = vadd.f32 %v2358_v59, %v5821_v45 }
 0x24f   : > { %v5888_v62 = vpop.f32.mrf.mxu1  ;;  %v4212_v13 = vpop.f32.mrf.mxu0 }
 0x250   : > { %v2399_v58 = vmax.f32 %v2359_v54, 0.0 }
 0x251   : > { %v5890_v48 = vpop.f32.mrf.mxu1  ;;  %v2363_v38 = vpop.f32.mrf.mxu0 }
 0x252   : > { %v5893_v43 = vmax.f32 %v5762_v26, %v2399_v58  ;;  %v2364_v41 = vadd.f32 %v2363_v38, %v5824_v53 }
 0x253   : > { %v5896_v19 = vpop.f32.mrf.mxu1  ;;  %v4215_v30 = vpop.f32.mrf.mxu0 }
 0x254   : > { %v2400_v21 = vmax.f32 %v2364_v41, 0.0 }
 0x255   : > { %v5898_v7 = vpop.f32.mrf.mxu1  ;;  %v2366_v60 = vpop.f32.mrf.mxu0 }
 0x256   : > { %v5901_v45 = vmax.f32 %v5767_v49, %v2400_v21  ;;  %v2367_v42 = vadd.f32 %v2366_v60, %v5827_v1 }
 0x257   : > { %v5904_v37 = vpop.f32.mrf.mxu1  ;;  %v4216_v31 = vpop.f32.mrf.mxu0 }
 0x258   : > { %v2401_v40 = vmax.f32 %v2367_v42, 0.0 }
 0x259   : > { %v5906_v26 = vpop.f32.mrf.mxu1  ;;  %v2371_v63 = vpop.f32.mrf.mxu0 }
 0x25a   : > { %v5909_v53 = vmax.f32 %v5772_v47, %v2401_v40  ;;  %v2372_v18 = vadd.f32 %v2371_v63, %v5830_v14 }
 0x25b   : > { %v5912_v8 = vpop.f32.mrf.mxu1  ;;  %v4219_v56 = vpop.f32.mrf.mxu0 }
 0x25c   : > { %v2402_v17 = vmax.f32 %v2372_v18, 0.0 }
 0x25d   : > { %v5914_v49 = vpop.f32.mrf.mxu1  ;;  %v2374_v4 = vpop.f32.mrf.mxu0 }
 0x25e   : > { %v5917_v1 = vmax.f32 %v5777_v57, %v2402_v17  ;;  %v2375_v22 = vadd.f32 %v2374_v4, %v5833_v61 }
 0x25f   : > { %v5920_v23 = vpop.f32.mrf.mxu1  ;;  %v4220_v11 = vpop.f32.mrf.mxu0 }
 0x260   : > { %v2403_v51 = vmax.f32 %v2375_v22, 0.0 }
 0x261   : > { %v5922_v47 = vpop.f32.mrf.mxu1  ;;  %v2379_v55 = vpop.f32.mrf.mxu0 }
 0x262   : > { %v5925_v14 = vmax.f32 %v5782_v15, %v2403_v51  ;;  %v2380_v0 = vadd.f32 %v2379_v55, %v5836_v46 }
 0x263   : > { %v5928_v59 = vpop.f32.mrf.mxu1  ;;  %v4223_v54 = vpop.f32.mrf.mxu0 }
 0x264   : > { %v2404_v13 = vmax.f32 %v2380_v0, 0.0 }
 0x265   : > { %v5930_v57 = vpop.f32.mrf.mxu1  ;;  %v2382_v58 = vpop.f32.mrf.mxu0 }
 0x266   : > { %v5933_v61 = vmax.f32 %v5787_v27, %v2404_v13  ;;  %v2383_v38 = vadd.f32 %v2382_v58, %v5839_v6 }
 0x267   : > { %v5936_v41 = vpop.f32.mrf.mxu1  ;;  %v4224_v30 = vpop.f32.mrf.mxu0 }
 0x268   : > { %v2405_v21 = vmax.f32 %v2383_v38, 0.0 }
 0x269   : > { %v5938_v15 = vpop.f32.mrf.mxu1  ;;  %v2387_v60 = vpop.f32.mrf.mxu0 }
 0x26a   : > { %v5941_v46 = vmax.f32 %v5792_v36, %v2405_v21  ;;  %v2388_v42 = vadd.f32 %v2387_v60, %v5842_v16  ;;  %v4012_v36 = vadd.f32 %v5848_v25, %v5846_v50 }
 0x26b   : > { %v5944_v31 = vpop.f32.mrf.mxu1  ;;  %v4227_v40 = vpop.f32.mrf.mxu0 }
 0x26c   : > { %v2406_v27 = vmax.f32 %v2388_v42, 0.0  ;;  %v2696_v0 = vadd.f32 %v5809_v39, %v4012_v36 }
 0x26d   : > { %v5946_v63 = vpop.f32.mrf.mxu1  ;;  %v2390_v6 = vpop.f32.mrf.mxu0 }
 0x26e   : > { %v5949_v18 = vmax.f32 %v5795_v32, %v2406_v27  ;;  %v2391_v56 = vadd.f32 %v2390_v6, %v5850_v24  ;;  %v4015_v24 = vadd.f32 %v5858_v12, %v5856_v5  ;;  %v4021_v5 = vadd.f32 %v5874_v10, %v5872_v9 }
 0x26f   : > { %v5952_v17 = vpop.f32.mrf.mxu1  ;;  %v4228_v4 = vpop.f32.mrf.mxu0 }
 0x270   : > { %v2407_v16 = vmax.f32 %v2391_v56, 0.0  ;;  %v2699_v30 = vadd.f32 %v5809_v39, %v4015_v24  ;;  %v4024_v24 = vadd.f32 %v5882_v34, %v5880_v52  ;;  %v4027_v52 = vadd.f32 %v5890_v48, %v5888_v62 }
 0x271   : > { %v5956_v22 = vpop.f32.mrf.mxu1  ;;  %v4068_v11 = vpop.f32.mrf.mxu0 }
 0x272   : > { %v5959_v51 = vmax.f32 %v5801_v33, %v2407_v16  ;;  %v4018_v33 = vadd.f32 %v5866_v44, %v5864_v28 }
 0x273   : > { %v2873_v55 = vpop.f32.mrf.mxu1  ;;  %v4069_v32 = vpop.f32.mrf.mxu0 }
 0x274   : > { %v4070_v54 = vadd.f32 %v4069_v32, %v4068_v11  ;;  %v2704_v56 = vadd.f32 %v5809_v39, %v4018_v33 }
 0x275   : > { %v4239_v13 = vpop.f32.mrf.mxu1  ;;  %v4071_v58 = vpop.f32.mrf.mxu0 }
 0x276   : > { %v2785_v50 = vadd.f32 %v4070_v54, %v2696_v0  ;;  %v2707_v0 = vadd.f32 %v5809_v39, %v4021_v5 }
 0x277   : > { %v2876_v25 = vpop.f32.mrf.mxu1  ;;  %v4072_v38 = vpop.f32.mrf.mxu0 }
 0x278   : > { %v2874_v21 = vadd.f32 %v2873_v55, %v2785_v50  ;;  %v4073_v60 = vadd.f32 %v4072_v38, %v4071_v58 }
 0x279   : > { %v4240_v42 = vpop.f32.mrf.mxu1  ;;  %v4074_v40 = vpop.f32.mrf.mxu0 }
 0x27a   : > { %v2788_v27 = vadd.f32 %v4073_v60, %v2699_v30  ;;  %v2928_v4 = vmax.f32 %v2874_v21, 0.0 }
 0x27b   : > { %v2881_v6 = vpop.f32.mrf.mxu1  ;;  %v4075_v12 = vpop.f32.mrf.mxu0 }
 0x27c   : > { %v2877_v36 = vadd.f32 %v2876_v25, %v2788_v27  ;;  %v4076_v16 = vadd.f32 %v4075_v12, %v4074_v40  ;;  %v2942_v9 = vmax.f32 %v5853_v20, %v2928_v4  ;;  %v2712_v20 = vadd.f32 %v5809_v39, %v4024_v24 }
 0x27d   : > { %v4243_v11 = vpop.f32.mrf.mxu1  ;;  %v4077_v32 = vpop.f32.mrf.mxu0  ;;  %v2715_v12 = vadd.f32 %v5809_v39, %v4027_v52 }
 0x27e   : > { %v2929_v28 = vmax.f32 %v2877_v36, 0.0  ;;  %v2793_v44 = vadd.f32 %v4076_v16, %v2704_v56  ;;  %v4030_v56 = vadd.f32 %v5898_v7, %v5896_v19 }
 0x27f   : > { %v2884_v55 = vpop.f32.mrf.mxu1  ;;  %v4078_v54 = vpop.f32.mrf.mxu0 }
 0x280   : > { %v2943_v10 = vmax.f32 %v5861_v35, %v2929_v28  ;;  %v2882_v13 = vadd.f32 %v2881_v6, %v2793_v44  ;;  %v4079_v58 = vadd.f32 %v4078_v54, %v4077_v32  ;;  %v2720_v54 = vadd.f32 %v5809_v39, %v4030_v56 }
 0x281   : > { %v4244_v50 = vpop.f32.mrf.mxu1  ;;  %v4080_v25 = vpop.f32.mrf.mxu0 }
 0x282   : > { %v3575_v38 = vpack.c.bf16 %v2943_v10, %v2942_v9  ;;  %v2796_v30 = vadd.f32 %v4079_v58, %v2707_v0  ;;  %v2930_v35 = vmax.f32 %v2882_v13, 0.0  ;;  %v4033_v0 = vadd.f32 %v5906_v26, %v5904_v37 }
 0x283   : > { %v2889_v33 = vpop.f32.mrf.mxu1  ;;  %v4081_v34 = vpop.f32.mrf.mxu0 }
 0x284   : > { %3576 = vst [vmem:[%s5980_s22] sm:$0xff] %v3575_v38   ;;  %v2885_v21 = vadd.f32 %v2884_v55, %v2796_v30  ;;  %v4082_v60 = vadd.f32 %v4081_v34, %v4080_v25  ;;  %v2944_v62 = vmax.f32 %v5869_v2, %v2930_v35  ;;  %v2723_v50 = vadd.f32 %v5809_v39, %v4033_v0 }
 0x285   : > { %v4247_v42 = vpop.f32.mrf.mxu1  ;;  %v4083_v40 = vpop.f32.mrf.mxu0  ;;  %v4036_v25 = vadd.f32 %v5914_v49, %v5912_v8 }
 0x286   : > { %v2931_v27 = vmax.f32 %v2885_v21, 0.0  ;;  %v2801_v6 = vadd.f32 %v4082_v60, %v2712_v20  ;;  %v4039_v60 = vadd.f32 %v5922_v47, %v5920_v23 }
 0x287   : > { %v2892_v5 = vpop.f32.mrf.mxu1  ;;  %v4084_v4 = vpop.f32.mrf.mxu0 }
 0x288   : > { %v2945_v48 = vmax.f32 %v5877_v29, %v2931_v27  ;;  %v2890_v36 = vadd.f32 %v2889_v33, %v2801_v6  ;;  %v4085_v16 = vadd.f32 %v4084_v4, %v4083_v40  ;;  %v2728_v40 = vadd.f32 %v5809_v39, %v4036_v25 }
 0x289   : > { %v4248_v11 = vpop.f32.mrf.mxu1  ;;  %v4086_v32 = vpop.f32.mrf.mxu0  ;;  %v2731_v56 = vadd.f32 %v5809_v39, %v4039_v60  ;;  %v4042_v4 = vadd.f32 %v5930_v57, %v5928_v59 }
 0x28a   : > { %v3580_v28 = vpack.c.bf16 %v2945_v48, %v2944_v62  ;;  %v2804_v44 = vadd.f32 %v4085_v16, %v2715_v12  ;;  %v2932_v19 = vmax.f32 %v2890_v36, 0.0 }
 0x28b   : > { %v2897_v55 = vpop.f32.mrf.mxu1  ;;  %v4087_v24 = vpop.f32.mrf.mxu0 }
 0x28c   : > { %3607 = vst [vmem:[%s5980_s22 + $0x8] sm:$0xff] %v3580_v28   ;;  %v2893_v7 = vadd.f32 %v2892_v5, %v2804_v44  ;;  %v4088_v9 = vadd.f32 %v4087_v24, %v4086_v32  ;;  %v2946_v37 = vmax.f32 %v5885_v3, %v2932_v19  ;;  %v2736_v24 = vadd.f32 %v5809_v39, %v4042_v4 }
 0x28d   : > { %v4251_v2 = vpop.f32.mrf.mxu1  ;;  %v4089_v10 = vpop.f32.mrf.mxu0 }
 0x28e   : > { %v2933_v29 = vmax.f32 %v2893_v7, 0.0  ;;  %v2809_v13 = vadd.f32 %v4088_v9, %v2720_v54 }
 0x28f   : > { %v2900_v58 = vpop.f32.mrf.mxu1  ;;  %v4090_v38 = vpop.f32.mrf.mxu0 }
 0x290   : > { %v2947_v26 = vmax.f32 %v5893_v43, %v2933_v29  ;;  %v2898_v30 = vadd.f32 %v2897_v55, %v2809_v13  ;;  %v4091_v33 = vadd.f32 %v4090_v38, %v4089_v10  ;;  %v4045_v55 = vadd.f32 %v5938_v15, %v5936_v41 }
 0x291   : > { %v4252_v52 = vpop.f32.mrf.mxu1  ;;  %v4092_v34 = vpop.f32.mrf.mxu0  ;;  %v4048_v10 = vadd.f32 %v5946_v63, %v5944_v31 }
 0x292   : > { %v3585_v20 = vpack.c.bf16 %v2947_v26, %v2946_v37  ;;  %v2812_v35 = vadd.f32 %v4091_v33, %v2723_v50  ;;  %v2934_v8 = vmax.f32 %v2898_v30, 0.0  ;;  %v2739_v2 = vadd.f32 %v5809_v39, %v4045_v55 }
 0x293   : > { %v2905_v21 = vpop.f32.mrf.mxu1  ;;  %v4093_v42 = vpop.f32.mrf.mxu0  ;;  %v4051_v30 = vadd.f32 %v5956_v22, %v5952_v17  ;;  %v2744_v52 = vadd.f32 %v5809_v39, %v4048_v10 }
 0x294   : > { %3608 = vst [vmem:[%s5980_s22 + $0x10] sm:$0xff] %v3585_v20   ;;  %v2901_v49 = vadd.f32 %v2900_v58, %v2812_v35  ;;  %v4094_v27 = vadd.f32 %v4093_v42, %v4092_v34  ;;  %v2948_v23 = vmax.f32 %v5901_v45, %v2934_v8 }
 0x295   : > { %v4255_v3 = vpop.f32.mrf.mxu1  ;;  %v4095_v6 = vpop.f32.mrf.mxu0  ;;  %v2747_v60 = vadd.f32 %v5809_v39, %v4051_v30 }
 0x296   : > { %v2935_v43 = vmax.f32 %v2901_v49, 0.0  ;;  %v2817_v5 = vadd.f32 %v4094_v27, %v2728_v40 }
 0x297   : > { %v2908_v12 = vpop.f32.mrf.mxu1  ;;  %v4096_v62 = vpop.f32.mrf.mxu0 }
 0x298   : > { %v2949_v47 = vmax.f32 %v5909_v53, %v2935_v43  ;;  %v2906_v48 = vadd.f32 %v2905_v21, %v2817_v5  ;;  %v4097_v36 = vadd.f32 %v4096_v62, %v4095_v6 }
 0x299   : > { %v4256_v16 = vpop.f32.mrf.mxu1  ;;  %v4098_v11 = vpop.f32.mrf.mxu0 }
 0x29a   : > { %v3590_v32 = vpack.c.bf16 %v2949_v47, %v2948_v23  ;;  %v2820_v28 = vadd.f32 %v4097_v36, %v2731_v56  ;;  %v2936_v59 = vmax.f32 %v2906_v48, 0.0 }
 0x29b   : > { %v2913_v44 = vpop.f32.mrf.mxu1  ;;  %v4099_v0 = vpop.f32.mrf.mxu0 }
 0x29c   : > { %3609 = vst [vmem:[%s5980_s22 + $0x18] sm:$0xff] %v3590_v32   ;;  %v2909_v57 = vadd.f32 %v2908_v12, %v2820_v28  ;;  %v4100_v54 = vadd.f32 %v4099_v0, %v4098_v11  ;;  %v2950_v41 = vmax.f32 %v5917_v1, %v2936_v59 }
 0x29d   : > { %v4259_v45 = vpop.f32.mrf.mxu1  ;;  %v4101_v19 = vpop.f32.mrf.mxu0 }
 0x29e   : > { %v2937_v53 = vmax.f32 %v2909_v57, 0.0  ;;  %v2825_v7 = vadd.f32 %v4100_v54, %v2736_v24 }
 0x29f   : > { %v2916_v9 = vpop.f32.mrf.mxu1  ;;  %v4102_v29 = vpop.f32.mrf.mxu0 }
 0x2a0   : > { %v2951_v15 = vmax.f32 %v5925_v14, %v2937_v53  ;;  %v2914_v13 = vadd.f32 %v2913_v44, %v2825_v7  ;;  %v4103_v58 = vadd.f32 %v4102_v29, %v4101_v19 }
 0x2a1   : > { %v4260_v50 = vpop.f32.mrf.mxu1  ;;  %v4104_v25 = vpop.f32.mrf.mxu0 }
 0x2a2   : > { %v3595_v38 = vpack.c.bf16 %v2951_v15, %v2950_v41  ;;  %v2828_v37 = vadd.f32 %v4103_v58, %v2739_v2  ;;  %v2938_v31 = vmax.f32 %v2914_v13, 0.0 }
 0x2a3   : > { %v2921_v26 = vpop.f32.mrf.mxu1  ;;  %v4105_v33 = vpop.f32.mrf.mxu0 }
 0x2a4   : > { %3610 = vst [vmem:[%s5980_s22 + $0x20] sm:$0xff] %v3595_v38   ;;  %v2917_v63 = vadd.f32 %v2916_v9, %v2828_v37  ;;  %v4106_v1 = vadd.f32 %v4105_v33, %v4104_v25  ;;  %v2952_v40 = vmax.f32 %v5933_v61, %v2938_v31 }
 0x2a5   : > { %v4263_v34 = vpop.f32.mrf.mxu1  ;;  %v4107_v14 = vpop.f32.mrf.mxu0 }
 0x2a6   : > { %v2939_v20 = vmax.f32 %v2917_v63, 0.0  ;;  %v2833_v35 = vadd.f32 %v4106_v1, %v2744_v52 }
 0x2a7   : > { %v2924_v21 = vpop.f32.mrf.mxu1  ;;  %v4108_v42 = vpop.f32.mrf.mxu0 }
 0x2a8   : > { %v2953_v17 = vmax.f32 %v5941_v46, %v2939_v20  ;;  %v2922_v22 = vadd.f32 %v2921_v26, %v2833_v35  ;;  %v4109_v8 = vadd.f32 %v4108_v42, %v4107_v14 }
 0x2a9   : > { %v4264_v49 = vpop.f32.mrf.mxu1 }
 0x2aa   : > { %v3600_v27 = vpack.c.bf16 %v2953_v17, %v2952_v40  ;;  %v2836_v3 = vadd.f32 %v4109_v8, %v2747_v60  ;;  %v2940_v6 = vmax.f32 %v2922_v22, 0.0 }
 0x2ac   : > { %3611 = vst [vmem:[%s5980_s22 + $0x28] sm:$0xff] %v3600_v27   ;;  %v2925_v43 = vadd.f32 %v2924_v21, %v2836_v3  ;;  %v2954_v12 = vmax.f32 %v5949_v18, %v2940_v6 }
 0x2ae   : > { %v2941_v5 = vmax.f32 %v2925_v43, 0.0 }
 0x2b0   : > { %v2955_v56 = vmax.f32 %v5959_v51, %v2941_v5 }
 0x2b2   : > { %v3605_v39 = vpack.c.bf16 %v2955_v56, %v2954_v12 }
 0x2b4   : > { %3612 = vst [vmem:[%s5980_s22 + $0x30] sm:$0xff] %v3605_v39  }
 0x2b5 PF: > { %p10_p9 = scmp.ge.s32.totalorder %s4623_s16, 4   ;;  %s6043_s12 = smov %s4578_s13 }
 0x2b6   : > { %s6044_s13 = smov %s4632_s19  ;;  %s6045_s14 = smov %s4623_s16 }
 0x2b7   :  { %12 = sbr.rel (!%p10_p9) target bundleno = 2 (0x2), region = 102 }

// kernel: cnn_forward.7
= control target key start
LH: loop header
LB: loop body
LE: loop exit
PB: predicated region body
PF: predicated region fallthrough
CT: control target
= control target key end

     0   :  { %s2926_s12 = smov 0   ;;  %s2928_s13 = smov 0   ;;  %s3759_s0 = inlined_call_operand.vmem [shape: bf16[4,64,896], index: 0, kind: input, shape index: {}]   ;;  %s3760_s1 = inlined_call_operand.vmem [shape: bf16[896,128], index: 1, kind: input, shape index: {}]   ;;  %s3761_s2 = inlined_call_operand.vmem [shape: f32[1,128], index: 2, kind: input, shape index: {}]   ;;  %s3762_s3 = inlined_call_operand.vmem [shape: bf16[64,128], index: 3, kind: output, shape index: {}]  }
   0x1   :  { %s2930_s14 = smov 0  }
   0x2 LB: > { %s2039_s15 = sadd.s32 4294967295, %s2904_s14   ;;  %s2943_s16 = sadd.s32 1, %s2904_s14   ;;  %s2904_s14 = sphi %s2930_s14, %s3765_s14   ;;  %s2900_s13 = sphi %s2928_s13, %s3764_s13   ;;  %s2896_s12 = sphi %s2926_s12, %s3763_s12  }
   0x3   : > { %s17_s17 = ssub.s32 %s2904_s14, %s2943_s16  ;;  %s20_s18 = sadd.s32 1, %s2900_s13 }
   0x4   : > { %p18_p0 = scmp.eq.s32.totalorder %s17_s17, 0  ;;  %p27_p1 = scmp.ne.s32.totalorder %s2900_s13, %s2896_s12 }
   0x5   : > { %p28_p2 = scmp.eq.s32.totalorder %s2904_s14, 0  ;;  %p2042_p4 = scmp.ge.s32.totalorder %s2904_s14, 2 }
   0x6   : > { %s2952_s19 = scalar_select %p18_p0, %s2900_s13, %s20_s18  }
   0x7   : > { %p29_p3 = por %p28_p2, %p27_p1  ;;  %127 = sbr.rel (%p2042_p4) target bundleno = 51 (0x33), region = 24 }
   0xc   : > { %130 = sbr.rel (!%p29_p3) target bundleno = 51 (0x33), region = 28  ;;  %s132_s20 = sand.u32 (%p29_p3), 1, %s2900_s13  }
   0xd   : > { %s2720_s21 = smul.u32 (%p29_p3), 112, %s2904_s14 }
   0xe   : > { %s2719_s22 = smul.u32 (%p29_p3), 448, %s132_s20 }
   0xf   : > { %s2960_s25 = scalar_lea.vmem (%p29_p3), %s3759_s0, %s2720_s21 }
  0x10   : > { %v153_v0 = vld [vmem:[%s2960_s25] sm:$0xff] (%p29_p3)  ;;  %v155_v1 = vld [vmem:[%s2960_s25 + $0x8] sm:$0xff] (%p29_p3)  ;;  %v157_v2 = vld [vmem:[%s2960_s25 + $0x10] sm:$0xff] (%p29_p3)  ;;  %s2965_s26 = scalar_lea.vmem (%p29_p3), [#allocation2], %s2719_s22 }
  0x11   : > { %154 = vst [vmem:[%s2965_s26] sm:$0xff] %v153_v0  ;;  %156 = vst [vmem:[%s2965_s26 + $0x8] sm:$0xff] %v155_v1  ;;  %v159_v3 = vld [vmem:[%s2960_s25 + $0x1c] sm:$0xff]  ;;  %v161_v4 = vld [vmem:[%s2960_s25 + $0x24] sm:$0xff] }
  0x12   : > { %158 = vst [vmem:[%s2965_s26 + $0x10] sm:$0xff] %v157_v2  ;;  %v163_v5 = vld [vmem:[%s2960_s25 + $0x2c] sm:$0xff]  ;;  %160 = vst [vmem:[%s2965_s26 + $0x1c] sm:$0xff] %v159_v3  ;;  %v165_v6 = vld [vmem:[%s2960_s25 + $0x38] sm:$0xff] }
  0x13   : > { %162 = vst [vmem:[%s2965_s26 + $0x24] sm:$0xff] %v161_v4  ;;  %164 = vst [vmem:[%s2965_s26 + $0x2c] sm:$0xff] %v163_v5  ;;  %v167_v7 = vld [vmem:[%s2960_s25 + $0x40] sm:$0xff]  ;;  %v169_v8 = vld [vmem:[%s2960_s25 + $0x48] sm:$0xff] }
  0x14   : > { %166 = vst [vmem:[%s2965_s26 + $0x38] sm:$0xff] %v165_v6  ;;  %168 = vst [vmem:[%s2965_s26 + $0x40] sm:$0xff] %v167_v7  ;;  %v171_v9 = vld [vmem:[%s2960_s25 + $0x54] sm:$0xff]  ;;  %v173_v10 = vld [vmem:[%s2960_s25 + $0x5c] sm:$0xff] }
  0x15   : > { %170 = vst [vmem:[%s2965_s26 + $0x48] sm:$0xff] %v169_v8  ;;  %v175_v11 = vld [vmem:[%s2960_s25 + $0x64] sm:$0xff]  ;;  %172 = vst [vmem:[%s2965_s26 + $0x54] sm:$0xff] %v171_v9  ;;  %v181_v14 = vld [vmem:[%s2960_s25 + $0xf0] sm:$0xff] }
  0x16   : > { %174 = vst [vmem:[%s2965_s26 + $0x5c] sm:$0xff] %v173_v10  ;;  %176 = vst [vmem:[%s2965_s26 + $0x64] sm:$0xff] %v175_v11  ;;  %v177_v12 = vld [vmem:[%s2960_s25 + $0xe0] sm:$0xff]  ;;  %v179_v13 = vld [vmem:[%s2960_s25 + $0xe8] sm:$0xff] }
  0x17   : > { %178 = vst [vmem:[%s2965_s26 + $0x70] sm:$0xff] %v177_v12  ;;  %180 = vst [vmem:[%s2965_s26 + $0x78] sm:$0xff] %v179_v13  ;;  %v183_v15 = vld [vmem:[%s2960_s25 + $0xfc] sm:$0xff]  ;;  %v185_v16 = vld [vmem:[%s2960_s25 + $0x104] sm:$0xff] }
  0x18   : > { %182 = vst [vmem:[%s2965_s26 + $0x80] sm:$0xff] %v181_v14  ;;  %v187_v17 = vld [vmem:[%s2960_s25 + $0x10c] sm:$0xff]  ;;  %184 = vst [vmem:[%s2965_s26 + $0x8c] sm:$0xff] %v183_v15  ;;  %v189_v18 = vld [vmem:[%s2960_s25 + $0x118] sm:$0xff] }
  0x19   : > { %186 = vst [vmem:[%s2965_s26 + $0x94] sm:$0xff] %v185_v16  ;;  %188 = vst [vmem:[%s2965_s26 + $0x9c] sm:$0xff] %v187_v17  ;;  %v191_v19 = vld [vmem:[%s2960_s25 + $0x120] sm:$0xff]  ;;  %v193_v20 = vld [vmem:[%s2960_s25 + $0x128] sm:$0xff] }
  0x1a   : > { %190 = vst [vmem:[%s2965_s26 + $0xa8] sm:$0xff] %v189_v18  ;;  %192 = vst [vmem:[%s2965_s26 + $0xb0] sm:$0xff] %v191_v19  ;;  %v195_v21 = vld [vmem:[%s2960_s25 + $0x134] sm:$0xff]  ;;  %v197_v22 = vld [vmem:[%s2960_s25 + $0x13c] sm:$0xff] }
  0x1b   : > { %194 = vst [vmem:[%s2965_s26 + $0xb8] sm:$0xff] %v193_v20  ;;  %v199_v23 = vld [vmem:[%s2960_s25 + $0x144] sm:$0xff]  ;;  %196 = vst [vmem:[%s2965_s26 + $0xc4] sm:$0xff] %v195_v21  ;;  %v205_v26 = vld [vmem:[%s2960_s25 + $0x1d0] sm:$0xff] }
  0x1c   : > { %198 = vst [vmem:[%s2965_s26 + $0xcc] sm:$0xff] %v197_v22  ;;  %200 = vst [vmem:[%s2965_s26 + $0xd4] sm:$0xff] %v199_v23  ;;  %v201_v24 = vld [vmem:[%s2960_s25 + $0x1c0] sm:$0xff]  ;;  %v203_v25 = vld [vmem:[%s2960_s25 + $0x1c8] sm:$0xff] }
  0x1d   : > { %202 = vst [vmem:[%s2965_s26 + $0xe0] sm:$0xff] %v201_v24  ;;  %204 = vst [vmem:[%s2965_s26 + $0xe8] sm:$0xff] %v203_v25  ;;  %v207_v27 = vld [vmem:[%s2960_s25 + $0x1dc] sm:$0xff]  ;;  %v209_v28 = vld [vmem:[%s2960_s25 + $0x1e4] sm:$0xff] }
  0x1e   : > { %206 = vst [vmem:[%s2965_s26 + $0xf0] sm:$0xff] %v205_v26  ;;  %v211_v29 = vld [vmem:[%s2960_s25 + $0x1ec] sm:$0xff]  ;;  %208 = vst [vmem:[%s2965_s26 + $0xfc] sm:$0xff] %v207_v27  ;;  %v213_v30 = vld [vmem:[%s2960_s25 + $0x1f8] sm:$0xff] }
  0x1f   : > { %210 = vst [vmem:[%s2965_s26 + $0x104] sm:$0xff] %v209_v28  ;;  %212 = vst [vmem:[%s2965_s26 + $0x10c] sm:$0xff] %v211_v29  ;;  %v215_v31 = vld [vmem:[%s2960_s25 + $0x200] sm:$0xff]  ;;  %v217_v32 = vld [vmem:[%s2960_s25 + $0x208] sm:$0xff] }
  0x20   : > { %214 = vst [vmem:[%s2965_s26 + $0x118] sm:$0xff] %v213_v30  ;;  %216 = vst [vmem:[%s2965_s26 + $0x120] sm:$0xff] %v215_v31  ;;  %v219_v33 = vld [vmem:[%s2960_s25 + $0x214] sm:$0xff]  ;;  %v221_v34 = vld [vmem:[%s2960_s25 + $0x21c] sm:$0xff] }
  0x21   : > { %218 = vst [vmem:[%s2965_s26 + $0x128] sm:$0xff] %v217_v32  ;;  %v223_v35 = vld [vmem:[%s2960_s25 + $0x224] sm:$0xff]  ;;  %220 = vst [vmem:[%s2965_s26 + $0x134] sm:$0xff] %v219_v33  ;;  %v229_v38 = vld [vmem:[%s2960_s25 + $0x2b0] sm:$0xff] }
  0x22   : > { %222 = vst [vmem:[%s2965_s26 + $0x13c] sm:$0xff] %v221_v34  ;;  %224 = vst [vmem:[%s2965_s26 + $0x144] sm:$0xff] %v223_v35  ;;  %v225_v36 = vld [vmem:[%s2960_s25 + $0x2a0] sm:$0xff]  ;;  %v227_v37 = vld [vmem:[%s2960_s25 + $0x2a8] sm:$0xff] }
  0x23   : > { %226 = vst [vmem:[%s2965_s26 + $0x150] sm:$0xff] %v225_v36  ;;  %228 = vst [vmem:[%s2965_s26 + $0x158] sm:$0xff] %v227_v37  ;;  %v231_v39 = vld [vmem:[%s2960_s25 + $0x2bc] sm:$0xff]  ;;  %v233_v40 = vld [vmem:[%s2960_s25 + $0x2c4] sm:$0xff] }
  0x24   : > { %230 = vst [vmem:[%s2965_s26 + $0x160] sm:$0xff] %v229_v38  ;;  %v235_v41 = vld [vmem:[%s2960_s25 + $0x2cc] sm:$0xff]  ;;  %232 = vst [vmem:[%s2965_s26 + $0x16c] sm:$0xff] %v231_v39  ;;  %v237_v42 = vld [vmem:[%s2960_s25 + $0x2d8] sm:$0xff] }
  0x25   : > { %234 = vst [vmem:[%s2965_s26 + $0x174] sm:$0xff] %v233_v40  ;;  %236 = vst [vmem:[%s2965_s26 + $0x17c] sm:$0xff] %v235_v41  ;;  %v239_v43 = vld [vmem:[%s2960_s25 + $0x2e0] sm:$0xff]  ;;  %v241_v44 = vld [vmem:[%s2960_s25 + $0x2e8] sm:$0xff] }
  0x26   : > { %238 = vst [vmem:[%s2965_s26 + $0x188] sm:$0xff] %v237_v42  ;;  %240 = vst [vmem:[%s2965_s26 + $0x190] sm:$0xff] %v239_v43  ;;  %v243_v45 = vld [vmem:[%s2960_s25 + $0x2f4] sm:$0xff]  ;;  %v245_v46 = vld [vmem:[%s2960_s25 + $0x2fc] sm:$0xff] }
  0x27   : > { %242 = vst [vmem:[%s2965_s26 + $0x198] sm:$0xff] %v241_v44  ;;  %v247_v47 = vld [vmem:[%s2960_s25 + $0x304] sm:$0xff]  ;;  %244 = vst [vmem:[%s2965_s26 + $0x1a4] sm:$0xff] %v243_v45  ;;  %v2046_v48 = vld [vmem:[%s2960_s25 + $0x18] sm:$0xf] }
  0x28   : > { %246 = vst [vmem:[%s2965_s26 + $0x1ac] sm:$0xff] %v245_v46  ;;  %248 = vst [vmem:[%s2965_s26 + $0x1b4] sm:$0xff] %v247_v47  ;;  %v2048_v49 = vld [vmem:[%s2960_s25 + $0x34] sm:$0xf]  ;;  %v2050_v50 = vld [vmem:[%s2960_s25 + $0x50] sm:$0xf] }
  0x29   : > { %2047 = vst [vmem:[%s2965_s26 + $0x18] sm:$0xf] %v2046_v48  ;;  %2049 = vst [vmem:[%s2965_s26 + $0x34] sm:$0xf] %v2048_v49  ;;  %v2052_v51 = vld [vmem:[%s2960_s25 + $0x6c] sm:$0xf] }
  0x2a   : > { %2051 = vst [vmem:[%s2965_s26 + $0x50] sm:$0xf] %v2050_v50  ;;  %v2054_v52 = vld [vmem:[%s2960_s25 + $0xf8] sm:$0xf]  ;;  %v2056_v53 = vld [vmem:[%s2960_s25 + $0x114] sm:$0xf] }
  0x2b   : > { %2053 = vst [vmem:[%s2965_s26 + $0x6c] sm:$0xf] %v2052_v51  ;;  %2055 = vst [vmem:[%s2965_s26 + $0x88] sm:$0xf] %v2054_v52  ;;  %v2058_v54 = vld [vmem:[%s2960_s25 + $0x130] sm:$0xf] }
  0x2c   : > { %2057 = vst [vmem:[%s2965_s26 + $0xa4] sm:$0xf] %v2056_v53  ;;  %v2060_v55 = vld [vmem:[%s2960_s25 + $0x14c] sm:$0xf]  ;;  %v2062_v56 = vld [vmem:[%s2960_s25 + $0x1d8] sm:$0xf] }
  0x2d   : > { %2059 = vst [vmem:[%s2965_s26 + $0xc0] sm:$0xf] %v2058_v54  ;;  %2061 = vst [vmem:[%s2965_s26 + $0xdc] sm:$0xf] %v2060_v55  ;;  %v2064_v57 = vld [vmem:[%s2960_s25 + $0x1f4] sm:$0xf] }
  0x2e   : > { %2063 = vst [vmem:[%s2965_s26 + $0xf8] sm:$0xf] %v2062_v56  ;;  %v2066_v58 = vld [vmem:[%s2960_s25 + $0x210] sm:$0xf]  ;;  %v2068_v59 = vld [vmem:[%s2960_s25 + $0x22c] sm:$0xf] }
  0x2f   : > { %2065 = vst [vmem:[%s2965_s26 + $0x114] sm:$0xf] %v2064_v57  ;;  %2067 = vst [vmem:[%s2965_s26 + $0x130] sm:$0xf] %v2066_v58  ;;  %v2070_v60 = vld [vmem:[%s2960_s25 + $0x2b8] sm:$0xf] }
  0x30   : > { %2069 = vst [vmem:[%s2965_s26 + $0x14c] sm:$0xf] %v2068_v59  ;;  %v2072_v61 = vld [vmem:[%s2960_s25 + $0x2d4] sm:$0xf]  ;;  %v2074_v62 = vld [vmem:[%s2960_s25 + $0x2f0] sm:$0xf] }
  0x31   : > { %2071 = vst [vmem:[%s2965_s26 + $0x168] sm:$0xf] %v2070_v60  ;;  %2073 = vst [vmem:[%s2965_s26 + $0x184] sm:$0xf] %v2072_v61  ;;  %v2076_v63 = vld [vmem:[%s2960_s25 + $0x30c] sm:$0xf] }
  0x32   : > { %2075 = vst [vmem:[%s2965_s26 + $0x1a0] sm:$0xf] %v2074_v62  ;;  %2077 = vst [vmem:[%s2965_s26 + $0x1bc] sm:$0xf] %v2076_v63 }
  0x33 PF: > { %p2078_p5 = scmp.ge.s32.totalorder %s2904_s14, 1  ;;  %p293_p6 = scmp.lt.s32.totalorder %s2904_s14, 3 }
  0x35   : > { %p294_p7 = pnand %p2078_p5, %p293_p6 }
  0x36   : > { %s300_s29 = sand.u32 (!%p294_p7), 1, %s2896_s12  }
  0x37   : > { %297 = sbr.rel (%p294_p7) target bundleno = 537 (0x219), region = 54 }
  0x38   : > { %s2721_s12 = smul.u32 (!%p294_p7), 448, %s300_s29 }
  0x3a   : > { %s3280_s27 = scalar_lea.vmem (!%p294_p7), [#allocation2], %s2721_s12 }
  0x3c   : > { %v3097_v0 = vld [vmem:[%s3760_s1 + $0x78] sm:$0xff]   ;;  %v3120_v4 = vld [vmem:[%s3760_s1 + $0x70] sm:$0xff]   ;;  %v3144_v8 = vld [vmem:[%s3760_s1 + $0x68] sm:$0xff]  }
  0x3d   : > { %v3102_v1 = vld [vmem:[%s3760_s1 + $0x38] sm:$0xff]   ;;  %2263 = vmatprep.subr.bf16.mxu0 %v3097_v0  ;;  %v3126_v5 = vld [vmem:[%s3760_s1 + $0x30] sm:$0xff]   ;;  %v3150_v9 = vld [vmem:[%s3760_s1 + $0x28] sm:$0xff]  }
  0x3e   : > { %v3108_v2 = vld [vmem:[%s3760_s1 + $0xf8] sm:$0xff]   ;;  %2264 = vmatpush3.bf16.msra.mxu0 %v3102_v1  ;;  %v3132_v6 = vld [vmem:[%s3760_s1 + $0xf0] sm:$0xff]   ;;  %v3156_v10 = vld [vmem:[%s3760_s1 + $0xe8] sm:$0xff]  }
  0x3f   : > { %v3114_v3 = vld [vmem:[%s3760_s1 + $0xb8] sm:$0xff]   ;;  %2291 = vmatprep.subr.bf16.mxu1 %v3108_v2  ;;  %2265 = vmatprep.subr.bf16.mxu0 %v3120_v4  ;;  %v3138_v7 = vld [vmem:[%s3760_s1 + $0xb0] sm:$0xff]   ;;  %v3162_v11 = vld [vmem:[%s3760_s1 + $0xa8] sm:$0xff]  }
  0x40   : > { %2292 = vmatpush3.bf16.msra.mxu1 %v3114_v3  ;;  %v3168_v12 = vld [vmem:[%s3760_s1 + $0x60] sm:$0xff]   ;;  %v3192_v16 = vld [vmem:[%s3760_s1 + $0x58] sm:$0xff]   ;;  %v3216_v20 = vld [vmem:[%s3760_s1 + $0x50] sm:$0xff]  }
  0x41   : > { %2293 = vmatprep.subr.bf16.mxu1 %v3132_v6  ;;  %v3174_v13 = vld [vmem:[%s3760_s1 + $0x20] sm:$0xff]   ;;  %v3198_v17 = vld [vmem:[%s3760_s1 + $0x18] sm:$0xff]   ;;  %v3222_v21 = vld [vmem:[%s3760_s1 + $0x10] sm:$0xff]  }
  0x42   : > { %2266 = vmatpush3.bf16.msra.mxu0 %v3126_v5  ;;  %v3180_v14 = vld [vmem:[%s3760_s1 + $0xe0] sm:$0xff]   ;;  %v3204_v18 = vld [vmem:[%s3760_s1 + $0xd8] sm:$0xff]   ;;  %v3229_v22 = vld [vmem:[%s3760_s1 + $0xd0] sm:$0xff]  }
  0x43   : > { %2267 = vmatprep.subr.bf16.mxu0 %v3144_v8  ;;  %v3186_v15 = vld [vmem:[%s3760_s1 + $0xa0] sm:$0xff]   ;;  %v3210_v19 = vld [vmem:[%s3760_s1 + $0x98] sm:$0xff]   ;;  %v3235_v23 = vld [vmem:[%s3760_s1 + $0x90] sm:$0xff]  }
  0x44   : > { %2294 = vmatpush3.bf16.msra.mxu1 %v3138_v7  ;;  %v3241_v24 = vld [vmem:[%s3760_s1 + $0x48] sm:$0xff]   ;;  %v3265_v28 = vld [vmem:[%s3760_s1 + $0x40] sm:$0xff]   ;;  %v3293_v34 = vld [vmem:[%s3760_s1 + $0x178] sm:$0xff]  }
  0x45   : > { %2295 = vmatprep.subr.bf16.mxu1 %v3156_v10  ;;  %v3247_v25 = vld [vmem:[%s3760_s1 + $0x8] sm:$0xff]   ;;  %v3271_v29 = vld [vmem:[%s3760_s1] sm:$0xff]   ;;  %v3302_v37 = vld [vmem:[%s3760_s1 + $0x138] sm:$0xff]  }
  0x46   : > { %2268 = vmatpush3.bf16.msra.mxu0 %v3150_v9  ;;  %v3253_v26 = vld [vmem:[%s3760_s1 + $0xc8] sm:$0xff]   ;;  %v3277_v30 = vld [vmem:[%s3760_s1 + $0xc0] sm:$0xff]   ;;  %v3307_v38 = vld [vmem:[%s3760_s1 + $0x1b8] sm:$0xff]  }
  0x47   : > { %2269 = vmatprep.subr.bf16.mxu0 %v3168_v12  ;;  %v3259_v27 = vld [vmem:[%s3760_s1 + $0x88] sm:$0xff]   ;;  %v2777_v31 = vld [vmem:[%s3280_s27] ss:$28 sps:$4 sm:$0xff]   ;;  %v3313_v39 = vld [vmem:[%s3760_s1 + $0x170] sm:$0xff]  }
  0x48   : > { %2296 = vmatpush3.bf16.msra.mxu1 %v3162_v11  ;;  %v2779_v32 = vld [vmem:[%s3280_s27 + $0x4] ss:$28 sps:$4 sm:$0xff]   ;;  %v2784_v36 = vld [vmem:[%s3280_s27 + $0xc] ss:$28 sps:$4 sm:$0xff]   ;;  %v3319_v40 = vld [vmem:[%s3760_s1 + $0x130] sm:$0xff]  }
  0x49   : > { %2297 = vmatprep.subr.bf16.mxu1 %v3180_v14  ;;  %v3288_v33 = vld [vmem:[%s3760_s1 + $0x80] sm:$0xff]   ;;  %906 = vmatprep.mubr.bf16.mxu0 %v2779_v32  ;;  %v3326_v41 = vld [vmem:[%s3760_s1 + $0x1b0] sm:$0xff]   ;;  %v3331_v42 = vld [vmem:[%s3760_s1 + $0x168] sm:$0xff]  }
  0x4a   : > { %2270 = vmatpush3.bf16.msra.mxu0 %v3174_v13  ;;  %v2782_v35 = vld [vmem:[%s3280_s27 + $0x8] ss:$28 sps:$4 sm:$0xff]   ;;  %955 = vmatprep.mubr.bf16.mxu1 %v2784_v36  ;;  %v3368_v48 = vld [vmem:[%s3760_s1 + $0x158] sm:$0xff]   ;;  %v3391_v54 = vld [vmem:[%s3760_s1 + $0x150] sm:$0xff]  }
  0x4b   : > { %2271 = vmatprep.subr.bf16.mxu0 %v3192_v16  ;;  %v3338_v43 = vld [vmem:[%s3760_s1 + $0x128] sm:$0xff]   ;;  %v3350_v45 = vld [vmem:[%s3760_s1 + $0x160] sm:$0xff]   ;;  %v3374_v49 = vld [vmem:[%s3760_s1 + $0x118] sm:$0xff]  }
  0x4c   : > { %2298 = vmatpush3.bf16.msra.mxu1 %v3186_v15  ;;  %v3344_v44 = vld [vmem:[%s3760_s1 + $0x1a8] sm:$0xff]   ;;  %v3356_v46 = vld [vmem:[%s3760_s1 + $0x120] sm:$0xff]   ;;  %v2798_v50 = vld [vmem:[%s3280_s27 + $0x3c] ss:$28 sps:$4 sm:$0xff]  }
  0x4d   : > { %2299 = vmatprep.subr.bf16.mxu1 %v3204_v18  ;;  %v3362_v47 = vld [vmem:[%s3760_s1 + $0x1a0] sm:$0xff]   ;;  %v3382_v51 = vld [vmem:[%s3760_s1 + $0x198] sm:$0xff]   ;;  %v3399_v56 = vld [vmem:[%s3760_s1 + $0x110] sm:$0xff]  }
  0x4e   : > { %2272 = vmatpush3.bf16.msra.mxu0 %v3198_v17  ;;  %v2801_v52 = vld [vmem:[%s3280_s27 + $0x38] ss:$28 sps:$4 sm:$0xff]   ;;  %v2802_v53 = vld [vmem:[%s3280_s27 + $0x44] ss:$28 sps:$4 sm:$0xff]   ;;  %v3411_v58 = vld [vmem:[%s3760_s1 + $0x148] sm:$0xff]  }
  0x4f   : > { %2273 = vmatprep.subr.bf16.mxu0 %v3216_v20  ;;  %v2805_v55 = vld [vmem:[%s3280_s27 + $0x40] ss:$28 sps:$4 sm:$0xff]   ;;  %v3405_v57 = vld [vmem:[%s3760_s1 + $0x190] sm:$0xff]   ;;  %v3417_v59 = vld [vmem:[%s3760_s1 + $0x108] sm:$0xff]  }
  0x50   : > { %2300 = vmatpush3.bf16.msra.mxu1 %v3210_v19  ;;  %v3423_v60 = vld [vmem:[%s3760_s1 + $0x188] sm:$0xff]   ;;  %v3429_v61 = vld [vmem:[%s3760_s1 + $0x140] sm:$0xff]   ;;  %v2817_v32 = vld [vmem:[%s3280_s27 + $0x18] ss:$28 sps:$4 sm:$0xff]  }
  0x51   : > { %2301 = vmatprep.subr.bf16.mxu1 %v3229_v22  ;;  %v3436_v62 = vld [vmem:[%s3760_s1 + $0x180] sm:$0xff]   ;;  %v2819_v36 = vld [vmem:[%s3280_s27 + $0x4c] ss:$28 sps:$4 sm:$0xff]  }
  0x52   : > { %2274 = vmatpush3.bf16.msra.mxu0 %v3222_v21  ;;  %v3442_v63 = vld [vmem:[%s3760_s1 + $0x100] sm:$0xff]  }
  0x53   : > { %2275 = vmatprep.subr.bf16.mxu0 %v3241_v24 }
  0x54   : > { %2302 = vmatpush3.bf16.msra.mxu1 %v3235_v23 }
  0x55   : > { %2303 = vmatprep.subr.bf16.mxu1 %v3253_v26 }
  0x56   : > { %2276 = vmatpush3.bf16.msra.mxu0 %v3247_v25 }
  0x57   : > { %2277 = vmatprep.subr.bf16.mxu0 %v3265_v28 }
  0x58   : > { %2304 = vmatpush3.bf16.msra.mxu1 %v3259_v27 }
  0x59   : > { %2305 = vmatprep.subr.bf16.mxu1 %v3277_v30 }
  0x5a   : > { %2278 = vmatpush3.bf16.msra.mxu0 %v3271_v29 }
  0x5b   : > { %2319 = vmatprep.subr.bf16.mxu0 %v3293_v34 }
  0x5c   : > { %2306 = vmatpush3.bf16.msra.mxu1 %v3288_v33 }
  0x5d   : > { %907 = vmatmul.mubr.bf16.vlgmr.msra.gmra.mxu0 %v2777_v31  ;;  %2639 = vmatprep.subr.bf16.mxu1 %v3307_v38  ;;  %v2816_v31 = vld [vmem:[%s3280_s27 + $0x14] ss:$28 sps:$4 sm:$0xff]  }
  0x5e   : > { %2320 = vmatpush3.bf16.msra.mxu0 %v3302_v37  ;;  %914 = vmatprep.mubr.bf16.mxu0 %v2798_v50  ;;  %v2818_v50 = vld [vmem:[%s3280_s27 + $0x50] ss:$28 sps:$4 sm:$0xff]  }
  0x5f   : > { %956 = vmatmul.mubr.bf16.vlgmr.msra.gmra.mxu1 %v2782_v35  ;;  %2321 = vmatprep.subr.bf16.mxu0 %v3313_v39  ;;  %v2814_v35 = vld [vmem:[%s3280_s27 + $0x10] ss:$28 sps:$4 sm:$0xff]  }
  0x60   : > { %2640 = vmatpush3.bf16.msra.mxu1 %v3307_v38  ;;  %963 = vmatprep.mubr.bf16.mxu1 %v2802_v53  ;;  %v2821_v53 = vld [vmem:[%s3280_s27 + $0x48] ss:$28 sps:$4 sm:$0xff]  }
  0x61   : > { %2641 = vmatprep.subr.bf16.mxu1 %v3326_v41 }
  0x62   : > { %2322 = vmatpush3.bf16.msra.mxu0 %v3319_v40 }
  0x63   : > { %2323 = vmatprep.subr.bf16.mxu0 %v3331_v42 }
  0x64   : > { %2642 = vmatpush3.bf16.msra.mxu1 %v3326_v41 }
  0x65   : > { %2643 = vmatprep.subr.bf16.mxu1 %v3344_v44  ;;  %915 = vmatmul.mubr.bf16.gmra.mxu0 %v2801_v52  ;;  %v2827_v52 = vld [vmem:[%s3280_s27 + $0x7c] ss:$28 sps:$4 sm:$0xff]  }
  0x66   : > { %2324 = vmatpush3.bf16.msra.mxu0 %v3338_v43  ;;  %1004 = vmatprep.mubr.bf16.mxu0 %v2816_v31  ;;  %v2822_v31 = vld [vmem:[%s3280_s27 + $0x70] ss:$28 sps:$4 sm:$0xff]  }
  0x67   : > { %2325 = vmatprep.subr.bf16.mxu0 %v3350_v45  ;;  %964 = vmatmul.mubr.bf16.gmra.mxu1 %v2805_v55  ;;  %v2824_v55 = vld [vmem:[%s3280_s27 + $0x74] ss:$28 sps:$4 sm:$0xff]  }
  0x68   : > { %2644 = vmatpush3.bf16.msra.mxu1 %v3344_v44  ;;  %2655 = vmatprep.mubr.bf16.mxu1 %v2817_v32  ;;  %v2828_v32 = vld [vmem:[%s3280_s27 + $0xac] ss:$28 sps:$4 sm:$0xff]  }
  0x69   : > { %2645 = vmatprep.subr.bf16.mxu1 %v3362_v47 }
  0x6a   : > { %2326 = vmatpush3.bf16.msra.mxu0 %v3356_v46 }
  0x6b   : > { %2327 = vmatprep.subr.bf16.mxu0 %v3368_v48 }
  0x6c   : > { %2646 = vmatpush3.bf16.msra.mxu1 %v3362_v47 }
  0x6d   : > { %2647 = vmatprep.subr.bf16.mxu1 %v3382_v51 }
  0x6e   : > { %2328 = vmatpush3.bf16.msra.mxu0 %v3374_v49 }
  0x6f   : > { %2329 = vmatprep.subr.bf16.mxu0 %v3391_v54 }
  0x70   : > { %2648 = vmatpush3.bf16.msra.mxu1 %v3382_v51 }
  0x71   : > { %2649 = vmatprep.subr.bf16.mxu1 %v3405_v57 }
  0x72   : > { %2330 = vmatpush3.bf16.msra.mxu0 %v3399_v56 }
  0x73   : > { %2331 = vmatprep.subr.bf16.mxu0 %v3411_v58 }
  0x74   : > { %2650 = vmatpush3.bf16.msra.mxu1 %v3405_v57 }
  0x75   : > { %2651 = vmatprep.subr.bf16.mxu1 %v3423_v60 }
  0x76   : > { %2332 = vmatpush3.bf16.msra.mxu0 %v3417_v59 }
  0x77   : > { %2333 = vmatprep.subr.bf16.mxu0 %v3429_v61 }
  0x78   : > { %2652 = vmatpush3.bf16.msra.mxu1 %v3423_v60 }
  0x79   : > { %2653 = vmatprep.subr.bf16.mxu1 %v3436_v62 }
  0x7a   : > { %2334 = vmatpush3.bf16.msra.mxu0 %v3442_v63 }
  0x7b   : > { %2357 = vmatprep.subr.bf16.mxu0 %v3097_v0 }
  0x7c   : > { %2654 = vmatpush3.bf16.msra.mxu1 %v3436_v62 }
  0x7d   : > { %1005 = vmatmul.mubr.bf16.vlgmr.msra.gmra.mxu0 %v2814_v35  ;;  %2385 = vmatprep.subr.bf16.mxu1 %v3108_v2  ;;  %v2825_v35 = vld [vmem:[%s3280_s27 + $0x78] ss:$28 sps:$4 sm:$0xff]  }
  0x7e   : > { %2358 = vmatpush3.bf16.msra.mxu0 %v3102_v1  ;;  %1012 = vmatprep.mubr.bf16.mxu0 %v2819_v36  ;;  %v2831_v36 = vld [vmem:[%s3280_s27 + $0xb4] ss:$28 sps:$4 sm:$0xff]  }
  0x7f   : > { %2656 = vmatmul.mubr.bf16.vlgmr.msra.gmra.mxu1 %v2818_v50  ;;  %2359 = vmatprep.subr.bf16.mxu0 %v3120_v4  ;;  %v2830_v50 = vld [vmem:[%s3280_s27 + $0xa8] ss:$28 sps:$4 sm:$0xff]  }
  0x80   : > { %2386 = vmatpush3.bf16.msra.mxu1 %v3114_v3  ;;  %1244 = vmatprep.mubr.bf16.mxu1 %v2827_v52  ;;  %v2836_v52 = vld [vmem:[%s3280_s27 + $0x84] ss:$28 sps:$4 sm:$0xff]  }
  0x81   : > { %2387 = vmatprep.subr.bf16.mxu1 %v3132_v6 }
  0x82   : > { %2360 = vmatpush3.bf16.msra.mxu0 %v3126_v5 }
  0x83   : > { %2361 = vmatprep.subr.bf16.mxu0 %v3144_v8 }
  0x84   : > { %2388 = vmatpush3.bf16.msra.mxu1 %v3138_v7 }
  0x85   : > { %1013 = vmatmul.mubr.bf16.gmra.mxu0 %v2821_v53  ;;  %2389 = vmatprep.subr.bf16.mxu1 %v3156_v10  ;;  %v2833_v53 = vld [vmem:[%s3280_s27 + $0xb0] ss:$28 sps:$4 sm:$0xff]  }
  0x86   : > { %2362 = vmatpush3.bf16.msra.mxu0 %v3150_v9  ;;  %1195 = vmatprep.mubr.bf16.mxu0 %v2824_v55  ;;  %v2837_v55 = vld [vmem:[%s3280_s27 + $0x88] ss:$28 sps:$4 sm:$0xff]  }
  0x87   : > { %2363 = vmatprep.subr.bf16.mxu0 %v3168_v12 }
  0x88   : > { %2390 = vmatpush3.bf16.msra.mxu1 %v3162_v11 }
  0x89   : > { %2391 = vmatprep.subr.bf16.mxu1 %v3180_v14 }
  0x8a   : > { %2364 = vmatpush3.bf16.msra.mxu0 %v3174_v13 }
  0x8b   : > { %2365 = vmatprep.subr.bf16.mxu0 %v3192_v16 }
  0x8c   : > { %2392 = vmatpush3.bf16.msra.mxu1 %v3186_v15 }
  0x8d   : > { %2393 = vmatprep.subr.bf16.mxu1 %v3204_v18 }
  0x8e   : > { %2366 = vmatpush3.bf16.msra.mxu0 %v3198_v17 }
  0x8f   : > { %2367 = vmatprep.subr.bf16.mxu0 %v3216_v20 }
  0x90   : > { %2394 = vmatpush3.bf16.msra.mxu1 %v3210_v19 }
  0x91   : > { %2395 = vmatprep.subr.bf16.mxu1 %v3229_v22 }
  0x92   : > { %2368 = vmatpush3.bf16.msra.mxu0 %v3222_v21 }
  0x93   : > { %2369 = vmatprep.subr.bf16.mxu0 %v3241_v24 }
  0x94   : > { %2396 = vmatpush3.bf16.msra.mxu1 %v3235_v23 }
  0x95   : > { %2397 = vmatprep.subr.bf16.mxu1 %v3253_v26 }
  0x96   : > { %2370 = vmatpush3.bf16.msra.mxu0 %v3247_v25 }
  0x97   : > { %2371 = vmatprep.subr.bf16.mxu0 %v3265_v28 }
  0x98   : > { %2398 = vmatpush3.bf16.msra.mxu1 %v3259_v27 }
  0x99   : > { %2399 = vmatprep.subr.bf16.mxu1 %v3277_v30 }
  0x9a   : > { %2372 = vmatpush3.bf16.msra.mxu0 %v3271_v29 }
  0x9b   : > { %2413 = vmatprep.subr.bf16.mxu0 %v3293_v34 }
  0x9c   : > { %2400 = vmatpush3.bf16.msra.mxu1 %v3288_v33 }
  0x9d   : > { %1196 = vmatmul.mubr.bf16.vlgmr.msra.gmra.mxu0 %v2822_v31  ;;  %2659 = vmatprep.subr.bf16.mxu1 %v3307_v38  ;;  %v2834_v31 = vld [vmem:[%s3280_s27 + $0x80] ss:$28 sps:$4 sm:$0xff]  }
  0x9e   : > { %2414 = vmatpush3.bf16.msra.mxu0 %v3302_v37  ;;  %1203 = vmatprep.mubr.bf16.mxu0 %v2828_v32  ;;  %v2839_v32 = vld [vmem:[%s3280_s27 + $0xbc] ss:$28 sps:$4 sm:$0xff]  }
  0x9f   : > { %1245 = vmatmul.mubr.bf16.vlgmr.msra.gmra.mxu1 %v2825_v35  ;;  %2415 = vmatprep.subr.bf16.mxu0 %v3313_v39  ;;  %v2838_v35 = vld [vmem:[%s3280_s27 + $0xc0] ss:$28 sps:$4 sm:$0xff]  }
  0xa0   : > { %2660 = vmatpush3.bf16.msra.mxu1 %v3307_v38  ;;  %1252 = vmatprep.mubr.bf16.mxu1 %v2831_v36  ;;  %v2847_v36 = vld [vmem:[%s3280_s27 + $0xec] ss:$28 sps:$4 sm:$0xff]  }
  0xa1   : > { %2661 = vmatprep.subr.bf16.mxu1 %v3326_v41 }
  0xa2   : > { %2416 = vmatpush3.bf16.msra.mxu0 %v3319_v40 }
  0xa3   : > { %2417 = vmatprep.subr.bf16.mxu0 %v3331_v42 }
  0xa4   : > { %2662 = vmatpush3.bf16.msra.mxu1 %v3326_v41 }
  0xa5   : > { %2663 = vmatprep.subr.bf16.mxu1 %v3344_v44  ;;  %1204 = vmatmul.mubr.bf16.gmra.mxu0 %v2830_v50  ;;  %v2841_v50 = vld [vmem:[%s3280_s27 + $0xb8] ss:$28 sps:$4 sm:$0xff]  }
  0xa6   : > { %2418 = vmatpush3.bf16.msra.mxu0 %v3338_v43  ;;  %1293 = vmatprep.mubr.bf16.mxu0 %v2836_v52  ;;  %v2844_v52 = vld [vmem:[%s3280_s27 + $0xe4] ss:$28 sps:$4 sm:$0xff]  }
  0xa7   : > { %2419 = vmatprep.subr.bf16.mxu0 %v3350_v45  ;;  %1253 = vmatmul.mubr.bf16.gmra.mxu1 %v2833_v53  ;;  %v2842_v53 = vld [vmem:[%s3280_s27 + $0xe0] ss:$28 sps:$4 sm:$0xff]  }
  0xa8   : > { %2664 = vmatpush3.bf16.msra.mxu1 %v3344_v44  ;;  %2675 = vmatprep.mubr.bf16.mxu1 %v2837_v55  ;;  %v2848_v55 = vld [vmem:[%s3280_s27 + $0x11c] ss:$28 sps:$4 sm:$0xff]  }
  0xa9   : > { %2665 = vmatprep.subr.bf16.mxu1 %v3362_v47 }
  0xaa   : > { %2420 = vmatpush3.bf16.msra.mxu0 %v3356_v46 }
  0xab   : > { %2421 = vmatprep.subr.bf16.mxu0 %v3368_v48 }
  0xac   : > { %2666 = vmatpush3.bf16.msra.mxu1 %v3362_v47 }
  0xad   : > { %2667 = vmatprep.subr.bf16.mxu1 %v3382_v51 }
  0xae   : > { %2422 = vmatpush3.bf16.msra.mxu0 %v3374_v49 }
  0xaf   : > { %2423 = vmatprep.subr.bf16.mxu0 %v3391_v54 }
  0xb0   : > { %2668 = vmatpush3.bf16.msra.mxu1 %v3382_v51 }
  0xb1   : > { %2669 = vmatprep.subr.bf16.mxu1 %v3405_v57 }
  0xb2   : > { %2424 = vmatpush3.bf16.msra.mxu0 %v3399_v56 }
  0xb3   : > { %2425 = vmatprep.subr.bf16.mxu0 %v3411_v58 }
  0xb4   : > { %2670 = vmatpush3.bf16.msra.mxu1 %v3405_v57 }
  0xb5   : > { %2671 = vmatprep.subr.bf16.mxu1 %v3423_v60 }
  0xb6   : > { %2426 = vmatpush3.bf16.msra.mxu0 %v3417_v59 }
  0xb7   : > { %2427 = vmatprep.subr.bf16.mxu0 %v3429_v61 }
  0xb8   : > { %2672 = vmatpush3.bf16.msra.mxu1 %v3423_v60 }
  0xb9   : > { %2673 = vmatprep.subr.bf16.mxu1 %v3436_v62 }
  0xba   : > { %2428 = vmatpush3.bf16.msra.mxu0 %v3442_v63 }
  0xbb   : > { %2451 = vmatprep.subr.bf16.mxu0 %v3097_v0 }
  0xbc   : > { %2674 = vmatpush3.bf16.msra.mxu1 %v3436_v62 }
  0xbd   : > { %1294 = vmatmul.mubr.bf16.vlgmr.msra.gmra.mxu0 %v2834_v31  ;;  %2479 = vmatprep.subr.bf16.mxu1 %v3108_v2  ;;  %v2845_v31 = vld [vmem:[%s3280_s27 + $0xe8] ss:$28 sps:$4 sm:$0xff]  }
  0xbe   : > { %2452 = vmatpush3.bf16.msra.mxu0 %v3102_v1  ;;  %1301 = vmatprep.mubr.bf16.mxu0 %v2839_v32  ;;  %v2851_v32 = vld [vmem:[%s3280_s27 + $0x124] ss:$28 sps:$4 sm:$0xff]  }
  0xbf   : > { %2676 = vmatmul.mubr.bf16.vlgmr.msra.gmra.mxu1 %v2838_v35  ;;  %2453 = vmatprep.subr.bf16.mxu0 %v3120_v4  ;;  %v2850_v35 = vld [vmem:[%s3280_s27 + $0x118] ss:$28 sps:$4 sm:$0xff]  }
  0xc0   : > { %2480 = vmatpush3.bf16.msra.mxu1 %v3114_v3  ;;  %1537 = vmatprep.mubr.bf16.mxu1 %v2847_v36  ;;  %v2856_v36 = vld [vmem:[%s3280_s27 + $0xf4] ss:$28 sps:$4 sm:$0xff]  }
  0xc1   : > { %2481 = vmatprep.subr.bf16.mxu1 %v3132_v6 }
  0xc2   : > { %2454 = vmatpush3.bf16.msra.mxu0 %v3126_v5 }
  0xc3   : > { %2455 = vmatprep.subr.bf16.mxu0 %v3144_v8 }
  0xc4   : > { %2482 = vmatpush3.bf16.msra.mxu1 %v3138_v7 }
  0xc5   : > { %1302 = vmatmul.mubr.bf16.gmra.mxu0 %v2841_v50  ;;  %2483 = vmatprep.subr.bf16.mxu1 %v3156_v10  ;;  %v2853_v50 = vld [vmem:[%s3280_s27 + $0x120] ss:$28 sps:$4 sm:$0xff]  }
  0xc6   : > { %2456 = vmatpush3.bf16.msra.mxu0 %v3150_v9  ;;  %1488 = vmatprep.mubr.bf16.mxu0 %v2844_v52  ;;  %v2857_v52 = vld [vmem:[%s3280_s27 + $0xf8] ss:$28 sps:$4 sm:$0xff]  }
  0xc7   : > { %2457 = vmatprep.subr.bf16.mxu0 %v3168_v12 }
  0xc8   : > { %2484 = vmatpush3.bf16.msra.mxu1 %v3162_v11 }
  0xc9   : > { %2485 = vmatprep.subr.bf16.mxu1 %v3180_v14 }
  0xca   : > { %2458 = vmatpush3.bf16.msra.mxu0 %v3174_v13 }
  0xcb   : > { %2459 = vmatprep.subr.bf16.mxu0 %v3192_v16 }
  0xcc   : > { %2486 = vmatpush3.bf16.msra.mxu1 %v3186_v15 }
  0xcd   : > { %2487 = vmatprep.subr.bf16.mxu1 %v3204_v18 }
  0xce   : > { %2460 = vmatpush3.bf16.msra.mxu0 %v3198_v17 }
  0xcf   : > { %2461 = vmatprep.subr.bf16.mxu0 %v3216_v20 }
  0xd0   : > { %2488 = vmatpush3.bf16.msra.mxu1 %v3210_v19 }
  0xd1   : > { %2489 = vmatprep.subr.bf16.mxu1 %v3229_v22 }
  0xd2   : > { %2462 = vmatpush3.bf16.msra.mxu0 %v3222_v21 }
  0xd3   : > { %2463 = vmatprep.subr.bf16.mxu0 %v3241_v24 }
  0xd4   : > { %2490 = vmatpush3.bf16.msra.mxu1 %v3235_v23 }
  0xd5   : > { %2491 = vmatprep.subr.bf16.mxu1 %v3253_v26 }
  0xd6   : > { %2464 = vmatpush3.bf16.msra.mxu0 %v3247_v25 }
  0xd7   : > { %2465 = vmatprep.subr.bf16.mxu0 %v3265_v28 }
  0xd8   : > { %2492 = vmatpush3.bf16.msra.mxu1 %v3259_v27 }
  0xd9   : > { %2493 = vmatprep.subr.bf16.mxu1 %v3277_v30 }
  0xda   : > { %2466 = vmatpush3.bf16.msra.mxu0 %v3271_v29 }
  0xdb   : > { %2507 = vmatprep.subr.bf16.mxu0 %v3293_v34 }
  0xdc   : > { %2494 = vmatpush3.bf16.msra.mxu1 %v3288_v33 }
  0xdd   : > { %1489 = vmatmul.mubr.bf16.vlgmr.msra.gmra.mxu0 %v2842_v53  ;;  %2679 = vmatprep.subr.bf16.mxu1 %v3307_v38  ;;  %v2854_v53 = vld [vmem:[%s3280_s27 + $0xf0] ss:$28 sps:$4 sm:$0xff]  }
  0xde   : > { %2508 = vmatpush3.bf16.msra.mxu0 %v3302_v37  ;;  %1496 = vmatprep.mubr.bf16.mxu0 %v2848_v55  ;;  %v2859_v55 = vld [vmem:[%s3280_s27 + $0x12c] ss:$28 sps:$4 sm:$0xff]  }
  0xdf   : > { %1538 = vmatmul.mubr.bf16.vlgmr.msra.gmra.mxu1 %v2845_v31  ;;  %2509 = vmatprep.subr.bf16.mxu0 %v3313_v39  ;;  %v2858_v31 = vld [vmem:[%s3280_s27 + $0x130] ss:$28 sps:$4 sm:$0xff]  }
  0xe0   : > { %2680 = vmatpush3.bf16.msra.mxu1 %v3307_v38  ;;  %1545 = vmatprep.mubr.bf16.mxu1 %v2851_v32  ;;  %v2867_v32 = vld [vmem:[%s3280_s27 + $0x15c] ss:$28 sps:$4 sm:$0xff]  }
  0xe1   : > { %2681 = vmatprep.subr.bf16.mxu1 %v3326_v41 }
  0xe2   : > { %2510 = vmatpush3.bf16.msra.mxu0 %v3319_v40 }
  0xe3   : > { %2511 = vmatprep.subr.bf16.mxu0 %v3331_v42 }
  0xe4   : > { %2682 = vmatpush3.bf16.msra.mxu1 %v3326_v41 }
  0xe5   : > { %2683 = vmatprep.subr.bf16.mxu1 %v3344_v44  ;;  %1497 = vmatmul.mubr.bf16.gmra.mxu0 %v2850_v35  ;;  %v2861_v35 = vld [vmem:[%s3280_s27 + $0x128] ss:$28 sps:$4 sm:$0xff]  }
  0xe6   : > { %2512 = vmatpush3.bf16.msra.mxu0 %v3338_v43  ;;  %1586 = vmatprep.mubr.bf16.mxu0 %v2856_v36 }
  0xe7   : > { %2513 = vmatprep.subr.bf16.mxu0 %v3350_v45  ;;  %1546 = vmatmul.mubr.bf16.gmra.mxu1 %v2853_v50 }
  0xe8   : > { %2684 = vmatpush3.bf16.msra.mxu1 %v3344_v44  ;;  %2695 = vmatprep.mubr.bf16.mxu1 %v2857_v52 }
  0xe9   : > { %2685 = vmatprep.subr.bf16.mxu1 %v3362_v47 }
  0xea   : > { %2514 = vmatpush3.bf16.msra.mxu0 %v3356_v46 }
  0xeb   : > { %2515 = vmatprep.subr.bf16.mxu0 %v3368_v48 }
  0xec   : > { %2686 = vmatpush3.bf16.msra.mxu1 %v3362_v47 }
  0xed   : > { %2687 = vmatprep.subr.bf16.mxu1 %v3382_v51 }
  0xee   : > { %2516 = vmatpush3.bf16.msra.mxu0 %v3374_v49 }
  0xef   : > { %2517 = vmatprep.subr.bf16.mxu0 %v3391_v54 }
  0xf0   : > { %2688 = vmatpush3.bf16.msra.mxu1 %v3382_v51 }
  0xf1   : > { %2689 = vmatprep.subr.bf16.mxu1 %v3405_v57 }
  0xf2   : > { %2518 = vmatpush3.bf16.msra.mxu0 %v3399_v56 }
  0xf3   : > { %2519 = vmatprep.subr.bf16.mxu0 %v3411_v58 }
  0xf4   : > { %2690 = vmatpush3.bf16.msra.mxu1 %v3405_v57 }
  0xf5   : > { %2691 = vmatprep.subr.bf16.mxu1 %v3423_v60 }
  0xf6   : > { %2520 = vmatpush3.bf16.msra.mxu0 %v3417_v59 }
  0xf7   : > { %2521 = vmatprep.subr.bf16.mxu0 %v3429_v61 }
  0xf8   : > { %2692 = vmatpush3.bf16.msra.mxu1 %v3423_v60 }
  0xf9   : > { %2693 = vmatprep.subr.bf16.mxu1 %v3436_v62 }
  0xfa   : > { %2522 = vmatpush3.bf16.msra.mxu0 %v3442_v63 }
  0xfb   : > { %2545 = vmatprep.subr.bf16.mxu0 %v3097_v0  ;;  %v2864_v0 = vld [vmem:[%s3280_s27 + $0x154] ss:$28 sps:$4 sm:$0xff]  }
  0xfc   : > { %2694 = vmatpush3.bf16.msra.mxu1 %v3436_v62 }
  0xfd   : > { %1587 = vmatmul.mubr.bf16.vlgmr.msra.gmra.mxu0 %v2854_v53  ;;  %2573 = vmatprep.subr.bf16.mxu1 %v3108_v2  ;;  %v2868_v2 = vld [vmem:[%s3280_s27 + $0x18c] ss:$28 sps:$4 sm:$0xff]  }
  0xfe   : > { %2546 = vmatpush3.bf16.msra.mxu0 %v3102_v1  ;;  %1594 = vmatprep.mubr.bf16.mxu0 %v2859_v55  ;;  %v2862_v1 = vld [vmem:[%s3280_s27 + $0x150] ss:$28 sps:$4 sm:$0xff]  }
  0xff   : > { %2696 = vmatmul.mubr.bf16.vlgmr.msra.gmra.mxu1 %v2858_v31  ;;  %2547 = vmatprep.subr.bf16.mxu0 %v3120_v4  ;;  %v2865_v4 = vld [vmem:[%s3280_s27 + $0x158] ss:$28 sps:$4 sm:$0xff]  }
 0x100   : > { %2574 = vmatpush3.bf16.msra.mxu1 %v3114_v3  ;;  %1830 = vmatprep.mubr.bf16.mxu1 %v2867_v32 }
 0x101   : > { %2575 = vmatprep.subr.bf16.mxu1 %v3132_v6  ;;  %v3653_v6 = vld [vmem:[%s3761_s2] ss:$0 sm:$0xff] }
 0x102   : > { %2548 = vmatpush3.bf16.msra.mxu0 %v3126_v5  ;;  %v2871_v5 = vld [vmem:[%s3280_s27 + $0x194] ss:$28 sps:$4 sm:$0xff]  }
 0x103   : > { %2549 = vmatprep.subr.bf16.mxu0 %v3144_v8 }
 0x104   : > { %2576 = vmatpush3.bf16.msra.mxu1 %v3138_v7 }
 0x105   : > { %1595 = vmatmul.mubr.bf16.gmra.mxu0 %v2861_v35  ;;  %2577 = vmatprep.subr.bf16.mxu1 %v3156_v10 }
 0x106   : > { %2550 = vmatpush3.bf16.msra.mxu0 %v3150_v9  ;;  %1781 = vmatprep.mubr.bf16.mxu0 %v2864_v0 }
 0x107   : > { %2551 = vmatprep.subr.bf16.mxu0 %v3168_v12 }
 0x108   : > { %2578 = vmatpush3.bf16.msra.mxu1 %v3162_v11 }
 0x109   : > { %2579 = vmatprep.subr.bf16.mxu1 %v3180_v14 }
 0x10a   : > { %2552 = vmatpush3.bf16.msra.mxu0 %v3174_v13 }
 0x10b   : > { %2553 = vmatprep.subr.bf16.mxu0 %v3192_v16 }
 0x10c   : > { %2580 = vmatpush3.bf16.msra.mxu1 %v3186_v15  ;;  %v2870_v15 = vld [vmem:[%s3280_s27 + $0x188] ss:$28 sps:$4 sm:$0xff]  }
 0x10d   : > { %2581 = vmatprep.subr.bf16.mxu1 %v3204_v18  ;;  %v2876_v18 = vld [vmem:[%s3280_s27 + $0x164] ss:$28 sps:$4 sm:$0xff]  }
 0x10e   : > { %2554 = vmatpush3.bf16.msra.mxu0 %v3198_v17 }
 0x10f   : > { %2555 = vmatprep.subr.bf16.mxu0 %v3216_v20  ;;  %v2873_v20 = vld [vmem:[%s3280_s27 + $0x190] ss:$28 sps:$4 sm:$0xff]  }
 0x110   : > { %2582 = vmatpush3.bf16.msra.mxu1 %v3210_v19 }
 0x111   : > { %2583 = vmatprep.subr.bf16.mxu1 %v3229_v22 }
 0x112   : > { %2556 = vmatpush3.bf16.msra.mxu0 %v3222_v21 }
 0x113   : > { %2557 = vmatprep.subr.bf16.mxu0 %v3241_v24 }
 0x114   : > { %2584 = vmatpush3.bf16.msra.mxu1 %v3235_v23  ;;  %v2877_v23 = vld [vmem:[%s3280_s27 + $0x168] ss:$28 sps:$4 sm:$0xff]  }
 0x115   : > { %2585 = vmatprep.subr.bf16.mxu1 %v3253_v26 }
 0x116   : > { %2558 = vmatpush3.bf16.msra.mxu0 %v3247_v25 }
 0x117   : > { %2559 = vmatprep.subr.bf16.mxu0 %v3265_v28 }
 0x118   : > { %2586 = vmatpush3.bf16.msra.mxu1 %v3259_v27 }
 0x119   : > { %2587 = vmatprep.subr.bf16.mxu1 %v3277_v30 }
 0x11a   : > { %2560 = vmatpush3.bf16.msra.mxu0 %v3271_v29 }
 0x11b   : > { %2601 = vmatprep.subr.bf16.mxu0 %v3293_v34 }
 0x11c   : > { %2588 = vmatpush3.bf16.msra.mxu1 %v3288_v33 }
 0x11d   : > { %v2279_v3 = vpop.f32.mrf.mxu0  ;;  %1782 = vmatmul.mubr.bf16.vlgmr.msra.gmra.mxu0 %v2862_v1  ;;  %2699 = vmatprep.subr.bf16.mxu1 %v3307_v38 }
 0x11e   : > { %2602 = vmatpush3.bf16.msra.mxu0 %v3302_v37  ;;  %1789 = vmatprep.mubr.bf16.mxu0 %v2868_v2 }
 0x11f   : > { %v2280_v7 = vpop.f32.mrf.mxu0  ;;  %v2307_v9 = vpop.f32.mrf.mxu1  ;;  %1831 = vmatmul.mubr.bf16.vlgmr.msra.gmra.mxu1 %v2865_v4  ;;  %2603 = vmatprep.subr.bf16.mxu0 %v3313_v39 }
 0x120   : > { %v2281_v8 = vadd.f32 %v2280_v7, %v2279_v3  ;;  %2700 = vmatpush3.bf16.msra.mxu1 %v3307_v38  ;;  %1838 = vmatprep.mubr.bf16.mxu1 %v2871_v5 }
 0x121   : > { %v2282_v10 = vpop.f32.mrf.mxu0  ;;  %v2308_v12 = vpop.f32.mrf.mxu1  ;;  %2701 = vmatprep.subr.bf16.mxu1 %v3326_v41 }
 0x122   : > { %v909_v11 = vadd.f32 %v2281_v8, %v3653_v6  ;;  %v2309_v13 = vadd.f32 %v2308_v12, %v2307_v9  ;;  %2604 = vmatpush3.bf16.msra.mxu0 %v3319_v40 }
 0x123   : > { %v2283_v14 = vpop.f32.mrf.mxu0  ;;  %v2310_v17 = vpop.f32.mrf.mxu1  ;;  %2605 = vmatprep.subr.bf16.mxu0 %v3331_v42 }
 0x124   : > { %v2284_v16 = vadd.f32 %v2283_v14, %v2282_v10  ;;  %v3664_v19 = vadd.f32 %v2309_v13, %v909_v11  ;;  %2702 = vmatpush3.bf16.msra.mxu1 %v3326_v41 }
 0x125   : > { %v2311_v22 = vpop.f32.mrf.mxu1  ;;  %2703 = vmatprep.subr.bf16.mxu1 %v3344_v44  ;;  %1790 = vmatmul.mubr.bf16.gmra.mxu0 %v2870_v15  ;;  %v2285_v26 = vpop.f32.mrf.mxu0 }
 0x126   : > { %v912_v21 = vadd.f32 %v2284_v16, %v3653_v6  ;;  %v2312_v24 = vadd.f32 %v2311_v22, %v2310_v17  ;;  %2606 = vmatpush3.bf16.msra.mxu0 %v3338_v43  ;;  %1879 = vmatprep.mubr.bf16.mxu0 %v2876_v18 }
 0x127   : > { %2607 = vmatprep.subr.bf16.mxu0 %v3350_v45  ;;  %1839 = vmatmul.mubr.bf16.gmra.mxu1 %v2873_v20  ;;  %v2286_v27 = vpop.f32.mrf.mxu0  ;;  %v2313_v29 = vpop.f32.mrf.mxu1 }
 0x128   : > { %v961_v25 = vadd.f32 %v2312_v24, %v912_v21  ;;  %2704 = vmatpush3.bf16.msra.mxu1 %v3344_v44  ;;  %2715 = vmatprep.mubr.bf16.mxu1 %v2877_v23  ;;  %v2287_v28 = vadd.f32 %v2286_v27, %v2285_v26 }
 0x129   : > { %2705 = vmatprep.subr.bf16.mxu1 %v3362_v47  ;;  %v2288_v30 = vpop.f32.mrf.mxu0  ;;  %v2314_v34 = vpop.f32.mrf.mxu1 }
 0x12a   : > { %2608 = vmatpush3.bf16.msra.mxu0 %v3356_v46  ;;  %v917_v33 = vadd.f32 %v2287_v28, %v3653_v6  ;;  %v2315_v37 = vadd.f32 %v2314_v34, %v2313_v29  ;;  %v2874_v46 = vld [vmem:[%s3280_s27 + $0x160] ss:$28 sps:$4 sm:$0xff]  }
 0x12b   : > { %2609 = vmatprep.subr.bf16.mxu0 %v3368_v48  ;;  %v2289_v38 = vpop.f32.mrf.mxu0  ;;  %v2316_v40 = vpop.f32.mrf.mxu1  ;;  %v2878_v48 = vld [vmem:[%s3280_s27 + $0x1a0] ss:$28 sps:$4 sm:$0xff]  }
 0x12c   : > { %2706 = vmatpush3.bf16.msra.mxu1 %v3362_v47  ;;  %v2290_v39 = vadd.f32 %v2289_v38, %v2288_v30  ;;  %v966_v41 = vadd.f32 %v2315_v37, %v917_v33  ;;  %v2879_v47 = vld [vmem:[%s3280_s27 + $0x19c] ss:$28 sps:$4 sm:$0xff]  }
 0x12d   : > { %2707 = vmatprep.subr.bf16.mxu1 %v3382_v51  ;;  %v2317_v43 = vpop.f32.mrf.mxu1 }
 0x12e   : > { %2610 = vmatpush3.bf16.msra.mxu0 %v3374_v49  ;;  %v920_v42 = vadd.f32 %v2290_v39, %v3653_v6  ;;  %v2318_v44 = vadd.f32 %v2317_v43, %v2316_v40 }
 0x12f   : > { %2611 = vmatprep.subr.bf16.mxu0 %v3391_v54 }
 0x130   : > { %2708 = vmatpush3.bf16.msra.mxu1 %v3382_v51  ;;  %v969_v45 = vadd.f32 %v2318_v44, %v920_v42 }
 0x131   : > { %2709 = vmatprep.subr.bf16.mxu1 %v3405_v57 }
 0x132   : > { %2612 = vmatpush3.bf16.msra.mxu0 %v3399_v56 }
 0x133   : > { %2613 = vmatprep.subr.bf16.mxu0 %v3411_v58 }
 0x134   : > { %2710 = vmatpush3.bf16.msra.mxu1 %v3405_v57 }
 0x135   : > { %2711 = vmatprep.subr.bf16.mxu1 %v3423_v60 }
 0x136   : > { %2614 = vmatpush3.bf16.msra.mxu0 %v3417_v59  ;;  %v2881_v59 = vld [vmem:[%s3280_s27 + $0x198] ss:$28 sps:$4 sm:$0xff]   ;;  %s2079_s27 = sshll.u32 %s2039_s15, 2 }
 0x137   : > { %2615 = vmatprep.subr.bf16.mxu0 %v3429_v61  ;;  %p325_p8 = scmp.lt.s32.totalorder %s2079_s27, 7 }
 0x138   : > { %2712 = vmatpush3.bf16.msra.mxu1 %v3423_v60 }
 0x139   : > { %2713 = vmatprep.subr.bf16.mxu1 %v3436_v62  ;;  %s3767_s27 = smov (!%p325_p8, %s2079_s27), 7 }
 0x13a   : > { %2616 = vmatpush3.bf16.msra.mxu0 %v3442_v63  ;;  %s2080_s14 = sshll.u32 %s3767_s27, 2 }
 0x13b   : > { %s328_s11 = scalar_lea.vmem %s3762_s3, %s2080_s14 }
 0x13c   : > { %2714 = vmatpush3.bf16.msra.mxu1 %v3436_v62 }
 0x13d   : > { %v2335_v49 = vpop.f32.mrf.mxu0  ;;  %1880 = vmatmul.mubr.bf16.vlgmr.msra.gmra.mxu0 %v2874_v46 }
 0x13e   : > { %1887 = vmatprep.mubr.bf16.mxu0 %v2879_v47 }
 0x13f   : > { %v2336_v51 = vpop.f32.mrf.mxu0  ;;  %v2657_v54 = vpop.f32.mrf.mxu1  ;;  %2716 = vmatmul.mubr.bf16.vlgmr.msra.gmra.mxu1 %v2878_v48 }
 0x140   : > { %v2337_v56 = vadd.f32 %v2336_v51, %v2335_v49 }
 0x141   : > { %v2338_v57 = vpop.f32.mrf.mxu0  ;;  %v1055_v58 = vpop.f32.mrf.mxu1 }
 0x142   : > { %v1007_v60 = vadd.f32 %v2337_v56, %v3664_v19 }
 0x143   : > { %v2339_v61 = vpop.f32.mrf.mxu0  ;;  %v2658_v36 = vpop.f32.mrf.mxu1 }
 0x144   : > { %v2340_v50 = vadd.f32 %v2339_v61, %v2338_v57  ;;  %v3701_v63 = vadd.f32 %v1055_v58, %v1007_v60 }
 0x145   : > { %v2341_v52 = vpop.f32.mrf.mxu0  ;;  %1888 = vmatmul.mubr.bf16.gmra.mxu0 %v2881_v59  ;;  %v1058_v62 = vpop.f32.mrf.mxu1 }
 0x146   : > { %v1010_v53 = vadd.f32 %v2340_v50, %v961_v25  ;;  %v1070_v56 = vmax.f32 %v3701_v63, 0.0 }
 0x147   : > { %v2342_v55 = vpop.f32.mrf.mxu0 }
 0x148   : > { %v2343_v31 = vadd.f32 %v2342_v55, %v2341_v52  ;;  %v3703_v32 = vadd.f32 %v1058_v62, %v1010_v53 }
 0x149   : > { %v2344_v35 = vpop.f32.mrf.mxu0 }
 0x14a   : > { %v1015_v0 = vadd.f32 %v2343_v31, %v966_v41  ;;  %v1071_v55 = vmax.f32 %v3703_v32, 0.0 }
 0x14b   : > { %v2345_v1 = vpop.f32.mrf.mxu0 }
 0x14c   : > { %v3705_v2 = vadd.f32 %v2657_v54, %v1015_v0  ;;  %v2346_v3 = vadd.f32 %v2345_v1, %v2344_v35 }
 0x14e   : > { %v1018_v4 = vadd.f32 %v2346_v3, %v969_v45 }
 0x150   : > { %v3707_v5 = vadd.f32 %v2658_v36, %v1018_v4 }
 0x15d   : > { %v2373_v7 = vpop.f32.mrf.mxu0 }
 0x15f   : > { %v2374_v8 = vpop.f32.mrf.mxu0  ;;  %v2401_v11 = vpop.f32.mrf.mxu1 }
 0x160   : > { %v2375_v9 = vadd.f32 %v2374_v8, %v2373_v7  ;;  %v1072_v7 = vmax.f32 %v3705_v2, 0.0 }
 0x161   : > { %v2376_v10 = vpop.f32.mrf.mxu0  ;;  %v2402_v15 = vpop.f32.mrf.mxu1 }
 0x162   : > { %v1198_v26 = vadd.f32 %v2375_v9, %v3653_v6  ;;  %v2403_v27 = vadd.f32 %v2402_v15, %v2401_v11 }
 0x163   : > { %v2377_v12 = vpop.f32.mrf.mxu0  ;;  %v2404_v19 = vpop.f32.mrf.mxu1 }
 0x164   : > { %v2378_v13 = vadd.f32 %v2377_v12, %v2376_v10  ;;  %v1247_v34 = vadd.f32 %v2403_v27, %v1198_v26  ;;  %v1073_v12 = vmax.f32 %v3707_v5, 0.0 }
 0x165   : > { %v2379_v14 = vpop.f32.mrf.mxu0  ;;  %v2405_v22 = vpop.f32.mrf.mxu1 }
 0x166   : > { %v1201_v37 = vadd.f32 %v2378_v13, %v3653_v6  ;;  %v2406_v38 = vadd.f32 %v2405_v22, %v2404_v19 }
 0x167   : > { %v2380_v16 = vpop.f32.mrf.mxu0  ;;  %v2407_v23 = vpop.f32.mrf.mxu1 }
 0x168   : > { %v2381_v17 = vadd.f32 %v2380_v16, %v2379_v14  ;;  %v1250_v47 = vadd.f32 %v2406_v38, %v1201_v37 }
 0x169   : > { %v2382_v18 = vpop.f32.mrf.mxu0  ;;  %v2408_v24 = vpop.f32.mrf.mxu1 }
 0x16a   : > { %v1206_v43 = vadd.f32 %v2381_v17, %v3653_v6  ;;  %v2409_v44 = vadd.f32 %v2408_v24, %v2407_v23 }
 0x16b   : > { %v2383_v20 = vpop.f32.mrf.mxu0  ;;  %v2410_v25 = vpop.f32.mrf.mxu1 }
 0x16c   : > { %v2384_v21 = vadd.f32 %v2383_v20, %v2382_v18  ;;  %v1255_v59 = vadd.f32 %v2409_v44, %v1206_v43 }
 0x16d   : > { %v2411_v28 = vpop.f32.mrf.mxu1 }
 0x16e   : > { %v1209_v60 = vadd.f32 %v2384_v21, %v3653_v6  ;;  %v2412_v36 = vadd.f32 %v2411_v28, %v2410_v25 }
 0x170   : > { %v1258_v1 = vadd.f32 %v2412_v36, %v1209_v60 }
 0x17d   : > { %v2429_v29 = vpop.f32.mrf.mxu0 }
 0x17f   : > { %v2430_v30 = vpop.f32.mrf.mxu0  ;;  %v2677_v33 = vpop.f32.mrf.mxu1 }
 0x180   : > { %v2431_v39 = vadd.f32 %v2430_v30, %v2429_v29 }
 0x181   : > { %v2432_v40 = vpop.f32.mrf.mxu0  ;;  %v1344_v41 = vpop.f32.mrf.mxu1 }
 0x182   : > { %v1296_v42 = vadd.f32 %v2431_v39, %v1247_v34 }
 0x183   : > { %v2433_v45 = vpop.f32.mrf.mxu0  ;;  %v2678_v46 = vpop.f32.mrf.mxu1 }
 0x184   : > { %v2434_v48 = vadd.f32 %v2433_v45, %v2432_v40  ;;  %v1345_v49 = vadd.f32 %v1344_v41, %v1296_v42 }
 0x185   : > { %v2435_v51 = vpop.f32.mrf.mxu0  ;;  %v1347_v54 = vpop.f32.mrf.mxu1 }
 0x186   : > { %v1359_v57 = vmax.f32 %v1345_v49, 0.0  ;;  %v1299_v58 = vadd.f32 %v2434_v48, %v1250_v47 }
 0x187   : > { %v2436_v61 = vpop.f32.mrf.mxu0 }
 0x188   : > { %v3714_v50 = vmax.f32 %v1070_v56, %v1359_v57  ;;  %v2437_v52 = vadd.f32 %v2436_v61, %v2435_v51  ;;  %v1348_v62 = vadd.f32 %v1347_v54, %v1299_v58 }
 0x189   : > { %v2438_v53 = vpop.f32.mrf.mxu0 }
 0x18a   : > { %v1304_v31 = vadd.f32 %v2437_v52, %v1255_v59  ;;  %v1360_v35 = vmax.f32 %v1348_v62, 0.0 }
 0x18b   : > { %v2439_v0 = vpop.f32.mrf.mxu0 }
 0x18c   : > { %v1353_v3 = vadd.f32 %v2677_v33, %v1304_v31  ;;  %v3717_v63 = vmax.f32 %v1071_v55, %v1360_v35  ;;  %v2440_v4 = vadd.f32 %v2439_v0, %v2438_v53 }
 0x18e   : > { %v1361_v8 = vmax.f32 %v1353_v3, 0.0  ;;  %v1307_v9 = vadd.f32 %v2440_v4, %v1258_v1 }
 0x190   : > { %v3720_v10 = vmax.f32 %v1072_v7, %v1361_v8  ;;  %v1356_v11 = vadd.f32 %v2678_v46, %v1307_v9 }
 0x192   : > { %v1362_v13 = vmax.f32 %v1356_v11, 0.0 }
 0x194   : > { %v3723_v14 = vmax.f32 %v1073_v12, %v1362_v13 }
 0x19d   : > { %v2467_v32 = vpop.f32.mrf.mxu0 }
 0x19f   : > { %v2468_v15 = vpop.f32.mrf.mxu0  ;;  %v2495_v19 = vpop.f32.mrf.mxu1 }
 0x1a0   : > { %v2469_v58 = vadd.f32 %v2468_v15, %v2467_v32 }
 0x1a1   : > { %v2470_v16 = vpop.f32.mrf.mxu0  ;;  %v2496_v21 = vpop.f32.mrf.mxu1 }
 0x1a2   : > { %v1491_v36 = vadd.f32 %v2469_v58, %v3653_v6  ;;  %v2497_v52 = vadd.f32 %v2496_v21, %v2495_v19 }
 0x1a3   : > { %v2471_v17 = vpop.f32.mrf.mxu0  ;;  %v2498_v2 = vpop.f32.mrf.mxu1 }
 0x1a4   : > { %v2472_v60 = vadd.f32 %v2471_v17, %v2470_v16  ;;  %v1540_v4 = vadd.f32 %v2497_v52, %v1491_v36 }
 0x1a5   : > { %v2473_v18 = vpop.f32.mrf.mxu0  ;;  %v2499_v25 = vpop.f32.mrf.mxu1 }
 0x1a6   : > { %v1494_v53 = vadd.f32 %v2472_v60, %v3653_v6  ;;  %v2500_v55 = vadd.f32 %v2499_v25, %v2498_v2 }
 0x1a7   : > { %v2474_v20 = vpop.f32.mrf.mxu0  ;;  %v2501_v26 = vpop.f32.mrf.mxu1 }
 0x1a8   : > { %v2475_v1 = vadd.f32 %v2474_v20, %v2473_v18  ;;  %v1543_v11 = vadd.f32 %v2500_v55, %v1494_v53 }
 0x1a9   : > { %v2476_v22 = vpop.f32.mrf.mxu0  ;;  %v2502_v28 = vpop.f32.mrf.mxu1 }
 0x1aa   : > { %v1499_v17 = vadd.f32 %v2475_v1, %v3653_v6  ;;  %v2503_v19 = vadd.f32 %v2502_v28, %v2501_v26 }
 0x1ab   : > { %v2477_v23 = vpop.f32.mrf.mxu0  ;;  %v2504_v29 = vpop.f32.mrf.mxu1 }
 0x1ac   : > { %v2478_v7 = vadd.f32 %v2477_v23, %v2476_v22 }
 0x1ad   : > { %v2505_v33 = vpop.f32.mrf.mxu1 }
 0x1ae   : > { %v1502_v2 = vadd.f32 %v2478_v7, %v3653_v6  ;;  %v2506_v18 = vadd.f32 %v2505_v33, %v2504_v29 }
 0x1b0   : > { %v1551_v29 = vadd.f32 %v2506_v18, %v1502_v2 }
 0x1bd   : > { %v2523_v24 = vpop.f32.mrf.mxu0 }
 0x1bf   : > { %v2524_v27 = vpop.f32.mrf.mxu0  ;;  %v3725_v37 = vpop.f32.mrf.mxu1 }
 0x1c0   : > { %v2525_v35 = vadd.f32 %v2524_v27, %v2523_v24 }
 0x1c1   : > { %v2526_v5 = vpop.f32.mrf.mxu0  ;;  %v1637_v39 = vpop.f32.mrf.mxu1 }
 0x1c2   : > { %v1589_v32 = vadd.f32 %v2525_v35, %v1540_v4 }
 0x1c3   : > { %v2527_v30 = vpop.f32.mrf.mxu0  ;;  %v3727_v41 = vpop.f32.mrf.mxu1 }
 0x1c4   : > { %v2528_v3 = vadd.f32 %v2527_v30, %v2526_v5  ;;  %v1638_v30 = vadd.f32 %v1637_v39, %v1589_v32 }
 0x1c5   : > { %v2529_v34 = vpop.f32.mrf.mxu0  ;;  %v1640_v43 = vpop.f32.mrf.mxu1 }
 0x1c6   : > { %v1592_v21 = vadd.f32 %v2528_v3, %v1543_v11 }
 0x1c7   : > { %v2530_v38 = vpop.f32.mrf.mxu0 }
 0x1c9   : > { %v2532_v40 = vpop.f32.mrf.mxu0 }
 0x1cb   : > { %v2533_v42 = vpop.f32.mrf.mxu0 }
 0x1cc   : > { %v2534_v26 = vadd.f32 %v2533_v42, %v2532_v40 }
 0x1dd   : > { %v2561_v44 = vpop.f32.mrf.mxu0 }
 0x1df   : > { %v2589_v45 = vpop.f32.mrf.mxu1  ;;  %v2562_v46 = vpop.f32.mrf.mxu0 }
 0x1e0   : > { %v2563_v31 = vadd.f32 %v2562_v46, %v2561_v44  ;;  %v2531_v44 = vadd.f32 %v2530_v38, %v2529_v34 }
 0x1e1   : > { %v2590_v47 = vpop.f32.mrf.mxu1  ;;  %v2564_v48 = vpop.f32.mrf.mxu0 }
 0x1e2   : > { %v1784_v12 = vadd.f32 %v2563_v31, %v3653_v6  ;;  %v2591_v13 = vadd.f32 %v2590_v47, %v2589_v45  ;;  %v1641_v47 = vadd.f32 %v1640_v43, %v1592_v21  ;;  %v1600_v43 = vadd.f32 %v2534_v26, %v1551_v29 }
 0x1e3   : > { %v2592_v49 = vpop.f32.mrf.mxu1  ;;  %v2565_v51 = vpop.f32.mrf.mxu0 }
 0x1e4   : > { %v2566_v8 = vadd.f32 %v2565_v51, %v2564_v48  ;;  %v1833_v25 = vadd.f32 %v2591_v13, %v1784_v12  ;;  %v1548_v48 = vadd.f32 %v2503_v19, %v1499_v17  ;;  %v1653_v52 = vmax.f32 %v1641_v47, 0.0 }
 0x1e5   : > { %v2593_v54 = vpop.f32.mrf.mxu1  ;;  %v2567_v56 = vpop.f32.mrf.mxu0  ;;  %v1649_v7 = vadd.f32 %v3727_v41, %v1600_v43 }
 0x1e6   : > { %v1787_v20 = vadd.f32 %v2566_v8, %v3653_v6  ;;  %v2594_v22 = vadd.f32 %v2593_v54, %v2592_v49  ;;  %v1597_v39 = vadd.f32 %v2531_v44, %v1548_v48  ;;  %v1657_v4 = vmax.f32 %v3717_v63, %v1653_v52 }
 0x1e7   : > { %v2595_v57 = vpop.f32.mrf.mxu1  ;;  %v2568_v59 = vpop.f32.mrf.mxu0 }
 0x1e8   : > { %v2569_v27 = vadd.f32 %v2568_v59, %v2567_v56  ;;  %v1836_v33 = vadd.f32 %v2594_v22, %v1787_v20  ;;  %v1652_v59 = vmax.f32 %v1638_v30, 0.0 }
 0x1e9   : > { %v2596_v61 = vpop.f32.mrf.mxu1  ;;  %v2570_v62 = vpop.f32.mrf.mxu0 }
 0x1ea   : > { %v1792_v58 = vadd.f32 %v2569_v27, %v3653_v6  ;;  %v2597_v60 = vadd.f32 %v2596_v61, %v2595_v57  ;;  %v1656_v57 = vmax.f32 %v3714_v50, %v1652_v59  ;;  %v1646_v61 = vadd.f32 %v3725_v37, %v1597_v39 }
 0x1eb   : > { %v2598_v0 = vpop.f32.mrf.mxu1  ;;  %v2571_v9 = vpop.f32.mrf.mxu0  ;;  %v1655_v37 = vmax.f32 %v1649_v7, 0.0 }
 0x1ec   : > { %v2572_v51 = vadd.f32 %v2571_v9, %v2570_v62  ;;  %v1841_v55 = vadd.f32 %v2597_v60, %v1792_v58  ;;  %v1654_v50 = vmax.f32 %v1646_v61, 0.0 }
 0x1ed   : > { %v2599_v15 = vpop.f32.mrf.mxu1  ;;  %v1659_v19 = vmax.f32 %v3723_v14, %v1655_v37 }
 0x1ee   : > { %v1795_v42 = vadd.f32 %v2572_v51, %v3653_v6  ;;  %v2600_v53 = vadd.f32 %v2599_v15, %v2598_v0  ;;  %v1658_v17 = vmax.f32 %v3720_v10, %v1654_v50 }
 0x1f0   : > { %v1844_v11 = vadd.f32 %v2600_v53, %v1795_v42 }
 0x1fd   : > { %v2617_v16 = vpop.f32.mrf.mxu0 }
 0x1ff   : > { %v2618_v23 = vpop.f32.mrf.mxu0  ;;  %v2717_v24 = vpop.f32.mrf.mxu1 }
 0x200   : > { %v2619_v5 = vadd.f32 %v2618_v23, %v2617_v16 }
 0x201   : > { %v2620_v45 = vpop.f32.mrf.mxu0  ;;  %v1930_v46 = vpop.f32.mrf.mxu1 }
 0x202   : > { %v1882_v28 = vadd.f32 %v2619_v5, %v1833_v25 }
 0x203   : > { %v2621_v49 = vpop.f32.mrf.mxu0  ;;  %v2718_v54 = vpop.f32.mrf.mxu1 }
 0x204   : > { %v2622_v36 = vadd.f32 %v2621_v49, %v2620_v45  ;;  %v1931_v56 = vadd.f32 %v1930_v46, %v1882_v28 }
 0x205   : > { %v2623_v34 = vpop.f32.mrf.mxu0  ;;  %v1933_v38 = vpop.f32.mrf.mxu1 }
 0x206   : > { %v1885_v40 = vadd.f32 %v2622_v36, %v1836_v33  ;;  %v1945_v31 = vmax.f32 %v1931_v56, 0.0 }
 0x207   : > { %v2624_v62 = vpop.f32.mrf.mxu0 }
 0x208   : > { %v2625_v35 = vadd.f32 %v2624_v62, %v2623_v34  ;;  %v1934_v1 = vadd.f32 %v1933_v38, %v1885_v40  ;;  %v1949_v0 = vmax.f32 %v1656_v57, %v1945_v31 }
 0x209   : > { %v2626_v3 = vpop.f32.mrf.mxu0 }
 0x20a   : > { %v1890_v8 = vadd.f32 %v2625_v35, %v1841_v55  ;;  %v1946_v9 = vmax.f32 %v1934_v1, 0.0 }
 0x20b   : > { %v2627_v6 = vpop.f32.mrf.mxu0 }
 0x20c   : > { %v1939_v12 = vadd.f32 %v2717_v24, %v1890_v8  ;;  %v1950_v13 = vmax.f32 %v1657_v4, %v1946_v9  ;;  %v2628_v32 = vadd.f32 %v2627_v6, %v2626_v3 }
 0x20e   : > { %v2255_v15 = vpack.c.bf16 %v1950_v13, %v1949_v0  ;;  %v1893_v16 = vadd.f32 %v2628_v32, %v1844_v11  ;;  %v1947_v63 = vmax.f32 %v1939_v12, 0.0 }
 0x210   : > { %2256 = vst [vmem:[%s328_s11] sm:$0xff] %v2255_v15   ;;  %v1942_v41 = vadd.f32 %v2718_v54, %v1893_v16  ;;  %v1951_v2 = vmax.f32 %v1658_v17, %v1947_v63 }
 0x212   : > { %v1948_v21 = vmax.f32 %v1942_v41, 0.0 }
 0x214   : > { %v1952_v18 = vmax.f32 %v1659_v19, %v1948_v21 }
 0x216   : > { %v2260_v20 = vpack.c.bf16 %v1952_v18, %v1951_v2 }
 0x218   : > { %2262 = vst [vmem:[%s328_s11 + $0x8] sm:$0xff] %v2260_v20  }
 0x219 PF: > { %p10_p9 = scmp.ge.s32.totalorder %s2943_s16, 4   ;;  %s3763_s12 = smov %s2900_s13 }
 0x21a   : > { %s3764_s13 = smov %s2952_s19  ;;  %s3765_s14 = smov %s2943_s16 }
 0x21b   :  { %12 = sbr.rel (!%p10_p9) target bundleno = 2 (0x2), region = 102 }

// kernel: cnn_forward.8
= control target key start
LH: loop header
LB: loop body
LE: loop exit
PB: predicated region body
PF: predicated region fallthrough
CT: control target
= control target key end

     0   :  { %s1767_s12 = smov 0   ;;  %s1769_s13 = smov 0   ;;  %s2258_s0 = inlined_call_operand.vmem [shape: bf16[4,32,576], index: 0, kind: input, shape index: {}]   ;;  %s2259_s1 = inlined_call_operand.vmem [shape: bf16[576,128], index: 1, kind: input, shape index: {}]   ;;  %s2260_s2 = inlined_call_operand.vmem [shape: f32[1,128], index: 2, kind: input, shape index: {}]   ;;  %s2261_s3 = inlined_call_operand.vmem [shape: bf16[32,128], index: 3, kind: output, shape index: {}]  }
   0x1   :  { %s1771_s14 = smov 0  }
   0x2 LB: > { %s1268_s15 = sadd.s32 4294967295, %s1743_s14   ;;  %s1784_s16 = sadd.s32 1, %s1743_s14   ;;  %s1743_s14 = sphi %s1771_s14, %s2264_s14   ;;  %s1739_s13 = sphi %s1769_s13, %s2263_s13   ;;  %s1735_s12 = sphi %s1767_s12, %s2262_s12  }
   0x3   : > { %s17_s17 = ssub.s32 %s1743_s14, %s1784_s16  ;;  %s20_s18 = sadd.s32 1, %s1739_s13 }
   0x4   : > { %p18_p0 = scmp.eq.s32.totalorder %s17_s17, 0  ;;  %p27_p1 = scmp.ne.s32.totalorder %s1739_s13, %s1735_s12 }
   0x5   : > { %p28_p2 = scmp.eq.s32.totalorder %s1743_s14, 0  ;;  %p1271_p4 = scmp.ge.s32.totalorder %s1743_s14, 2 }
   0x6   : > { %s1793_s19 = scalar_select %p18_p0, %s1739_s13, %s20_s18  }
   0x7   : > { %p29_p3 = por %p28_p2, %p27_p1  ;;  %127 = sbr.rel (%p1271_p4) target bundleno = 30 (0x1e), region = 24 }
   0xc   : > { %130 = sbr.rel (!%p29_p3) target bundleno = 30 (0x1e), region = 28  ;;  %s132_s20 = sand.u32 (%p29_p3), 1, %s1739_s13  }
   0xd   : > { %s1629_s21 = smul.u32 (%p29_p3), 40, %s1743_s14 }
   0xe   : > { %s1628_s22 = smul.u32 (%p29_p3), 160, %s132_s20 }
   0xf   : > { %s1801_s25 = scalar_lea.vmem (%p29_p3), %s2258_s0, %s1629_s21 }
  0x10   : > { %v153_v0 = vld [vmem:[%s1801_s25] sm:$0xff] (%p29_p3)  ;;  %v155_v1 = vld [vmem:[%s1801_s25 + $0x8] sm:$0xff] (%p29_p3)  ;;  %v157_v2 = vld [vmem:[%s1801_s25 + $0x14] sm:$0xff] (%p29_p3)  ;;  %s1806_s26 = scalar_lea.vmem (%p29_p3), [#allocation2], %s1628_s22 }
  0x11   : > { %154 = vst [vmem:[%s1806_s26] sm:$0xff] %v153_v0  ;;  %156 = vst [vmem:[%s1806_s26 + $0x8] sm:$0xff] %v155_v1  ;;  %v159_v3 = vld [vmem:[%s1801_s25 + $0x1c] sm:$0xff]  ;;  %v161_v4 = vld [vmem:[%s1801_s25 + $0x50] sm:$0xff] }
  0x12   : > { %158 = vst [vmem:[%s1806_s26 + $0x14] sm:$0xff] %v157_v2  ;;  %v163_v5 = vld [vmem:[%s1801_s25 + $0x58] sm:$0xff]  ;;  %160 = vst [vmem:[%s1806_s26 + $0x1c] sm:$0xff] %v159_v3  ;;  %v165_v6 = vld [vmem:[%s1801_s25 + $0x64] sm:$0xff] }
  0x13   : > { %162 = vst [vmem:[%s1806_s26 + $0x28] sm:$0xff] %v161_v4  ;;  %164 = vst [vmem:[%s1806_s26 + $0x30] sm:$0xff] %v163_v5  ;;  %v167_v7 = vld [vmem:[%s1801_s25 + $0x6c] sm:$0xff]  ;;  %v169_v8 = vld [vmem:[%s1801_s25 + $0xa0] sm:$0xff] }
  0x14   : > { %166 = vst [vmem:[%s1806_s26 + $0x3c] sm:$0xff] %v165_v6  ;;  %168 = vst [vmem:[%s1806_s26 + $0x44] sm:$0xff] %v167_v7  ;;  %v171_v9 = vld [vmem:[%s1801_s25 + $0xa8] sm:$0xff]  ;;  %v173_v10 = vld [vmem:[%s1801_s25 + $0xb4] sm:$0xff] }
  0x15   : > { %170 = vst [vmem:[%s1806_s26 + $0x50] sm:$0xff] %v169_v8  ;;  %v175_v11 = vld [vmem:[%s1801_s25 + $0xbc] sm:$0xff]  ;;  %172 = vst [vmem:[%s1806_s26 + $0x58] sm:$0xff] %v171_v9  ;;  %v177_v12 = vld [vmem:[%s1801_s25 + $0xf0] sm:$0xff] }
  0x16   : > { %174 = vst [vmem:[%s1806_s26 + $0x64] sm:$0xff] %v173_v10  ;;  %176 = vst [vmem:[%s1806_s26 + $0x6c] sm:$0xff] %v175_v11  ;;  %v179_v13 = vld [vmem:[%s1801_s25 + $0xf8] sm:$0xff]  ;;  %v181_v14 = vld [vmem:[%s1801_s25 + $0x104] sm:$0xff] }
  0x17   : > { %178 = vst [vmem:[%s1806_s26 + $0x78] sm:$0xff] %v177_v12  ;;  %180 = vst [vmem:[%s1806_s26 + $0x80] sm:$0xff] %v179_v13  ;;  %v183_v15 = vld [vmem:[%s1801_s25 + $0x10c] sm:$0xff]  ;;  %v1277_v17 = vld [vmem:[%s1801_s25 + $0x24] sm:$0xf] }
  0x18   : > { %182 = vst [vmem:[%s1806_s26 + $0x8c] sm:$0xff] %v181_v14  ;;  %v1275_v16 = vld [vmem:[%s1801_s25 + $0x10] sm:$0xf]  ;;  %184 = vst [vmem:[%s1806_s26 + $0x94] sm:$0xff] %v183_v15  ;;  %v1279_v18 = vld [vmem:[%s1801_s25 + $0x60] sm:$0xf] }
  0x19   : > { %1276 = vst [vmem:[%s1806_s26 + $0x10] sm:$0xf] %v1275_v16  ;;  %1278 = vst [vmem:[%s1806_s26 + $0x24] sm:$0xf] %v1277_v17  ;;  %v1281_v19 = vld [vmem:[%s1801_s25 + $0x74] sm:$0xf] }
  0x1a   : > { %v1283_v20 = vld [vmem:[%s1801_s25 + $0xb0] sm:$0xf]  ;;  %1280 = vst [vmem:[%s1806_s26 + $0x38] sm:$0xf] %v1279_v18  ;;  %1282 = vst [vmem:[%s1806_s26 + $0x4c] sm:$0xf] %v1281_v19 }
  0x1b   : > { %1284 = vst [vmem:[%s1806_s26 + $0x60] sm:$0xf] %v1283_v20  ;;  %v1285_v21 = vld [vmem:[%s1801_s25 + $0xc4] sm:$0xf]  ;;  %v1287_v22 = vld [vmem:[%s1801_s25 + $0x100] sm:$0xf] }
  0x1c   : > { %v1289_v23 = vld [vmem:[%s1801_s25 + $0x114] sm:$0xf]  ;;  %1286 = vst [vmem:[%s1806_s26 + $0x74] sm:$0xf] %v1285_v21  ;;  %1288 = vst [vmem:[%s1806_s26 + $0x88] sm:$0xf] %v1287_v22 }
  0x1d   : > { %1290 = vst [vmem:[%s1806_s26 + $0x9c] sm:$0xf] %v1289_v23 }
  0x1e PF: > { %p1291_p5 = scmp.ge.s32.totalorder %s1743_s14, 1  ;;  %p213_p6 = scmp.lt.s32.totalorder %s1743_s14, 3 }
  0x20   : > { %p214_p7 = pnand %p1291_p5, %p213_p6 }
  0x21   : > { %s220_s4 = sand.u32 (!%p214_p7), 1, %s1735_s12   ;;  %s1292_s17 = sshll.u32 (!%p214_p7), %s1268_s15, 1 }
  0x22   : > { %217 = sbr.rel (%p214_p7) target bundleno = 413 (0x19d), region = 54  ;;  %p245_p8 = scmp.lt.s32.totalorder (!%p214_p7), %s1292_s17, 3 }
  0x23   : > { %s1630_s12 = smul.u32 (!%p214_p7), 160, %s220_s4 }
  0x25   : > { %s2047_s29 = scalar_lea.vmem (!%p214_p7), [#allocation2], %s1630_s12 }
  0x27   : > { %v1858_v24 = vld [vmem:[%s2259_s1 + $0x78] sm:$0xff]   ;;  %v1881_v28 = vld [vmem:[%s2259_s1 + $0x70] sm:$0xff]   ;;  %v1905_v32 = vld [vmem:[%s2259_s1 + $0x68] sm:$0xff]   ;;  %v1745_v58 = vmov 0.0   ;;  %vm1746_vm0 = vmmov 0   ;;  %vm577_vm1 = vcmask 523264  }
  0x28   : > { %v1863_v25 = vld [vmem:[%s2259_s1 + $0xf8] sm:$0xff]   ;;  %1384 = vmatprep.subr.bf16.mxu0 %v1858_v24  ;;  %v1887_v29 = vld [vmem:[%s2259_s1 + $0xf0] sm:$0xff]   ;;  %v1911_v33 = vld [vmem:[%s2259_s1 + $0xe8] sm:$0xff]   ;;  %s2266_s17 = smov (!%p245_p8, %s1292_s17), 3 }
  0x29   : > { %v1869_v26 = vld [vmem:[%s2259_s1 + $0x38] sm:$0xff]   ;;  %1406 = vmatprep.subr.bf16.mxu1 %v1863_v25  ;;  %v1893_v30 = vld [vmem:[%s2259_s1 + $0x30] sm:$0xff]   ;;  %v1917_v34 = vld [vmem:[%s2259_s1 + $0x28] sm:$0xff]   ;;  %s1293_s14 = sshll.u32 %s2266_s17, 2 }
  0x2a   : > { %v1875_v27 = vld [vmem:[%s2259_s1 + $0xb8] sm:$0xff]   ;;  %1385 = vmatpush3.bf16.msra.mxu0 %v1869_v26  ;;  %v1899_v31 = vld [vmem:[%s2259_s1 + $0xb0] sm:$0xff]   ;;  %v1923_v35 = vld [vmem:[%s2259_s1 + $0xa8] sm:$0xff]   ;;  %s248_s20 = scalar_lea.vmem %s2261_s3, %s1293_s14 }
  0x2b   : > { %1407 = vmatpush3.bf16.msra.mxu1 %v1875_v27  ;;  %1386 = vmatprep.subr.bf16.mxu0 %v1881_v28  ;;  %v1929_v36 = vld [vmem:[%s2259_s1 + $0x60] sm:$0xff]   ;;  %v1953_v40 = vld [vmem:[%s2259_s1 + $0x58] sm:$0xff]   ;;  %v1977_v44 = vld [vmem:[%s2259_s1 + $0x50] sm:$0xff]  }
  0x2c   : > { %1408 = vmatprep.subr.bf16.mxu1 %v1887_v29  ;;  %v1935_v37 = vld [vmem:[%s2259_s1 + $0xe0] sm:$0xff]   ;;  %v1959_v41 = vld [vmem:[%s2259_s1 + $0xd8] sm:$0xff]   ;;  %v1983_v45 = vld [vmem:[%s2259_s1 + $0xd0] sm:$0xff]  }
  0x2d   : > { %v1941_v38 = vld [vmem:[%s2259_s1 + $0x20] sm:$0xff]   ;;  %v1965_v42 = vld [vmem:[%s2259_s1 + $0x18] sm:$0xff]   ;;  %v1989_v46 = vld [vmem:[%s2259_s1 + $0x10] sm:$0xff]  }
  0x2e   : > { %1387 = vmatpush3.bf16.msra.mxu0 %v1893_v30  ;;  %v1947_v39 = vld [vmem:[%s2259_s1 + $0xa0] sm:$0xff]   ;;  %v1971_v43 = vld [vmem:[%s2259_s1 + $0x98] sm:$0xff]   ;;  %v1996_v47 = vld [vmem:[%s2259_s1 + $0x90] sm:$0xff]  }
  0x2f   : > { %1409 = vmatpush3.bf16.msra.mxu1 %v1899_v31  ;;  %1388 = vmatprep.subr.bf16.mxu0 %v1905_v32  ;;  %v2002_v48 = vld [vmem:[%s2259_s1 + $0x48] sm:$0xff]   ;;  %v2026_v52 = vld [vmem:[%s2259_s1 + $0x40] sm:$0xff]   ;;  %v2059_v61 = vld [vmem:[%s2259_s1 + $0x118] sm:$0xff]  }
  0x30   : > { %1410 = vmatprep.subr.bf16.mxu1 %v1911_v33  ;;  %v2008_v49 = vld [vmem:[%s2259_s1 + $0xc8] sm:$0xff]   ;;  %v2032_v53 = vld [vmem:[%s2259_s1 + $0xc0] sm:$0xff]   ;;  %v2065_v62 = vld [vmem:[%s2259_s1 + $0x110] sm:$0xff]  }
  0x31   : > { %v2014_v50 = vld [vmem:[%s2259_s1 + $0x8] sm:$0xff]   ;;  %v2038_v54 = vld [vmem:[%s2259_s1] sm:$0xff]   ;;  %v1712_v8 = vld [vmem:[%s2047_s29 + $0x5c] ss:$20 sps:$4 sm:$0xff]  }
  0x32   : > { %1389 = vmatpush3.bf16.msra.mxu0 %v1917_v34  ;;  %v2020_v51 = vld [vmem:[%s2259_s1 + $0x88] sm:$0xff]   ;;  %v2044_v55 = vld [vmem:[%s2259_s1 + $0x80] sm:$0xff]   ;;  %v1716_v11 = vld [vmem:[%s2047_s29 + $0x7c] ss:$20 sps:$4 sm:$0xff]  }
  0x33   : > { %1411 = vmatpush3.bf16.msra.mxu1 %v1923_v35  ;;  %1390 = vmatprep.subr.bf16.mxu0 %v1929_v36  ;;  %v1689_v56 = vld [vmem:[%s2047_s29] ss:$20 sps:$4 sm:$0xff]   ;;  %v1691_v57 = vld [vmem:[%s2047_s29 + $0x4] ss:$20 sps:$4 sm:$0xff]   ;;  %v1692_v59 = vld [vmem:[%s2047_s29 + $0x8] ss:$20 sps:$4 sm:$0xff]  }
  0x34   : > { %1412 = vmatprep.subr.bf16.mxu1 %v1935_v37  ;;  %v1694_v60 = vld [vmem:[%s2047_s29 + $0xc] ss:$20 sps:$4 sm:$0xff]   ;;  %613 = vmatprep.mubr.bf16.mxu0 %v1691_v57  ;;  %v1699_v2 = vld [vmem:[%s2047_s29 + $0x10] ss:$20 sps:$4 sm:$0xff]   ;;  %v1705_v3 = vld [vmem:[%s2047_s29 + $0x34] ss:$20 sps:$4 sm:$0xff]  }
  0x35   : > { %654 = vmatprep.mubr.bf16.mxu1 %v1694_v60  ;;  %v1702_v63 = vld [vmem:[%s2047_s29 + $0x2c] ss:$20 sps:$4 sm:$0xff]   ;;  %v1700_v4 = vld [vmem:[%s2047_s29 + $0x28] ss:$20 sps:$4 sm:$0xff]   ;;  %v1703_v5 = vld [vmem:[%s2047_s29 + $0x30] ss:$20 sps:$4 sm:$0xff]  }
  0x36   : > { %1391 = vmatpush3.bf16.msra.mxu0 %v1941_v38  ;;  %v2077_v0 = vld [vmem:[%s2259_s1 + $0x108] sm:$0xff]   ;;  %v2086_v1 = vld [vmem:[%s2259_s1 + $0x100] sm:$0xff]  }
  0x37   : > { %1413 = vmatpush3.bf16.msra.mxu1 %v1947_v39  ;;  %1392 = vmatprep.subr.bf16.mxu0 %v1953_v40  ;;  %v1706_v6 = vld [vmem:[%s2047_s29 + $0x38] ss:$20 sps:$4 sm:$0xff]   ;;  %v1709_v7 = vld [vmem:[%s2047_s29 + $0x54] ss:$20 sps:$4 sm:$0xff]   ;;  %v1707_v9 = vld [vmem:[%s2047_s29 + $0x50] ss:$20 sps:$4 sm:$0xff]  }
  0x38   : > { %1414 = vmatprep.subr.bf16.mxu1 %v1959_v41  ;;  %v1710_v10 = vld [vmem:[%s2047_s29 + $0x58] ss:$20 sps:$4 sm:$0xff]   ;;  %v1713_v12 = vld [vmem:[%s2047_s29 + $0x60] ss:$20 sps:$4 sm:$0xff]   ;;  %v1720_v16 = vld [vmem:[%s2047_s29 + $0x88] ss:$20 sps:$4 sm:$0xff]  }
  0x39   : > { %v1719_v13 = vld [vmem:[%s2047_s29 + $0x84] ss:$20 sps:$4 sm:$0xff]   ;;  %v1717_v15 = vld [vmem:[%s2047_s29 + $0x80] ss:$20 sps:$4 sm:$0xff]  }
  0x3a   : > { %1393 = vmatpush3.bf16.msra.mxu0 %v1965_v42  ;;  %v1714_v14 = vld [vmem:[%s2047_s29 + $0x78] ss:$20 sps:$4 sm:$0xff]   ;;  %v2233_v19 = vld [vmem:[%s2260_s2] ss:$0 sm:$0xff] }
  0x3b   : > { %1415 = vmatpush3.bf16.msra.mxu1 %v1971_v43  ;;  %1394 = vmatprep.subr.bf16.mxu0 %v1977_v44 }
  0x3c   : > { %1416 = vmatprep.subr.bf16.mxu1 %v1983_v45 }
  0x3e   : > { %1395 = vmatpush3.bf16.msra.mxu0 %v1989_v46 }
  0x3f   : > { %1417 = vmatpush3.bf16.msra.mxu1 %v1996_v47  ;;  %1396 = vmatprep.subr.bf16.mxu0 %v2002_v48 }
  0x40   : > { %1418 = vmatprep.subr.bf16.mxu1 %v2008_v49 }
  0x42   : > { %1397 = vmatpush3.bf16.msra.mxu0 %v2014_v50 }
  0x43   : > { %1419 = vmatpush3.bf16.msra.mxu1 %v2020_v51  ;;  %1398 = vmatprep.subr.bf16.mxu0 %v2026_v52 }
  0x44   : > { %1420 = vmatprep.subr.bf16.mxu1 %v2032_v53 }
  0x46   : > { %1399 = vmatpush3.bf16.msra.mxu0 %v2038_v54 }
  0x47   : > { %1421 = vmatpush3.bf16.msra.mxu1 %v2044_v55  ;;  %1580 = vmatprep.subr.bf16.mxu0 %v1745_v58 }
  0x48   : > { %1433 = vmatprep.subr.bf16.mxu1 %v1858_v24 }
  0x49   : > { %614 = vmatmul.mubr.bf16.vlgmr.msra.gmra.mxu0 %v1689_v56 }
  0x4a   : > { %655 = vmatmul.mubr.bf16.vlgmr.msra.gmra.mxu1 %v1692_v59  ;;  %1581 = vmatpush3.bf16.msra.mxu0 %v2059_v61 }
  0x4b   : > { %1434 = vmatpush3.bf16.msra.mxu1 %v1869_v26  ;;  %1582 = vmatprep.subr.bf16.mxu0 %v1745_v58 }
  0x4c   : > { %1435 = vmatprep.subr.bf16.mxu1 %v1881_v28  ;;  %1588 = vmatprep.mubr.msk.bf16.mxu0 %vm1746_vm0, %v1745_v58 }
  0x4d   : > { %773 = vmatprep.mubr.bf16.mxu1 %v1702_v63 }
  0x4e   : > { %1583 = vmatpush3.bf16.msra.mxu0 %v2065_v62 }
  0x4f   : > { %1436 = vmatpush3.bf16.msra.mxu1 %v1893_v30  ;;  %1584 = vmatprep.subr.bf16.mxu0 %v1745_v58 }
  0x50   : > { %1437 = vmatprep.subr.bf16.mxu1 %v1905_v32 }
  0x52   : > { %1585 = vmatpush3.bf16.msra.mxu0 %v2077_v0 }
  0x53   : > { %1438 = vmatpush3.bf16.msra.mxu1 %v1917_v34  ;;  %1586 = vmatprep.subr.bf16.mxu0 %v1745_v58 }
  0x54   : > { %1439 = vmatprep.subr.bf16.mxu1 %v1929_v36 }
  0x56   : > { %1587 = vmatpush3.bf16.msra.mxu0 %v2086_v1 }
  0x57   : > { %1440 = vmatpush3.bf16.msra.mxu1 %v1941_v38  ;;  %1455 = vmatprep.subr.bf16.mxu0 %v1863_v25 }
  0x58   : > { %1441 = vmatprep.subr.bf16.mxu1 %v1953_v40 }
  0x59   : > { %1589 = vmatmul.mubr.msk.bf16.vlgmr.msra.gmra.mxu0 %vm577_vm1, %v1699_v2 }
  0x5a   : > { %1456 = vmatpush3.bf16.msra.mxu0 %v1875_v27  ;;  %814 = vmatprep.mubr.bf16.mxu0 %v1705_v3 }
  0x5b   : > { %1442 = vmatpush3.bf16.msra.mxu1 %v1965_v42  ;;  %1457 = vmatprep.subr.bf16.mxu0 %v1887_v29 }
  0x5c   : > { %1443 = vmatprep.subr.bf16.mxu1 %v1977_v44 }
  0x5e   : > { %1458 = vmatpush3.bf16.msra.mxu0 %v1899_v31 }
  0x5f   : > { %1444 = vmatpush3.bf16.msra.mxu1 %v1989_v46  ;;  %1459 = vmatprep.subr.bf16.mxu0 %v1911_v33 }
  0x60   : > { %1445 = vmatprep.subr.bf16.mxu1 %v2002_v48 }
  0x62   : > { %1460 = vmatpush3.bf16.msra.mxu0 %v1923_v35 }
  0x63   : > { %1446 = vmatpush3.bf16.msra.mxu1 %v2014_v50  ;;  %1461 = vmatprep.subr.bf16.mxu0 %v1935_v37 }
  0x64   : > { %1447 = vmatprep.subr.bf16.mxu1 %v2026_v52 }
  0x66   : > { %1462 = vmatpush3.bf16.msra.mxu0 %v1947_v39 }
  0x67   : > { %1448 = vmatpush3.bf16.msra.mxu1 %v2038_v54  ;;  %1463 = vmatprep.subr.bf16.mxu0 %v1959_v41 }
  0x68   : > { %1592 = vmatprep.subr.bf16.mxu1 %v1745_v58 }
  0x6a   : > { %774 = vmatmul.mubr.bf16.vlgmr.msra.gmra.mxu1 %v1700_v4  ;;  %1464 = vmatpush3.bf16.msra.mxu0 %v1971_v43 }
  0x6b   : > { %1593 = vmatpush3.bf16.msra.mxu1 %v2059_v61  ;;  %1465 = vmatprep.subr.bf16.mxu0 %v1983_v45 }
  0x6c   : > { %1594 = vmatprep.subr.bf16.mxu1 %v1745_v58  ;;  %1600 = vmatprep.mubr.msk.bf16.mxu1 %vm1746_vm0, %v1745_v58 }
  0x6e   : > { %1466 = vmatpush3.bf16.msra.mxu0 %v1996_v47 }
  0x6f   : > { %1595 = vmatpush3.bf16.msra.mxu1 %v2065_v62  ;;  %1467 = vmatprep.subr.bf16.mxu0 %v2008_v49 }
  0x70   : > { %1596 = vmatprep.subr.bf16.mxu1 %v1745_v58 }
  0x72   : > { %1468 = vmatpush3.bf16.msra.mxu0 %v2020_v51 }
  0x73   : > { %1597 = vmatpush3.bf16.msra.mxu1 %v2077_v0  ;;  %1469 = vmatprep.subr.bf16.mxu0 %v2032_v53 }
  0x74   : > { %1598 = vmatprep.subr.bf16.mxu1 %v1745_v58 }
  0x76   : > { %1470 = vmatpush3.bf16.msra.mxu0 %v2044_v55 }
  0x77   : > { %1599 = vmatpush3.bf16.msra.mxu1 %v2086_v1  ;;  %1482 = vmatprep.subr.bf16.mxu0 %v1858_v24 }
  0x78   : > { %1504 = vmatprep.subr.bf16.mxu1 %v1863_v25 }
  0x79   : > { %815 = vmatmul.mubr.bf16.vlgmr.msra.gmra.mxu0 %v1703_v5 }
  0x7a   : > { %1601 = vmatmul.mubr.msk.bf16.vlgmr.msra.gmra.mxu1 %vm577_vm1, %v1706_v6  ;;  %1483 = vmatpush3.bf16.msra.mxu0 %v1869_v26 }
  0x7b   : > { %1505 = vmatpush3.bf16.msra.mxu1 %v1875_v27  ;;  %1484 = vmatprep.subr.bf16.mxu0 %v1881_v28 }
  0x7c   : > { %1506 = vmatprep.subr.bf16.mxu1 %v1887_v29  ;;  %935 = vmatprep.mubr.bf16.mxu0 %v1709_v7 }
  0x7d   : > { %976 = vmatprep.mubr.bf16.mxu1 %v1712_v8 }
  0x7e   : > { %1485 = vmatpush3.bf16.msra.mxu0 %v1893_v30 }
  0x7f   : > { %1507 = vmatpush3.bf16.msra.mxu1 %v1899_v31  ;;  %1486 = vmatprep.subr.bf16.mxu0 %v1905_v32 }
  0x80   : > { %1508 = vmatprep.subr.bf16.mxu1 %v1911_v33 }
  0x82   : > { %1487 = vmatpush3.bf16.msra.mxu0 %v1917_v34 }
  0x83   : > { %1509 = vmatpush3.bf16.msra.mxu1 %v1923_v35  ;;  %1488 = vmatprep.subr.bf16.mxu0 %v1929_v36 }
  0x84   : > { %1510 = vmatprep.subr.bf16.mxu1 %v1935_v37 }
  0x86   : > { %1489 = vmatpush3.bf16.msra.mxu0 %v1941_v38 }
  0x87   : > { %1511 = vmatpush3.bf16.msra.mxu1 %v1947_v39  ;;  %1490 = vmatprep.subr.bf16.mxu0 %v1953_v40 }
  0x88   : > { %1512 = vmatprep.subr.bf16.mxu1 %v1959_v41 }
  0x8a   : > { %1491 = vmatpush3.bf16.msra.mxu0 %v1965_v42 }
  0x8b   : > { %1513 = vmatpush3.bf16.msra.mxu1 %v1971_v43  ;;  %1492 = vmatprep.subr.bf16.mxu0 %v1977_v44 }
  0x8c   : > { %1514 = vmatprep.subr.bf16.mxu1 %v1983_v45 }
  0x8e   : > { %1493 = vmatpush3.bf16.msra.mxu0 %v1989_v46 }
  0x8f   : > { %1515 = vmatpush3.bf16.msra.mxu1 %v1996_v47  ;;  %1494 = vmatprep.subr.bf16.mxu0 %v2002_v48 }
  0x90   : > { %1516 = vmatprep.subr.bf16.mxu1 %v2008_v49 }
  0x92   : > { %1495 = vmatpush3.bf16.msra.mxu0 %v2014_v50 }
  0x93   : > { %1517 = vmatpush3.bf16.msra.mxu1 %v2020_v51  ;;  %1496 = vmatprep.subr.bf16.mxu0 %v2026_v52 }
  0x94   : > { %1518 = vmatprep.subr.bf16.mxu1 %v2032_v53 }
  0x96   : > { %1497 = vmatpush3.bf16.msra.mxu0 %v2038_v54 }
  0x97   : > { %1519 = vmatpush3.bf16.msra.mxu1 %v2044_v55  ;;  %1604 = vmatprep.subr.bf16.mxu0 %v1745_v58 }
  0x98   : > { %1531 = vmatprep.subr.bf16.mxu1 %v1858_v24 }
  0x99   : > { %936 = vmatmul.mubr.bf16.vlgmr.msra.gmra.mxu0 %v1707_v9 }
  0x9a   : > { %977 = vmatmul.mubr.bf16.vlgmr.msra.gmra.mxu1 %v1710_v10  ;;  %1605 = vmatpush3.bf16.msra.mxu0 %v2059_v61 }
  0x9b   : > { %1532 = vmatpush3.bf16.msra.mxu1 %v1869_v26  ;;  %1606 = vmatprep.subr.bf16.mxu0 %v1745_v58 }
  0x9c   : > { %1533 = vmatprep.subr.bf16.mxu1 %v1881_v28  ;;  %1612 = vmatprep.mubr.msk.bf16.mxu0 %vm1746_vm0, %v1745_v58 }
  0x9d   : > { %1097 = vmatprep.mubr.bf16.mxu1 %v1716_v11 }
  0x9e   : > { %1607 = vmatpush3.bf16.msra.mxu0 %v2065_v62 }
  0x9f   : > { %1534 = vmatpush3.bf16.msra.mxu1 %v1893_v30  ;;  %1608 = vmatprep.subr.bf16.mxu0 %v1745_v58 }
  0xa0   : > { %1535 = vmatprep.subr.bf16.mxu1 %v1905_v32 }
  0xa2   : > { %1609 = vmatpush3.bf16.msra.mxu0 %v2077_v0 }
  0xa3   : > { %1536 = vmatpush3.bf16.msra.mxu1 %v1917_v34  ;;  %1610 = vmatprep.subr.bf16.mxu0 %v1745_v58 }
  0xa4   : > { %1537 = vmatprep.subr.bf16.mxu1 %v1929_v36 }
  0xa6   : > { %1611 = vmatpush3.bf16.msra.mxu0 %v2086_v1 }
  0xa7   : > { %1538 = vmatpush3.bf16.msra.mxu1 %v1941_v38  ;;  %1553 = vmatprep.subr.bf16.mxu0 %v1863_v25 }
  0xa8   : > { %1539 = vmatprep.subr.bf16.mxu1 %v1953_v40 }
  0xa9   : > { %1613 = vmatmul.mubr.msk.bf16.vlgmr.msra.gmra.mxu0 %vm577_vm1, %v1713_v12 }
  0xaa   : > { %1554 = vmatpush3.bf16.msra.mxu0 %v1875_v27  ;;  %1138 = vmatprep.mubr.bf16.mxu0 %v1719_v13 }
  0xab   : > { %1540 = vmatpush3.bf16.msra.mxu1 %v1965_v42  ;;  %1555 = vmatprep.subr.bf16.mxu0 %v1887_v29 }
  0xac   : > { %1541 = vmatprep.subr.bf16.mxu1 %v1977_v44 }
  0xae   : > { %1556 = vmatpush3.bf16.msra.mxu0 %v1899_v31 }
  0xaf   : > { %1542 = vmatpush3.bf16.msra.mxu1 %v1989_v46  ;;  %1557 = vmatprep.subr.bf16.mxu0 %v1911_v33 }
  0xb0   : > { %1543 = vmatprep.subr.bf16.mxu1 %v2002_v48 }
  0xb2   : > { %1558 = vmatpush3.bf16.msra.mxu0 %v1923_v35 }
  0xb3   : > { %1544 = vmatpush3.bf16.msra.mxu1 %v2014_v50  ;;  %1559 = vmatprep.subr.bf16.mxu0 %v1935_v37 }
  0xb4   : > { %1545 = vmatprep.subr.bf16.mxu1 %v2026_v52 }
  0xb6   : > { %1560 = vmatpush3.bf16.msra.mxu0 %v1947_v39 }
  0xb7   : > { %1546 = vmatpush3.bf16.msra.mxu1 %v2038_v54  ;;  %1561 = vmatprep.subr.bf16.mxu0 %v1959_v41 }
  0xb8   : > { %1616 = vmatprep.subr.bf16.mxu1 %v1745_v58 }
  0xba   : > { %1098 = vmatmul.mubr.bf16.vlgmr.msra.gmra.mxu1 %v1714_v14  ;;  %1562 = vmatpush3.bf16.msra.mxu0 %v1971_v43 }
  0xbb   : > { %1617 = vmatpush3.bf16.msra.mxu1 %v2059_v61  ;;  %1563 = vmatprep.subr.bf16.mxu0 %v1983_v45 }
  0xbc   : > { %1618 = vmatprep.subr.bf16.mxu1 %v1745_v58  ;;  %1624 = vmatprep.mubr.msk.bf16.mxu1 %vm1746_vm0, %v1745_v58 }
  0xbe   : > { %1564 = vmatpush3.bf16.msra.mxu0 %v1996_v47 }
  0xbf   : > { %1619 = vmatpush3.bf16.msra.mxu1 %v2065_v62  ;;  %1565 = vmatprep.subr.bf16.mxu0 %v2008_v49 }
  0xc0   : > { %1620 = vmatprep.subr.bf16.mxu1 %v1745_v58 }
  0xc2   : > { %1566 = vmatpush3.bf16.msra.mxu0 %v2020_v51 }
  0xc3   : > { %1621 = vmatpush3.bf16.msra.mxu1 %v2077_v0  ;;  %1567 = vmatprep.subr.bf16.mxu0 %v2032_v53 }
  0xc4   : > { %1622 = vmatprep.subr.bf16.mxu1 %v1745_v58 }
  0xc6   : > { %1568 = vmatpush3.bf16.msra.mxu0 %v2044_v55 }
  0xc7   : > { %1623 = vmatpush3.bf16.msra.mxu1 %v2086_v1 }
  0xc9   : > { %1139 = vmatmul.mubr.bf16.vlgmr.msra.gmra.mxu0 %v1717_v15 }
  0xca   : > { %1625 = vmatmul.mubr.msk.bf16.vlgmr.msra.gmra.mxu1 %vm577_vm1, %v1720_v16 }
 0x109   : > { %v1400_v17 = vpop.f32.mrf.mxu0 }
 0x10a   : > { %v1422_v18 = vpop.f32.mrf.mxu1 }
 0x10b   : > { %v1401_v20 = vpop.f32.mrf.mxu0 }
 0x10c   : > { %v1402_v21 = vadd.f32 %v1401_v20, %v1400_v17  ;;  %v1423_v22 = vpop.f32.mrf.mxu1 }
 0x10d   : > { %v1424_v23 = vadd.f32 %v1423_v22, %v1422_v18  ;;  %v1403_v24 = vpop.f32.mrf.mxu0 }
 0x10e   : > { %v616_v25 = vadd.f32 %v1402_v21, %v2233_v19  ;;  %v1425_v26 = vpop.f32.mrf.mxu1 }
 0x10f   : > { %v1404_v27 = vpop.f32.mrf.mxu0 }
 0x110   : > { %v1405_v28 = vadd.f32 %v1404_v27, %v1403_v24  ;;  %v1426_v29 = vpop.f32.mrf.mxu1  ;;  %v657_v30 = vadd.f32 %v1424_v23, %v616_v25 }
 0x111   : > { %v1427_v31 = vadd.f32 %v1426_v29, %v1425_v26 }
 0x112   : > { %v619_v32 = vadd.f32 %v1405_v28, %v2233_v19 }
 0x114   : > { %v660_v33 = vadd.f32 %v1427_v31, %v619_v32 }
 0x119   : > { %v697_v34 = vpop.f32.mrf.mxu0 }
 0x11a   : > { %v698_v35 = vadd.f32 %v697_v34, %v657_v30 }
 0x11b   : > { %v1590_v36 = vpop.f32.mrf.mxu0 }
 0x11c   : > { %v704_v60 = vmax.f32 %v698_v35, 0.0 }
 0x11d   : > { %v700_v37 = vpop.f32.mrf.mxu0 }
 0x11e   : > { %v701_v38 = vadd.f32 %v700_v37, %v660_v33 }
 0x11f   : > { %v1591_v39 = vpop.f32.mrf.mxu0 }
 0x120   : > { %v705_v1 = vmax.f32 %v701_v38, 0.0 }
 0x12a   : > { %v1449_v40 = vpop.f32.mrf.mxu1 }
 0x12c   : > { %v1450_v41 = vpop.f32.mrf.mxu1 }
 0x12d   : > { %v1451_v42 = vadd.f32 %v1450_v41, %v1449_v40 }
 0x12e   : > { %v1452_v43 = vpop.f32.mrf.mxu1 }
 0x12f   : > { %v776_v49 = vadd.f32 %v1451_v42, %v2233_v19 }
 0x130   : > { %v1453_v44 = vpop.f32.mrf.mxu1 }
 0x131   : > { %v1454_v45 = vadd.f32 %v1453_v44, %v1452_v43 }
 0x133   : > { %v779_v56 = vadd.f32 %v1454_v45, %v2233_v19 }
 0x139   : > { %v1471_v46 = vpop.f32.mrf.mxu0 }
 0x13a   : > { %v857_v47 = vpop.f32.mrf.mxu1 }
 0x13b   : > { %v1472_v48 = vpop.f32.mrf.mxu0 }
 0x13c   : > { %v1473_v50 = vadd.f32 %v1472_v48, %v1471_v46  ;;  %v1602_v51 = vpop.f32.mrf.mxu1 }
 0x13d   : > { %v1474_v52 = vpop.f32.mrf.mxu0 }
 0x13e   : > { %v817_v53 = vadd.f32 %v1473_v50, %v776_v49  ;;  %v860_v54 = vpop.f32.mrf.mxu1 }
 0x13f   : > { %v1475_v55 = vpop.f32.mrf.mxu0 }
 0x140   : > { %v858_v57 = vadd.f32 %v857_v47, %v817_v53  ;;  %v1476_v58 = vadd.f32 %v1475_v55, %v1474_v52  ;;  %v1603_v59 = vpop.f32.mrf.mxu1 }
 0x142   : > { %v864_v61 = vmax.f32 %v858_v57, 0.0  ;;  %v820_v62 = vadd.f32 %v1476_v58, %v779_v56 }
 0x144   : > { %v861_v63 = vadd.f32 %v860_v54, %v820_v62  ;;  %v866_v0 = vmax.f32 %v704_v60, %v864_v61 }
 0x146   : > { %v865_v2 = vmax.f32 %v861_v63, 0.0 }
 0x148   : > { %v867_v3 = vmax.f32 %v705_v1, %v865_v2 }
 0x159   : > { %v1498_v4 = vpop.f32.mrf.mxu0 }
 0x15a   : > { %v1520_v11 = vpop.f32.mrf.mxu1 }
 0x15b   : > { %v1499_v5 = vpop.f32.mrf.mxu0 }
 0x15c   : > { %v1521_v13 = vpop.f32.mrf.mxu1  ;;  %v1500_v18 = vadd.f32 %v1499_v5, %v1498_v4 }
 0x15d   : > { %v1501_v6 = vpop.f32.mrf.mxu0  ;;  %v1522_v23 = vadd.f32 %v1521_v13, %v1520_v11 }
 0x15e   : > { %v1523_v14 = vpop.f32.mrf.mxu1  ;;  %v938_v22 = vadd.f32 %v1500_v18, %v2233_v19 }
 0x15f   : > { %v1502_v7 = vpop.f32.mrf.mxu0 }
 0x160   : > { %v1524_v15 = vpop.f32.mrf.mxu1  ;;  %v1503_v20 = vadd.f32 %v1502_v7, %v1501_v6  ;;  %v979_v30 = vadd.f32 %v1522_v23, %v938_v22 }
 0x161   : > { %v1525_v25 = vadd.f32 %v1524_v15, %v1523_v14 }
 0x162   : > { %v941_v24 = vadd.f32 %v1503_v20, %v2233_v19 }
 0x164   : > { %v982_v32 = vadd.f32 %v1525_v25, %v941_v24 }
 0x169   : > { %v1019_v8 = vpop.f32.mrf.mxu0 }
 0x16a   : > { %v1020_v38 = vadd.f32 %v1019_v8, %v979_v30 }
 0x16b   : > { %v1614_v9 = vpop.f32.mrf.mxu0 }
 0x16c   : > { %v1026_v47 = vmax.f32 %v1020_v38, 0.0 }
 0x16d   : > { %v1022_v10 = vpop.f32.mrf.mxu0 }
 0x16e   : > { %v1023_v39 = vadd.f32 %v1022_v10, %v982_v32  ;;  %v1028_v52 = vmax.f32 %v866_v0, %v1026_v47 }
 0x16f   : > { %v1615_v12 = vpop.f32.mrf.mxu0 }
 0x170   : > { %v1027_v48 = vmax.f32 %v1023_v39, 0.0 }
 0x172   : > { %v1029_v53 = vmax.f32 %v867_v3, %v1027_v48 }
 0x17a   : > { %v1547_v16 = vpop.f32.mrf.mxu1 }
 0x17c   : > { %v1548_v17 = vpop.f32.mrf.mxu1 }
 0x17d   : > { %v1549_v26 = vadd.f32 %v1548_v17, %v1547_v16 }
 0x17e   : > { %v1550_v21 = vpop.f32.mrf.mxu1 }
 0x17f   : > { %v1100_v33 = vadd.f32 %v1549_v26, %v2233_v19 }
 0x180   : > { %v1551_v27 = vpop.f32.mrf.mxu1 }
 0x181   : > { %v1552_v34 = vadd.f32 %v1551_v27, %v1550_v21 }
 0x183   : > { %v1103_v43 = vadd.f32 %v1552_v34, %v2233_v19 }
 0x189   : > { %v1569_v28 = vpop.f32.mrf.mxu0 }
 0x18a   : > { %v1181_v29 = vpop.f32.mrf.mxu1 }
 0x18b   : > { %v1570_v31 = vpop.f32.mrf.mxu0 }
 0x18c   : > { %v1571_v35 = vadd.f32 %v1570_v31, %v1569_v28  ;;  %v1626_v36 = vpop.f32.mrf.mxu1 }
 0x18d   : > { %v1572_v37 = vpop.f32.mrf.mxu0 }
 0x18e   : > { %v1141_v40 = vadd.f32 %v1571_v35, %v1100_v33  ;;  %v1184_v41 = vpop.f32.mrf.mxu1 }
 0x18f   : > { %v1573_v42 = vpop.f32.mrf.mxu0 }
 0x190   : > { %v1182_v44 = vadd.f32 %v1181_v29, %v1141_v40  ;;  %v1574_v45 = vadd.f32 %v1573_v42, %v1572_v37  ;;  %v1627_v46 = vpop.f32.mrf.mxu1 }
 0x192   : > { %v1144_v49 = vadd.f32 %v1574_v45, %v1103_v43  ;;  %v1188_v50 = vmax.f32 %v1182_v44, 0.0 }
 0x194   : > { %v1185_v51 = vadd.f32 %v1184_v41, %v1144_v49  ;;  %v1190_v55 = vmax.f32 %v1028_v52, %v1188_v50 }
 0x196   : > { %v1189_v54 = vmax.f32 %v1185_v51, 0.0 }
 0x198   : > { %v1191_v56 = vmax.f32 %v1029_v53, %v1189_v54 }
 0x19a   : > { %v1382_v19 = vpack.c.bf16 %v1191_v56, %v1190_v55 }
 0x19c   : > { %1383 = vst [vmem:[%s248_s20] sm:$0xff] %v1382_v19  }
 0x19d PF: > { %p10_p9 = scmp.ge.s32.totalorder %s1784_s16, 4   ;;  %s2262_s12 = smov %s1739_s13 }
 0x19e   : > { %s2263_s13 = smov %s1793_s19  ;;  %s2264_s14 = smov %s1784_s16 }
 0x19f   :  { %12 = sbr.rel (!%p10_p9) target bundleno = 2 (0x2), region = 102 }

// kernel: cnn_forward.9
= control target key start
LH: loop header
LB: loop body
LE: loop exit
PB: predicated region body
PF: predicated region fallthrough
CT: control target
= control target key end

     0   :  { %vm1131_vm0 = vmmov 0   ;;  %vm236_vm1 = vcmask 261120   ;;  %s1868_s1 = inlined_call_operand.vmem [shape: f32[1568,128], index: 1, kind: input, shape index: {}]   ;;  %s1869_s0 = inlined_call_operand.vmem [shape: f32[8,1568], index: 0, kind: input, shape index: {}]   ;;  %s1870_s3 = inlined_call_operand.vmem [shape: f32[128,128], index: 3, kind: input, shape index: {}]   ;;  %s1871_s2 = inlined_call_operand.vmem [shape: f32[1,128], index: 2, kind: input, shape index: {}]   ;;  %s1872_s4 = inlined_call_operand.vmem [shape: f32[1,128], index: 4, kind: input, shape index: {}]   ;;  %s1873_s5 = inlined_call_operand.vmem [shape: f32[8,128], index: 5, kind: output, shape index: {}]  }
   0x1   :  { %v64_v0 = vld [vmem:[%s1868_s1 + $0xf8] sm:$0xff]  ;;  %v63_v4 = vld [vmem:[%s1868_s1 + $0xf0] sm:$0xff]  ;;  %v62_v8 = vld [vmem:[%s1868_s1 + $0xe8] sm:$0xff] }
   0x2   :  { %v96_v1 = vld [vmem:[%s1868_s1 + $0x1f8] sm:$0xff]  ;;  %846 = vmatprep.subr.mxu0 %v64_v0  ;;  %v95_v5 = vld [vmem:[%s1868_s1 + $0x1f0] sm:$0xff]  ;;  %v94_v9 = vld [vmem:[%s1868_s1 + $0x1e8] sm:$0xff] }
   0x3   :  { %v48_v2 = vld [vmem:[%s1868_s1 + $0x78] sm:$0xff]  ;;  %881 = vmatprep.subr.mxu1 %v96_v1  ;;  %v47_v6 = vld [vmem:[%s1868_s1 + $0x70] sm:$0xff]  ;;  %v46_v10 = vld [vmem:[%s1868_s1 + $0x68] sm:$0xff] }
   0x4   :  { %v80_v3 = vld [vmem:[%s1868_s1 + $0x178] sm:$0xff]  ;;  %847 = vmatpush3.msra.mxu0 %v48_v2  ;;  %v79_v7 = vld [vmem:[%s1868_s1 + $0x170] sm:$0xff]  ;;  %v78_v11 = vld [vmem:[%s1868_s1 + $0x168] sm:$0xff] }
   0x5   :  { %882 = vmatpush3.msra.mxu1 %v80_v3  ;;  %848 = vmatprep.subr.mxu0 %v63_v4  ;;  %v61_v12 = vld [vmem:[%s1868_s1 + $0xe0] sm:$0xff]  ;;  %v60_v16 = vld [vmem:[%s1868_s1 + $0xd8] sm:$0xff]  ;;  %v59_v20 = vld [vmem:[%s1868_s1 + $0xd0] sm:$0xff] }
   0x6   :  { %883 = vmatprep.subr.mxu1 %v95_v5  ;;  %849 = vmatpush3.msra.mxu0 %v47_v6  ;;  %v93_v13 = vld [vmem:[%s1868_s1 + $0x1e0] sm:$0xff]  ;;  %v92_v17 = vld [vmem:[%s1868_s1 + $0x1d8] sm:$0xff]  ;;  %v91_v21 = vld [vmem:[%s1868_s1 + $0x1d0] sm:$0xff] }
   0x7   :  { %884 = vmatpush3.msra.mxu1 %v79_v7  ;;  %850 = vmatprep.subr.mxu0 %v62_v8  ;;  %v45_v14 = vld [vmem:[%s1868_s1 + $0x60] sm:$0xff]  ;;  %v44_v18 = vld [vmem:[%s1868_s1 + $0x58] sm:$0xff]  ;;  %v43_v22 = vld [vmem:[%s1868_s1 + $0x50] sm:$0xff] }
   0x8   :  { %885 = vmatprep.subr.mxu1 %v94_v9  ;;  %v77_v15 = vld [vmem:[%s1868_s1 + $0x160] sm:$0xff]  ;;  %851 = vmatpush3.msra.mxu0 %v46_v10  ;;  %v76_v19 = vld [vmem:[%s1868_s1 + $0x158] sm:$0xff]  ;;  %v75_v23 = vld [vmem:[%s1868_s1 + $0x150] sm:$0xff] }
   0x9   :  { %886 = vmatpush3.msra.mxu1 %v78_v11  ;;  %852 = vmatprep.subr.mxu0 %v61_v12  ;;  %v58_v24 = vld [vmem:[%s1868_s1 + $0xc8] sm:$0xff]  ;;  %v57_v28 = vld [vmem:[%s1868_s1 + $0xc0] sm:$0xff]  ;;  %v56_v32 = vld [vmem:[%s1868_s1 + $0xb8] sm:$0xff] }
   0xa   :  { %887 = vmatprep.subr.mxu1 %v93_v13  ;;  %853 = vmatpush3.msra.mxu0 %v45_v14  ;;  %v90_v25 = vld [vmem:[%s1868_s1 + $0x1c8] sm:$0xff]  ;;  %v89_v29 = vld [vmem:[%s1868_s1 + $0x1c0] sm:$0xff]  ;;  %v88_v33 = vld [vmem:[%s1868_s1 + $0x1b8] sm:$0xff] }
   0xb   :  { %888 = vmatpush3.msra.mxu1 %v77_v15  ;;  %854 = vmatprep.subr.mxu0 %v60_v16  ;;  %v42_v26 = vld [vmem:[%s1868_s1 + $0x48] sm:$0xff]  ;;  %v41_v30 = vld [vmem:[%s1868_s1 + $0x40] sm:$0xff]  ;;  %v40_v34 = vld [vmem:[%s1868_s1 + $0x38] sm:$0xff] }
   0xc   :  { %889 = vmatprep.subr.mxu1 %v92_v17  ;;  %855 = vmatpush3.msra.mxu0 %v44_v18  ;;  %v74_v27 = vld [vmem:[%s1868_s1 + $0x148] sm:$0xff]  ;;  %v73_v31 = vld [vmem:[%s1868_s1 + $0x140] sm:$0xff]  ;;  %v72_v35 = vld [vmem:[%s1868_s1 + $0x138] sm:$0xff] }
   0xd   :  { %890 = vmatpush3.msra.mxu1 %v76_v19  ;;  %856 = vmatprep.subr.mxu0 %v59_v20  ;;  %v55_v36 = vld [vmem:[%s1868_s1 + $0xb0] sm:$0xff]  ;;  %v54_v40 = vld [vmem:[%s1868_s1 + $0xa8] sm:$0xff]  ;;  %v53_v44 = vld [vmem:[%s1868_s1 + $0xa0] sm:$0xff] }
   0xe   :  { %891 = vmatprep.subr.mxu1 %v91_v21  ;;  %857 = vmatpush3.msra.mxu0 %v43_v22  ;;  %v87_v37 = vld [vmem:[%s1868_s1 + $0x1b0] sm:$0xff]  ;;  %v86_v41 = vld [vmem:[%s1868_s1 + $0x1a8] sm:$0xff]  ;;  %v85_v45 = vld [vmem:[%s1868_s1 + $0x1a0] sm:$0xff] }
   0xf   :  { %892 = vmatpush3.msra.mxu1 %v75_v23  ;;  %858 = vmatprep.subr.mxu0 %v58_v24  ;;  %v39_v38 = vld [vmem:[%s1868_s1 + $0x30] sm:$0xff]  ;;  %v38_v42 = vld [vmem:[%s1868_s1 + $0x28] sm:$0xff]  ;;  %v37_v46 = vld [vmem:[%s1868_s1 + $0x20] sm:$0xff] }
  0x10   :  { %893 = vmatprep.subr.mxu1 %v90_v25  ;;  %859 = vmatpush3.msra.mxu0 %v42_v26  ;;  %v71_v39 = vld [vmem:[%s1868_s1 + $0x130] sm:$0xff]  ;;  %v70_v43 = vld [vmem:[%s1868_s1 + $0x128] sm:$0xff]  ;;  %v69_v47 = vld [vmem:[%s1868_s1 + $0x120] sm:$0xff] }
  0x11   :  { %894 = vmatpush3.msra.mxu1 %v74_v27  ;;  %860 = vmatprep.subr.mxu0 %v57_v28  ;;  %v52_v48 = vld [vmem:[%s1868_s1 + $0x98] sm:$0xff]  ;;  %v51_v52 = vld [vmem:[%s1868_s1 + $0x90] sm:$0xff]  ;;  %v50_v56 = vld [vmem:[%s1868_s1 + $0x88] sm:$0xff] }
  0x12   :  { %895 = vmatprep.subr.mxu1 %v89_v29  ;;  %861 = vmatpush3.msra.mxu0 %v41_v30  ;;  %v84_v49 = vld [vmem:[%s1868_s1 + $0x198] sm:$0xff]  ;;  %v83_v53 = vld [vmem:[%s1868_s1 + $0x190] sm:$0xff]  ;;  %v82_v57 = vld [vmem:[%s1868_s1 + $0x188] sm:$0xff] }
  0x13   :  { %896 = vmatpush3.msra.mxu1 %v73_v31  ;;  %862 = vmatprep.subr.mxu0 %v56_v32  ;;  %v36_v50 = vld [vmem:[%s1868_s1 + $0x18] sm:$0xff]  ;;  %v35_v54 = vld [vmem:[%s1868_s1 + $0x10] sm:$0xff]  ;;  %v34_v58 = vld [vmem:[%s1868_s1 + $0x8] sm:$0xff] }
  0x14   :  { %897 = vmatprep.subr.mxu1 %v88_v33  ;;  %863 = vmatpush3.msra.mxu0 %v40_v34  ;;  %v68_v51 = vld [vmem:[%s1868_s1 + $0x118] sm:$0xff]  ;;  %v67_v55 = vld [vmem:[%s1868_s1 + $0x110] sm:$0xff]  ;;  %v66_v59 = vld [vmem:[%s1868_s1 + $0x108] sm:$0xff] }
  0x15   :  { %898 = vmatpush3.msra.mxu1 %v72_v35  ;;  %864 = vmatprep.subr.mxu0 %v55_v36  ;;  %v49_v60 = vld [vmem:[%s1868_s1 + $0x80] sm:$0xff]  ;;  %v21_v63 = vld [vmem:[%s1869_s0 + $0x8] sm:$0xff]  ;;  %v23_v2 = vld [vmem:[%s1869_s0 + $0x18] sm:$0xff] }
  0x16   :  { %899 = vmatprep.subr.mxu1 %v87_v37  ;;  %865 = vmatpush3.msra.mxu0 %v39_v38  ;;  %v81_v61 = vld [vmem:[%s1868_s1 + $0x180] sm:$0xff]  ;;  %v128_v3 = vld [vmem:[%s1868_s1 + $0x2f8] sm:$0xff]  ;;  %v22_v5 = vld [vmem:[%s1869_s0 + $0x10] sm:$0xff] }
  0x17   :  { %900 = vmatpush3.msra.mxu1 %v71_v39  ;;  %866 = vmatprep.subr.mxu0 %v54_v40  ;;  %v33_v62 = vld [vmem:[%s1868_s1] sm:$0xff]  ;;  %v160_v4 = vld [vmem:[%s1868_s1 + $0x3f8] sm:$0xff]  ;;  %v127_v8 = vld [vmem:[%s1868_s1 + $0x2f0] sm:$0xff] }
  0x18   :  { %901 = vmatprep.subr.mxu1 %v86_v41  ;;  %867 = vmatpush3.msra.mxu0 %v38_v42  ;;  %v65_v0 = vld [vmem:[%s1868_s1 + $0x100] sm:$0xff]  ;;  %v112_v6 = vld [vmem:[%s1868_s1 + $0x278] sm:$0xff]  ;;  %v159_v9 = vld [vmem:[%s1868_s1 + $0x3f0] sm:$0xff] }
  0x19   :  { %902 = vmatpush3.msra.mxu1 %v70_v43  ;;  %868 = vmatprep.subr.mxu0 %v53_v44  ;;  %v20_v1 = vld [vmem:[%s1869_s0] sm:$0xff]  ;;  %v144_v7 = vld [vmem:[%s1868_s1 + $0x378] sm:$0xff]  ;;  %v111_v10 = vld [vmem:[%s1868_s1 + $0x270] sm:$0xff] }
  0x1a   :  { %903 = vmatprep.subr.mxu1 %v85_v45  ;;  %869 = vmatpush3.msra.mxu0 %v37_v46  ;;  %v143_v11 = vld [vmem:[%s1868_s1 + $0x370] sm:$0xff]  ;;  %v126_v12 = vld [vmem:[%s1868_s1 + $0x2e8] sm:$0xff]  ;;  %v125_v16 = vld [vmem:[%s1868_s1 + $0x2e0] sm:$0xff] }
  0x1b   :  { %904 = vmatpush3.msra.mxu1 %v69_v47  ;;  %870 = vmatprep.subr.mxu0 %v52_v48  ;;  %v158_v13 = vld [vmem:[%s1868_s1 + $0x3e8] sm:$0xff]  ;;  %v157_v17 = vld [vmem:[%s1868_s1 + $0x3e0] sm:$0xff]  ;;  %v124_v20 = vld [vmem:[%s1868_s1 + $0x2d8] sm:$0xff] }
  0x1c   :  { %905 = vmatprep.subr.mxu1 %v84_v49  ;;  %871 = vmatpush3.msra.mxu0 %v36_v50  ;;  %v110_v14 = vld [vmem:[%s1868_s1 + $0x268] sm:$0xff]  ;;  %v109_v18 = vld [vmem:[%s1868_s1 + $0x260] sm:$0xff]  ;;  %v156_v21 = vld [vmem:[%s1868_s1 + $0x3d8] sm:$0xff] }
  0x1d   :  { %906 = vmatpush3.msra.mxu1 %v68_v51  ;;  %872 = vmatprep.subr.mxu0 %v51_v52  ;;  %v142_v15 = vld [vmem:[%s1868_s1 + $0x368] sm:$0xff]  ;;  %v141_v19 = vld [vmem:[%s1868_s1 + $0x360] sm:$0xff]  ;;  %v108_v22 = vld [vmem:[%s1868_s1 + $0x258] sm:$0xff] }
  0x1e   :  { %907 = vmatprep.subr.mxu1 %v83_v53  ;;  %873 = vmatpush3.msra.mxu0 %v35_v54  ;;  %v140_v23 = vld [vmem:[%s1868_s1 + $0x358] sm:$0xff]  ;;  %v123_v24 = vld [vmem:[%s1868_s1 + $0x2d0] sm:$0xff]  ;;  %v122_v28 = vld [vmem:[%s1868_s1 + $0x2c8] sm:$0xff] }
  0x1f   :  { %908 = vmatpush3.msra.mxu1 %v67_v55  ;;  %874 = vmatprep.subr.mxu0 %v50_v56  ;;  %v155_v25 = vld [vmem:[%s1868_s1 + $0x3d0] sm:$0xff]  ;;  %v154_v29 = vld [vmem:[%s1868_s1 + $0x3c8] sm:$0xff]  ;;  %v121_v32 = vld [vmem:[%s1868_s1 + $0x2c0] sm:$0xff] }
  0x20   :  { %909 = vmatprep.subr.mxu1 %v82_v57  ;;  %875 = vmatpush3.msra.mxu0 %v34_v58  ;;  %v107_v26 = vld [vmem:[%s1868_s1 + $0x250] sm:$0xff]  ;;  %v106_v30 = vld [vmem:[%s1868_s1 + $0x248] sm:$0xff]  ;;  %v153_v33 = vld [vmem:[%s1868_s1 + $0x3c0] sm:$0xff] }
  0x21   :  { %910 = vmatpush3.msra.mxu1 %v66_v59  ;;  %876 = vmatprep.subr.mxu0 %v49_v60  ;;  %v139_v27 = vld [vmem:[%s1868_s1 + $0x350] sm:$0xff]  ;;  %v138_v31 = vld [vmem:[%s1868_s1 + $0x348] sm:$0xff]  ;;  %v105_v34 = vld [vmem:[%s1868_s1 + $0x240] sm:$0xff] }
  0x22   :  { %911 = vmatprep.subr.mxu1 %v81_v61  ;;  %877 = vmatpush3.msra.mxu0 %v33_v62  ;;  %v137_v35 = vld [vmem:[%s1868_s1 + $0x340] sm:$0xff]  ;;  %v120_v36 = vld [vmem:[%s1868_s1 + $0x2b8] sm:$0xff]  ;;  %v119_v40 = vld [vmem:[%s1868_s1 + $0x2b0] sm:$0xff] }
  0x23   :  { %304 = vmatprep.mubr.f32.mxu0 %v21_v63  ;;  %912 = vmatpush3.msra.mxu1 %v65_v0  ;;  %v152_v37 = vld [vmem:[%s1868_s1 + $0x3b8] sm:$0xff]  ;;  %v151_v41 = vld [vmem:[%s1868_s1 + $0x3b0] sm:$0xff]  ;;  %v118_v44 = vld [vmem:[%s1868_s1 + $0x2a8] sm:$0xff] }
  0x24   :  { %305 = vmatmul.mubr.f32.vlgmr.msra.gmra.mxu0 %v20_v1  ;;  %374 = vmatprep.mubr.f32.mxu1 %v23_v2  ;;  %v104_v38 = vld [vmem:[%s1868_s1 + $0x238] sm:$0xff]  ;;  %v103_v42 = vld [vmem:[%s1868_s1 + $0x230] sm:$0xff]  ;;  %v150_v45 = vld [vmem:[%s1868_s1 + $0x3a8] sm:$0xff] }
  0x25   :  { %916 = vmatprep.subr.mxu0 %v128_v3  ;;  %951 = vmatprep.subr.mxu1 %v160_v4  ;;  %v136_v39 = vld [vmem:[%s1868_s1 + $0x338] sm:$0xff]  ;;  %v135_v43 = vld [vmem:[%s1868_s1 + $0x330] sm:$0xff]  ;;  %v102_v46 = vld [vmem:[%s1868_s1 + $0x228] sm:$0xff] }
  0x26   :  { %375 = vmatmul.mubr.f32.vlgmr.msra.gmra.mxu1 %v22_v5  ;;  %917 = vmatpush3.msra.mxu0 %v112_v6  ;;  %v134_v47 = vld [vmem:[%s1868_s1 + $0x328] sm:$0xff]  ;;  %v117_v48 = vld [vmem:[%s1868_s1 + $0x2a0] sm:$0xff]  ;;  %v116_v52 = vld [vmem:[%s1868_s1 + $0x298] sm:$0xff] }
  0x27   :  { %952 = vmatpush3.msra.mxu1 %v144_v7  ;;  %918 = vmatprep.subr.mxu0 %v127_v8  ;;  %v149_v49 = vld [vmem:[%s1868_s1 + $0x3a0] sm:$0xff]  ;;  %v148_v53 = vld [vmem:[%s1868_s1 + $0x398] sm:$0xff]  ;;  %v115_v56 = vld [vmem:[%s1868_s1 + $0x290] sm:$0xff] }
  0x28   :  { %953 = vmatprep.subr.mxu1 %v159_v9  ;;  %919 = vmatpush3.msra.mxu0 %v111_v10  ;;  %v101_v50 = vld [vmem:[%s1868_s1 + $0x220] sm:$0xff]  ;;  %v100_v54 = vld [vmem:[%s1868_s1 + $0x218] sm:$0xff]  ;;  %v147_v57 = vld [vmem:[%s1868_s1 + $0x390] sm:$0xff] }
  0x29   :  { %954 = vmatpush3.msra.mxu1 %v143_v11  ;;  %920 = vmatprep.subr.mxu0 %v126_v12  ;;  %v133_v51 = vld [vmem:[%s1868_s1 + $0x320] sm:$0xff]  ;;  %v132_v55 = vld [vmem:[%s1868_s1 + $0x318] sm:$0xff]  ;;  %v99_v58 = vld [vmem:[%s1868_s1 + $0x210] sm:$0xff] }
  0x2a   :  { %955 = vmatprep.subr.mxu1 %v158_v13  ;;  %921 = vmatpush3.msra.mxu0 %v110_v14  ;;  %v131_v59 = vld [vmem:[%s1868_s1 + $0x310] sm:$0xff]  ;;  %v114_v60 = vld [vmem:[%s1868_s1 + $0x288] sm:$0xff]  ;;  %v113_v0 = vld [vmem:[%s1868_s1 + $0x280] sm:$0xff] }
  0x2b   :  { %956 = vmatpush3.msra.mxu1 %v142_v15  ;;  %922 = vmatprep.subr.mxu0 %v125_v16  ;;  %v146_v61 = vld [vmem:[%s1868_s1 + $0x388] sm:$0xff]  ;;  %v145_v1 = vld [vmem:[%s1868_s1 + $0x380] sm:$0xff]  ;;  %v27_v6 = vld [vmem:[%s1869_s0 + $0x38] sm:$0xff] }
  0x2c   :  { %957 = vmatprep.subr.mxu1 %v157_v17  ;;  %923 = vmatpush3.msra.mxu0 %v109_v18  ;;  %v98_v62 = vld [vmem:[%s1868_s1 + $0x208] sm:$0xff]  ;;  %v97_v2 = vld [vmem:[%s1868_s1 + $0x200] sm:$0xff]  ;;  %v192_v7 = vld [vmem:[%s1868_s1 + $0x4f8] sm:$0xff] }
  0x2d   :  { %958 = vmatpush3.msra.mxu1 %v141_v19  ;;  %924 = vmatprep.subr.mxu0 %v124_v20  ;;  %v130_v63 = vld [vmem:[%s1868_s1 + $0x308] sm:$0xff]  ;;  %v129_v4 = vld [vmem:[%s1868_s1 + $0x300] sm:$0xff]  ;;  %v224_v8 = vld [vmem:[%s1868_s1 + $0x5f8] sm:$0xff] }
  0x2e   :  { %959 = vmatprep.subr.mxu1 %v156_v21  ;;  %925 = vmatpush3.msra.mxu0 %v108_v22  ;;  %v25_v3 = vld [vmem:[%s1869_s0 + $0x28] sm:$0xff]  ;;  %v24_v5 = vld [vmem:[%s1869_s0 + $0x20] sm:$0xff]  ;;  %v26_v9 = vld [vmem:[%s1869_s0 + $0x30] sm:$0xff] }
  0x2f   :  { %960 = vmatpush3.msra.mxu1 %v140_v23  ;;  %926 = vmatprep.subr.mxu0 %v123_v24  ;;  %v176_v10 = vld [vmem:[%s1868_s1 + $0x478] sm:$0xff]  ;;  %v191_v12 = vld [vmem:[%s1868_s1 + $0x4f0] sm:$0xff]  ;;  %v190_v16 = vld [vmem:[%s1868_s1 + $0x4e8] sm:$0xff] }
  0x30   :  { %961 = vmatprep.subr.mxu1 %v155_v25  ;;  %927 = vmatpush3.msra.mxu0 %v107_v26  ;;  %v208_v11 = vld [vmem:[%s1868_s1 + $0x578] sm:$0xff]  ;;  %v223_v13 = vld [vmem:[%s1868_s1 + $0x5f0] sm:$0xff]  ;;  %v222_v17 = vld [vmem:[%s1868_s1 + $0x5e8] sm:$0xff] }
  0x31   :  { %962 = vmatpush3.msra.mxu1 %v139_v27  ;;  %928 = vmatprep.subr.mxu0 %v122_v28  ;;  %v175_v14 = vld [vmem:[%s1868_s1 + $0x470] sm:$0xff]  ;;  %v174_v18 = vld [vmem:[%s1868_s1 + $0x468] sm:$0xff]  ;;  %v189_v20 = vld [vmem:[%s1868_s1 + $0x4e0] sm:$0xff] }
  0x32   :  { %963 = vmatprep.subr.mxu1 %v154_v29  ;;  %929 = vmatpush3.msra.mxu0 %v106_v30  ;;  %v207_v15 = vld [vmem:[%s1868_s1 + $0x570] sm:$0xff]  ;;  %v206_v19 = vld [vmem:[%s1868_s1 + $0x568] sm:$0xff]  ;;  %v221_v21 = vld [vmem:[%s1868_s1 + $0x5e0] sm:$0xff] }
  0x33   :  { %964 = vmatpush3.msra.mxu1 %v138_v31  ;;  %930 = vmatprep.subr.mxu0 %v121_v32  ;;  %v173_v22 = vld [vmem:[%s1868_s1 + $0x460] sm:$0xff]  ;;  %v188_v24 = vld [vmem:[%s1868_s1 + $0x4d8] sm:$0xff]  ;;  %v187_v28 = vld [vmem:[%s1868_s1 + $0x4d0] sm:$0xff] }
  0x34   :  { %965 = vmatprep.subr.mxu1 %v153_v33  ;;  %931 = vmatpush3.msra.mxu0 %v105_v34  ;;  %v205_v23 = vld [vmem:[%s1868_s1 + $0x560] sm:$0xff]  ;;  %v220_v25 = vld [vmem:[%s1868_s1 + $0x5d8] sm:$0xff]  ;;  %v219_v29 = vld [vmem:[%s1868_s1 + $0x5d0] sm:$0xff] }
  0x35   :  { %966 = vmatpush3.msra.mxu1 %v137_v35  ;;  %932 = vmatprep.subr.mxu0 %v120_v36  ;;  %v172_v26 = vld [vmem:[%s1868_s1 + $0x458] sm:$0xff]  ;;  %v171_v30 = vld [vmem:[%s1868_s1 + $0x450] sm:$0xff]  ;;  %v186_v32 = vld [vmem:[%s1868_s1 + $0x4c8] sm:$0xff] }
  0x36   :  { %967 = vmatprep.subr.mxu1 %v152_v37  ;;  %933 = vmatpush3.msra.mxu0 %v104_v38  ;;  %v204_v27 = vld [vmem:[%s1868_s1 + $0x558] sm:$0xff]  ;;  %v203_v31 = vld [vmem:[%s1868_s1 + $0x550] sm:$0xff]  ;;  %v218_v33 = vld [vmem:[%s1868_s1 + $0x5c8] sm:$0xff] }
  0x37   :  { %968 = vmatpush3.msra.mxu1 %v136_v39  ;;  %934 = vmatprep.subr.mxu0 %v119_v40  ;;  %v170_v34 = vld [vmem:[%s1868_s1 + $0x448] sm:$0xff]  ;;  %v185_v36 = vld [vmem:[%s1868_s1 + $0x4c0] sm:$0xff]  ;;  %v184_v40 = vld [vmem:[%s1868_s1 + $0x4b8] sm:$0xff] }
  0x38   :  { %969 = vmatprep.subr.mxu1 %v151_v41  ;;  %935 = vmatpush3.msra.mxu0 %v103_v42  ;;  %v202_v35 = vld [vmem:[%s1868_s1 + $0x548] sm:$0xff]  ;;  %v217_v37 = vld [vmem:[%s1868_s1 + $0x5c0] sm:$0xff]  ;;  %v216_v41 = vld [vmem:[%s1868_s1 + $0x5b8] sm:$0xff] }
  0x39   :  { %970 = vmatpush3.msra.mxu1 %v135_v43  ;;  %936 = vmatprep.subr.mxu0 %v118_v44  ;;  %v169_v38 = vld [vmem:[%s1868_s1 + $0x440] sm:$0xff]  ;;  %v168_v42 = vld [vmem:[%s1868_s1 + $0x438] sm:$0xff]  ;;  %v183_v44 = vld [vmem:[%s1868_s1 + $0x4b0] sm:$0xff] }
  0x3a   :  { %971 = vmatprep.subr.mxu1 %v150_v45  ;;  %937 = vmatpush3.msra.mxu0 %v102_v46  ;;  %v201_v39 = vld [vmem:[%s1868_s1 + $0x540] sm:$0xff]  ;;  %v200_v43 = vld [vmem:[%s1868_s1 + $0x538] sm:$0xff]  ;;  %v215_v45 = vld [vmem:[%s1868_s1 + $0x5b0] sm:$0xff] }
  0x3b   :  { %972 = vmatpush3.msra.mxu1 %v134_v47  ;;  %938 = vmatprep.subr.mxu0 %v117_v48  ;;  %v167_v46 = vld [vmem:[%s1868_s1 + $0x430] sm:$0xff]  ;;  %v182_v48 = vld [vmem:[%s1868_s1 + $0x4a8] sm:$0xff] }
  0x3c   :  { %973 = vmatprep.subr.mxu1 %v149_v49  ;;  %939 = vmatpush3.msra.mxu0 %v101_v50  ;;  %v199_v47 = vld [vmem:[%s1868_s1 + $0x530] sm:$0xff]  ;;  %v214_v49 = vld [vmem:[%s1868_s1 + $0x5a8] sm:$0xff] }
  0x3d   :  { %974 = vmatpush3.msra.mxu1 %v133_v51  ;;  %940 = vmatprep.subr.mxu0 %v116_v52  ;;  %v166_v50 = vld [vmem:[%s1868_s1 + $0x428] sm:$0xff]  ;;  %v181_v52 = vld [vmem:[%s1868_s1 + $0x4a0] sm:$0xff] }
  0x3e   :  { %975 = vmatprep.subr.mxu1 %v148_v53  ;;  %941 = vmatpush3.msra.mxu0 %v100_v54  ;;  %v198_v51 = vld [vmem:[%s1868_s1 + $0x528] sm:$0xff]  ;;  %v213_v53 = vld [vmem:[%s1868_s1 + $0x5a0] sm:$0xff] }
  0x3f   :  { %976 = vmatpush3.msra.mxu1 %v132_v55  ;;  %942 = vmatprep.subr.mxu0 %v115_v56  ;;  %v165_v54 = vld [vmem:[%s1868_s1 + $0x420] sm:$0xff]  ;;  %v180_v56 = vld [vmem:[%s1868_s1 + $0x498] sm:$0xff] }
  0x40   :  { %977 = vmatprep.subr.mxu1 %v147_v57  ;;  %943 = vmatpush3.msra.mxu0 %v99_v58  ;;  %v197_v55 = vld [vmem:[%s1868_s1 + $0x520] sm:$0xff]  ;;  %v212_v57 = vld [vmem:[%s1868_s1 + $0x598] sm:$0xff] }
  0x41   :  { %978 = vmatpush3.msra.mxu1 %v131_v59  ;;  %944 = vmatprep.subr.mxu0 %v114_v60  ;;  %v164_v58 = vld [vmem:[%s1868_s1 + $0x418] sm:$0xff]  ;;  %v179_v60 = vld [vmem:[%s1868_s1 + $0x490] sm:$0xff] }
  0x42   :  { %979 = vmatprep.subr.mxu1 %v146_v61  ;;  %945 = vmatpush3.msra.mxu0 %v98_v62  ;;  %v196_v59 = vld [vmem:[%s1868_s1 + $0x518] sm:$0xff]  ;;  %v211_v61 = vld [vmem:[%s1868_s1 + $0x590] sm:$0xff] }
  0x43   :  { %980 = vmatpush3.msra.mxu1 %v130_v63  ;;  %946 = vmatprep.subr.mxu0 %v113_v0  ;;  %v163_v62 = vld [vmem:[%s1868_s1 + $0x410] sm:$0xff]  ;;  %v178_v0 = vld [vmem:[%s1868_s1 + $0x488] sm:$0xff] }
  0x44   :  { %981 = vmatprep.subr.mxu1 %v145_v1  ;;  %947 = vmatpush3.msra.mxu0 %v97_v2  ;;  %v195_v63 = vld [vmem:[%s1868_s1 + $0x510] sm:$0xff]  ;;  %v210_v1 = vld [vmem:[%s1868_s1 + $0x588] sm:$0xff] }
  0x45   :  { %444 = vmatprep.mubr.f32.mxu0 %v25_v3  ;;  %982 = vmatpush3.msra.mxu1 %v129_v4  ;;  %v162_v2 = vld [vmem:[%s1868_s1 + $0x408] sm:$0xff]  ;;  %v177_v4 = vld [vmem:[%s1868_s1 + $0x480] sm:$0xff] }
  0x46   :  { %445 = vmatmul.mubr.f32.vlgmr.msra.gmra.mxu0 %v24_v5  ;;  %514 = vmatprep.mubr.f32.mxu1 %v27_v6  ;;  %v194_v3 = vld [vmem:[%s1868_s1 + $0x508] sm:$0xff]  ;;  %v209_v5 = vld [vmem:[%s1868_s1 + $0x580] sm:$0xff] }
  0x47   :  { %986 = vmatprep.subr.mxu0 %v192_v7  ;;  %1021 = vmatprep.subr.mxu1 %v224_v8  ;;  %v161_v6 = vld [vmem:[%s1868_s1 + $0x400] sm:$0xff]  ;;  %v29_v7 = vld [vmem:[%s1869_s0 + $0x48] sm:$0xff] }
  0x48   :  { %515 = vmatmul.mubr.f32.vlgmr.msra.gmra.mxu1 %v26_v9  ;;  %987 = vmatpush3.msra.mxu0 %v176_v10  ;;  %v193_v8 = vld [vmem:[%s1868_s1 + $0x500] sm:$0xff]  ;;  %v31_v9 = vld [vmem:[%s1869_s0 + $0x58] sm:$0xff] }
  0x49   :  { %1022 = vmatpush3.msra.mxu1 %v208_v11  ;;  %988 = vmatprep.subr.mxu0 %v191_v12  ;;  %v28_v10 = vld [vmem:[%s1869_s0 + $0x40] sm:$0xff]  ;;  %v30_v11 = vld [vmem:[%s1869_s0 + $0x50] sm:$0xff]  ;;  %v228_v12 = vld [vmem:[%s1868_s1 + $0x618] sm:$0xff] }
  0x4a   :  { %1023 = vmatprep.subr.mxu1 %v223_v13  ;;  %989 = vmatpush3.msra.mxu0 %v175_v14  ;;  %v1130_v13 = vmov 0.0   ;;  %v227_v14 = vld [vmem:[%s1868_s1 + $0x610] sm:$0xff] }
  0x4b   :  { %1024 = vmatpush3.msra.mxu1 %v207_v15  ;;  %990 = vmatprep.subr.mxu0 %v190_v16  ;;  %v226_v15 = vld [vmem:[%s1868_s1 + $0x608] sm:$0xff]  ;;  %v225_v16 = vld [vmem:[%s1868_s1 + $0x600] sm:$0xff] }
  0x4c   :  { %1025 = vmatprep.subr.mxu1 %v222_v17  ;;  %991 = vmatpush3.msra.mxu0 %v174_v18  ;;  %v32_v17 = vld [vmem:[%s1869_s0 + $0x60] sm:$0xff]  ;;  %v746_v18 = vld [vmem:[%s1870_s3 + $0x78] sm:$0xff] }
  0x4d   :  { %1026 = vmatpush3.msra.mxu1 %v206_v19  ;;  %992 = vmatprep.subr.mxu0 %v189_v20  ;;  %v745_v19 = vld [vmem:[%s1870_s3 + $0x70] sm:$0xff]  ;;  %v744_v20 = vld [vmem:[%s1870_s3 + $0x68] sm:$0xff] }
  0x4e   :  { %1027 = vmatprep.subr.mxu1 %v221_v21  ;;  %993 = vmatpush3.msra.mxu0 %v173_v22  ;;  %v743_v21 = vld [vmem:[%s1870_s3 + $0x60] sm:$0xff]  ;;  %v742_v22 = vld [vmem:[%s1870_s3 + $0x58] sm:$0xff] }
  0x4f   :  { %1028 = vmatpush3.msra.mxu1 %v205_v23  ;;  %994 = vmatprep.subr.mxu0 %v188_v24  ;;  %v741_v23 = vld [vmem:[%s1870_s3 + $0x50] sm:$0xff]  ;;  %v740_v24 = vld [vmem:[%s1870_s3 + $0x48] sm:$0xff] }
  0x50   :  { %1029 = vmatprep.subr.mxu1 %v220_v25  ;;  %995 = vmatpush3.msra.mxu0 %v172_v26  ;;  %v739_v25 = vld [vmem:[%s1870_s3 + $0x40] sm:$0xff]  ;;  %v738_v26 = vld [vmem:[%s1870_s3 + $0x38] sm:$0xff] }
  0x51   :  { %1030 = vmatpush3.msra.mxu1 %v204_v27  ;;  %996 = vmatprep.subr.mxu0 %v187_v28  ;;  %v737_v27 = vld [vmem:[%s1870_s3 + $0x30] sm:$0xff]  ;;  %v736_v28 = vld [vmem:[%s1870_s3 + $0x28] sm:$0xff] }
  0x52   :  { %1031 = vmatprep.subr.mxu1 %v219_v29  ;;  %997 = vmatpush3.msra.mxu0 %v171_v30  ;;  %v735_v29 = vld [vmem:[%s1870_s3 + $0x20] sm:$0xff]  ;;  %v734_v30 = vld [vmem:[%s1870_s3 + $0x18] sm:$0xff] }
  0x53   :  { %1032 = vmatpush3.msra.mxu1 %v203_v31  ;;  %998 = vmatprep.subr.mxu0 %v186_v32  ;;  %v733_v31 = vld [vmem:[%s1870_s3 + $0x10] sm:$0xff]  ;;  %v732_v32 = vld [vmem:[%s1870_s3 + $0x8] sm:$0xff] }
  0x54   :  { %1033 = vmatprep.subr.mxu1 %v218_v33  ;;  %999 = vmatpush3.msra.mxu0 %v170_v34  ;;  %v731_v33 = vld [vmem:[%s1870_s3] sm:$0xff] }
  0x55   :  { %1034 = vmatpush3.msra.mxu1 %v202_v35  ;;  %1000 = vmatprep.subr.mxu0 %v185_v36 }
  0x56   :  { %1035 = vmatprep.subr.mxu1 %v217_v37  ;;  %1001 = vmatpush3.msra.mxu0 %v169_v38 }
  0x57   :  { %1036 = vmatpush3.msra.mxu1 %v201_v39  ;;  %1002 = vmatprep.subr.mxu0 %v184_v40  ;;  %v843_v39 = vld [vmem:[%s1871_s2] ss:$0 sm:$0xff] }
  0x58   :  { %1037 = vmatprep.subr.mxu1 %v216_v41  ;;  %1003 = vmatpush3.msra.mxu0 %v168_v42 }
  0x59   :  { %1038 = vmatpush3.msra.mxu1 %v200_v43  ;;  %1004 = vmatprep.subr.mxu0 %v183_v44 }
  0x5a   :  { %1039 = vmatprep.subr.mxu1 %v215_v45  ;;  %1005 = vmatpush3.msra.mxu0 %v167_v46 }
  0x5b   :  { %1040 = vmatpush3.msra.mxu1 %v199_v47  ;;  %1006 = vmatprep.subr.mxu0 %v182_v48 }
  0x5c   :  { %1041 = vmatprep.subr.mxu1 %v214_v49  ;;  %1007 = vmatpush3.msra.mxu0 %v166_v50 }
  0x5d   :  { %1042 = vmatpush3.msra.mxu1 %v198_v51  ;;  %1008 = vmatprep.subr.mxu0 %v181_v52 }
  0x5e   :  { %1043 = vmatprep.subr.mxu1 %v213_v53  ;;  %1009 = vmatpush3.msra.mxu0 %v165_v54 }
  0x5f   :  { %1044 = vmatpush3.msra.mxu1 %v197_v55  ;;  %1010 = vmatprep.subr.mxu0 %v180_v56 }
  0x60   :  { %1045 = vmatprep.subr.mxu1 %v212_v57  ;;  %1011 = vmatpush3.msra.mxu0 %v164_v58 }
  0x61   :  { %1046 = vmatpush3.msra.mxu1 %v196_v59  ;;  %1012 = vmatprep.subr.mxu0 %v179_v60 }
  0x62   :  { %1047 = vmatprep.subr.mxu1 %v211_v61  ;;  %1013 = vmatpush3.msra.mxu0 %v163_v62 }
  0x63   :  { %1048 = vmatpush3.msra.mxu1 %v195_v63  ;;  %1014 = vmatprep.subr.mxu0 %v178_v0  ;;  %v825_v63 = vlaneseq  ;;  %v845_v0 = vld [vmem:[%s1872_s4] ss:$0 sm:$0xff] }
  0x64   :  { %1049 = vmatprep.subr.mxu1 %v210_v1  ;;  %1015 = vmatpush3.msra.mxu0 %v162_v2 }
  0x65   :  { %1050 = vmatpush3.msra.mxu1 %v194_v3  ;;  %1016 = vmatprep.subr.mxu0 %v177_v4  ;;  %v826_v1 = vand.u32 127, %v825_v63 }
  0x66   :  { %1051 = vmatprep.subr.mxu1 %v209_v5  ;;  %1017 = vmatpush3.msra.mxu0 %v161_v6 }
  0x67   :  { %584 = vmatprep.mubr.f32.mxu0 %v29_v7  ;;  %1052 = vmatpush3.msra.mxu1 %v193_v8  ;;  %vm827_vm2 = vcmp.lt.s32.totalorder %v826_v1, 10 }
  0x68   :  { %654 = vmatprep.mubr.f32.mxu1 %v31_v9  ;;  %585 = vmatmul.mubr.f32.vlgmr.msra.gmra.mxu0 %v28_v10 }
  0x69   :  { %655 = vmatmul.mubr.f32.vlgmr.msra.gmra.mxu1 %v30_v11  ;;  %1078 = vmatprep.subr.mxu0 %v1130_v13 }
  0x6a   :  { %1086 = vmatprep.mubr.msk.f32.mxu0 %vm1131_vm0, %v1130_v13  ;;  %1079 = vmatpush3.msra.mxu0 %v228_v12 }
  0x6b   :  { %1089 = vmatprep.subr.mxu1 %v1130_v13  ;;  %1080 = vmatprep.subr.mxu0 %v1130_v13 }
  0x6c   :  { %1121 = vmatprep.mubr.msk.f32.mxu1 %vm1131_vm0, %v1130_v13  ;;  %1081 = vmatpush3.msra.mxu0 %v227_v14 }
  0x6d   :  { %1082 = vmatprep.subr.mxu0 %v1130_v13  ;;  %1090 = vmatpush3.msra.mxu1 %v746_v18 }
  0x6e   :  { %1083 = vmatpush3.msra.mxu0 %v226_v15  ;;  %1091 = vmatprep.subr.mxu1 %v1130_v13 }
  0x6f   :  { %1084 = vmatprep.subr.mxu0 %v1130_v13  ;;  %1092 = vmatpush3.msra.mxu1 %v745_v19 }
  0x70   :  { %1085 = vmatpush3.msra.mxu0 %v225_v16  ;;  %1093 = vmatprep.subr.mxu1 %v1130_v13 }
  0x71   :  { %1087 = vmatmul.mubr.msk.f32.vlgmr.msra.gmra.mxu0 %vm236_vm1, %v32_v17  ;;  %1094 = vmatpush3.msra.mxu1 %v744_v20 }
  0x72   :  { %1095 = vmatprep.subr.mxu1 %v1130_v13 }
  0x73   :  { %1096 = vmatpush3.msra.mxu1 %v743_v21 }
  0x74   :  { %1097 = vmatprep.subr.mxu1 %v1130_v13 }
  0x75   :  { %1098 = vmatpush3.msra.mxu1 %v742_v22 }
  0x76   :  { %1099 = vmatprep.subr.mxu1 %v1130_v13 }
  0x77   :  { %1100 = vmatpush3.msra.mxu1 %v741_v23 }
  0x78   :  { %1101 = vmatprep.subr.mxu1 %v1130_v13 }
  0x79   :  { %1102 = vmatpush3.msra.mxu1 %v740_v24 }
  0x7a   :  { %1103 = vmatprep.subr.mxu1 %v1130_v13 }
  0x7b   :  { %1104 = vmatpush3.msra.mxu1 %v739_v25 }
  0x7c   :  { %1105 = vmatprep.subr.mxu1 %v1130_v13 }
  0x7d   :  { %1106 = vmatpush3.msra.mxu1 %v738_v26 }
  0x7e   :  { %1107 = vmatprep.subr.mxu1 %v1130_v13 }
  0x7f   :  { %1108 = vmatpush3.msra.mxu1 %v737_v27 }
  0x80   :  { %1109 = vmatprep.subr.mxu1 %v1130_v13 }
  0x81   :  { %1110 = vmatpush3.msra.mxu1 %v736_v28 }
  0x82   :  { %1111 = vmatprep.subr.mxu1 %v1130_v13 }
  0x83   :  { %1112 = vmatpush3.msra.mxu1 %v735_v29 }
  0x84   :  { %1113 = vmatprep.subr.mxu1 %v1130_v13 }
  0x85   :  { %1114 = vmatpush3.msra.mxu1 %v734_v30 }
  0x86   :  { %1115 = vmatprep.subr.mxu1 %v1130_v13 }
  0x87   :  { %1116 = vmatpush3.msra.mxu1 %v733_v31 }
  0x88   :  { %1117 = vmatprep.subr.mxu1 %v1130_v13 }
  0x89   :  { %1118 = vmatpush3.msra.mxu1 %v732_v32 }
  0x8a   :  { %1119 = vmatprep.subr.mxu1 %v1130_v13 }
  0x8b   :  { %1120 = vmatpush3.msra.mxu1 %v731_v33 }
  0xe4   :  { %v878_v34 = vpop.f32.mrf.mxu0 }
  0xe6   :  { %v913_v35 = vpop.f32.mrf.mxu1  ;;  %v879_v36 = vpop.f32.mrf.mxu0 }
  0xe7   :  { %v880_v38 = vadd.f32 %v879_v36, %v878_v34 }
  0xe8   :  { %v914_v40 = vpop.f32.mrf.mxu1 }
  0xe9   :  { %v307_v43 = vadd.f32 %v880_v38, %v843_v39  ;;  %v915_v44 = vadd.f32 %v914_v40, %v913_v35 }
  0xeb   :  { %v377_v47 = vadd.f32 %v915_v44, %v307_v43 }
 0x106   :  { %v948_v37 = vpop.f32.mrf.mxu0 }
 0x108   :  { %v983_v41 = vpop.f32.mrf.mxu1  ;;  %v949_v42 = vpop.f32.mrf.mxu0 }
 0x109   :  { %v950_v45 = vadd.f32 %v949_v42, %v948_v37 }
 0x10a   :  { %v984_v46 = vpop.f32.mrf.mxu1 }
 0x10b   :  { %v447_v48 = vadd.f32 %v950_v45, %v377_v47  ;;  %v985_v49 = vadd.f32 %v984_v46, %v983_v41 }
 0x10d   :  { %v517_v54 = vadd.f32 %v985_v49, %v447_v48 }
 0x128   :  { %v1018_v50 = vpop.f32.mrf.mxu0 }
 0x129   :  { %v1053_v51 = vpop.f32.mrf.mxu1 }
 0x12a   :  { %v1019_v52 = vpop.f32.mrf.mxu0 }
 0x12b   :  { %v1054_v53 = vpop.f32.mrf.mxu1  ;;  %v1020_v55 = vadd.f32 %v1019_v52, %v1018_v50 }
 0x12c   :  { %v1055_v57 = vadd.f32 %v1054_v53, %v1053_v51 }
 0x12d   :  { %v587_v56 = vadd.f32 %v1020_v55, %v517_v54 }
 0x12f   :  { %v657_v58 = vadd.f32 %v1055_v57, %v587_v56 }
 0x131   :  { %v726_v59 = vpop.f32.mrf.mxu0 }
 0x132   :  { %v727_v60 = vadd.f32 %v726_v59, %v657_v58 }
 0x133   :  { %v1088_v61 = vpop.f32.mrf.mxu0 }
 0x134   :  { %v730_v62 = vmax.f32 %v727_v60, 0.0 }
 0x136   :  { %1122 = vmatmul.mubr.f32.vlgmr.msra.gmra.mxu1 %v730_v62 }
 0x1f6   :  { %v820_v2 = vpop.f32.mrf.mxu1 }
 0x1f7   :  { %v821_v3 = vadd.f32 %v845_v0, %v820_v2 }
 0x1f8   :  { %v1123_v4 = vpop.f32.mrf.mxu1 }
 0x1f9   :  { %v824_v5 = vmax.f32 %v821_v3, 0.0 }
 0x1fb   :  { %v828_v6 = vsel %vm827_vm2, %v824_v5, -1e+30 }
 0x1fc   :  { %829 = vmax.xlane.f32.xlu0 %v828_v6 }
 0x285   :  { %v830_v7 = vpop.xlane.xlu0 %829 }
 0x286   :  { %v831_v8 = vsub.f32 %v828_v6, %v830_v7 }
 0x288   :  { %v832_v9 = vmul.f32 1.442695, %v831_v8 }
 0x28a   :  { %1126 = vpow2.f32 %v832_v9 }
 0x297   :  { %v1127_v10 = vpop.eup %1126 }
 0x298   :  { %834 = vadd.xlane.f32.xlu0 %v1127_v10 }
 0x321   :  { %v835_v11 = vpop.xlane.xlu0 %834 }
 0x322   :  { %1128 = vrcp.f32 %v835_v11 }
 0x32f   :  { %v1129_v12 = vpop.eup %1128 }
 0x330   :  { %v837_v13 = vmul.f32 %v1129_v12, %v1127_v10 }
 0x332   :  { %838 = vst [vmem:[%s1873_s5] sm:$0xff] %v837_v13 }

</bundles_post_ra>
